<compile_context>
chip_gen: v5e
topology: v5e:2x2
jax: 0.10.0
libtpu: 0.0.40
codegen_flags: <defaults>
</compile_context>

<pallas_src>
import functools

import jax
import jax.numpy as jnp
from jax import lax
from jax.experimental import pallas as pl
from jax.experimental.pallas import tpu as pltpu

LN_EPS = 1e-5                      # PyTorch nn.LayerNorm default
_VMEM_LIMIT = 48 * 1024 * 1024     # explicit; leaves headroom on v7x (64 MiB phys)
_ROW_TILE_TARGET = 512             # row-block target for the matmul kernels


# -------------------- small helpers --------------------
def _round_up(x, m):
    return (x + m - 1) // m * m


def _row_tile(n, target=_ROW_TILE_TARGET):
    tm = min(target, _round_up(n, 8))
    return tm, _round_up(n, tm)


def _pad_rows(a, n_pad):
    n = a.shape[0]
    if n_pad == n:
        return a
    return jnp.pad(a, [(0, n_pad - n)] + [(0, 0)] * (a.ndim - 1))


def _full_spec(a):
    nd = a.ndim
    return pl.BlockSpec(a.shape, lambda *_: (0,) * nd)


def _pick_time_chunk(t, batch, hidden):
    # largest time chunk that divides T and keeps double-buffered chunks small
    def chunk_bytes(tt):
        gx = 2 * 2 * tt * batch * 4 * hidden * 4        # two f32 gate blocks, 2 bufs
        out = 2 * 2 * tt * batch * hidden * 2           # two bf16 output blocks, 2 bufs
        return gx + out
    for tt in (256, 128, 64, 32, 16, 8):
        if t % tt == 0 and chunk_bytes(tt) <= 24 * 1024 * 1024:
            return t // tt, tt
    return 1, t


# ---- Kernel A: Linear + LayerNorm + ReLU + layer-0 LSTM gate precompute ----
def _proj_ln_relu_gx_kernel(x_ref, w_ref, b_ref, g_ref, beta_ref,
                            wih_ref, bih_ref, xp_ref, gx_ref):
    y = jnp.dot(x_ref[...].astype(jnp.bfloat16), w_ref[...],
                preferred_element_type=jnp.float32) + b_ref[...]
    mean = jnp.mean(y, axis=-1, keepdims=True)
    var = jnp.mean((y - mean) ** 2, axis=-1, keepdims=True)     # biased, as nn.LayerNorm
    ln = (y - mean) * lax.rsqrt(var + LN_EPS) * g_ref[...] + beta_ref[...]
    xp = jnp.maximum(ln, 0.0)
    xp_bf = xp.astype(jnp.bfloat16)
    xp_ref[...] = xp_bf
    # hoisted LSTM layer-0 input projection, both directions + bias fused
    gx_ref[...] = jnp.dot(xp_bf, wih_ref[...],
                          preferred_element_type=jnp.float32) + bih_ref[...]


def proj_ln_relu_gx(x2d, p):
    n, d_in = x2d.shape
    H = p["hidden_dim"]
    lp0 = p["lstm"][0]
    tm, n_pad = _row_tile(n)
    xp, gx = pl.pallas_call(
        _proj_ln_relu_gx_kernel,
        out_shape=(jax.ShapeDtypeStruct((n_pad, H), jnp.bfloat16),
                   jax.ShapeDtypeStruct((n_pad, 8 * H), jnp.float32)),
        grid_spec=pltpu.PrefetchScalarGridSpec(
            num_scalar_prefetch=0, grid=(n_pad // tm,),
            in_specs=[pl.BlockSpec((tm, d_in), lambda i: (i, 0)),
                      _full_spec(p["w_in"]), _full_spec(p["b_in"]),
                      _full_spec(p["ln_g"]), _full_spec(p["ln_b"]),
                      _full_spec(lp0["wih_cat"]), _full_spec(lp0["b_cat"])],
            out_specs=(pl.BlockSpec((tm, H), lambda i: (i, 0)),
                       pl.BlockSpec((tm, 8 * H), lambda i: (i, 0)))),
        compiler_params=pltpu.CompilerParams(
            dimension_semantics=("parallel",), vmem_limit_bytes=_VMEM_LIMIT),
    )(_pad_rows(x2d, n_pad), p["w_in"], p["b_in"], p["ln_g"], p["ln_b"],
      lp0["wih_cat"], lp0["b_cat"])
    return xp[:n], gx[:n]


# -------------------- Kernel B: gate precompute for layers >= 1 --------------------
def _gx_pair_kernel(hf_ref, hb_ref, wt_ref, wb_ref, b_ref, gx_ref):
    gx_ref[...] = (
        jnp.dot(hf_ref[...], wt_ref[...], preferred_element_type=jnp.float32)
        + jnp.dot(hb_ref[...], wb_ref[...], preferred_element_type=jnp.float32)
        + b_ref[...])


def gx_pair(hf2d, hb2d, lp):
    n, H = hf2d.shape
    tm, n_pad = _row_tile(n)
    gx = pl.pallas_call(
        _gx_pair_kernel,
        out_shape=jax.ShapeDtypeStruct((n_pad, 8 * H), jnp.float32),
        grid_spec=pltpu.PrefetchScalarGridSpec(
            num_scalar_prefetch=0, grid=(n_pad // tm,),
            in_specs=[pl.BlockSpec((tm, H), lambda i: (i, 0)),
                      pl.BlockSpec((tm, H), lambda i: (i, 0)),
                      _full_spec(lp["wih_top"]), _full_spec(lp["wih_bot"]),
                      _full_spec(lp["b_cat"])],
            out_specs=pl.BlockSpec((tm, 8 * H), lambda i: (i, 0))),
        compiler_params=pltpu.CompilerParams(
            dimension_semantics=("parallel",), vmem_limit_bytes=_VMEM_LIMIT),
    )(_pad_rows(hf2d, n_pad), _pad_rows(hb2d, n_pad),
      lp["wih_top"], lp["wih_bot"], lp["b_cat"])
    return gx[:n]


# -------------------- Kernel C: fused bidirectional LSTM recurrence --------------------
# gx: (T, B, 8H) precomputed x-gates [fwd 4H | bwd 4H]; grid over time chunks.
# Forward consumes chunk i, backward consumes chunk nc-1-i (reverse order), so both
# recurrences advance together; h/c carries live in VMEM scratch across chunks.
def _bilstm_kernel(gxf_ref, gxb_ref, whf_ref, whb_ref, of_ref, ob_ref,
                   hf_scr, hb_scr, cf_scr, cb_scr, *, hidden):
    H = hidden
    tt = gxf_ref.shape[0]

    @pl.when(pl.program_id(0) == 0)
    def _():
        hf_scr[...] = jnp.zeros_like(hf_scr)
        hb_scr[...] = jnp.zeros_like(hb_scr)
        cf_scr[...] = jnp.zeros_like(cf_scr)
        cb_scr[...] = jnp.zeros_like(cb_scr)

    whf = whf_ref[...]                      # (H, 4H) bf16, resident for the chunk
    whb = whb_ref[...]

    def cell(gates, c):                     # PyTorch gate order i, f, g, o
        i_g = jax.nn.sigmoid(gates[:, 0 * H:1 * H])
        f_g = jax.nn.sigmoid(gates[:, 1 * H:2 * H])
        g_g = jnp.tanh(gates[:, 2 * H:3 * H])
        o_g = jax.nn.sigmoid(gates[:, 3 * H:4 * H])
        c_new = f_g * c + i_g * g_g
        return o_g * jnp.tanh(c_new), c_new

    def step(s, carry):
        h_f, h_b, c_f, c_b = carry          # each (B, H) f32
        sb = tt - 1 - s
        gates_f = gxf_ref[s] + jnp.dot(h_f.astype(jnp.bfloat16), whf,
                                       preferred_element_type=jnp.float32)
        gates_b = gxb_ref[sb] + jnp.dot(h_b.astype(jnp.bfloat16), whb,
                                        preferred_element_type=jnp.float32)
        h_f, c_f = cell(gates_f, c_f)
        h_b, c_b = cell(gates_b, c_b)
        of_ref[s] = h_f.astype(of_ref.dtype)
        ob_ref[sb] = h_b.astype(ob_ref.dtype)   # already in un-flipped time order
        return h_f, h_b, c_f, c_b

    h_f, h_b, c_f, c_b = lax.fori_loop(
        0, tt, step, (hf_scr[...], hb_scr[...], cf_scr[...], cb_scr[...]))
    hf_scr[...] = h_f
    hb_scr[...] = h_b
    cf_scr[...] = c_f
    cb_scr[...] = c_b


def bilstm_layer(gx_tb, whh_f, whh_b, hidden, batch):
    T, B, _ = gx_tb.shape
    H = hidden
    nc, tt = _pick_time_chunk(T, B, H)
    out_f, out_b = pl.pallas_call(
        functools.partial(_bilstm_kernel, hidden=H),
        out_shape=(jax.ShapeDtypeStruct((T, B, H), jnp.bfloat16),
                   jax.ShapeDtypeStruct((T, B, H), jnp.bfloat16)),
        grid_spec=pltpu.PrefetchScalarGridSpec(
            num_scalar_prefetch=0, grid=(nc,),
            in_specs=[
                # forward: chunk i, gate columns [0, 4H)
                pl.BlockSpec((tt, B, 4 * H), lambda i: (i, 0, 0)),
                # backward: chunk nc-1-i, gate columns [4H, 8H)
                pl.BlockSpec((tt, B, 4 * H), lambda i: (nc - 1 - i, 0, 1)),
                _full_spec(whh_f), _full_spec(whh_b),
            ],
            out_specs=(
                pl.BlockSpec((tt, B, H), lambda i: (i, 0, 0)),
                pl.BlockSpec((tt, B, H), lambda i: (nc - 1 - i, 0, 0)),
            ),
            scratch_shapes=[pltpu.VMEM((B, H), jnp.float32)] * 4),
        compiler_params=pltpu.CompilerParams(
            dimension_semantics=("arbitrary",), vmem_limit_bytes=_VMEM_LIMIT),
    )(gx_tb, gx_tb, whh_f, whh_b)
    return out_f, out_b


# ------------- Kernel D: output head (residual folded, GLUs, padded output) -------------
def _head_kernel(xp_ref, xf_ref, xb_ref, w1s_ref, w1f_ref, w1b_ref, b1_ref,
                 w2_ref, b2_ref, w3_ref, b3_ref, o_ref):
    # tile(xp,(1,2)) + [h_f | h_b] folded into the first linear (no concat temp)
    h1 = (jnp.dot(xp_ref[...], w1s_ref[...], preferred_element_type=jnp.float32)
          + jnp.dot(xf_ref[...], w1f_ref[...], preferred_element_type=jnp.float32)
          + jnp.dot(xb_ref[...], w1b_ref[...], preferred_element_type=jnp.float32)
          + b1_ref[...])
    d1 = h1.shape[-1] // 2
    h1 = h1[:, :d1] * jax.nn.sigmoid(h1[:, d1:])                          # GLU 1
    h2 = jnp.dot(h1.astype(jnp.bfloat16), w2_ref[...],
                 preferred_element_type=jnp.float32) + b2_ref[...]
    d2 = h2.shape[-1] // 2
    h2 = h2[:, :d2] * jax.nn.sigmoid(h2[:, d2:])                          # GLU 2
    o_ref[...] = jnp.dot(h2.astype(jnp.bfloat16), w3_ref[...],
                         preferred_element_type=jnp.float32) + b3_ref[...]


def output_head(xp2d, xf2d, xb2d, p):
    n, H = xp2d.shape
    out_pad = p["out_pad"]
    tm, n_pad = _row_tile(n)
    out = pl.pallas_call(
        _head_kernel,
        out_shape=jax.ShapeDtypeStruct((n_pad, out_pad), jnp.float32),
        grid_spec=pltpu.PrefetchScalarGridSpec(
            num_scalar_prefetch=0, grid=(n_pad // tm,),
            in_specs=[pl.BlockSpec((tm, H), lambda i: (i, 0)),
                      pl.BlockSpec((tm, H), lambda i: (i, 0)),
                      pl.BlockSpec((tm, H), lambda i: (i, 0)),
                      _full_spec(p["w1s"]), _full_spec(p["w1f"]),
                      _full_spec(p["w1b"]), _full_spec(p["b1"]),
                      _full_spec(p["w2"]), _full_spec(p["b2"]),
                      _full_spec(p["w3"]), _full_spec(p["b3"])],
            out_specs=pl.BlockSpec((tm, out_pad), lambda i: (i, 0))),
        compiler_params=pltpu.CompilerParams(
            dimension_semantics=("parallel",), vmem_limit_bytes=_VMEM_LIMIT),
    )(_pad_rows(xp2d, n_pad), _pad_rows(xf2d, n_pad), _pad_rows(xb2d, n_pad),
      p["w1s"], p["w1f"], p["w1b"], p["b1"], p["w2"], p["b2"], p["w3"], p["b3"])
    return out[:n]


# -------------------- Parameter init (deterministic, synthetic, pre-fused) --------------
def init_params(key, input_dim, hidden_dim, ema_dim, num_layers=3):
    H = hidden_dim
    kit = iter(jax.random.split(key, 128))

    def mat(shape, scale=0.1):
        return scale * jax.random.normal(next(kit), shape, jnp.float32)

    p = {"hidden_dim": H, "ema_dim": ema_dim}
    p["w_in"] = mat((input_dim, H)).astype(jnp.bfloat16)
    p["b_in"] = mat((1, H), 0.01)
    p["ln_g"] = jnp.ones((1, H), jnp.float32)
    p["ln_b"] = jnp.zeros((1, H), jnp.float32)

    p["lstm"] = []
    for layer in range(num_layers):
        d_in = H if layer == 0 else 2 * H
        wih_f, wih_b = mat((d_in, 4 * H)), mat((d_in, 4 * H))
        whh_f, whh_b = mat((H, 4 * H)), mat((H, 4 * H))
        b_f, b_b = mat((1, 4 * H), 0.01), mat((1, 4 * H), 0.01)   # b_ih + b_hh combined
        lp = {"whh_f": whh_f.astype(jnp.bfloat16),
              "whh_b": whh_b.astype(jnp.bfloat16),
              "b_cat": jnp.concatenate([b_f, b_b], axis=1)}
        if layer == 0:
            lp["wih_cat"] = jnp.concatenate([wih_f, wih_b], axis=1).astype(jnp.bfloat16)
        else:
            # gx = h_fwd @ wih_top + h_bwd @ wih_bot   (splits the 2H input dim)
            lp["wih_top"] = jnp.concatenate([wih_f[:H], wih_b[:H]], axis=1).astype(jnp.bfloat16)
            lp["wih_bot"] = jnp.concatenate([wih_f[H:], wih_b[H:]], axis=1).astype(jnp.bfloat16)
        p["lstm"].append(lp)

    # head: Linear(2H,H)->GLU->Linear(H/2,H/4)->GLU->Linear(H/8,ema)
    w1 = mat((2 * H, H))
    p["b1"] = mat((1, H), 0.01)
    p["w1s"] = (w1[:H] + w1[H:]).astype(jnp.bfloat16)   # applied to tiled xp
    p["w1f"] = w1[:H].astype(jnp.bfloat16)              # applied to forward LSTM half
    p["w1b"] = w1[H:].astype(jnp.bfloat16)              # applied to backward LSTM half
    p["w2"] = mat((H // 2, H // 4)).astype(jnp.bfloat16)
    p["b2"] = mat((1, H // 4), 0.01)
    w3, b3 = mat((H // 8, ema_dim)), mat((1, ema_dim), 0.01)
    out_pad = _round_up(ema_dim, 128)                   # lane-dense final store
    p["w3"] = jnp.pad(w3, ((0, 0), (0, out_pad - ema_dim))).astype(jnp.bfloat16)
    p["b3"] = jnp.pad(b3, ((0, 0), (0, out_pad - ema_dim)))
    p["out_pad"] = out_pad
    return p


# -------------------- Forward pass --------------------
def ema_reconstruction_forward(x, p):
    B, T, _ = x.shape
    H = p["hidden_dim"]
    N = T * B

    # single transpose to time-major; everything downstream stays time-major
    x2d = jnp.transpose(x, (1, 0, 2)).reshape(N, -1)

    xp2d, gx = proj_ln_relu_gx(x2d, p)                     # (N, H) bf16, (N, 8H) f32

    h_f = h_b = None
    for layer, lp in enumerate(p["lstm"]):
        if layer > 0:
            gx = gx_pair(h_f.reshape(N, H), h_b.reshape(N, H), lp)
        h_f, h_b = bilstm_layer(gx.reshape(T, B, 8 * H), lp["whh_f"], lp["whh_b"], H, B)

    out = output_head(xp2d, h_f.reshape(N, H), h_b.reshape(N, H), p)   # (N, out_pad)
    out = out[:, :p["ema_dim"]].reshape(T, B, p["ema_dim"])
    return jnp.transpose(out, (1, 0, 2))                   # back to (B, T, ema_dim)


if __name__ == "__main__":
    # Small shapes consistent with the module: input_dim = embedding_dim + ema_dim
    B, T = 2, 8
    embedding_dim, ema_dim = 24, 8
    input_dim = embedding_dim + ema_dim    # 32
    hidden_dim = 128                       # keeps LSTM gate slices lane-aligned

    key = jax.random.PRNGKey(0)
    kx, kp = jax.random.split(key)
    x = jax.random.normal(kx, (B, T, input_dim), jnp.float32)
    params = init_params(kp, input_dim, hidden_dim, ema_dim)

    forward = jax.jit(functools.partial(ema_reconstruction_forward, p=params))
    out = jax.block_until_ready(forward(x))

    assert out.shape == (B, T, ema_dim), out.shape
    assert bool(jnp.all(jnp.isfinite(out)))
    print("KERNEL_OK")
</pallas_src>

<mosaic_0001>
module attributes {stable_mosaic.version = 11 : i64} {
  func.func @_proj_ln_relu_gx_kernel(%arg0: i32, %arg1: memref<16x32xf32, #tpu.memory_space<vmem>>, %arg2: memref<32x128xbf16, #tpu.memory_space<vmem>>, %arg3: memref<1x128xf32, #tpu.memory_space<vmem>>, %arg4: memref<1x128xf32, #tpu.memory_space<vmem>>, %arg5: memref<1x128xf32, #tpu.memory_space<vmem>>, %arg6: memref<128x1024xbf16, #tpu.memory_space<vmem>>, %arg7: memref<1x1024xf32, #tpu.memory_space<vmem>>, %arg8: memref<16x128xbf16, #tpu.memory_space<vmem>>, %arg9: memref<16x1024xf32, #tpu.memory_space<vmem>>) attributes {dimension_semantics = [#tpu.dimension_semantics<parallel>], iteration_bounds = array<i64: 1>, scalar_prefetch = 0 : i64, scratch_operands = 0 : i64, tpu.core_type = #tpu.core_type<tc>, window_params = [{transform_indices = @transform_0, window_bounds = array<i64: 16, 32>}, {pipeline_mode = #tpu.pipeline_mode<synchronous>, transform_indices = @transform_1, window_bounds = array<i64: 32, 128>}, {pipeline_mode = #tpu.pipeline_mode<synchronous>, transform_indices = @transform_2, window_bounds = array<i64: 1, 128>}, {pipeline_mode = #tpu.pipeline_mode<synchronous>, transform_indices = @transform_3, window_bounds = array<i64: 1, 128>}, {pipeline_mode = #tpu.pipeline_mode<synchronous>, transform_indices = @transform_4, window_bounds = array<i64: 1, 128>}, {pipeline_mode = #tpu.pipeline_mode<synchronous>, transform_indices = @transform_5, window_bounds = array<i64: 128, 1024>}, {pipeline_mode = #tpu.pipeline_mode<synchronous>, transform_indices = @transform_6, window_bounds = array<i64: 1, 1024>}, {transform_indices = @transform_7, window_bounds = array<i64: 16, 128>}, {transform_indices = @transform_8, window_bounds = array<i64: 16, 1024>}]} {
    %c0 = arith.constant 0 : index
    %c0_0 = arith.constant 0 : index
    %0 = vector.load %arg1[%c0, %c0_0] : memref<16x32xf32, #tpu.memory_space<vmem>>, vector<16x32xf32>
    %1 = arith.truncf %0 : vector<16x32xf32> to vector<16x32xbf16>
    %c0_1 = arith.constant 0 : index
    %c0_2 = arith.constant 0 : index
    %2 = vector.load %arg2[%c0_1, %c0_2] : memref<32x128xbf16, #tpu.memory_space<vmem>>, vector<32x128xbf16>
    %cst = arith.constant dense<0.000000e+00> : vector<16x128xf32>
    %3 = tpu.matmul %1, %2, %cst {dimension_numbers = #tpu.dot_dimension_numbers<[1], [0], [0], [1], [0, 0, 1, 1], [], []>} : vector<16x32xbf16>, vector<32x128xbf16>, vector<16x128xf32> -> vector<16x128xf32>
    %c0_3 = arith.constant 0 : index
    %c0_4 = arith.constant 0 : index
    %4 = vector.load %arg3[%c0_3, %c0_4] : memref<1x128xf32, #tpu.memory_space<vmem>>, vector<1x128xf32>
    %5 = vector.broadcast %4 : vector<1x128xf32> to vector<16x128xf32>
    %6 = arith.addf %3, %5 : vector<16x128xf32>
    %cst_5 = arith.constant dense<0.000000e+00> : vector<16xf32>
    %7 = vector.multi_reduction <add>, %6, %cst_5 [1] : vector<16x128xf32> to vector<16xf32>
    %8 = vector.shape_cast %7 : vector<16xf32> to vector<16x1xf32>
    %cst_6 = arith.constant 1.280000e+02 : f32
    %9 = vector.broadcast %cst_6 : f32 to vector<16x1xf32>
    %10 = arith.divf %8, %9 : vector<16x1xf32>
    %11 = vector.broadcast %10 : vector<16x1xf32> to vector<16x128xf32>
    %12 = arith.subf %6, %11 : vector<16x128xf32>
    %13 = arith.mulf %12, %12 : vector<16x128xf32>
    %cst_7 = arith.constant dense<0.000000e+00> : vector<16xf32>
    %14 = vector.multi_reduction <add>, %13, %cst_7 [1] : vector<16x128xf32> to vector<16xf32>
    %15 = vector.shape_cast %14 : vector<16xf32> to vector<16x1xf32>
    %cst_8 = arith.constant 1.280000e+02 : f32
    %16 = vector.broadcast %cst_8 : f32 to vector<16x1xf32>
    %17 = arith.divf %15, %16 : vector<16x1xf32>
    %18 = vector.broadcast %10 : vector<16x1xf32> to vector<16x128xf32>
    %19 = arith.subf %6, %18 : vector<16x128xf32>
    %cst_9 = arith.constant 9.99999974E-6 : f32
    %20 = vector.broadcast %cst_9 : f32 to vector<16x1xf32>
    %21 = arith.addf %17, %20 : vector<16x1xf32>
    %22 = math.rsqrt %21 : vector<16x1xf32>
    %23 = vector.broadcast %22 : vector<16x1xf32> to vector<16x128xf32>
    %24 = arith.mulf %19, %23 : vector<16x128xf32>
    %c0_10 = arith.constant 0 : index
    %c0_11 = arith.constant 0 : index
    %25 = vector.load %arg4[%c0_10, %c0_11] : memref<1x128xf32, #tpu.memory_space<vmem>>, vector<1x128xf32>
    %26 = vector.broadcast %25 : vector<1x128xf32> to vector<16x128xf32>
    %27 = arith.mulf %24, %26 : vector<16x128xf32>
    %c0_12 = arith.constant 0 : index
    %c0_13 = arith.constant 0 : index
    %28 = vector.load %arg5[%c0_12, %c0_13] : memref<1x128xf32, #tpu.memory_space<vmem>>, vector<1x128xf32>
    %29 = vector.broadcast %28 : vector<1x128xf32> to vector<16x128xf32>
    %30 = arith.addf %27, %29 : vector<16x128xf32>
    %cst_14 = arith.constant 0.000000e+00 : f32
    %31 = vector.broadcast %cst_14 : f32 to vector<16x128xf32>
    %32 = arith.maximumf %30, %31 : vector<16x128xf32>
    %33 = arith.truncf %32 : vector<16x128xf32> to vector<16x128xbf16>
    %c0_15 = arith.constant 0 : index
    %c0_16 = arith.constant 0 : index
    %34 = vector.load %arg8[%c0_15, %c0_16] : memref<16x128xbf16, #tpu.memory_space<vmem>>, vector<16x128xbf16>
    tpu.vector_store %arg8[%c0_15, %c0_16], %33 {strides = array<i32>} : memref<16x128xbf16, #tpu.memory_space<vmem>>, vector<16x128xbf16>,
    %c0_17 = arith.constant 0 : index
    %c0_18 = arith.constant 0 : index
    %35 = vector.load %arg6[%c0_17, %c0_18] : memref<128x1024xbf16, #tpu.memory_space<vmem>>, vector<128x1024xbf16>
    %cst_19 = arith.constant dense<0.000000e+00> : vector<16x1024xf32>
    %36 = tpu.matmul %33, %35, %cst_19 {dimension_numbers = #tpu.dot_dimension_numbers<[1], [0], [0], [1], [0, 0, 1, 1], [], []>} : vector<16x128xbf16>, vector<128x1024xbf16>, vector<16x1024xf32> -> vector<16x1024xf32>
    %c0_20 = arith.constant 0 : index
    %c0_21 = arith.constant 0 : index
    %37 = vector.load %arg7[%c0_20, %c0_21] : memref<1x1024xf32, #tpu.memory_space<vmem>>, vector<1x1024xf32>
    %38 = vector.broadcast %37 : vector<1x1024xf32> to vector<16x1024xf32>
    %39 = arith.addf %36, %38 : vector<16x1024xf32>
    %c0_22 = arith.constant 0 : index
    %c0_23 = arith.constant 0 : index
    %40 = vector.load %arg9[%c0_22, %c0_23] : memref<16x1024xf32, #tpu.memory_space<vmem>>, vector<16x1024xf32>
    tpu.vector_store %arg9[%c0_22, %c0_23], %39 {strides = array<i32>} : memref<16x1024xf32, #tpu.memory_space<vmem>>, vector<16x1024xf32>,
    return
  }
  func.func @transform_0(%arg0: i32) -> (i32, i32) {
    %c0_i32 = arith.constant 0 : i32
    %c0_i32_0 = arith.constant 0 : i32
    return %arg0, %c0_i32 : i32, i32
  }
  func.func @transform_1(%arg0: i32) -> (i32, i32) {
    %c0_i32 = arith.constant 0 : i32
    %c0_i32_0 = arith.constant 0 : i32
    %c0_i32_1 = arith.constant 0 : i32
    return %c0_i32, %c0_i32_0 : i32, i32
  }
  func.func @transform_2(%arg0: i32) -> (i32, i32) {
    %c0_i32 = arith.constant 0 : i32
    %c0_i32_0 = arith.constant 0 : i32
    %c0_i32_1 = arith.constant 0 : i32
    return %c0_i32, %c0_i32_0 : i32, i32
  }
  func.func @transform_3(%arg0: i32) -> (i32, i32) {
    %c0_i32 = arith.constant 0 : i32
    %c0_i32_0 = arith.constant 0 : i32
    %c0_i32_1 = arith.constant 0 : i32
    return %c0_i32, %c0_i32_0 : i32, i32
  }
  func.func @transform_4(%arg0: i32) -> (i32, i32) {
    %c0_i32 = arith.constant 0 : i32
    %c0_i32_0 = arith.constant 0 : i32
    %c0_i32_1 = arith.constant 0 : i32
    return %c0_i32, %c0_i32_0 : i32, i32
  }
  func.func @transform_5(%arg0: i32) -> (i32, i32) {
    %c0_i32 = arith.constant 0 : i32
    %c0_i32_0 = arith.constant 0 : i32
    %c0_i32_1 = arith.constant 0 : i32
    return %c0_i32, %c0_i32_0 : i32, i32
  }
  func.func @transform_6(%arg0: i32) -> (i32, i32) {
    %c0_i32 = arith.constant 0 : i32
    %c0_i32_0 = arith.constant 0 : i32
    %c0_i32_1 = arith.constant 0 : i32
    return %c0_i32, %c0_i32_0 : i32, i32
  }
  func.func @transform_7(%arg0: i32) -> (i32, i32) {
    %c0_i32 = arith.constant 0 : i32
    %c0_i32_0 = arith.constant 0 : i32
    return %arg0, %c0_i32 : i32, i32
  }
  func.func @transform_8(%arg0: i32) -> (i32, i32) {
    %c0_i32 = arith.constant 0 : i32
    %c0_i32_0 = arith.constant 0 : i32
    return %arg0, %c0_i32 : i32, i32
  }
}

module attributes {stable_mosaic.version = 11 : i64} {
  func.func @_gx_pair_kernel(%arg0: i32, %arg1: memref<16x128xbf16, #tpu.memory_space<vmem>>, %arg2: memref<16x128xbf16, #tpu.memory_space<vmem>>, %arg3: memref<128x1024xbf16, #tpu.memory_space<vmem>>, %arg4: memref<128x1024xbf16, #tpu.memory_space<vmem>>, %arg5: memref<1x1024xf32, #tpu.memory_space<vmem>>, %arg6: memref<16x1024xf32, #tpu.memory_space<vmem>>) attributes {dimension_semantics = [#tpu.dimension_semantics<parallel>], iteration_bounds = array<i64: 1>, scalar_prefetch = 0 : i64, scratch_operands = 0 : i64, tpu.core_type = #tpu.core_type<tc>, window_params = [{transform_indices = @transform_0, window_bounds = array<i64: 16, 128>}, {transform_indices = @transform_1, window_bounds = array<i64: 16, 128>}, {pipeline_mode = #tpu.pipeline_mode<synchronous>, transform_indices = @transform_2, window_bounds = array<i64: 128, 1024>}, {pipeline_mode = #tpu.pipeline_mode<synchronous>, transform_indices = @transform_3, window_bounds = array<i64: 128, 1024>}, {pipeline_mode = #tpu.pipeline_mode<synchronous>, transform_indices = @transform_4, window_bounds = array<i64: 1, 1024>}, {transform_indices = @transform_5, window_bounds = array<i64: 16, 1024>}]} {
    %c0 = arith.constant 0 : index
    %c0_0 = arith.constant 0 : index
    %0 = vector.load %arg1[%c0, %c0_0] : memref<16x128xbf16, #tpu.memory_space<vmem>>, vector<16x128xbf16>
    %c0_1 = arith.constant 0 : index
    %c0_2 = arith.constant 0 : index
    %1 = vector.load %arg3[%c0_1, %c0_2] : memref<128x1024xbf16, #tpu.memory_space<vmem>>, vector<128x1024xbf16>
    %cst = arith.constant dense<0.000000e+00> : vector<16x1024xf32>
    %2 = tpu.matmul %0, %1, %cst {dimension_numbers = #tpu.dot_dimension_numbers<[1], [0], [0], [1], [0, 0, 1, 1], [], []>} : vector<16x128xbf16>, vector<128x1024xbf16>, vector<16x1024xf32> -> vector<16x1024xf32>
    %c0_3 = arith.constant 0 : index
    %c0_4 = arith.constant 0 : index
    %3 = vector.load %arg2[%c0_3, %c0_4] : memref<16x128xbf16, #tpu.memory_space<vmem>>, vector<16x128xbf16>
    %c0_5 = arith.constant 0 : index
    %c0_6 = arith.constant 0 : index
    %4 = vector.load %arg4[%c0_5, %c0_6] : memref<128x1024xbf16, #tpu.memory_space<vmem>>, vector<128x1024xbf16>
    %cst_7 = arith.constant dense<0.000000e+00> : vector<16x1024xf32>
    %5 = tpu.matmul %3, %4, %cst_7 {dimension_numbers = #tpu.dot_dimension_numbers<[1], [0], [0], [1], [0, 0, 1, 1], [], []>} : vector<16x128xbf16>, vector<128x1024xbf16>, vector<16x1024xf32> -> vector<16x1024xf32>
    %6 = arith.addf %2, %5 : vector<16x1024xf32>
    %c0_8 = arith.constant 0 : index
    %c0_9 = arith.constant 0 : index
    %7 = vector.load %arg5[%c0_8, %c0_9] : memref<1x1024xf32, #tpu.memory_space<vmem>>, vector<1x1024xf32>
    %8 = vector.broadcast %7 : vector<1x1024xf32> to vector<16x1024xf32>
    %9 = arith.addf %6, %8 : vector<16x1024xf32>
    %c0_10 = arith.constant 0 : index
    %c0_11 = arith.constant 0 : index
    %10 = vector.load %arg6[%c0_10, %c0_11] : memref<16x1024xf32, #tpu.memory_space<vmem>>, vector<16x1024xf32>
    tpu.vector_store %arg6[%c0_10, %c0_11], %9 {strides = array<i32>} : memref<16x1024xf32, #tpu.memory_space<vmem>>, vector<16x1024xf32>,
    return
  }
  func.func @transform_0(%arg0: i32) -> (i32, i32) {
    %c0_i32 = arith.constant 0 : i32
    %c0_i32_0 = arith.constant 0 : i32
    return %arg0, %c0_i32 : i32, i32
  }
  func.func @transform_1(%arg0: i32) -> (i32, i32) {
    %c0_i32 = arith.constant 0 : i32
    %c0_i32_0 = arith.constant 0 : i32
    return %arg0, %c0_i32 : i32, i32
  }
  func.func @transform_2(%arg0: i32) -> (i32, i32) {
    %c0_i32 = arith.constant 0 : i32
    %c0_i32_0 = arith.constant 0 : i32
    %c0_i32_1 = arith.constant 0 : i32
    return %c0_i32, %c0_i32_0 : i32, i32
  }
  func.func @transform_3(%arg0: i32) -> (i32, i32) {
    %c0_i32 = arith.constant 0 : i32
    %c0_i32_0 = arith.constant 0 : i32
    %c0_i32_1 = arith.constant 0 : i32
    return %c0_i32, %c0_i32_0 : i32, i32
  }
  func.func @transform_4(%arg0: i32) -> (i32, i32) {
    %c0_i32 = arith.constant 0 : i32
    %c0_i32_0 = arith.constant 0 : i32
    %c0_i32_1 = arith.constant 0 : i32
    return %c0_i32, %c0_i32_0 : i32, i32
  }
  func.func @transform_5(%arg0: i32) -> (i32, i32) {
    %c0_i32 = arith.constant 0 : i32
    %c0_i32_0 = arith.constant 0 : i32
    return %arg0, %c0_i32 : i32, i32
  }
}

module attributes {stable_mosaic.version = 11 : i64} {
  func.func @_bilstm_kernel(%arg0: i32, %arg1: memref<8x2x512xf32, #tpu.memory_space<vmem>>, %arg2: memref<8x2x512xf32, #tpu.memory_space<vmem>>, %arg3: memref<128x512xbf16, #tpu.memory_space<vmem>>, %arg4: memref<128x512xbf16, #tpu.memory_space<vmem>>, %arg5: memref<8x2x128xbf16, #tpu.memory_space<vmem>>, %arg6: memref<8x2x128xbf16, #tpu.memory_space<vmem>>, %arg7: memref<2x128xf32, #tpu.memory_space<vmem>>, %arg8: memref<2x128xf32, #tpu.memory_space<vmem>>, %arg9: memref<2x128xf32, #tpu.memory_space<vmem>>, %arg10: memref<2x128xf32, #tpu.memory_space<vmem>>) attributes {dimension_semantics = [#tpu.dimension_semantics<arbitrary>], iteration_bounds = array<i64: 1>, scalar_prefetch = 0 : i64, scratch_operands = 4 : i64, tpu.core_type = #tpu.core_type<tc>, window_params = [{transform_indices = @transform_0, window_bounds = array<i64: 8, 2, 512>}, {transform_indices = @transform_1, window_bounds = array<i64: 8, 2, 512>}, {pipeline_mode = #tpu.pipeline_mode<synchronous>, transform_indices = @transform_2, window_bounds = array<i64: 128, 512>}, {pipeline_mode = #tpu.pipeline_mode<synchronous>, transform_indices = @transform_3, window_bounds = array<i64: 128, 512>}, {transform_indices = @transform_4, window_bounds = array<i64: 8, 2, 128>}, {transform_indices = @transform_5, window_bounds = array<i64: 8, 2, 128>}]} {
    %c0_i32 = arith.constant 0 : i32
    %0 = arith.cmpi eq, %arg0, %c0_i32 : i32
    %1 = arith.extui %0 : i1 to i32
    %c0_i32_0 = arith.constant 0 : i32
    %2 = arith.cmpi ne, %1, %c0_i32_0 : i32
    scf.if %2 {
      %cst = arith.constant 0.000000e+00 : f32
      %15 = vector.broadcast %cst : f32 to vector<2x128xf32>
      %c0_22 = arith.constant 0 : index
      %c0_23 = arith.constant 0 : index
      %16 = vector.load %arg7[%c0_22, %c0_23] : memref<2x128xf32, #tpu.memory_space<vmem>>, vector<2x128xf32>
      tpu.vector_store %arg7[%c0_22, %c0_23], %15 {strides = array<i32>} : memref<2x128xf32, #tpu.memory_space<vmem>>, vector<2x128xf32>,
      %cst_24 = arith.constant 0.000000e+00 : f32
      %17 = vector.broadcast %cst_24 : f32 to vector<2x128xf32>
      %c0_25 = arith.constant 0 : index
      %c0_26 = arith.constant 0 : index
      %18 = vector.load %arg8[%c0_25, %c0_26] : memref<2x128xf32, #tpu.memory_space<vmem>>, vector<2x128xf32>
      tpu.vector_store %arg8[%c0_25, %c0_26], %17 {strides = array<i32>} : memref<2x128xf32, #tpu.memory_space<vmem>>, vector<2x128xf32>,
      %cst_27 = arith.constant 0.000000e+00 : f32
      %19 = vector.broadcast %cst_27 : f32 to vector<2x128xf32>
      %c0_28 = arith.constant 0 : index
      %c0_29 = arith.constant 0 : index
      %20 = vector.load %arg9[%c0_28, %c0_29] : memref<2x128xf32, #tpu.memory_space<vmem>>, vector<2x128xf32>
      tpu.vector_store %arg9[%c0_28, %c0_29], %19 {strides = array<i32>} : memref<2x128xf32, #tpu.memory_space<vmem>>, vector<2x128xf32>,
      %cst_30 = arith.constant 0.000000e+00 : f32
      %21 = vector.broadcast %cst_30 : f32 to vector<2x128xf32>
      %c0_31 = arith.constant 0 : index
      %c0_32 = arith.constant 0 : index
      %22 = vector.load %arg10[%c0_31, %c0_32] : memref<2x128xf32, #tpu.memory_space<vmem>>, vector<2x128xf32>
      tpu.vector_store %arg10[%c0_31, %c0_32], %21 {strides = array<i32>} : memref<2x128xf32, #tpu.memory_space<vmem>>, vector<2x128xf32>,
    } else {
    }
    %c0 = arith.constant 0 : index
    %c0_1 = arith.constant 0 : index
    %3 = vector.load %arg3[%c0, %c0_1] : memref<128x512xbf16, #tpu.memory_space<vmem>>, vector<128x512xbf16>
    %c0_2 = arith.constant 0 : index
    %c0_3 = arith.constant 0 : index
    %4 = vector.load %arg4[%c0_2, %c0_3] : memref<128x512xbf16, #tpu.memory_space<vmem>>, vector<128x512xbf16>
    %c0_4 = arith.constant 0 : index
    %c0_5 = arith.constant 0 : index
    %5 = vector.load %arg7[%c0_4, %c0_5] : memref<2x128xf32, #tpu.memory_space<vmem>>, vector<2x128xf32>
    %c0_6 = arith.constant 0 : index
    %c0_7 = arith.constant 0 : index
    %6 = vector.load %arg8[%c0_6, %c0_7] : memref<2x128xf32, #tpu.memory_space<vmem>>, vector<2x128xf32>
    %c0_8 = arith.constant 0 : index
    %c0_9 = arith.constant 0 : index
    %7 = vector.load %arg9[%c0_8, %c0_9] : memref<2x128xf32, #tpu.memory_space<vmem>>, vector<2x128xf32>
    %c0_10 = arith.constant 0 : index
    %c0_11 = arith.constant 0 : index
    %8 = vector.load %arg10[%c0_10, %c0_11] : memref<2x128xf32, #tpu.memory_space<vmem>>, vector<2x128xf32>
    %c0_i32_12 = arith.constant 0 : i32
    %c8_i32 = arith.constant 8 : i32
    %9 = arith.addi %c0_i32_12, %c8_i32 : i32
    %c1_i32 = arith.constant 1 : i32
    %10:4 = scf.for %arg11 = %c0_i32_12 to %9 step %c1_i32 iter_args(%arg12 = %5, %arg13 = %6, %arg14 = %7, %arg15 = %8) -> (vector<2x128xf32>, vector<2x128xf32>, vector<2x128xf32>, vector<2x128xf32>)  : i32 {
      %c7_i32 = arith.constant 7 : i32
      %15 = arith.subi %c7_i32, %arg11 : i32
      %16 = arith.index_cast %arg11 : i32 to index
      %c0_22 = arith.constant 0 : index
      %c0_23 = arith.constant 0 : index
      %17 = vector.load %arg1[%16, %c0_22, %c0_23] : memref<8x2x512xf32, #tpu.memory_space<vmem>>, vector<1x2x512xf32>
      %18 = vector.shape_cast %17 : vector<1x2x512xf32> to vector<2x512xf32>
      %19 = arith.truncf %arg12 : vector<2x128xf32> to vector<2x128xbf16>
      %cst = arith.constant dense<0.000000e+00> : vector<2x512xf32>
      %20 = tpu.matmul %19, %3, %cst {dimension_numbers = #tpu.dot_dimension_numbers<[1], [0], [0], [1], [0, 0, 1, 1], [], []>} : vector<2x128xbf16>, vector<128x512xbf16>, vector<2x512xf32> -> vector<2x512xf32>
      %21 = arith.addf %18, %20 : vector<2x512xf32>
      %22 = arith.index_cast %15 : i32 to index
      %c0_24 = arith.constant 0 : index
      %c0_25 = arith.constant 0 : index
      %23 = vector.load %arg2[%22, %c0_24, %c0_25] : memref<8x2x512xf32, #tpu.memory_space<vmem>>, vector<1x2x512xf32>
      %24 = vector.shape_cast %23 : vector<1x2x512xf32> to vector<2x512xf32>
      %25 = arith.truncf %arg13 : vector<2x128xf32> to vector<2x128xbf16>
      %cst_26 = arith.constant dense<0.000000e+00> : vector<2x512xf32>
      %26 = tpu.matmul %25, %4, %cst_26 {dimension_numbers = #tpu.dot_dimension_numbers<[1], [0], [0], [1], [0, 0, 1, 1], [], []>} : vector<2x128xbf16>, vector<128x512xbf16>, vector<2x512xf32> -> vector<2x512xf32>
      %27 = arith.addf %24, %26 : vector<2x512xf32>
      %28 = vector.extract_strided_slice %21 {offsets = [0, 0], sizes = [2, 128], strides = [1, 1]} : vector<2x512xf32> to vector<2x128xf32>
      %29 = arith.negf %28 : vector<2x128xf32>
      %30 = math.exp %29 : vector<2x128xf32>
      %cst_27 = arith.constant 1.000000e+00 : f32
      %31 = vector.broadcast %cst_27 : f32 to vector<2x128xf32>
      %32 = arith.addf %31, %30 : vector<2x128xf32>
      %33 = arith.divf %31, %32 : vector<2x128xf32>
      %34 = vector.extract_strided_slice %21 {offsets = [0, 128], sizes = [2, 128], strides = [1, 1]} : vector<2x512xf32> to vector<2x128xf32>
      %35 = arith.negf %34 : vector<2x128xf32>
      %36 = math.exp %35 : vector<2x128xf32>
      %cst_28 = arith.constant 1.000000e+00 : f32
      %37 = vector.broadcast %cst_28 : f32 to vector<2x128xf32>
      %38 = arith.addf %37, %36 : vector<2x128xf32>
      %39 = arith.divf %37, %38 : vector<2x128xf32>
      %40 = vector.extract_strided_slice %21 {offsets = [0, 256], sizes = [2, 128], strides = [1, 1]} : vector<2x512xf32> to vector<2x128xf32>
      %41 = math.tanh %40 : vector<2x128xf32>
      %42 = vector.extract_strided_slice %21 {offsets = [0, 384], sizes = [2, 128], strides = [1, 1]} : vector<2x512xf32> to vector<2x128xf32>
      %43 = arith.negf %42 : vector<2x128xf32>
      %44 = math.exp %43 : vector<2x128xf32>
      %cst_29 = arith.constant 1.000000e+00 : f32
      %45 = vector.broadcast %cst_29 : f32 to vector<2x128xf32>
      %46 = arith.addf %45, %44 : vector<2x128xf32>
      %47 = arith.divf %45, %46 : vector<2x128xf32>
      %48 = arith.mulf %39, %arg14 : vector<2x128xf32>
      %49 = arith.mulf %33, %41 : vector<2x128xf32>
      %50 = arith.addf %48, %49 : vector<2x128xf32>
      %51 = math.tanh %50 : vector<2x128xf32>
      %52 = arith.mulf %47, %51 : vector<2x128xf32>
      %53 = vector.extract_strided_slice %27 {offsets = [0, 0], sizes = [2, 128], strides = [1, 1]} : vector<2x512xf32> to vector<2x128xf32>
      %54 = arith.negf %53 : vector<2x128xf32>
      %55 = math.exp %54 : vector<2x128xf32>
      %cst_30 = arith.constant 1.000000e+00 : f32
      %56 = vector.broadcast %cst_30 : f32 to vector<2x128xf32>
      %57 = arith.addf %56, %55 : vector<2x128xf32>
      %58 = arith.divf %56, %57 : vector<2x128xf32>
      %59 = vector.extract_strided_slice %27 {offsets = [0, 128], sizes = [2, 128], strides = [1, 1]} : vector<2x512xf32> to vector<2x128xf32>
      %60 = arith.negf %59 : vector<2x128xf32>
      %61 = math.exp %60 : vector<2x128xf32>
      %cst_31 = arith.constant 1.000000e+00 : f32
      %62 = vector.broadcast %cst_31 : f32 to vector<2x128xf32>
      %63 = arith.addf %62, %61 : vector<2x128xf32>
      %64 = arith.divf %62, %63 : vector<2x128xf32>
      %65 = vector.extract_strided_slice %27 {offsets = [0, 256], sizes = [2, 128], strides = [1, 1]} : vector<2x512xf32> to vector<2x128xf32>
      %66 = math.tanh %65 : vector<2x128xf32>
      %67 = vector.extract_strided_slice %27 {offsets = [0, 384], sizes = [2, 128], strides = [1, 1]} : vector<2x512xf32> to vector<2x128xf32>
      %68 = arith.negf %67 : vector<2x128xf32>
      %69 = math.exp %68 : vector<2x128xf32>
      %cst_32 = arith.constant 1.000000e+00 : f32
      %70 = vector.broadcast %cst_32 : f32 to vector<2x128xf32>
      %71 = arith.addf %70, %69 : vector<2x128xf32>
      %72 = arith.divf %70, %71 : vector<2x128xf32>
      %73 = arith.mulf %64, %arg15 : vector<2x128xf32>
      %74 = arith.mulf %58, %66 : vector<2x128xf32>
      %75 = arith.addf %73, %74 : vector<2x128xf32>
      %76 = math.tanh %75 : vector<2x128xf32>
      %77 = arith.mulf %72, %76 : vector<2x128xf32>
      %78 = arith.truncf %52 : vector<2x128xf32> to vector<2x128xbf16>
      %79 = arith.index_cast %arg11 : i32 to index
      %c0_33 = arith.constant 0 : index
      %c0_34 = arith.constant 0 : index
      %80 = vector.load %arg5[%79, %c0_33, %c0_34] : memref<8x2x128xbf16, #tpu.memory_space<vmem>>, vector<1x2x128xbf16>
      %81 = vector.shape_cast %80 : vector<1x2x128xbf16> to vector<2x128xbf16>
      %82 = vector.shape_cast %78 : vector<2x128xbf16> to vector<1x2x128xbf16>
      tpu.vector_store %arg5[%79, %c0_33, %c0_34], %82 {strides = array<i32>} : memref<8x2x128xbf16, #tpu.memory_space<vmem>>, vector<1x2x128xbf16>,
      %83 = arith.truncf %77 : vector<2x128xf32> to vector<2x128xbf16>
      %84 = arith.index_cast %15 : i32 to index
      %c0_35 = arith.constant 0 : index
      %c0_36 = arith.constant 0 : index
      %85 = vector.load %arg6[%84, %c0_35, %c0_36] : memref<8x2x128xbf16, #tpu.memory_space<vmem>>, vector<1x2x128xbf16>
      %86 = vector.shape_cast %85 : vector<1x2x128xbf16> to vector<2x128xbf16>
      %87 = vector.shape_cast %83 : vector<2x128xbf16> to vector<1x2x128xbf16>
      tpu.vector_store %arg6[%84, %c0_35, %c0_36], %87 {strides = array<i32>} : memref<8x2x128xbf16, #tpu.memory_space<vmem>>, vector<1x2x128xbf16>,
      scf.yield %52, %77, %50, %75 : vector<2x128xf32>, vector<2x128xf32>, vector<2x128xf32>, vector<2x128xf32>
    }
    %c8_i32_13 = arith.constant 8 : i32
    %c0_14 = arith.constant 0 : index
    %c0_15 = arith.constant 0 : index
    %11 = vector.load %arg7[%c0_14, %c0_15] : memref<2x128xf32, #tpu.memory_space<vmem>>, vector<2x128xf32>
    tpu.vector_store %arg7[%c0_14, %c0_15], %10#0 {strides = array<i32>} : memref<2x128xf32, #tpu.memory_space<vmem>>, vector<2x128xf32>,
    %c0_16 = arith.constant 0 : index
    %c0_17 = arith.constant 0 : index
    %12 = vector.load %arg8[%c0_16, %c0_17] : memref<2x128xf32, #tpu.memory_space<vmem>>, vector<2x128xf32>
    tpu.vector_store %arg8[%c0_16, %c0_17], %10#1 {strides = array<i32>} : memref<2x128xf32, #tpu.memory_space<vmem>>, vector<2x128xf32>,
    %c0_18 = arith.constant 0 : index
    %c0_19 = arith.constant 0 : index
    %13 = vector.load %arg9[%c0_18, %c0_19] : memref<2x128xf32, #tpu.memory_space<vmem>>, vector<2x128xf32>
    tpu.vector_store %arg9[%c0_18, %c0_19], %10#2 {strides = array<i32>} : memref<2x128xf32, #tpu.memory_space<vmem>>, vector<2x128xf32>,
    %c0_20 = arith.constant 0 : index
    %c0_21 = arith.constant 0 : index
    %14 = vector.load %arg10[%c0_20, %c0_21] : memref<2x128xf32, #tpu.memory_space<vmem>>, vector<2x128xf32>
    tpu.vector_store %arg10[%c0_20, %c0_21], %10#3 {strides = array<i32>} : memref<2x128xf32, #tpu.memory_space<vmem>>, vector<2x128xf32>,
    return
  }
  func.func @transform_0(%arg0: i32) -> (i32, i32, i32) {
    %c0_i32 = arith.constant 0 : i32
    %c0_i32_0 = arith.constant 0 : i32
    %c0_i32_1 = arith.constant 0 : i32
    return %arg0, %c0_i32, %c0_i32_0 : i32, i32, i32
  }
  func.func @transform_1(%arg0: i32) -> (i32, i32, i32) {
    %c0_i32 = arith.constant 0 : i32
    %0 = arith.subi %c0_i32, %arg0 : i32
    %c0_i32_0 = arith.constant 0 : i32
    %c1_i32 = arith.constant 1 : i32
    %c0_i32_1 = arith.constant 0 : i32
    return %0, %c0_i32_0, %c1_i32 : i32, i32, i32
  }
  func.func @transform_2(%arg0: i32) -> (i32, i32) {
    %c0_i32 = arith.constant 0 : i32
    %c0_i32_0 = arith.constant 0 : i32
    %c0_i32_1 = arith.constant 0 : i32
    return %c0_i32, %c0_i32_0 : i32, i32
  }
  func.func @transform_3(%arg0: i32) -> (i32, i32) {
    %c0_i32 = arith.constant 0 : i32
    %c0_i32_0 = arith.constant 0 : i32
    %c0_i32_1 = arith.constant 0 : i32
    return %c0_i32, %c0_i32_0 : i32, i32
  }
  func.func @transform_4(%arg0: i32) -> (i32, i32, i32) {
    %c0_i32 = arith.constant 0 : i32
    %c0_i32_0 = arith.constant 0 : i32
    %c0_i32_1 = arith.constant 0 : i32
    return %arg0, %c0_i32, %c0_i32_0 : i32, i32, i32
  }
  func.func @transform_5(%arg0: i32) -> (i32, i32, i32) {
    %c0_i32 = arith.constant 0 : i32
    %0 = arith.subi %c0_i32, %arg0 : i32
    %c0_i32_0 = arith.constant 0 : i32
    %c0_i32_1 = arith.constant 0 : i32
    %c0_i32_2 = arith.constant 0 : i32
    return %0, %c0_i32_0, %c0_i32_1 : i32, i32, i32
  }
}

module attributes {stable_mosaic.version = 11 : i64} {
  func.func @_gx_pair_kernel(%arg0: i32, %arg1: memref<16x128xbf16, #tpu.memory_space<vmem>>, %arg2: memref<16x128xbf16, #tpu.memory_space<vmem>>, %arg3: memref<128x1024xbf16, #tpu.memory_space<vmem>>, %arg4: memref<128x1024xbf16, #tpu.memory_space<vmem>>, %arg5: memref<1x1024xf32, #tpu.memory_space<vmem>>, %arg6: memref<16x1024xf32, #tpu.memory_space<vmem>>) attributes {dimension_semantics = [#tpu.dimension_semantics<parallel>], iteration_bounds = array<i64: 1>, scalar_prefetch = 0 : i64, scratch_operands = 0 : i64, tpu.core_type = #tpu.core_type<tc>, window_params = [{transform_indices = @transform_0, window_bounds = array<i64: 16, 128>}, {transform_indices = @transform_1, window_bounds = array<i64: 16, 128>}, {pipeline_mode = #tpu.pipeline_mode<synchronous>, transform_indices = @transform_2, window_bounds = array<i64: 128, 1024>}, {pipeline_mode = #tpu.pipeline_mode<synchronous>, transform_indices = @transform_3, window_bounds = array<i64: 128, 1024>}, {pipeline_mode = #tpu.pipeline_mode<synchronous>, transform_indices = @transform_4, window_bounds = array<i64: 1, 1024>}, {transform_indices = @transform_5, window_bounds = array<i64: 16, 1024>}]} {
    %c0 = arith.constant 0 : index
    %c0_0 = arith.constant 0 : index
    %0 = vector.load %arg1[%c0, %c0_0] : memref<16x128xbf16, #tpu.memory_space<vmem>>, vector<16x128xbf16>
    %c0_1 = arith.constant 0 : index
    %c0_2 = arith.constant 0 : index
    %1 = vector.load %arg3[%c0_1, %c0_2] : memref<128x1024xbf16, #tpu.memory_space<vmem>>, vector<128x1024xbf16>
    %cst = arith.constant dense<0.000000e+00> : vector<16x1024xf32>
    %2 = tpu.matmul %0, %1, %cst {dimension_numbers = #tpu.dot_dimension_numbers<[1], [0], [0], [1], [0, 0, 1, 1], [], []>} : vector<16x128xbf16>, vector<128x1024xbf16>, vector<16x1024xf32> -> vector<16x1024xf32>
    %c0_3 = arith.constant 0 : index
    %c0_4 = arith.constant 0 : index
    %3 = vector.load %arg2[%c0_3, %c0_4] : memref<16x128xbf16, #tpu.memory_space<vmem>>, vector<16x128xbf16>
    %c0_5 = arith.constant 0 : index
    %c0_6 = arith.constant 0 : index
    %4 = vector.load %arg4[%c0_5, %c0_6] : memref<128x1024xbf16, #tpu.memory_space<vmem>>, vector<128x1024xbf16>
    %cst_7 = arith.constant dense<0.000000e+00> : vector<16x1024xf32>
    %5 = tpu.matmul %3, %4, %cst_7 {dimension_numbers = #tpu.dot_dimension_numbers<[1], [0], [0], [1], [0, 0, 1, 1], [], []>} : vector<16x128xbf16>, vector<128x1024xbf16>, vector<16x1024xf32> -> vector<16x1024xf32>
    %6 = arith.addf %2, %5 : vector<16x1024xf32>
    %c0_8 = arith.constant 0 : index
    %c0_9 = arith.constant 0 : index
    %7 = vector.load %arg5[%c0_8, %c0_9] : memref<1x1024xf32, #tpu.memory_space<vmem>>, vector<1x1024xf32>
    %8 = vector.broadcast %7 : vector<1x1024xf32> to vector<16x1024xf32>
    %9 = arith.addf %6, %8 : vector<16x1024xf32>
    %c0_10 = arith.constant 0 : index
    %c0_11 = arith.constant 0 : index
    %10 = vector.load %arg6[%c0_10, %c0_11] : memref<16x1024xf32, #tpu.memory_space<vmem>>, vector<16x1024xf32>
    tpu.vector_store %arg6[%c0_10, %c0_11], %9 {strides = array<i32>} : memref<16x1024xf32, #tpu.memory_space<vmem>>, vector<16x1024xf32>,
    return
  }
  func.func @transform_0(%arg0: i32) -> (i32, i32) {
    %c0_i32 = arith.constant 0 : i32
    %c0_i32_0 = arith.constant 0 : i32
    return %arg0, %c0_i32 : i32, i32
  }
  func.func @transform_1(%arg0: i32) -> (i32, i32) {
    %c0_i32 = arith.constant 0 : i32
    %c0_i32_0 = arith.constant 0 : i32
    return %arg0, %c0_i32 : i32, i32
  }
  func.func @transform_2(%arg0: i32) -> (i32, i32) {
    %c0_i32 = arith.constant 0 : i32
    %c0_i32_0 = arith.constant 0 : i32
    %c0_i32_1 = arith.constant 0 : i32
    return %c0_i32, %c0_i32_0 : i32, i32
  }
  func.func @transform_3(%arg0: i32) -> (i32, i32) {
    %c0_i32 = arith.constant 0 : i32
    %c0_i32_0 = arith.constant 0 : i32
    %c0_i32_1 = arith.constant 0 : i32
    return %c0_i32, %c0_i32_0 : i32, i32
  }
  func.func @transform_4(%arg0: i32) -> (i32, i32) {
    %c0_i32 = arith.constant 0 : i32
    %c0_i32_0 = arith.constant 0 : i32
    %c0_i32_1 = arith.constant 0 : i32
    return %c0_i32, %c0_i32_0 : i32, i32
  }
  func.func @transform_5(%arg0: i32) -> (i32, i32) {
    %c0_i32 = arith.constant 0 : i32
    %c0_i32_0 = arith.constant 0 : i32
    return %arg0, %c0_i32 : i32, i32
  }
}

module attributes {stable_mosaic.version = 11 : i64} {
  func.func @_bilstm_kernel(%arg0: i32, %arg1: memref<8x2x512xf32, #tpu.memory_space<vmem>>, %arg2: memref<8x2x512xf32, #tpu.memory_space<vmem>>, %arg3: memref<128x512xbf16, #tpu.memory_space<vmem>>, %arg4: memref<128x512xbf16, #tpu.memory_space<vmem>>, %arg5: memref<8x2x128xbf16, #tpu.memory_space<vmem>>, %arg6: memref<8x2x128xbf16, #tpu.memory_space<vmem>>, %arg7: memref<2x128xf32, #tpu.memory_space<vmem>>, %arg8: memref<2x128xf32, #tpu.memory_space<vmem>>, %arg9: memref<2x128xf32, #tpu.memory_space<vmem>>, %arg10: memref<2x128xf32, #tpu.memory_space<vmem>>) attributes {dimension_semantics = [#tpu.dimension_semantics<arbitrary>], iteration_bounds = array<i64: 1>, scalar_prefetch = 0 : i64, scratch_operands = 4 : i64, tpu.core_type = #tpu.core_type<tc>, window_params = [{transform_indices = @transform_0, window_bounds = array<i64: 8, 2, 512>}, {transform_indices = @transform_1, window_bounds = array<i64: 8, 2, 512>}, {pipeline_mode = #tpu.pipeline_mode<synchronous>, transform_indices = @transform_2, window_bounds = array<i64: 128, 512>}, {pipeline_mode = #tpu.pipeline_mode<synchronous>, transform_indices = @transform_3, window_bounds = array<i64: 128, 512>}, {transform_indices = @transform_4, window_bounds = array<i64: 8, 2, 128>}, {transform_indices = @transform_5, window_bounds = array<i64: 8, 2, 128>}]} {
    %c0_i32 = arith.constant 0 : i32
    %0 = arith.cmpi eq, %arg0, %c0_i32 : i32
    %1 = arith.extui %0 : i1 to i32
    %c0_i32_0 = arith.constant 0 : i32
    %2 = arith.cmpi ne, %1, %c0_i32_0 : i32
    scf.if %2 {
      %cst = arith.constant 0.000000e+00 : f32
      %15 = vector.broadcast %cst : f32 to vector<2x128xf32>
      %c0_22 = arith.constant 0 : index
      %c0_23 = arith.constant 0 : index
      %16 = vector.load %arg7[%c0_22, %c0_23] : memref<2x128xf32, #tpu.memory_space<vmem>>, vector<2x128xf32>
      tpu.vector_store %arg7[%c0_22, %c0_23], %15 {strides = array<i32>} : memref<2x128xf32, #tpu.memory_space<vmem>>, vector<2x128xf32>,
      %cst_24 = arith.constant 0.000000e+00 : f32
      %17 = vector.broadcast %cst_24 : f32 to vector<2x128xf32>
      %c0_25 = arith.constant 0 : index
      %c0_26 = arith.constant 0 : index
      %18 = vector.load %arg8[%c0_25, %c0_26] : memref<2x128xf32, #tpu.memory_space<vmem>>, vector<2x128xf32>
      tpu.vector_store %arg8[%c0_25, %c0_26], %17 {strides = array<i32>} : memref<2x128xf32, #tpu.memory_space<vmem>>, vector<2x128xf32>,
      %cst_27 = arith.constant 0.000000e+00 : f32
      %19 = vector.broadcast %cst_27 : f32 to vector<2x128xf32>
      %c0_28 = arith.constant 0 : index
      %c0_29 = arith.constant 0 : index
      %20 = vector.load %arg9[%c0_28, %c0_29] : memref<2x128xf32, #tpu.memory_space<vmem>>, vector<2x128xf32>
      tpu.vector_store %arg9[%c0_28, %c0_29], %19 {strides = array<i32>} : memref<2x128xf32, #tpu.memory_space<vmem>>, vector<2x128xf32>,
      %cst_30 = arith.constant 0.000000e+00 : f32
      %21 = vector.broadcast %cst_30 : f32 to vector<2x128xf32>
      %c0_31 = arith.constant 0 : index
      %c0_32 = arith.constant 0 : index
      %22 = vector.load %arg10[%c0_31, %c0_32] : memref<2x128xf32, #tpu.memory_space<vmem>>, vector<2x128xf32>
      tpu.vector_store %arg10[%c0_31, %c0_32], %21 {strides = array<i32>} : memref<2x128xf32, #tpu.memory_space<vmem>>, vector<2x128xf32>,
    } else {
    }
    %c0 = arith.constant 0 : index
    %c0_1 = arith.constant 0 : index
    %3 = vector.load %arg3[%c0, %c0_1] : memref<128x512xbf16, #tpu.memory_space<vmem>>, vector<128x512xbf16>
    %c0_2 = arith.constant 0 : index
    %c0_3 = arith.constant 0 : index
    %4 = vector.load %arg4[%c0_2, %c0_3] : memref<128x512xbf16, #tpu.memory_space<vmem>>, vector<128x512xbf16>
    %c0_4 = arith.constant 0 : index
    %c0_5 = arith.constant 0 : index
    %5 = vector.load %arg7[%c0_4, %c0_5] : memref<2x128xf32, #tpu.memory_space<vmem>>, vector<2x128xf32>
    %c0_6 = arith.constant 0 : index
    %c0_7 = arith.constant 0 : index
    %6 = vector.load %arg8[%c0_6, %c0_7] : memref<2x128xf32, #tpu.memory_space<vmem>>, vector<2x128xf32>
    %c0_8 = arith.constant 0 : index
    %c0_9 = arith.constant 0 : index
    %7 = vector.load %arg9[%c0_8, %c0_9] : memref<2x128xf32, #tpu.memory_space<vmem>>, vector<2x128xf32>
    %c0_10 = arith.constant 0 : index
    %c0_11 = arith.constant 0 : index
    %8 = vector.load %arg10[%c0_10, %c0_11] : memref<2x128xf32, #tpu.memory_space<vmem>>, vector<2x128xf32>
    %c0_i32_12 = arith.constant 0 : i32
    %c8_i32 = arith.constant 8 : i32
    %9 = arith.addi %c0_i32_12, %c8_i32 : i32
    %c1_i32 = arith.constant 1 : i32
    %10:4 = scf.for %arg11 = %c0_i32_12 to %9 step %c1_i32 iter_args(%arg12 = %5, %arg13 = %6, %arg14 = %7, %arg15 = %8) -> (vector<2x128xf32>, vector<2x128xf32>, vector<2x128xf32>, vector<2x128xf32>)  : i32 {
      %c7_i32 = arith.constant 7 : i32
      %15 = arith.subi %c7_i32, %arg11 : i32
      %16 = arith.index_cast %arg11 : i32 to index
      %c0_22 = arith.constant 0 : index
      %c0_23 = arith.constant 0 : index
      %17 = vector.load %arg1[%16, %c0_22, %c0_23] : memref<8x2x512xf32, #tpu.memory_space<vmem>>, vector<1x2x512xf32>
      %18 = vector.shape_cast %17 : vector<1x2x512xf32> to vector<2x512xf32>
      %19 = arith.truncf %arg12 : vector<2x128xf32> to vector<2x128xbf16>
      %cst = arith.constant dense<0.000000e+00> : vector<2x512xf32>
      %20 = tpu.matmul %19, %3, %cst {dimension_numbers = #tpu.dot_dimension_numbers<[1], [0], [0], [1], [0, 0, 1, 1], [], []>} : vector<2x128xbf16>, vector<128x512xbf16>, vector<2x512xf32> -> vector<2x512xf32>
      %21 = arith.addf %18, %20 : vector<2x512xf32>
      %22 = arith.index_cast %15 : i32 to index
      %c0_24 = arith.constant 0 : index
      %c0_25 = arith.constant 0 : index
      %23 = vector.load %arg2[%22, %c0_24, %c0_25] : memref<8x2x512xf32, #tpu.memory_space<vmem>>, vector<1x2x512xf32>
      %24 = vector.shape_cast %23 : vector<1x2x512xf32> to vector<2x512xf32>
      %25 = arith.truncf %arg13 : vector<2x128xf32> to vector<2x128xbf16>
      %cst_26 = arith.constant dense<0.000000e+00> : vector<2x512xf32>
      %26 = tpu.matmul %25, %4, %cst_26 {dimension_numbers = #tpu.dot_dimension_numbers<[1], [0], [0], [1], [0, 0, 1, 1], [], []>} : vector<2x128xbf16>, vector<128x512xbf16>, vector<2x512xf32> -> vector<2x512xf32>
      %27 = arith.addf %24, %26 : vector<2x512xf32>
      %28 = vector.extract_strided_slice %21 {offsets = [0, 0], sizes = [2, 128], strides = [1, 1]} : vector<2x512xf32> to vector<2x128xf32>
      %29 = arith.negf %28 : vector<2x128xf32>
      %30 = math.exp %29 : vector<2x128xf32>
      %cst_27 = arith.constant 1.000000e+00 : f32
      %31 = vector.broadcast %cst_27 : f32 to vector<2x128xf32>
      %32 = arith.addf %31, %30 : vector<2x128xf32>
      %33 = arith.divf %31, %32 : vector<2x128xf32>
      %34 = vector.extract_strided_slice %21 {offsets = [0, 128], sizes = [2, 128], strides = [1, 1]} : vector<2x512xf32> to vector<2x128xf32>
      %35 = arith.negf %34 : vector<2x128xf32>
      %36 = math.exp %35 : vector<2x128xf32>
      %cst_28 = arith.constant 1.000000e+00 : f32
      %37 = vector.broadcast %cst_28 : f32 to vector<2x128xf32>
      %38 = arith.addf %37, %36 : vector<2x128xf32>
      %39 = arith.divf %37, %38 : vector<2x128xf32>
      %40 = vector.extract_strided_slice %21 {offsets = [0, 256], sizes = [2, 128], strides = [1, 1]} : vector<2x512xf32> to vector<2x128xf32>
      %41 = math.tanh %40 : vector<2x128xf32>
      %42 = vector.extract_strided_slice %21 {offsets = [0, 384], sizes = [2, 128], strides = [1, 1]} : vector<2x512xf32> to vector<2x128xf32>
      %43 = arith.negf %42 : vector<2x128xf32>
      %44 = math.exp %43 : vector<2x128xf32>
      %cst_29 = arith.constant 1.000000e+00 : f32
      %45 = vector.broadcast %cst_29 : f32 to vector<2x128xf32>
      %46 = arith.addf %45, %44 : vector<2x128xf32>
      %47 = arith.divf %45, %46 : vector<2x128xf32>
      %48 = arith.mulf %39, %arg14 : vector<2x128xf32>
      %49 = arith.mulf %33, %41 : vector<2x128xf32>
      %50 = arith.addf %48, %49 : vector<2x128xf32>
      %51 = math.tanh %50 : vector<2x128xf32>
      %52 = arith.mulf %47, %51 : vector<2x128xf32>
      %53 = vector.extract_strided_slice %27 {offsets = [0, 0], sizes = [2, 128], strides = [1, 1]} : vector<2x512xf32> to vector<2x128xf32>
      %54 = arith.negf %53 : vector<2x128xf32>
      %55 = math.exp %54 : vector<2x128xf32>
      %cst_30 = arith.constant 1.000000e+00 : f32
      %56 = vector.broadcast %cst_30 : f32 to vector<2x128xf32>
      %57 = arith.addf %56, %55 : vector<2x128xf32>
      %58 = arith.divf %56, %57 : vector<2x128xf32>
      %59 = vector.extract_strided_slice %27 {offsets = [0, 128], sizes = [2, 128], strides = [1, 1]} : vector<2x512xf32> to vector<2x128xf32>
      %60 = arith.negf %59 : vector<2x128xf32>
      %61 = math.exp %60 : vector<2x128xf32>
      %cst_31 = arith.constant 1.000000e+00 : f32
      %62 = vector.broadcast %cst_31 : f32 to vector<2x128xf32>
      %63 = arith.addf %62, %61 : vector<2x128xf32>
      %64 = arith.divf %62, %63 : vector<2x128xf32>
      %65 = vector.extract_strided_slice %27 {offsets = [0, 256], sizes = [2, 128], strides = [1, 1]} : vector<2x512xf32> to vector<2x128xf32>
      %66 = math.tanh %65 : vector<2x128xf32>
      %67 = vector.extract_strided_slice %27 {offsets = [0, 384], sizes = [2, 128], strides = [1, 1]} : vector<2x512xf32> to vector<2x128xf32>
      %68 = arith.negf %67 : vector<2x128xf32>
      %69 = math.exp %68 : vector<2x128xf32>
      %cst_32 = arith.constant 1.000000e+00 : f32
      %70 = vector.broadcast %cst_32 : f32 to vector<2x128xf32>
      %71 = arith.addf %70, %69 : vector<2x128xf32>
      %72 = arith.divf %70, %71 : vector<2x128xf32>
      %73 = arith.mulf %64, %arg15 : vector<2x128xf32>
      %74 = arith.mulf %58, %66 : vector<2x128xf32>
      %75 = arith.addf %73, %74 : vector<2x128xf32>
      %76 = math.tanh %75 : vector<2x128xf32>
      %77 = arith.mulf %72, %76 : vector<2x128xf32>
      %78 = arith.truncf %52 : vector<2x128xf32> to vector<2x128xbf16>
      %79 = arith.index_cast %arg11 : i32 to index
      %c0_33 = arith.constant 0 : index
      %c0_34 = arith.constant 0 : index
      %80 = vector.load %arg5[%79, %c0_33, %c0_34] : memref<8x2x128xbf16, #tpu.memory_space<vmem>>, vector<1x2x128xbf16>
      %81 = vector.shape_cast %80 : vector<1x2x128xbf16> to vector<2x128xbf16>
      %82 = vector.shape_cast %78 : vector<2x128xbf16> to vector<1x2x128xbf16>
      tpu.vector_store %arg5[%79, %c0_33, %c0_34], %82 {strides = array<i32>} : memref<8x2x128xbf16, #tpu.memory_space<vmem>>, vector<1x2x128xbf16>,
      %83 = arith.truncf %77 : vector<2x128xf32> to vector<2x128xbf16>
      %84 = arith.index_cast %15 : i32 to index
      %c0_35 = arith.constant 0 : index
      %c0_36 = arith.constant 0 : index
      %85 = vector.load %arg6[%84, %c0_35, %c0_36] : memref<8x2x128xbf16, #tpu.memory_space<vmem>>, vector<1x2x128xbf16>
      %86 = vector.shape_cast %85 : vector<1x2x128xbf16> to vector<2x128xbf16>
      %87 = vector.shape_cast %83 : vector<2x128xbf16> to vector<1x2x128xbf16>
      tpu.vector_store %arg6[%84, %c0_35, %c0_36], %87 {strides = array<i32>} : memref<8x2x128xbf16, #tpu.memory_space<vmem>>, vector<1x2x128xbf16>,
      scf.yield %52, %77, %50, %75 : vector<2x128xf32>, vector<2x128xf32>, vector<2x128xf32>, vector<2x128xf32>
    }
    %c8_i32_13 = arith.constant 8 : i32
    %c0_14 = arith.constant 0 : index
    %c0_15 = arith.constant 0 : index
    %11 = vector.load %arg7[%c0_14, %c0_15] : memref<2x128xf32, #tpu.memory_space<vmem>>, vector<2x128xf32>
    tpu.vector_store %arg7[%c0_14, %c0_15], %10#0 {strides = array<i32>} : memref<2x128xf32, #tpu.memory_space<vmem>>, vector<2x128xf32>,
    %c0_16 = arith.constant 0 : index
    %c0_17 = arith.constant 0 : index
    %12 = vector.load %arg8[%c0_16, %c0_17] : memref<2x128xf32, #tpu.memory_space<vmem>>, vector<2x128xf32>
    tpu.vector_store %arg8[%c0_16, %c0_17], %10#1 {strides = array<i32>} : memref<2x128xf32, #tpu.memory_space<vmem>>, vector<2x128xf32>,
    %c0_18 = arith.constant 0 : index
    %c0_19 = arith.constant 0 : index
    %13 = vector.load %arg9[%c0_18, %c0_19] : memref<2x128xf32, #tpu.memory_space<vmem>>, vector<2x128xf32>
    tpu.vector_store %arg9[%c0_18, %c0_19], %10#2 {strides = array<i32>} : memref<2x128xf32, #tpu.memory_space<vmem>>, vector<2x128xf32>,
    %c0_20 = arith.constant 0 : index
    %c0_21 = arith.constant 0 : index
    %14 = vector.load %arg10[%c0_20, %c0_21] : memref<2x128xf32, #tpu.memory_space<vmem>>, vector<2x128xf32>
    tpu.vector_store %arg10[%c0_20, %c0_21], %10#3 {strides = array<i32>} : memref<2x128xf32, #tpu.memory_space<vmem>>, vector<2x128xf32>,
    return
  }
  func.func @transform_0(%arg0: i32) -> (i32, i32, i32) {
    %c0_i32 = arith.constant 0 : i32
    %c0_i32_0 = arith.constant 0 : i32
    %c0_i32_1 = arith.constant 0 : i32
    return %arg0, %c0_i32, %c0_i32_0 : i32, i32, i32
  }
  func.func @transform_1(%arg0: i32) -> (i32, i32, i32) {
    %c0_i32 = arith.constant 0 : i32
    %0 = arith.subi %c0_i32, %arg0 : i32
    %c0_i32_0 = arith.constant 0 : i32
    %c1_i32 = arith.constant 1 : i32
    %c0_i32_1 = arith.constant 0 : i32
    return %0, %c0_i32_0, %c1_i32 : i32, i32, i32
  }
  func.func @transform_2(%arg0: i32) -> (i32, i32) {
    %c0_i32 = arith.constant 0 : i32
    %c0_i32_0 = arith.constant 0 : i32
    %c0_i32_1 = arith.constant 0 : i32
    return %c0_i32, %c0_i32_0 : i32, i32
  }
  func.func @transform_3(%arg0: i32) -> (i32, i32) {
    %c0_i32 = arith.constant 0 : i32
    %c0_i32_0 = arith.constant 0 : i32
    %c0_i32_1 = arith.constant 0 : i32
    return %c0_i32, %c0_i32_0 : i32, i32
  }
  func.func @transform_4(%arg0: i32) -> (i32, i32, i32) {
    %c0_i32 = arith.constant 0 : i32
    %c0_i32_0 = arith.constant 0 : i32
    %c0_i32_1 = arith.constant 0 : i32
    return %arg0, %c0_i32, %c0_i32_0 : i32, i32, i32
  }
  func.func @transform_5(%arg0: i32) -> (i32, i32, i32) {
    %c0_i32 = arith.constant 0 : i32
    %0 = arith.subi %c0_i32, %arg0 : i32
    %c0_i32_0 = arith.constant 0 : i32
    %c0_i32_1 = arith.constant 0 : i32
    %c0_i32_2 = arith.constant 0 : i32
    return %0, %c0_i32_0, %c0_i32_1 : i32, i32, i32
  }
}

module attributes {stable_mosaic.version = 11 : i64} {
  func.func @_head_kernel(%arg0: i32, %arg1: memref<16x128xbf16, #tpu.memory_space<vmem>>, %arg2: memref<16x128xbf16, #tpu.memory_space<vmem>>, %arg3: memref<16x128xbf16, #tpu.memory_space<vmem>>, %arg4: memref<128x128xbf16, #tpu.memory_space<vmem>>, %arg5: memref<128x128xbf16, #tpu.memory_space<vmem>>, %arg6: memref<128x128xbf16, #tpu.memory_space<vmem>>, %arg7: memref<1x128xf32, #tpu.memory_space<vmem>>, %arg8: memref<64x32xbf16, #tpu.memory_space<vmem>>, %arg9: memref<1x32xf32, #tpu.memory_space<vmem>>, %arg10: memref<16x128xbf16, #tpu.memory_space<vmem>>, %arg11: memref<1x128xf32, #tpu.memory_space<vmem>>, %arg12: memref<16x128xf32, #tpu.memory_space<vmem>>) attributes {dimension_semantics = [#tpu.dimension_semantics<parallel>], iteration_bounds = array<i64: 1>, scalar_prefetch = 0 : i64, scratch_operands = 0 : i64, tpu.core_type = #tpu.core_type<tc>, window_params = [{transform_indices = @transform_0, window_bounds = array<i64: 16, 128>}, {transform_indices = @transform_1, window_bounds = array<i64: 16, 128>}, {transform_indices = @transform_2, window_bounds = array<i64: 16, 128>}, {pipeline_mode = #tpu.pipeline_mode<synchronous>, transform_indices = @transform_3, window_bounds = array<i64: 128, 128>}, {pipeline_mode = #tpu.pipeline_mode<synchronous>, transform_indices = @transform_4, window_bounds = array<i64: 128, 128>}, {pipeline_mode = #tpu.pipeline_mode<synchronous>, transform_indices = @transform_5, window_bounds = array<i64: 128, 128>}, {pipeline_mode = #tpu.pipeline_mode<synchronous>, transform_indices = @transform_6, window_bounds = array<i64: 1, 128>}, {pipeline_mode = #tpu.pipeline_mode<synchronous>, transform_indices = @transform_7, window_bounds = array<i64: 64, 32>}, {pipeline_mode = #tpu.pipeline_mode<synchronous>, transform_indices = @transform_8, window_bounds = array<i64: 1, 32>}, {pipeline_mode = #tpu.pipeline_mode<synchronous>, transform_indices = @transform_9, window_bounds = array<i64: 16, 128>}, {pipeline_mode = #tpu.pipeline_mode<synchronous>, transform_indices = @transform_10, window_bounds = array<i64: 1, 128>}, {transform_indices = @transform_11, window_bounds = array<i64: 16, 128>}]} {
    %c0 = arith.constant 0 : index
    %c0_0 = arith.constant 0 : index
    %0 = vector.load %arg1[%c0, %c0_0] : memref<16x128xbf16, #tpu.memory_space<vmem>>, vector<16x128xbf16>
    %c0_1 = arith.constant 0 : index
    %c0_2 = arith.constant 0 : index
    %1 = vector.load %arg4[%c0_1, %c0_2] : memref<128x128xbf16, #tpu.memory_space<vmem>>, vector<128x128xbf16>
    %cst = arith.constant dense<0.000000e+00> : vector<16x128xf32>
    %2 = tpu.matmul %0, %1, %cst {dimension_numbers = #tpu.dot_dimension_numbers<[1], [0], [0], [1], [0, 0, 1, 1], [], []>} : vector<16x128xbf16>, vector<128x128xbf16>, vector<16x128xf32> -> vector<16x128xf32>
    %c0_3 = arith.constant 0 : index
    %c0_4 = arith.constant 0 : index
    %3 = vector.load %arg2[%c0_3, %c0_4] : memref<16x128xbf16, #tpu.memory_space<vmem>>, vector<16x128xbf16>
    %c0_5 = arith.constant 0 : index
    %c0_6 = arith.constant 0 : index
    %4 = vector.load %arg5[%c0_5, %c0_6] : memref<128x128xbf16, #tpu.memory_space<vmem>>, vector<128x128xbf16>
    %cst_7 = arith.constant dense<0.000000e+00> : vector<16x128xf32>
    %5 = tpu.matmul %3, %4, %cst_7 {dimension_numbers = #tpu.dot_dimension_numbers<[1], [0], [0], [1], [0, 0, 1, 1], [], []>} : vector<16x128xbf16>, vector<128x128xbf16>, vector<16x128xf32> -> vector<16x128xf32>
    %6 = arith.addf %2, %5 : vector<16x128xf32>
    %c0_8 = arith.constant 0 : index
    %c0_9 = arith.constant 0 : index
    %7 = vector.load %arg3[%c0_8, %c0_9] : memref<16x128xbf16, #tpu.memory_space<vmem>>, vector<16x128xbf16>
    %c0_10 = arith.constant 0 : index
    %c0_11 = arith.constant 0 : index
    %8 = vector.load %arg6[%c0_10, %c0_11] : memref<128x128xbf16, #tpu.memory_space<vmem>>, vector<128x128xbf16>
    %cst_12 = arith.constant dense<0.000000e+00> : vector<16x128xf32>
    %9 = tpu.matmul %7, %8, %cst_12 {dimension_numbers = #tpu.dot_dimension_numbers<[1], [0], [0], [1], [0, 0, 1, 1], [], []>} : vector<16x128xbf16>, vector<128x128xbf16>, vector<16x128xf32> -> vector<16x128xf32>
    %10 = arith.addf %6, %9 : vector<16x128xf32>
    %c0_13 = arith.constant 0 : index
    %c0_14 = arith.constant 0 : index
    %11 = vector.load %arg7[%c0_13, %c0_14] : memref<1x128xf32, #tpu.memory_space<vmem>>, vector<1x128xf32>
    %12 = vector.broadcast %11 : vector<1x128xf32> to vector<16x128xf32>
    %13 = arith.addf %10, %12 : vector<16x128xf32>
    %14 = vector.extract_strided_slice %13 {offsets = [0, 0], sizes = [16, 64], strides = [1, 1]} : vector<16x128xf32> to vector<16x64xf32>
    %15 = vector.extract_strided_slice %13 {offsets = [0, 64], sizes = [16, 64], strides = [1, 1]} : vector<16x128xf32> to vector<16x64xf32>
    %16 = arith.negf %15 : vector<16x64xf32>
    %17 = math.exp %16 : vector<16x64xf32>
    %cst_15 = arith.constant 1.000000e+00 : f32
    %18 = vector.broadcast %cst_15 : f32 to vector<16x64xf32>
    %19 = arith.addf %18, %17 : vector<16x64xf32>
    %20 = arith.divf %18, %19 : vector<16x64xf32>
    %21 = arith.mulf %14, %20 : vector<16x64xf32>
    %22 = arith.truncf %21 : vector<16x64xf32> to vector<16x64xbf16>
    %c0_16 = arith.constant 0 : index
    %c0_17 = arith.constant 0 : index
    %23 = vector.load %arg8[%c0_16, %c0_17] : memref<64x32xbf16, #tpu.memory_space<vmem>>, vector<64x32xbf16>
    %cst_18 = arith.constant dense<0.000000e+00> : vector<16x32xf32>
    %24 = tpu.matmul %22, %23, %cst_18 {dimension_numbers = #tpu.dot_dimension_numbers<[1], [0], [0], [1], [0, 0, 1, 1], [], []>} : vector<16x64xbf16>, vector<64x32xbf16>, vector<16x32xf32> -> vector<16x32xf32>
    %c0_19 = arith.constant 0 : index
    %c0_20 = arith.constant 0 : index
    %25 = vector.load %arg9[%c0_19, %c0_20] : memref<1x32xf32, #tpu.memory_space<vmem>>, vector<1x32xf32>
    %26 = vector.broadcast %25 : vector<1x32xf32> to vector<16x32xf32>
    %27 = arith.addf %24, %26 : vector<16x32xf32>
    %28 = vector.extract_strided_slice %27 {offsets = [0, 0], sizes = [16, 16], strides = [1, 1]} : vector<16x32xf32> to vector<16x16xf32>
    %29 = vector.extract_strided_slice %27 {offsets = [0, 16], sizes = [16, 16], strides = [1, 1]} : vector<16x32xf32> to vector<16x16xf32>
    %30 = arith.negf %29 : vector<16x16xf32>
    %31 = math.exp %30 : vector<16x16xf32>
    %cst_21 = arith.constant 1.000000e+00 : f32
    %32 = vector.broadcast %cst_21 : f32 to vector<16x16xf32>
    %33 = arith.addf %32, %31 : vector<16x16xf32>
    %34 = arith.divf %32, %33 : vector<16x16xf32>
    %35 = arith.mulf %28, %34 : vector<16x16xf32>
    %36 = arith.truncf %35 : vector<16x16xf32> to vector<16x16xbf16>
    %c0_22 = arith.constant 0 : index
    %c0_23 = arith.constant 0 : index
    %37 = vector.load %arg10[%c0_22, %c0_23] : memref<16x128xbf16, #tpu.memory_space<vmem>>, vector<16x128xbf16>
    %cst_24 = arith.constant dense<0.000000e+00> : vector<16x128xf32>
    %38 = tpu.matmul %36, %37, %cst_24 {dimension_numbers = #tpu.dot_dimension_numbers<[1], [0], [0], [1], [0, 0, 1, 1], [], []>} : vector<16x16xbf16>, vector<16x128xbf16>, vector<16x128xf32> -> vector<16x128xf32>
    %c0_25 = arith.constant 0 : index
    %c0_26 = arith.constant 0 : index
    %39 = vector.load %arg11[%c0_25, %c0_26] : memref<1x128xf32, #tpu.memory_space<vmem>>, vector<1x128xf32>
    %40 = vector.broadcast %39 : vector<1x128xf32> to vector<16x128xf32>
    %41 = arith.addf %38, %40 : vector<16x128xf32>
    %c0_27 = arith.constant 0 : index
    %c0_28 = arith.constant 0 : index
    %42 = vector.load %arg12[%c0_27, %c0_28] : memref<16x128xf32, #tpu.memory_space<vmem>>, vector<16x128xf32>
    tpu.vector_store %arg12[%c0_27, %c0_28], %41 {strides = array<i32>} : memref<16x128xf32, #tpu.memory_space<vmem>>, vector<16x128xf32>,
    return
  }
  func.func @transform_0(%arg0: i32) -> (i32, i32) {
    %c0_i32 = arith.constant 0 : i32
    %c0_i32_0 = arith.constant 0 : i32
    return %arg0, %c0_i32 : i32, i32
  }
  func.func @transform_1(%arg0: i32) -> (i32, i32) {
    %c0_i32 = arith.constant 0 : i32
    %c0_i32_0 = arith.constant 0 : i32
    return %arg0, %c0_i32 : i32, i32
  }
  func.func @transform_2(%arg0: i32) -> (i32, i32) {
    %c0_i32 = arith.constant 0 : i32
    %c0_i32_0 = arith.constant 0 : i32
    return %arg0, %c0_i32 : i32, i32
  }
  func.func @transform_3(%arg0: i32) -> (i32, i32) {
    %c0_i32 = arith.constant 0 : i32
    %c0_i32_0 = arith.constant 0 : i32
    %c0_i32_1 = arith.constant 0 : i32
    return %c0_i32, %c0_i32_0 : i32, i32
  }
  func.func @transform_4(%arg0: i32) -> (i32, i32) {
    %c0_i32 = arith.constant 0 : i32
    %c0_i32_0 = arith.constant 0 : i32
    %c0_i32_1 = arith.constant 0 : i32
    return %c0_i32, %c0_i32_0 : i32, i32
  }
  func.func @transform_5(%arg0: i32) -> (i32, i32) {
    %c0_i32 = arith.constant 0 : i32
    %c0_i32_0 = arith.constant 0 : i32
    %c0_i32_1 = arith.constant 0 : i32
    return %c0_i32, %c0_i32_0 : i32, i32
  }
  func.func @transform_6(%arg0: i32) -> (i32, i32) {
    %c0_i32 = arith.constant 0 : i32
    %c0_i32_0 = arith.constant 0 : i32
    %c0_i32_1 = arith.constant 0 : i32
    return %c0_i32, %c0_i32_0 : i32, i32
  }
  func.func @transform_7(%arg0: i32) -> (i32, i32) {
    %c0_i32 = arith.constant 0 : i32
    %c0_i32_0 = arith.constant 0 : i32
    %c0_i32_1 = arith.constant 0 : i32
    return %c0_i32, %c0_i32_0 : i32, i32
  }
  func.func @transform_8(%arg0: i32) -> (i32, i32) {
    %c0_i32 = arith.constant 0 : i32
    %c0_i32_0 = arith.constant 0 : i32
    %c0_i32_1 = arith.constant 0 : i32
    return %c0_i32, %c0_i32_0 : i32, i32
  }
  func.func @transform_9(%arg0: i32) -> (i32, i32) {
    %c0_i32 = arith.constant 0 : i32
    %c0_i32_0 = arith.constant 0 : i32
    %c0_i32_1 = arith.constant 0 : i32
    return %c0_i32, %c0_i32_0 : i32, i32
  }
  func.func @transform_10(%arg0: i32) -> (i32, i32) {
    %c0_i32 = arith.constant 0 : i32
    %c0_i32_0 = arith.constant 0 : i32
    %c0_i32_1 = arith.constant 0 : i32
    return %c0_i32, %c0_i32_0 : i32, i32
  }
  func.func @transform_11(%arg0: i32) -> (i32, i32) {
    %c0_i32 = arith.constant 0 : i32
    %c0_i32_0 = arith.constant 0 : i32
    return %arg0, %c0_i32 : i32, i32
  }
}

</mosaic_0001>

<bundles_post_ra>
// kernel: ema_reconstruction_forward.7
= control target key start
LH: loop header
LB: loop body
LE: loop exit
PB: predicated region body
PF: predicated region fallthrough
CT: control target
= control target key end

     0   :  { %14 = vsyncpa [#allocation3], 0  ;;  %s1279_s0 = inlined_call_operand.vmem [shape: f32[16,32], index: 0, kind: input, shape index: {}]   ;;  %s1280_s1 = inlined_call_operand.hbm [shape: bf16[32,128], index: 1, kind: input, shape index: {}]   ;;  %s1281_s2 = inlined_call_operand.vmem [shape: f32[1,128], index: 2, kind: input, shape index: {}]   ;;  %s1282_s3 = inlined_call_operand.vmem [shape: f32[1,128], index: 3, kind: input, shape index: {}]   ;;  %s1283_s4 = inlined_call_operand.vmem [shape: f32[1,128], index: 4, kind: input, shape index: {}]   ;;  %s1284_s5 = inlined_call_operand.hbm [shape: bf16[128,1024], index: 5, kind: input, shape index: {}]   ;;  %s1285_s6 = inlined_call_operand.vmem [shape: f32[1,1024], index: 6, kind: input, shape index: {}]   ;;  %s1286_s7 = inlined_call_operand.vmem [shape: bf16[16,128], index: 7, kind: output, shape index: {0}]   ;;  %s1287_s8 = inlined_call_operand.vmem [shape: f32[16,1024], index: 8, kind: output, shape index: {1}]  }
   0x1   :  { %s22_s29 = sshll.u32 %s1280_s1, 4  ;;  %s23_s29 = int_to_ptr.hbm [resolvable:$true] %s22_s29 }
   0x2   :  { %15 = vsyncpa [#allocation5], 0  ;;  %s1117_s30 = smov [#allocation2]   ;;  %s41_s12 = sshll.u32 %s1284_s5, 4  ;;  %s42_s12 = int_to_ptr.hbm [resolvable:$true] %s41_s12 }
   0x3   :  { %s24_s9 = sshll.u32 %s1117_s30, 4  ;;  %s1118_s13 = smov 64   ;;  %s25_s9 = int_to_ptr.vmem [resolvable:$true] %s24_s9 }
   0x4   :  { %s1119_s14 = smov 4   ;;  %s1120_s15 = smov [#allocation4]  }
   0x5   :  { %30 = dma.hbm_to_vmem [thread:$0]  %s23_s29, 256, %s25_s9, [#allocation3], %s1118_s13, %s1118_s13, %s1119_s14  }
   0x6   :  { %s43_s16 = sshll.u32 %s1120_s15, 4  ;;  %s1121_s17 = smov 512   ;;  %s44_s16 = int_to_ptr.vmem [resolvable:$true] %s43_s16 }
   0x7   :  { %s1122_s18 = smov 32  }
   0x8   :  { %49 = dma.hbm_to_vmem [thread:$0]  %s42_s12, 8192, %s44_s16, [#allocation5], %s1121_s17, %s1121_s17, %s1122_s18  }
   0x9   :  { %1113 = dma.done.wait [#allocation3], 256  }
   0xa   :  { %1114 = vsyncadd [#allocation3], 4294967040 }
   0xb   :  { %1115 = dma.done.wait [#allocation5], 8192  }
   0xc   :  { %1116 = vsyncadd [#allocation5], 4294959104  ;;  %v979_v0 = vld [vmem:[#allocation2 + $0x8] sm:$0xff]  ;;  %v978_v1 = vld [vmem:[#allocation2] sm:$0xff]  ;;  %vm84_vm0 = vcmask 261120   ;;  %v1123_v10 = vmov 128.0  }
   0xd   :  { %v61_v2 = vld [vmem:[%s1279_s0] sm:$0xff]  ;;  %94 = vmatpush.bf16.msra.mxu0 %v979_v0  ;;  %v62_v3 = vld [vmem:[%s1279_s0 + $0x8] sm:$0xff]  ;;  %1059 = vrcp.f32 %v1123_v10  ;;  %v948_v25 = vld [vmem:[#allocation4 + $0x1c0] sm:$0xf] }
   0xe   :  { %v63_v4 = vpack.c.bf16 %v62_v3, %v61_v2  ;;  %v1056_v5 = vld [vmem:[%s1281_s2] ss:$0 sm:$0xff]  ;;  %v1040_v26 = vld [vmem:[#allocation4 + $0x1dc] sm:$0xf0]  ;;  %v1036_v27 = vld [vmem:[#allocation4 + $0x1c4] sm:$0xf] }
   0xf   :  { %v949_v28 = vor.u32 %v1040_v26, %v948_v25  ;;  %v950_v29 = vld [vmem:[#allocation4 + $0x1e0] sm:$0xf0]  ;;  %v956_v30 = vld [vmem:[#allocation4 + $0x1c8] sm:$0xf]  ;;  %v1037_v34 = vld [vmem:[#allocation4 + $0x1cc] sm:$0xf] }
  0x10   :  { %v1041_v31 = vld [vmem:[#allocation4 + $0x1e4] sm:$0xf0]  ;;  %v953_v32 = vor.u32 %v1036_v27, %v950_v29  ;;  %v958_v35 = vld [vmem:[#allocation4 + $0x1e8] sm:$0xf0]  ;;  %v916_v37 = vld [vmem:[#allocation4 + $0x180] sm:$0xf] }
  0x11   :  { %95 = vmatpush.bf16.msra.mxu0 %v978_v1  ;;  %v957_v33 = vor.u32 %v1041_v31, %v956_v30  ;;  %575 = vmatpush.bf16.msra.mxu1 %v949_v28  ;;  %v961_v36 = vor.u32 %v1037_v34, %v958_v35  ;;  %v1032_v38 = vld [vmem:[#allocation4 + $0x19c] sm:$0xf0]  ;;  %v1028_v39 = vld [vmem:[#allocation4 + $0x184] sm:$0xf]  ;;  %v924_v42 = vld [vmem:[#allocation4 + $0x188] sm:$0xf] }
  0x12   :  { %589 = vmatpush.bf16.msra.mxu2 %v953_v32  ;;  %v917_v40 = vor.u32 %v1032_v38, %v916_v37  ;;  %v918_v41 = vld [vmem:[#allocation4 + $0x1a0] sm:$0xf0]  ;;  %v1033_v43 = vld [vmem:[#allocation4 + $0x1a4] sm:$0xf0]  ;;  %v1029_v46 = vld [vmem:[#allocation4 + $0x18c] sm:$0xf] }
  0x13   :  { %v1060_v11 = vpop.eup %1059  ;;  %603 = vmatpush.bf16.msra.mxu3 %v957_v33  ;;  %v921_v44 = vor.u32 %v1028_v39, %v918_v41  ;;  %v925_v45 = vor.u32 %v1033_v43, %v924_v42  ;;  %v926_v47 = vld [vmem:[#allocation4 + $0x1a8] sm:$0xf0]  ;;  %v884_v49 = vld [vmem:[#allocation4 + $0x140] sm:$0xf]  ;;  %v1020_v51 = vld [vmem:[#allocation4 + $0x144] sm:$0xf] }
  0x14   :  { %721 = vmatmul.msk.bf16.vlgmr.msra.gmra.mxu0 %vm84_vm0, %v63_v4  ;;  %v107_v12 = vmul.f32 128.0, %v1060_v11  ;;  %vm111_vm1 = vweird.f32 %v1060_v11  ;;  %v929_v48 = vor.u32 %v1029_v46, %v926_v47  ;;  %v1024_v50 = vld [vmem:[#allocation4 + $0x15c] sm:$0xf0]  ;;  %v886_v53 = vld [vmem:[#allocation4 + $0x160] sm:$0xf0] }
  0x15   :  { %617 = vmatpush.bf16.msrb.mxu0 %v961_v36  ;;  %576 = vmatpush.bf16.msra.mxu1 %v917_v40  ;;  %v885_v52 = vor.u32 %v1024_v50, %v884_v49  ;;  %v892_v54 = vld [vmem:[#allocation4 + $0x148] sm:$0xf]  ;;  %v889_v56 = vor.u32 %v1020_v51, %v886_v53  ;;  %v1021_v58 = vld [vmem:[#allocation4 + $0x14c] sm:$0xf]  ;;  %v852_v61 = vld [vmem:[#allocation4 + $0x100] sm:$0xf] }
  0x16   :  { %v108_v13 = vsub.f32 1.0, %v107_v12  ;;  %590 = vmatpush.bf16.msra.mxu2 %v921_v44  ;;  %v1025_v55 = vld [vmem:[#allocation4 + $0x164] sm:$0xf0]  ;;  %v894_v59 = vld [vmem:[#allocation4 + $0x168] sm:$0xf0] }
  0x17   :  { %604 = vmatpush.bf16.msra.mxu3 %v925_v45  ;;  %v893_v57 = vor.u32 %v1025_v55, %v892_v54  ;;  %v897_v60 = vor.u32 %v1021_v58, %v894_v59  ;;  %v1016_v62 = vld [vmem:[#allocation4 + $0x11c] sm:$0xf0]  ;;  %v1012_v63 = vld [vmem:[#allocation4 + $0x104] sm:$0xf]  ;;  %v860_v2 = vld [vmem:[#allocation4 + $0x108] sm:$0xf] }
  0x18   :  { %v109_v14 = vmul.f32 %v1060_v11, %v108_v13  ;;  %v853_v0 = vor.u32 %v1016_v62, %v852_v61  ;;  %v854_v1 = vld [vmem:[#allocation4 + $0x120] sm:$0xf0]  ;;  %v1017_v3 = vld [vmem:[#allocation4 + $0x124] sm:$0xf0]  ;;  %v1008_v10 = vld [vmem:[#allocation4 + $0xdc] sm:$0xf0] }
  0x19   :  { %618 = vmatpush.bf16.msrb.mxu0 %v929_v48  ;;  %577 = vmatpush.bf16.msra.mxu1 %v885_v52  ;;  %v857_v4 = vor.u32 %v1012_v63, %v854_v1  ;;  %v822_v13 = vld [vmem:[#allocation4 + $0xe0] sm:$0xf0]  ;;  %v1000_v25 = vld [vmem:[#allocation4 + $0x9c] sm:$0xf0]  ;;  %v796_v29 = vld [vmem:[#allocation4 + $0x88] sm:$0xf] }
  0x1a   :  { %v110_v15 = vadd.f32 %v1060_v11, %v109_v14  ;;  %591 = vmatpush.bf16.msra.mxu2 %v889_v56  ;;  %v828_v14 = vld [vmem:[#allocation4 + $0xc8] sm:$0xf]  ;;  %v996_v26 = vld [vmem:[#allocation4 + $0x84] sm:$0xf]  ;;  %v997_v33 = vld [vmem:[#allocation4 + $0x8c] sm:$0xf] }
  0x1b   :  { %605 = vmatpush.bf16.msra.mxu3 %v893_v57  ;;  %v790_v28 = vld [vmem:[#allocation4 + $0xa0] sm:$0xf0]  ;;  %v1001_v30 = vld [vmem:[#allocation4 + $0xa4] sm:$0xf0]  ;;  %v798_v34 = vld [vmem:[#allocation4 + $0xa8] sm:$0xf0] }
  0x1c   :  { %v1184_v16 = vsel %vm111_vm1, %v1060_v11, %v110_v15  ;;  %v1004_v11 = vld [vmem:[#allocation4 + $0xc4] sm:$0xf]  ;;  %v1009_v15 = vld [vmem:[#allocation4 + $0xe4] sm:$0xf0]  ;;  %v793_v31 = vor.u32 %v996_v26, %v790_v28  ;;  %v797_v32 = vor.u32 %v1001_v30, %v796_v29  ;;  %v801_v35 = vor.u32 %v997_v33, %v798_v34  ;;  %v756_v36 = vld [vmem:[#allocation4 + $0x40] sm:$0xf] }
  0x1d   :  { %619 = vmatpush.bf16.msrb.mxu0 %v897_v60  ;;  %578 = vmatpush.bf16.msra.mxu1 %v853_v0  ;;  %v992_v37 = vld [vmem:[#allocation4 + $0x5c] sm:$0xf0]  ;;  %v988_v38 = vld [vmem:[#allocation4 + $0x44] sm:$0xf]  ;;  %v764_v41 = vld [vmem:[#allocation4 + $0x48] sm:$0xf] }
  0x1e   :  { %592 = vmatpush.bf16.msra.mxu2 %v857_v4  ;;  %v757_v39 = vor.u32 %v992_v37, %v756_v36  ;;  %v758_v40 = vld [vmem:[#allocation4 + $0x60] sm:$0xf0]  ;;  %v993_v42 = vld [vmem:[#allocation4 + $0x64] sm:$0xf0]  ;;  %v989_v45 = vld [vmem:[#allocation4 + $0x4c] sm:$0xf] }
  0x1f   :  { %v761_v43 = vor.u32 %v988_v38, %v758_v40  ;;  %v765_v44 = vor.u32 %v993_v42, %v764_v41  ;;  %v766_v46 = vld [vmem:[#allocation4 + $0x68] sm:$0xf0]  ;;  %v724_v48 = vld [vmem:[#allocation4] sm:$0xf]  ;;  %v980_v50 = vld [vmem:[#allocation4 + $0x4] sm:$0xf] }
  0x20   :  { %v769_v47 = vor.u32 %v989_v45, %v766_v46  ;;  %v984_v49 = vld [vmem:[#allocation4 + $0x1c] sm:$0xf0]  ;;  %v726_v52 = vld [vmem:[#allocation4 + $0x20] sm:$0xf0]  ;;  %v732_v53 = vld [vmem:[#allocation4 + $0x8] sm:$0xf] }
  0x21   :  { %v725_v51 = vor.u32 %v984_v49, %v724_v48  ;;  %v985_v54 = vld [vmem:[#allocation4 + $0x24] sm:$0xf0]  ;;  %v729_v55 = vor.u32 %v980_v50, %v726_v52  ;;  %v981_v57 = vld [vmem:[#allocation4 + $0xc] sm:$0xf]  ;;  %v964_v59 = vld [vmem:[#allocation4 + $0x1d0] sm:$0xf] }
  0x22   :  { %v733_v56 = vor.u32 %v985_v54, %v732_v53  ;;  %v734_v58 = vld [vmem:[#allocation4 + $0x28] sm:$0xf0]  ;;  %v1042_v61 = vld [vmem:[#allocation4 + $0x1ec] sm:$0xf0]  ;;  %v1038_v62 = vld [vmem:[#allocation4 + $0x1d4] sm:$0xf] }
  0x23   :  { %v737_v60 = vor.u32 %v981_v57, %v734_v58  ;;  %v966_v63 = vld [vmem:[#allocation4 + $0x1f0] sm:$0xf0]  ;;  %v965_v0 = vor.u32 %v1042_v61, %v964_v59  ;;  %v1039_v4 = vld [vmem:[#allocation4 + $0x1dc] sm:$0xf]  ;;  %v900_v26 = vld [vmem:[#allocation4 + $0x150] sm:$0xf] }
  0x24   :  { %v969_v1 = vor.u32 %v1038_v62, %v966_v63  ;;  %v1022_v29 = vld [vmem:[#allocation4 + $0x154] sm:$0xf]  ;;  %v1027_v33 = vld [vmem:[#allocation4 + $0x174] sm:$0xf0]  ;;  %v1023_v34 = vld [vmem:[#allocation4 + $0x15c] sm:$0xf] }
  0x25   :  { %v902_v30 = vld [vmem:[#allocation4 + $0x170] sm:$0xf0]  ;;  %v868_v38 = vld [vmem:[#allocation4 + $0x110] sm:$0xf]  ;;  %v1019_v45 = vld [vmem:[#allocation4 + $0x134] sm:$0xf0] }
  0x26   :  { %v1014_v40 = vld [vmem:[#allocation4 + $0x114] sm:$0xf]  ;;  %v1015_v49 = vld [vmem:[#allocation4 + $0x11c] sm:$0xf]  ;;  %v844_v59 = vld [vmem:[#allocation4 + $0xd8] sm:$0xf] }
  0x27   :  { %v878_v50 = vld [vmem:[#allocation4 + $0x138] sm:$0xf0]  ;;  %v1006_v57 = vld [vmem:[#allocation4 + $0xd4] sm:$0xf]  ;;  %v1011_v62 = vld [vmem:[#allocation4 + $0xf4] sm:$0xf0] }
  0x28   :  { %v838_v58 = vld [vmem:[#allocation4 + $0xf0] sm:$0xf0]  ;;  %v1007_v63 = vld [vmem:[#allocation4 + $0xdc] sm:$0xf] }
  0x29   :  { %v841_v61 = vor.u32 %v1006_v57, %v838_v58 }
  0x91   :  { %v97_v6 = vpop.f32.mrf.mxu0 }
  0x92   :  { %v98_v7 = vadd.f32 %v1056_v5, %v97_v6  ;;  %v1013_v6 = vld [vmem:[#allocation4 + $0x10c] sm:$0xf] }
  0x94   :  { %102 = vadd.xlane.f32.xlu0 %v98_v7 }
  0x99   :  { %v99_v8 = vpop.f32.mrf.mxu0 }
  0x9a   :  { %v100_v9 = vadd.f32 %v1056_v5, %v99_v8  ;;  %v861_v5 = vor.u32 %v1017_v3, %v860_v2  ;;  %v972_v2 = vld [vmem:[#allocation4 + $0x1d8] sm:$0xf] }
  0x9b   :  { %v1043_v3 = vld [vmem:[#allocation4 + $0x1f4] sm:$0xf0] }
  0x9c   :  { %104 = vadd.xlane.f32.xlu0 %v100_v9  ;;  %606 = vmatpush.bf16.msra.mxu3 %v861_v5  ;;  %v973_v5 = vor.u32 %v1043_v3, %v972_v2  ;;  %v804_v3 = vld [vmem:[#allocation4 + $0x90] sm:$0xf] }
 0x107   :  { %v103_v17 = vpop.xlane.xlu0 %102 }
 0x108   :  { %v113_v18 = vmul.f32 %v1184_v16, %v103_v17  ;;  %v825_v17 = vor.u32 %v1004_v11, %v822_v13  ;;  %v934_v13 = vld [vmem:[#allocation4 + $0x1b0] sm:$0xf0] }
 0x10a   :  { %v1187_v19 = vsub.f32 %v98_v7, %v113_v18  ;;  %v862_v7 = vld [vmem:[#allocation4 + $0x128] sm:$0xf0]  ;;  %v829_v18 = vor.u32 %v1009_v15, %v828_v14  ;;  %593 = vmatpush.bf16.msra.mxu2 %v825_v17  ;;  %v940_v14 = vld [vmem:[#allocation4 + $0x198] sm:$0xf] }
 0x10b   :  { %v865_v8 = vor.u32 %v1013_v6, %v862_v7  ;;  %v974_v6 = vld [vmem:[#allocation4 + $0x1f8] sm:$0xf0]  ;;  %v932_v7 = vld [vmem:[#allocation4 + $0x190] sm:$0xf] }
 0x10c   :  { %v117_v20 = vmul.f32 %v1187_v19, %v1187_v19  ;;  %607 = vmatpush.bf16.msra.mxu3 %v829_v18  ;;  %v1035_v18 = vld [vmem:[#allocation4 + $0x1b4] sm:$0xf0] }
 0x10d   :  { %620 = vmatpush.bf16.msrb.mxu0 %v865_v8  ;;  %v1034_v8 = vld [vmem:[#allocation4 + $0x1ac] sm:$0xf0] }
 0x10e   :  { %119 = vadd.xlane.f32.xlu1 %v117_v20  ;;  %v1005_v20 = vld [vmem:[#allocation4 + $0xcc] sm:$0xf]  ;;  %594 = vmatpush.bf16.msra.mxu2 %v793_v31  ;;  %v933_v11 = vor.u32 %v1034_v8, %v932_v7  ;;  %v908_v31 = vld [vmem:[#allocation4 + $0x158] sm:$0xf]  ;;  %v806_v8 = vld [vmem:[#allocation4 + $0xb0] sm:$0xf0] }
 0x10f   :  { %v105_v21 = vpop.xlane.xlu0 %104  ;;  %v909_v36 = vor.u32 %v1027_v33, %v908_v31  ;;  %v991_v33 = vld [vmem:[#allocation4 + $0x5c] sm:$0xf] }
 0x110   :  { %v114_v22 = vmul.f32 %v1184_v16, %v105_v21  ;;  %v830_v21 = vld [vmem:[#allocation4 + $0xe8] sm:$0xf0]  ;;  %608 = vmatpush.bf16.msra.mxu3 %v797_v32  ;;  %v905_v32 = vor.u32 %v1022_v29, %v902_v30 }
 0x112   :  { %v1192_v23 = vsub.f32 %v100_v9, %v114_v22  ;;  %v820_v9 = vld [vmem:[#allocation4 + $0xc0] sm:$0xf]  ;;  %v833_v22 = vor.u32 %v1005_v20, %v830_v21  ;;  %595 = vmatpush.bf16.msra.mxu2 %v761_v43  ;;  %v1031_v20 = vld [vmem:[#allocation4 + $0x19c] sm:$0xf]  ;;  %v870_v43 = vld [vmem:[#allocation4 + $0x130] sm:$0xf0] }
 0x113   :  { %v821_v12 = vor.u32 %v1008_v10, %v820_v9  ;;  %v977_v10 = vor.u32 %v1039_v4, %v974_v6  ;;  %v942_v21 = vld [vmem:[#allocation4 + $0x1b8] sm:$0xf0]  ;;  %v1002_v4 = vld [vmem:[#allocation4 + $0xac] sm:$0xf0] }
 0x114   :  { %v118_v24 = vmul.f32 %v1192_v23, %v1192_v23  ;;  %621 = vmatpush.bf16.msrb.mxu0 %v833_v22  ;;  %609 = vmatpush.bf16.msra.mxu3 %v765_v44  ;;  %v941_v22 = vor.u32 %v1035_v18, %v940_v14  ;;  %v876_v44 = vld [vmem:[#allocation4 + $0x118] sm:$0xf]  ;;  %v805_v7 = vor.u32 %v1002_v4, %v804_v3  ;;  %v772_v18 = vld [vmem:[#allocation4 + $0x50] sm:$0xf] }
 0x115   :  { %579 = vmatpush.bf16.msra.mxu1 %v821_v12  ;;  %v1030_v12 = vld [vmem:[#allocation4 + $0x194] sm:$0xf]  ;;  %v877_v48 = vor.u32 %v1019_v45, %v876_v44  ;;  %v987_v44 = vld [vmem:[#allocation4 + $0x34] sm:$0xf0]  ;;  %v983_v45 = vld [vmem:[#allocation4 + $0x1c] sm:$0xf] }
 0x116   :  { %121 = vadd.xlane.f32.xlu1 %v118_v24  ;;  %v788_v24 = vld [vmem:[#allocation4 + $0x80] sm:$0xf]  ;;  %596 = vmatpush.bf16.msra.mxu2 %v729_v55  ;;  %v937_v17 = vor.u32 %v1030_v12, %v934_v13  ;;  %v836_v55 = vld [vmem:[#allocation4 + $0xd0] sm:$0xf]  ;;  %v999_v12 = vld [vmem:[#allocation4 + $0x9c] sm:$0xf] }
 0x117   :  { %v789_v27 = vor.u32 %v1000_v25, %v788_v24  ;;  %v945_v24 = vor.u32 %v1031_v20, %v942_v21  ;;  %v814_v13 = vld [vmem:[#allocation4 + $0xb8] sm:$0xf0]  ;;  %v994_v20 = vld [vmem:[#allocation4 + $0x6c] sm:$0xf0] }
 0x118   :  { %622 = vmatpush.bf16.msrb.mxu0 %v801_v35  ;;  %610 = vmatpush.bf16.msra.mxu3 %v733_v56  ;;  %v910_v35 = vld [vmem:[#allocation4 + $0x178] sm:$0xf0]  ;;  %v1010_v56 = vld [vmem:[#allocation4 + $0xec] sm:$0xf0] }
 0x119   :  { %580 = vmatpush.bf16.msra.mxu1 %v789_v27  ;;  %v1026_v27 = vld [vmem:[#allocation4 + $0x16c] sm:$0xf0]  ;;  %v913_v37 = vor.u32 %v1023_v34, %v910_v35  ;;  %v782_v34 = vld [vmem:[#allocation4 + $0x78] sm:$0xf0] }
 0x11a   :  { %645 = vmatpush.bf16.msrb.mxu2 %v969_v1  ;;  %v901_v28 = vor.u32 %v1026_v27, %v900_v26  ;;  %v845_v1 = vor.u32 %v1011_v62, %v844_v59  ;;  %v990_v26 = vld [vmem:[#allocation4 + $0x54] sm:$0xf] }
 0x11b   :  { %v774_v27 = vld [vmem:[#allocation4 + $0x70] sm:$0xf0] }
 0x11c   :  { %623 = vmatpush.bf16.msrb.mxu0 %v769_v47  ;;  %659 = vmatpush.bf16.msrb.mxu3 %v973_v5  ;;  %v873_v47 = vor.u32 %v1014_v40, %v870_v43  ;;  %v998_v5 = vld [vmem:[#allocation4 + $0x94] sm:$0xf]  ;;  %v777_v31 = vor.u32 %v990_v26, %v774_v27 }
 0x11d   :  { %581 = vmatpush.bf16.msra.mxu1 %v757_v39  ;;  %v1018_v39 = vld [vmem:[#allocation4 + $0x12c] sm:$0xf0]  ;;  %v982_v40 = vld [vmem:[#allocation4 + $0x14] sm:$0xf] }
 0x11e   :  { %646 = vmatpush.bf16.msrb.mxu2 %v937_v17  ;;  %v869_v42 = vor.u32 %v1018_v39, %v868_v38  ;;  %v817_v17 = vor.u32 %v999_v12, %v814_v13 }
 0x120   :  { %624 = vmatpush.bf16.msrb.mxu0 %v737_v60  ;;  %660 = vmatpush.bf16.msrb.mxu3 %v941_v22  ;;  %v1057_v22 = vld [vmem:[%s1282_s3] ss:$0 sm:$0xff] }
 0x121   :  { %582 = vmatpush.bf16.msra.mxu1 %v725_v51  ;;  %v881_v51 = vor.u32 %v1015_v49, %v878_v50  ;;  %v1058_v50 = vld [vmem:[%s1283_s4] ss:$0 sm:$0xff] }
 0x122   :  { %647 = vmatpush.bf16.msrb.mxu2 %v905_v32  ;;  %v995_v32 = vld [vmem:[#allocation4 + $0x74] sm:$0xf0] }
 0x124   :  { %673 = vmatpush.bf16.msra.mxu0 %v977_v10  ;;  %661 = vmatpush.bf16.msrb.mxu3 %v909_v36  ;;  %v809_v10 = vor.u32 %v998_v5, %v806_v8  ;;  %v740_v36 = vld [vmem:[#allocation4 + $0x10] sm:$0xf] }
 0x125   :  { %631 = vmatpush.bf16.msrb.mxu1 %v965_v0  ;;  %v846_v0 = vld [vmem:[#allocation4 + $0xf8] sm:$0xf0] }
 0x126   :  { %648 = vmatpush.bf16.msrb.mxu2 %v873_v47  ;;  %v849_v2 = vor.u32 %v1007_v63, %v846_v0 }
 0x128   :  { %674 = vmatpush.bf16.msra.mxu0 %v945_v24  ;;  %662 = vmatpush.bf16.msrb.mxu3 %v877_v48  ;;  %v773_v24 = vor.u32 %v994_v20, %v772_v18 }
 0x129   :  { %632 = vmatpush.bf16.msrb.mxu1 %v933_v11  ;;  %v1003_v11 = vld [vmem:[#allocation4 + $0xb4] sm:$0xf0] }
 0x12a   :  { %649 = vmatpush.bf16.msrb.mxu2 %v841_v61 }
 0x12c   :  { %675 = vmatpush.bf16.msra.mxu0 %v913_v37  ;;  %663 = vmatpush.bf16.msrb.mxu3 %v845_v1  ;;  %v986_v37 = vld [vmem:[#allocation4 + $0x2c] sm:$0xf0] }
 0x12d   :  { %633 = vmatpush.bf16.msrb.mxu1 %v901_v28  ;;  %v780_v28 = vld [vmem:[#allocation4 + $0x58] sm:$0xf]  ;;  %v741_v48 = vor.u32 %v986_v37, %v740_v36 }
 0x12e   :  { %650 = vmatpush.bf16.msrb.mxu2 %v809_v10  ;;  %v781_v35 = vor.u32 %v995_v32, %v780_v28 }
 0x130   :  { %676 = vmatpush.bf16.msra.mxu0 %v881_v51 }
 0x131   :  { %634 = vmatpush.bf16.msrb.mxu1 %v869_v42  ;;  %v748_v42 = vld [vmem:[#allocation4 + $0x18] sm:$0xf] }
 0x132   :  { %651 = vmatpush.bf16.msrb.mxu2 %v777_v31 }
 0x134   :  { %677 = vmatpush.bf16.msra.mxu0 %v849_v2 }
 0x138   :  { %678 = vmatpush.bf16.msra.mxu0 %v817_v17 }
 0x181   :  { %v120_v9 = vpop.xlane.xlu1 %119 }
 0x182   :  { %v123_v15 = vmul.f32 %v120_v9, %v1184_v16  ;;  %v812_v9 = vld [vmem:[#allocation4 + $0x98] sm:$0xf] }
 0x184   :  { %v1197_v25 = vadd.f32 1e-05, %v123_v15  ;;  %v813_v15 = vor.u32 %v1003_v11, %v812_v9 }
 0x186   :  { %1061 = vrsqrt.f32 %v1197_v25  ;;  %vm133_vm3 = vweird.f32 %v1197_v25  ;;  %664 = vmatpush.bf16.msrb.mxu3 %v813_v15 }
 0x189   :  { %v122_v41 = vpop.xlane.xlu1 %121 }
 0x18a   :  { %v124_v46 = vmul.f32 %v122_v41, %v1184_v16  ;;  %v837_v16 = vor.u32 %v1010_v56, %v836_v55  ;;  %v742_v41 = vld [vmem:[#allocation4 + $0x30] sm:$0xf0]  ;;  %665 = vmatpush.bf16.msrb.mxu3 %v781_v35 }
 0x18b   :  { %v745_v49 = vor.u32 %v982_v40, %v742_v41 }
 0x18c   :  { %v1201_v52 = vpop.eup %1061  ;;  %v1203_v53 = vadd.f32 1e-05, %v124_v46  ;;  %635 = vmatpush.bf16.msrb.mxu1 %v837_v16  ;;  %v750_v46 = vld [vmem:[#allocation4 + $0x38] sm:$0xf0] }
 0x18d   :  { %v128_v54 = vmul.f32 %v1201_v52, %v1197_v25  ;;  %vm134_vm2 = vweird.f32 %v1201_v52  ;;  %v785_v25 = vor.u32 %v991_v33, %v782_v34  ;;  %v753_v55 = vor.u32 %v983_v45, %v750_v46  ;;  %652 = vmatpush.bf16.msrb.mxu2 %v745_v49 }
 0x18e   :  { %1063 = vrsqrt.f32 %v1203_v53  ;;  %vm135_vm4 = vmor %vm133_vm3, %vm134_vm2  ;;  %vm143_vm6 = vweird.f32 %v1203_v53 }
 0x18f   :  { %v129_v60 = vmul.f32 %v1201_v52, %v128_v54  ;;  %679 = vmatpush.bf16.msra.mxu0 %v785_v25 }
 0x190   :  { %636 = vmatpush.bf16.msrb.mxu1 %v805_v7 }
 0x191   :  { %v130_v6 = vmul.f32 0.5, %v129_v60 }
 0x193   :  { %v131_v14 = vsub.f32 1.5, %v130_v6  ;;  %680 = vmatpush.bf16.msra.mxu0 %v753_v55 }
 0x194   :  { %v1064_v21 = vpop.eup %1063  ;;  %637 = vmatpush.bf16.msrb.mxu1 %v773_v24 }
 0x195   :  { %v132_v29 = vmul.f32 %v1201_v52, %v131_v14  ;;  %v138_v30 = vmul.f32 %v1064_v21, %v1203_v53  ;;  %vm144_vm5 = vweird.f32 %v1064_v21 }
 0x196   :  { %vm145_vm7 = vmor %vm143_vm6, %vm144_vm5 }
 0x197   :  { %v136_v38 = vsel %vm135_vm4, %v1201_v52, %v132_v29  ;;  %v139_v39 = vmul.f32 %v1064_v21, %v138_v30  ;;  %v749_v52 = vor.u32 %v987_v44, %v748_v42 }
 0x198   :  { %v147_v43 = vmul.f32 %v136_v38, %v1187_v19  ;;  %638 = vmatpush.bf16.msrb.mxu1 %v741_v48 }
 0x199   :  { %v140_v47 = vmul.f32 0.5, %v139_v39  ;;  %666 = vmatpush.bf16.msrb.mxu3 %v749_v52 }
 0x19a   :  { %v153_v51 = vmul.f32 %v1057_v22, %v147_v43 }
 0x19b   :  { %v141_v54 = vsub.f32 1.5, %v140_v47 }
 0x19c   :  { %v159_v56 = vadd.f32 %v1058_v50, %v153_v51 }
 0x19d   :  { %v142_v19 = vmul.f32 %v1064_v21, %v141_v54 }
 0x19e   :  { %v161_v58 = vmax.f32 %v159_v56, 0.0 }
 0x19f   :  { %v146_v57 = vsel %vm145_vm7, %v1064_v21, %v142_v19 }
 0x1a0   :  { %v148_v16 = vmul.f32 %v146_v57, %v1192_v23  ;;  %v163_v61 = vpack.c.bf16 %v161_v58, %v161_v58  ;;  %v231_v23 = vld [vmem:[%s1285_s6] sm:$0xff] }
 0x1a1   :  { %v233_v3 = vperm.slane %v231_v23, 0  ;;  %v236_v4 = vperm.slane %v231_v23, 3  ;;  %v234_v9 = vperm.slane %v231_v23, 1  ;;  %v235_v10 = vperm.slane %v231_v23, 2 }
 0x1a2   :  { %v154_v59 = vmul.f32 %v1057_v22, %v148_v16  ;;  %v251_v1 = vunpack.c.l.b16 %v163_v61  ;;  %v237_v21 = vperm.slane %v231_v23, 4  ;;  %v240_v24 = vperm.slane %v231_v23, 7 }
 0x1a3   :  { %v238_v33 = vperm.slane %v231_v23, 5  ;;  %v239_v34 = vperm.slane %v231_v23, 6 }
 0x1a4   :  { %v160_v60 = vadd.f32 %v1058_v50, %v154_v59 }
 0x1a6   :  { %v162_v62 = vmax.f32 %v160_v60, 0.0 }
 0x1a8   :  { %v164_v63 = vpack.c.bf16 %v162_v62, %v162_v62  ;;  %v1047_v0 = vpack.c.bf16 %v162_v62, %v161_v58 }
 0x1aa   :  { %1048 = vst [vmem:[%s1286_s7] sm:$0xff] %v1047_v0   ;;  %v252_v53 = vunpack.c.l.b16 %v164_v63 }
 0x1ac   :  { %v253_v2 = vpack.c.b16 %v252_v53, %v251_v1 }
 0x1ae   :  { %583 = vmatmul.bf16.vlgmr.msra.gmra.mxu1 %v253_v2  ;;  %597 = vmatmul.bf16.vlgmr.msra.gmra.mxu2 %v253_v2 }
 0x1af   :  { %611 = vmatmul.bf16.vlgmr.msra.gmra.mxu3 %v253_v2  ;;  %625 = vmatmul.bf16.vlgmr.msrb.gmra.mxu0 %v253_v2 }
 0x1be   :  { %639 = vmatmul.bf16.vlgmr.msrb.gmra.mxu1 %v253_v2  ;;  %653 = vmatmul.bf16.vlgmr.msrb.gmra.mxu2 %v253_v2 }
 0x1bf   :  { %667 = vmatmul.bf16.vlgmr.msrb.gmra.mxu3 %v253_v2  ;;  %681 = vmatmul.bf16.vlgmr.msra.gmra.mxu0 %v253_v2 }
 0x22b   :  { %v584_v5 = vpop.f32.mrf.mxu1 }
 0x22c   :  { %v585_v6 = vadd.f32 %v584_v5, %v233_v3  ;;  %v626_v7 = vpop.f32.mrf.mxu0 }
 0x22d   :  { %v627_v8 = vadd.f32 %v626_v7, %v236_v4 }
 0x22e   :  { %687 = vst [vmem:[%s1287_s8] sm:$0xff] %v585_v6 }
 0x22f   :  { %690 = vst [vmem:[%s1287_s8 + $0x18] sm:$0xff] %v627_v8 }
 0x231   :  { %v598_v11 = vpop.f32.mrf.mxu2 }
 0x232   :  { %v599_v12 = vadd.f32 %v598_v11, %v234_v9  ;;  %v612_v13 = vpop.f32.mrf.mxu3 }
 0x233   :  { %v613_v14 = vadd.f32 %v612_v13, %v235_v10  ;;  %v586_v15 = vpop.f32.mrf.mxu1 }
 0x234   :  { %688 = vst [vmem:[%s1287_s8 + $0x8] sm:$0xff] %v599_v12  ;;  %v587_v17 = vadd.f32 %v586_v15, %v233_v3  ;;  %v628_v18 = vpop.f32.mrf.mxu0 }
 0x235   :  { %689 = vst [vmem:[%s1287_s8 + $0x10] sm:$0xff] %v613_v14  ;;  %v629_v20 = vadd.f32 %v628_v18, %v236_v4 }
 0x236   :  { %695 = vst [vmem:[%s1287_s8 + $0x40] sm:$0xff] %v587_v17 }
 0x237   :  { %698 = vst [vmem:[%s1287_s8 + $0x58] sm:$0xff] %v629_v20 }
 0x239   :  { %v600_v22 = vpop.f32.mrf.mxu2 }
 0x23a   :  { %v601_v26 = vadd.f32 %v600_v22, %v234_v9  ;;  %v614_v27 = vpop.f32.mrf.mxu3 }
 0x23b   :  { %v615_v28 = vadd.f32 %v614_v27, %v235_v10  ;;  %v640_v29 = vpop.f32.mrf.mxu1 }
 0x23c   :  { %696 = vst [vmem:[%s1287_s8 + $0x48] sm:$0xff] %v601_v26  ;;  %v641_v30 = vadd.f32 %v640_v29, %v237_v21  ;;  %v682_v31 = vpop.f32.mrf.mxu0 }
 0x23d   :  { %697 = vst [vmem:[%s1287_s8 + $0x50] sm:$0xff] %v615_v28  ;;  %v683_v32 = vadd.f32 %v682_v31, %v240_v24 }
 0x23e   :  { %691 = vst [vmem:[%s1287_s8 + $0x20] sm:$0xff] %v641_v30 }
 0x23f   :  { %694 = vst [vmem:[%s1287_s8 + $0x38] sm:$0xff] %v683_v32 }
 0x241   :  { %v654_v35 = vpop.f32.mrf.mxu2 }
 0x242   :  { %v655_v36 = vadd.f32 %v654_v35, %v238_v33  ;;  %v668_v37 = vpop.f32.mrf.mxu3 }
 0x243   :  { %v669_v38 = vadd.f32 %v668_v37, %v239_v34  ;;  %v642_v39 = vpop.f32.mrf.mxu1 }
 0x244   :  { %692 = vst [vmem:[%s1287_s8 + $0x28] sm:$0xff] %v655_v36  ;;  %v643_v25 = vadd.f32 %v642_v39, %v237_v21  ;;  %v684_v40 = vpop.f32.mrf.mxu0 }
 0x245   :  { %693 = vst [vmem:[%s1287_s8 + $0x30] sm:$0xff] %v669_v38  ;;  %v685_v41 = vadd.f32 %v684_v40, %v240_v24 }
 0x246   :  { %699 = vst [vmem:[%s1287_s8 + $0x60] sm:$0xff] %v643_v25 }
 0x247   :  { %702 = vst [vmem:[%s1287_s8 + $0x78] sm:$0xff] %v685_v41 }
 0x249   :  { %v656_v42 = vpop.f32.mrf.mxu2 }
 0x24a   :  { %v657_v43 = vadd.f32 %v656_v42, %v238_v33  ;;  %v670_v44 = vpop.f32.mrf.mxu3 }
 0x24b   :  { %v671_v45 = vadd.f32 %v670_v44, %v239_v34 }
 0x24c   :  { %700 = vst [vmem:[%s1287_s8 + $0x68] sm:$0xff] %v657_v43 }
 0x24d   :  { %701 = vst [vmem:[%s1287_s8 + $0x70] sm:$0xff] %v671_v45 }
 0x24e   :  { %711 = vsyncpa [#allocation3], 1 }
 0x24f   :  { %712 = vsyncpa [#allocation5], 1 }

// kernel: ema_reconstruction_forward.9
= control target key start
LH: loop header
LB: loop body
LE: loop exit
PB: predicated region body
PF: predicated region fallthrough
CT: control target
= control target key end

     0   :  { %10 = vsyncpa [#allocation3], 0  ;;  %s1994_s0 = inlined_call_operand.vmem [shape: bf16[16,128], index: 0, kind: input, shape index: {}]   ;;  %s1995_s1 = inlined_call_operand.vmem [shape: bf16[16,128], index: 1, kind: input, shape index: {}]   ;;  %s1996_s2 = inlined_call_operand.hbm [shape: bf16[128,1024], index: 2, kind: input, shape index: {}]   ;;  %s1997_s3 = inlined_call_operand.hbm [shape: bf16[128,1024], index: 3, kind: input, shape index: {}]   ;;  %s1998_s4 = inlined_call_operand.hbm [shape: f32[1,1024], index: 4, kind: input, shape index: {}]   ;;  %s1999_s5 = inlined_call_operand.vmem [shape: f32[16,1024], index: 5, kind: output, shape index: {}]  }
   0x1   :  { %11 = vsyncpa [#allocation5], 0  ;;  %s33_s20 = sshll.u32 %s1997_s3, 4  ;;  %s1860_s21 = smov [#allocation4]   ;;  %s34_s20 = int_to_ptr.hbm [resolvable:$true] %s33_s20 }
   0x2   :  { %s35_s22 = sshll.u32 %s1860_s21, 4  ;;  %s20_s25 = sshll.u32 %s1996_s2, 4  ;;  %s36_s22 = int_to_ptr.vmem [resolvable:$true] %s35_s22  ;;  %s21_s25 = int_to_ptr.hbm [resolvable:$true] %s20_s25 }
   0x3   :  { %s1861_s26 = smov 512   ;;  %s1862_s27 = smov 32  }
   0x4   :  { %41 = dma.hbm_to_vmem [thread:$0]  %s34_s20, 8192, %s36_s22, [#allocation5], %s1861_s26, %s1861_s26, %s1862_s27  }
   0x5   :  { %s1863_s28 = smov [#allocation2]   ;;  %s47_s7 = sshll.u32 %s1998_s4, 4  ;;  %s48_s7 = int_to_ptr.hbm [resolvable:$true] %s47_s7 }
   0x6   :  { %s22_s29 = sshll.u32 %s1863_s28, 4  ;;  %s1864_s3 = smov [#allocation6]   ;;  %s23_s29 = int_to_ptr.vmem [resolvable:$true] %s22_s29 }
   0x7   :  { %28 = dma.hbm_to_vmem [thread:$0]  %s21_s25, 8192, %s23_s29, [#allocation3], %s1861_s26, %s1861_s26, %s1862_s27  }
   0x8   :  { %s49_s8 = sshll.u32 %s1864_s3, 4  ;;  %s50_s8 = int_to_ptr.vmem [resolvable:$true] %s49_s8 }
   0x9   :  { %52 = dma.hbm_to_vmem [thread:$0]  %s48_s7, 128, %s50_s8, [#allocation5]  }
   0xa   :  { %1856 = dma.done.wait [#allocation3], 8192  }
   0xb   :  { %1857 = vsyncadd [#allocation3], 4294959104 }
   0xc   :  { %1858 = dma.done.wait [#allocation5], 8320  }
   0xd   :  { %1859 = vsyncadd [#allocation5], 4294958976  ;;  %v1359_v0 = vld [vmem:[#allocation4 + $0x1c0] sm:$0xf]  ;;  %v1771_v2 = vld [vmem:[#allocation4 + $0x1c4] sm:$0xf] }
   0xe   :  { %v1775_v1 = vld [vmem:[#allocation4 + $0x1dc] sm:$0xf0]  ;;  %v1361_v4 = vld [vmem:[#allocation4 + $0x1e0] sm:$0xf0]  ;;  %v1367_v5 = vld [vmem:[#allocation4 + $0x1c8] sm:$0xf] }
   0xf   :  { %v1360_v3 = vor.u32 %v1775_v1, %v1359_v0  ;;  %v1776_v6 = vld [vmem:[#allocation4 + $0x1e4] sm:$0xf0]  ;;  %v1364_v7 = vor.u32 %v1771_v2, %v1361_v4  ;;  %v1772_v9 = vld [vmem:[#allocation4 + $0x1cc] sm:$0xf]  ;;  %v1327_v11 = vld [vmem:[#allocation4 + $0x180] sm:$0xf] }
  0x10   :  { %v1368_v8 = vor.u32 %v1776_v6, %v1367_v5  ;;  %v1369_v10 = vld [vmem:[#allocation4 + $0x1e8] sm:$0xf0]  ;;  %v1767_v13 = vld [vmem:[#allocation4 + $0x19c] sm:$0xf0]  ;;  %v1763_v14 = vld [vmem:[#allocation4 + $0x184] sm:$0xf] }
  0x11   :  { %523 = vmatpush.bf16.msra.mxu0 %v1360_v3  ;;  %v1372_v12 = vor.u32 %v1772_v9, %v1369_v10  ;;  %v1329_v15 = vld [vmem:[#allocation4 + $0x1a0] sm:$0xf0]  ;;  %537 = vmatpush.bf16.msra.mxu1 %v1364_v7  ;;  %v1328_v16 = vor.u32 %v1767_v13, %v1327_v11  ;;  %v1335_v18 = vld [vmem:[#allocation4 + $0x188] sm:$0xf]  ;;  %v1764_v20 = vld [vmem:[#allocation4 + $0x18c] sm:$0xf] }
  0x12   :  { %551 = vmatpush.bf16.msra.mxu2 %v1368_v8  ;;  %v1332_v17 = vor.u32 %v1763_v14, %v1329_v15  ;;  %v1768_v19 = vld [vmem:[#allocation4 + $0x1a4] sm:$0xf0]  ;;  %v1337_v22 = vld [vmem:[#allocation4 + $0x1a8] sm:$0xf0]  ;;  %v1295_v23 = vld [vmem:[#allocation4 + $0x140] sm:$0xf] }
  0x13   :  { %565 = vmatpush.bf16.msra.mxu3 %v1372_v12  ;;  %v1336_v21 = vor.u32 %v1768_v19, %v1335_v18  ;;  %v1759_v24 = vld [vmem:[#allocation4 + $0x15c] sm:$0xf0]  ;;  %v1340_v25 = vor.u32 %v1764_v20, %v1337_v22  ;;  %v1755_v26 = vld [vmem:[#allocation4 + $0x144] sm:$0xf]  ;;  %v1303_v28 = vld [vmem:[#allocation4 + $0x148] sm:$0xf] }
  0x14   :  { %v1297_v27 = vld [vmem:[#allocation4 + $0x160] sm:$0xf0]  ;;  %v1296_v29 = vor.u32 %v1759_v24, %v1295_v23  ;;  %v1760_v30 = vld [vmem:[#allocation4 + $0x164] sm:$0xf0]  ;;  %v1756_v31 = vld [vmem:[#allocation4 + $0x14c] sm:$0xf] }
  0x15   :  { %524 = vmatpush.bf16.msra.mxu0 %v1328_v16  ;;  %v1305_v32 = vld [vmem:[#allocation4 + $0x168] sm:$0xf0]  ;;  %538 = vmatpush.bf16.msra.mxu1 %v1332_v17  ;;  %v1300_v33 = vor.u32 %v1755_v26, %v1297_v27  ;;  %v1304_v34 = vor.u32 %v1760_v30, %v1303_v28  ;;  %v1263_v35 = vld [vmem:[#allocation4 + $0x100] sm:$0xf]  ;;  %v1747_v37 = vld [vmem:[#allocation4 + $0x104] sm:$0xf] }
  0x16   :  { %552 = vmatpush.bf16.msra.mxu2 %v1336_v21  ;;  %v1751_v36 = vld [vmem:[#allocation4 + $0x11c] sm:$0xf0]  ;;  %v1308_v38 = vor.u32 %v1756_v31, %v1305_v32  ;;  %v1265_v39 = vld [vmem:[#allocation4 + $0x120] sm:$0xf0]  ;;  %v1271_v40 = vld [vmem:[#allocation4 + $0x108] sm:$0xf] }
  0x17   :  { %566 = vmatpush.bf16.msra.mxu3 %v1340_v25  ;;  %v1752_v41 = vld [vmem:[#allocation4 + $0x124] sm:$0xf0]  ;;  %v1748_v42 = vld [vmem:[#allocation4 + $0x10c] sm:$0xf]  ;;  %v1264_v44 = vor.u32 %v1751_v36, %v1263_v35  ;;  %v1268_v45 = vor.u32 %v1747_v37, %v1265_v39  ;;  %v1231_v47 = vld [vmem:[#allocation4 + $0xc0] sm:$0xf] }
  0x18   :  { %v1273_v43 = vld [vmem:[#allocation4 + $0x128] sm:$0xf0]  ;;  %v1272_v46 = vor.u32 %v1752_v41, %v1271_v40  ;;  %v1743_v48 = vld [vmem:[#allocation4 + $0xdc] sm:$0xf0]  ;;  %v1739_v49 = vld [vmem:[#allocation4 + $0xc4] sm:$0xf] }
  0x19   :  { %525 = vmatpush.bf16.msra.mxu0 %v1296_v29  ;;  %539 = vmatpush.bf16.msra.mxu1 %v1300_v33  ;;  %v1276_v50 = vor.u32 %v1748_v42, %v1273_v43  ;;  %v1233_v51 = vld [vmem:[#allocation4 + $0xe0] sm:$0xf0]  ;;  %v1239_v52 = vld [vmem:[#allocation4 + $0xc8] sm:$0xf]  ;;  %v1740_v54 = vld [vmem:[#allocation4 + $0xcc] sm:$0xf]  ;;  %v1232_v56 = vor.u32 %v1743_v48, %v1231_v47 }
  0x1a   :  { %553 = vmatpush.bf16.msra.mxu2 %v1304_v34  ;;  %v1744_v53 = vld [vmem:[#allocation4 + $0xe4] sm:$0xf0]  ;;  %v1241_v55 = vld [vmem:[#allocation4 + $0xe8] sm:$0xf0]  ;;  %v1236_v57 = vor.u32 %v1739_v49, %v1233_v51  ;;  %v1199_v59 = vld [vmem:[#allocation4 + $0x80] sm:$0xf] }
  0x1b   :  { %567 = vmatpush.bf16.msra.mxu3 %v1308_v38  ;;  %v1240_v58 = vor.u32 %v1744_v53, %v1239_v52  ;;  %v1735_v60 = vld [vmem:[#allocation4 + $0x9c] sm:$0xf0]  ;;  %v1731_v61 = vld [vmem:[#allocation4 + $0x84] sm:$0xf]  ;;  %v1244_v62 = vor.u32 %v1740_v54, %v1241_v55  ;;  %v1207_v0 = vld [vmem:[#allocation4 + $0x88] sm:$0xf] }
  0x1c   :  { %v1201_v63 = vld [vmem:[#allocation4 + $0xa0] sm:$0xf0]  ;;  %v1736_v1 = vld [vmem:[#allocation4 + $0xa4] sm:$0xf0]  ;;  %v1732_v2 = vld [vmem:[#allocation4 + $0x8c] sm:$0xf]  ;;  %v1200_v4 = vor.u32 %v1735_v60, %v1199_v59 }
  0x1d   :  { %526 = vmatpush.bf16.msra.mxu0 %v1264_v44  ;;  %540 = vmatpush.bf16.msra.mxu1 %v1268_v45  ;;  %v1209_v3 = vld [vmem:[#allocation4 + $0xa8] sm:$0xf0]  ;;  %v1204_v5 = vor.u32 %v1731_v61, %v1201_v63  ;;  %v1208_v6 = vor.u32 %v1736_v1, %v1207_v0  ;;  %v1167_v7 = vld [vmem:[#allocation4 + $0x40] sm:$0xf]  ;;  %v1723_v9 = vld [vmem:[#allocation4 + $0x44] sm:$0xf] }
  0x1e   :  { %554 = vmatpush.bf16.msra.mxu2 %v1272_v46  ;;  %v1727_v8 = vld [vmem:[#allocation4 + $0x5c] sm:$0xf0]  ;;  %v1212_v10 = vor.u32 %v1732_v2, %v1209_v3  ;;  %v1169_v11 = vld [vmem:[#allocation4 + $0x60] sm:$0xf0]  ;;  %v1175_v12 = vld [vmem:[#allocation4 + $0x48] sm:$0xf] }
  0x1f   :  { %568 = vmatpush.bf16.msra.mxu3 %v1276_v50  ;;  %v1728_v13 = vld [vmem:[#allocation4 + $0x64] sm:$0xf0]  ;;  %v1724_v14 = vld [vmem:[#allocation4 + $0x4c] sm:$0xf]  ;;  %v1168_v16 = vor.u32 %v1727_v8, %v1167_v7  ;;  %v1135_v17 = vld [vmem:[#allocation4] sm:$0xf]  ;;  %v1172_v19 = vor.u32 %v1723_v9, %v1169_v11 }
  0x20   :  { %v1177_v15 = vld [vmem:[#allocation4 + $0x68] sm:$0xf0]  ;;  %v1719_v18 = vld [vmem:[#allocation4 + $0x1c] sm:$0xf0]  ;;  %v1176_v20 = vor.u32 %v1728_v13, %v1175_v12  ;;  %v1715_v21 = vld [vmem:[#allocation4 + $0x4] sm:$0xf] }
  0x21   :  { %527 = vmatpush.bf16.msra.mxu0 %v1232_v56  ;;  %541 = vmatpush.bf16.msra.mxu1 %v1236_v57  ;;  %v1137_v22 = vld [vmem:[#allocation4 + $0x20] sm:$0xf0]  ;;  %v1143_v23 = vld [vmem:[#allocation4 + $0x8] sm:$0xf]  ;;  %v1180_v24 = vor.u32 %v1724_v14, %v1177_v15  ;;  %v1716_v26 = vld [vmem:[#allocation4 + $0xc] sm:$0xf]  ;;  %v1136_v31 = vor.u32 %v1719_v18, %v1135_v17 }
  0x22   :  { %555 = vmatpush.bf16.msra.mxu2 %v1240_v58  ;;  %v1720_v25 = vld [vmem:[#allocation4 + $0x24] sm:$0xf0]  ;;  %v1145_v27 = vld [vmem:[#allocation4 + $0x28] sm:$0xf0]  ;;  %v1375_v28 = vld [vmem:[#allocation4 + $0x1d0] sm:$0xf]  ;;  %v1140_v35 = vor.u32 %v1715_v21, %v1137_v22 }
  0x23   :  { %569 = vmatpush.bf16.msra.mxu3 %v1244_v62  ;;  %v1777_v29 = vld [vmem:[#allocation4 + $0x1ec] sm:$0xf0]  ;;  %v1773_v30 = vld [vmem:[#allocation4 + $0x1d4] sm:$0xf]  ;;  %v1383_v33 = vld [vmem:[#allocation4 + $0x1d8] sm:$0xf]  ;;  %v1144_v36 = vor.u32 %v1720_v25, %v1143_v23  ;;  %v1148_v39 = vor.u32 %v1716_v26, %v1145_v27 }
  0x24   :  { %v1377_v32 = vld [vmem:[#allocation4 + $0x1f0] sm:$0xf0]  ;;  %v1778_v34 = vld [vmem:[#allocation4 + $0x1f4] sm:$0xf0]  ;;  %v1774_v37 = vld [vmem:[#allocation4 + $0x1dc] sm:$0xf]  ;;  %v1376_v40 = vor.u32 %v1777_v29, %v1375_v28 }
  0x25   :  { %528 = vmatpush.bf16.msra.mxu0 %v1200_v4  ;;  %542 = vmatpush.bf16.msra.mxu1 %v1204_v5  ;;  %v1385_v38 = vld [vmem:[#allocation4 + $0x1f8] sm:$0xf0]  ;;  %v1380_v41 = vor.u32 %v1773_v30, %v1377_v32  ;;  %v1384_v42 = vor.u32 %v1778_v34, %v1383_v33  ;;  %v1343_v43 = vld [vmem:[#allocation4 + $0x190] sm:$0xf]  ;;  %v1765_v45 = vld [vmem:[#allocation4 + $0x194] sm:$0xf] }
  0x26   :  { %556 = vmatpush.bf16.msra.mxu2 %v1208_v6  ;;  %v1769_v44 = vld [vmem:[#allocation4 + $0x1ac] sm:$0xf0]  ;;  %v1388_v46 = vor.u32 %v1774_v37, %v1385_v38  ;;  %v1345_v47 = vld [vmem:[#allocation4 + $0x1b0] sm:$0xf0]  ;;  %v1351_v48 = vld [vmem:[#allocation4 + $0x198] sm:$0xf] }
  0x27   :  { %570 = vmatpush.bf16.msra.mxu3 %v1212_v10  ;;  %v1770_v49 = vld [vmem:[#allocation4 + $0x1b4] sm:$0xf0]  ;;  %v1766_v50 = vld [vmem:[#allocation4 + $0x19c] sm:$0xf]  ;;  %v1344_v52 = vor.u32 %v1769_v44, %v1343_v43  ;;  %v1348_v53 = vor.u32 %v1765_v45, %v1345_v47  ;;  %v1311_v55 = vld [vmem:[#allocation4 + $0x150] sm:$0xf] }
  0x28   :  { %v1353_v51 = vld [vmem:[#allocation4 + $0x1b8] sm:$0xf0]  ;;  %v1352_v54 = vor.u32 %v1770_v49, %v1351_v48  ;;  %v1761_v56 = vld [vmem:[#allocation4 + $0x16c] sm:$0xf0]  ;;  %v1757_v57 = vld [vmem:[#allocation4 + $0x154] sm:$0xf] }
  0x29   :  { %529 = vmatpush.bf16.msra.mxu0 %v1168_v16  ;;  %543 = vmatpush.bf16.msra.mxu1 %v1172_v19  ;;  %v1356_v58 = vor.u32 %v1766_v50, %v1353_v51  ;;  %v1313_v59 = vld [vmem:[#allocation4 + $0x170] sm:$0xf0]  ;;  %v1319_v60 = vld [vmem:[#allocation4 + $0x158] sm:$0xf]  ;;  %v1758_v62 = vld [vmem:[#allocation4 + $0x15c] sm:$0xf]  ;;  %v1312_v0 = vor.u32 %v1761_v56, %v1311_v55 }
  0x2a   :  { %557 = vmatpush.bf16.msra.mxu2 %v1176_v20  ;;  %v1762_v61 = vld [vmem:[#allocation4 + $0x174] sm:$0xf0]  ;;  %v1321_v63 = vld [vmem:[#allocation4 + $0x178] sm:$0xf0]  ;;  %v1907_v1 = vld [vmem:[%s1995_s1] sm:$0xff]  ;;  %v1316_v2 = vor.u32 %v1757_v57, %v1313_v59 }
  0x2b   :  { %571 = vmatpush.bf16.msra.mxu3 %v1180_v24  ;;  %v1320_v3 = vor.u32 %v1762_v61, %v1319_v60  ;;  %v1279_v4 = vld [vmem:[#allocation4 + $0x110] sm:$0xf]  ;;  %v1749_v6 = vld [vmem:[#allocation4 + $0x114] sm:$0xf]  ;;  %v1324_v7 = vor.u32 %v1758_v62, %v1321_v63  ;;  %v1287_v9 = vld [vmem:[#allocation4 + $0x118] sm:$0xf] }
  0x2c   :  { %v1753_v5 = vld [vmem:[#allocation4 + $0x12c] sm:$0xf0]  ;;  %v1281_v8 = vld [vmem:[#allocation4 + $0x130] sm:$0xf0]  ;;  %v1754_v10 = vld [vmem:[#allocation4 + $0x134] sm:$0xf0] }
  0x2d   :  { %530 = vmatpush.bf16.msra.mxu0 %v1136_v31  ;;  %544 = vmatpush.bf16.msra.mxu1 %v1140_v35  ;;  %v1750_v11 = vld [vmem:[#allocation4 + $0x11c] sm:$0xf]  ;;  %v1280_v13 = vor.u32 %v1753_v5, %v1279_v4  ;;  %v1284_v14 = vor.u32 %v1749_v6, %v1281_v8  ;;  %v1288_v15 = vor.u32 %v1754_v10, %v1287_v9  ;;  %v1247_v16 = vld [vmem:[#allocation4 + $0xd0] sm:$0xf]  ;;  %v1741_v18 = vld [vmem:[#allocation4 + $0xd4] sm:$0xf] }
  0x2e   :  { %558 = vmatpush.bf16.msra.mxu2 %v1144_v36  ;;  %v1289_v12 = vld [vmem:[#allocation4 + $0x138] sm:$0xf0]  ;;  %v1745_v17 = vld [vmem:[#allocation4 + $0xec] sm:$0xf0]  ;;  %v1249_v20 = vld [vmem:[#allocation4 + $0xf0] sm:$0xf0] }
  0x2f   :  { %572 = vmatpush.bf16.msra.mxu3 %v1148_v39  ;;  %v1292_v19 = vor.u32 %v1750_v11, %v1289_v12  ;;  %v1255_v21 = vld [vmem:[#allocation4 + $0xd8] sm:$0xf]  ;;  %v1742_v23 = vld [vmem:[#allocation4 + $0xdc] sm:$0xf]  ;;  %v1248_v25 = vor.u32 %v1745_v17, %v1247_v16  ;;  %v1252_v26 = vor.u32 %v1741_v18, %v1249_v20  ;;  %v1215_v28 = vld [vmem:[#allocation4 + $0x90] sm:$0xf] }
  0x30   :  { %531 = vmatmul.bf16.vlgmr.msra.gmra.mxu0 %v1907_v1  ;;  %545 = vmatmul.bf16.vlgmr.msra.gmra.mxu1 %v1907_v1  ;;  %v1746_v22 = vld [vmem:[#allocation4 + $0xf4] sm:$0xf0]  ;;  %v1257_v24 = vld [vmem:[#allocation4 + $0xf8] sm:$0xf0]  ;;  %v1737_v29 = vld [vmem:[#allocation4 + $0xac] sm:$0xf0] }
  0x31   :  { %579 = vmatpush.bf16.msrb.mxu0 %v1376_v40  ;;  %593 = vmatpush.bf16.msrb.mxu1 %v1380_v41  ;;  %v1256_v27 = vor.u32 %v1746_v22, %v1255_v21  ;;  %v1733_v30 = vld [vmem:[#allocation4 + $0x94] sm:$0xf]  ;;  %v1260_v31 = vor.u32 %v1742_v23, %v1257_v24  ;;  %v1223_v33 = vld [vmem:[#allocation4 + $0x98] sm:$0xf]  ;;  %v1734_v35 = vld [vmem:[#allocation4 + $0x9c] sm:$0xf]  ;;  %v1216_v37 = vor.u32 %v1737_v29, %v1215_v28 }
  0x32   :  { %607 = vmatpush.bf16.msrb.mxu2 %v1384_v42  ;;  %573 = vmatmul.bf16.vlgmr.msra.gmra.mxu3 %v1907_v1  ;;  %v1217_v32 = vld [vmem:[#allocation4 + $0xb0] sm:$0xf0]  ;;  %v1738_v34 = vld [vmem:[#allocation4 + $0xb4] sm:$0xf0]  ;;  %v1225_v36 = vld [vmem:[#allocation4 + $0xb8] sm:$0xf0] }
  0x33   :  { %621 = vmatpush.bf16.msrb.mxu3 %v1388_v46  ;;  %559 = vmatmul.bf16.vlgmr.msra.gmra.mxu2 %v1907_v1  ;;  %v1220_v38 = vor.u32 %v1733_v30, %v1217_v32  ;;  %v1224_v39 = vor.u32 %v1738_v34, %v1223_v33  ;;  %v1183_v40 = vld [vmem:[#allocation4 + $0x50] sm:$0xf]  ;;  %v1725_v42 = vld [vmem:[#allocation4 + $0x54] sm:$0xf]  ;;  %v1228_v43 = vor.u32 %v1734_v35, %v1225_v36  ;;  %v1191_v45 = vld [vmem:[#allocation4 + $0x58] sm:$0xf] }
  0x34   :  { %v1729_v41 = vld [vmem:[#allocation4 + $0x6c] sm:$0xf0]  ;;  %v1185_v44 = vld [vmem:[#allocation4 + $0x70] sm:$0xf0]  ;;  %v1730_v46 = vld [vmem:[#allocation4 + $0x74] sm:$0xf0] }
  0x35   :  { %580 = vmatpush.bf16.msrb.mxu0 %v1344_v52  ;;  %594 = vmatpush.bf16.msrb.mxu1 %v1348_v53  ;;  %v1726_v47 = vld [vmem:[#allocation4 + $0x5c] sm:$0xf]  ;;  %v1184_v49 = vor.u32 %v1729_v41, %v1183_v40  ;;  %v1151_v50 = vld [vmem:[#allocation4 + $0x10] sm:$0xf]  ;;  %v1188_v52 = vor.u32 %v1725_v42, %v1185_v44  ;;  %v1192_v53 = vor.u32 %v1730_v46, %v1191_v45  ;;  %v1153_v55 = vld [vmem:[#allocation4 + $0x30] sm:$0xf0] }
  0x36   :  { %608 = vmatpush.bf16.msrb.mxu2 %v1352_v54  ;;  %v1193_v48 = vld [vmem:[#allocation4 + $0x78] sm:$0xf0]  ;;  %v1721_v51 = vld [vmem:[#allocation4 + $0x2c] sm:$0xf0]  ;;  %v1717_v54 = vld [vmem:[#allocation4 + $0x14] sm:$0xf] }
  0x37   :  { %622 = vmatpush.bf16.msrb.mxu3 %v1356_v58  ;;  %v1159_v56 = vld [vmem:[#allocation4 + $0x18] sm:$0xf]  ;;  %v1196_v57 = vor.u32 %v1726_v47, %v1193_v48  ;;  %v1718_v59 = vld [vmem:[#allocation4 + $0x1c] sm:$0xf]  ;;  %v1619_v61 = vld [vmem:[#allocation2 + $0x1c0] sm:$0xf]  ;;  %v1156_v5 = vor.u32 %v1717_v54, %v1153_v55 }
  0x38   :  { %v1722_v58 = vld [vmem:[#allocation4 + $0x34] sm:$0xf0]  ;;  %v1161_v60 = vld [vmem:[#allocation4 + $0x38] sm:$0xf0]  ;;  %v1710_v62 = vld [vmem:[#allocation2 + $0x1dc] sm:$0xf0] }
  0x39   :  { %581 = vmatpush.bf16.msrb.mxu0 %v1312_v0  ;;  %595 = vmatpush.bf16.msrb.mxu1 %v1316_v2  ;;  %v1706_v63 = vld [vmem:[#allocation2 + $0x1c4] sm:$0xf]  ;;  %v1152_v0 = vor.u32 %v1721_v51, %v1151_v50  ;;  %v1711_v4 = vld [vmem:[#allocation2 + $0x1e4] sm:$0xf0]  ;;  %v1160_v6 = vor.u32 %v1722_v58, %v1159_v56  ;;  %v1629_v8 = vld [vmem:[#allocation2 + $0x1e8] sm:$0xf0]  ;;  %v1164_v9 = vor.u32 %v1718_v59, %v1161_v60 }
  0x3a   :  { %609 = vmatpush.bf16.msrb.mxu2 %v1320_v3  ;;  %v1621_v2 = vld [vmem:[#allocation2 + $0x1e0] sm:$0xf0]  ;;  %v1627_v3 = vld [vmem:[#allocation2 + $0x1c8] sm:$0xf]  ;;  %v1620_v10 = vor.u32 %v1710_v62, %v1619_v61  ;;  %v1699_v20 = vld [vmem:[#allocation2 + $0x18c] sm:$0xf] }
  0x3b   :  { %623 = vmatpush.bf16.msrb.mxu3 %v1324_v7  ;;  %v1707_v7 = vld [vmem:[#allocation2 + $0x1cc] sm:$0xf]  ;;  %v1624_v11 = vor.u32 %v1706_v63, %v1621_v2  ;;  %v1628_v12 = vor.u32 %v1711_v4, %v1627_v3  ;;  %v1589_v17 = vld [vmem:[#allocation2 + $0x1a0] sm:$0xf0]  ;;  %v1595_v18 = vld [vmem:[#allocation2 + $0x188] sm:$0xf] }
  0x3c   :  { %v1632_v16 = vor.u32 %v1707_v7, %v1629_v8  ;;  %v1597_v21 = vld [vmem:[#allocation2 + $0x1a8] sm:$0xf0]  ;;  %v1557_v29 = vld [vmem:[#allocation2 + $0x160] sm:$0xf0]  ;;  %v1563_v30 = vld [vmem:[#allocation2 + $0x148] sm:$0xf] }
  0x3d   :  { %582 = vmatpush.bf16.msrb.mxu0 %v1280_v13  ;;  %596 = vmatpush.bf16.msrb.mxu1 %v1284_v14  ;;  %v1587_v13 = vld [vmem:[#allocation2 + $0x180] sm:$0xf]  ;;  %v1600_v28 = vor.u32 %v1699_v20, %v1597_v21  ;;  %v1691_v32 = vld [vmem:[#allocation2 + $0x14c] sm:$0xf]  ;;  %v1525_v41 = vld [vmem:[#allocation2 + $0x120] sm:$0xf0] }
  0x3e   :  { %610 = vmatpush.bf16.msrb.mxu2 %v1288_v15  ;;  %v1702_v14 = vld [vmem:[#allocation2 + $0x19c] sm:$0xf0]  ;;  %v1698_v15 = vld [vmem:[#allocation2 + $0x184] sm:$0xf]  ;;  %v1565_v33 = vld [vmem:[#allocation2 + $0x168] sm:$0xf0] }
  0x3f   :  { %624 = vmatpush.bf16.msrb.mxu3 %v1292_v19  ;;  %v1703_v19 = vld [vmem:[#allocation2 + $0x1a4] sm:$0xf0]  ;;  %v1588_v22 = vor.u32 %v1702_v14, %v1587_v13  ;;  %v1592_v23 = vor.u32 %v1698_v15, %v1589_v17  ;;  %v1568_v40 = vor.u32 %v1691_v32, %v1565_v33  ;;  %v1683_v44 = vld [vmem:[#allocation2 + $0x10c] sm:$0xf]  ;;  %v1491_v48 = vld [vmem:[#allocation2 + $0xc0] sm:$0xf] }
  0x40   :  { %v1596_v24 = vor.u32 %v1703_v19, %v1595_v18  ;;  %v1531_v42 = vld [vmem:[#allocation2 + $0x108] sm:$0xf]  ;;  %v1533_v45 = vld [vmem:[#allocation2 + $0x128] sm:$0xf0]  ;;  %v1674_v50 = vld [vmem:[#allocation2 + $0xc4] sm:$0xf] }
  0x41   :  { %583 = vmatpush.bf16.msrb.mxu0 %v1248_v25  ;;  %597 = vmatpush.bf16.msrb.mxu1 %v1252_v26  ;;  %v1555_v25 = vld [vmem:[#allocation2 + $0x140] sm:$0xf]  ;;  %v1536_v51 = vor.u32 %v1683_v44, %v1533_v45  ;;  %v1679_v54 = vld [vmem:[#allocation2 + $0xe4] sm:$0xf0]  ;;  %v1675_v55 = vld [vmem:[#allocation2 + $0xcc] sm:$0xf] }
  0x42   :  { %611 = vmatpush.bf16.msrb.mxu2 %v1256_v27  ;;  %v1694_v26 = vld [vmem:[#allocation2 + $0x15c] sm:$0xf0]  ;;  %v1690_v27 = vld [vmem:[#allocation2 + $0x144] sm:$0xf]  ;;  %v1501_v56 = vld [vmem:[#allocation2 + $0xe8] sm:$0xf0] }
  0x43   :  { %625 = vmatpush.bf16.msrb.mxu3 %v1260_v31  ;;  %v1695_v31 = vld [vmem:[#allocation2 + $0x164] sm:$0xf0]  ;;  %v1556_v34 = vor.u32 %v1694_v26, %v1555_v25  ;;  %v1560_v35 = vor.u32 %v1690_v27, %v1557_v29  ;;  %v1459_v60 = vld [vmem:[#allocation2 + $0x80] sm:$0xf]  ;;  %v1666_v62 = vld [vmem:[#allocation2 + $0x84] sm:$0xf]  ;;  %v1504_v63 = vor.u32 %v1675_v55, %v1501_v56 }
  0x44   :  { %v1564_v36 = vor.u32 %v1695_v31, %v1563_v30  ;;  %v1670_v61 = vld [vmem:[#allocation2 + $0x9c] sm:$0xf0]  ;;  %v1467_v2 = vld [vmem:[#allocation2 + $0x88] sm:$0xf]  ;;  %v1667_v4 = vld [vmem:[#allocation2 + $0x8c] sm:$0xf] }
  0x45   :  { %584 = vmatpush.bf16.msrb.mxu0 %v1216_v37  ;;  %598 = vmatpush.bf16.msrb.mxu1 %v1220_v38  ;;  %v1523_v37 = vld [vmem:[#allocation2 + $0x100] sm:$0xf]  ;;  %v1671_v3 = vld [vmem:[#allocation2 + $0xa4] sm:$0xf0]  ;;  %v1429_v13 = vld [vmem:[#allocation2 + $0x60] sm:$0xf0] }
  0x46   :  { %612 = vmatpush.bf16.msrb.mxu2 %v1224_v39  ;;  %v1686_v38 = vld [vmem:[#allocation2 + $0x11c] sm:$0xf0]  ;;  %v1682_v39 = vld [vmem:[#allocation2 + $0x104] sm:$0xf]  ;;  %v1468_v8 = vor.u32 %v1671_v3, %v1467_v2  ;;  %v1435_v14 = vld [vmem:[#allocation2 + $0x48] sm:$0xf] }
  0x47   :  { %626 = vmatpush.bf16.msrb.mxu3 %v1228_v43  ;;  %v1687_v43 = vld [vmem:[#allocation2 + $0x124] sm:$0xf0]  ;;  %v1524_v46 = vor.u32 %v1686_v38, %v1523_v37  ;;  %v1528_v47 = vor.u32 %v1682_v39, %v1525_v41  ;;  %v1437_v17 = vld [vmem:[#allocation2 + $0x68] sm:$0xf0]  ;;  %v1395_v19 = vld [vmem:[#allocation2] sm:$0xf] }
  0x48   :  { %v1663_v15 = vld [vmem:[#allocation2 + $0x64] sm:$0xf0]  ;;  %v1654_v20 = vld [vmem:[#allocation2 + $0x1c] sm:$0xf0]  ;;  %v1405_v29 = vld [vmem:[#allocation2 + $0x28] sm:$0xf0] }
  0x49   :  { %585 = vmatpush.bf16.msrb.mxu0 %v1184_v49  ;;  %599 = vmatpush.bf16.msrb.mxu1 %v1188_v52  ;;  %v1678_v49 = vld [vmem:[#allocation2 + $0xdc] sm:$0xf0]  ;;  %v1493_v52 = vld [vmem:[#allocation2 + $0xe0] sm:$0xf0]  ;;  %v1403_v25 = vld [vmem:[#allocation2 + $0x8] sm:$0xf]  ;;  %v1396_v33 = vor.u32 %v1654_v20, %v1395_v19 }
  0x4a   :  { %613 = vmatpush.bf16.msrb.mxu2 %v1192_v53  ;;  %v1499_v53 = vld [vmem:[#allocation2 + $0xc8] sm:$0xf]  ;;  %v1496_v58 = vor.u32 %v1674_v50, %v1493_v52  ;;  %v1635_v30 = vld [vmem:[#allocation2 + $0x1d0] sm:$0xf]  ;;  %v1708_v32 = vld [vmem:[#allocation2 + $0x1d4] sm:$0xf] }
  0x4b   :  { %627 = vmatpush.bf16.msrb.mxu3 %v1196_v57  ;;  %v1492_v57 = vor.u32 %v1678_v49, %v1491_v48  ;;  %v1500_v59 = vor.u32 %v1679_v54, %v1499_v53  ;;  %v1655_v27 = vld [vmem:[#allocation2 + $0x24] sm:$0xf0]  ;;  %v1712_v31 = vld [vmem:[#allocation2 + $0x1ec] sm:$0xf0]  ;;  %v1709_v39 = vld [vmem:[#allocation2 + $0x1dc] sm:$0xf] }
  0x4c   :  { %v1404_v38 = vor.u32 %v1655_v27, %v1403_v25  ;;  %v1605_v49 = vld [vmem:[#allocation2 + $0x1b0] sm:$0xf0]  ;;  %v1611_v50 = vld [vmem:[#allocation2 + $0x198] sm:$0xf]  ;;  %v1701_v52 = vld [vmem:[#allocation2 + $0x19c] sm:$0xf] }
  0x4d   :  { %586 = vmatpush.bf16.msrb.mxu0 %v1152_v0  ;;  %600 = vmatpush.bf16.msrb.mxu1 %v1156_v5  ;;  %v1461_v0 = vld [vmem:[#allocation2 + $0xa0] sm:$0xf0]  ;;  %v1469_v5 = vld [vmem:[#allocation2 + $0xa8] sm:$0xf0]  ;;  %v1613_v53 = vld [vmem:[#allocation2 + $0x1b8] sm:$0xf0] }
  0x4e   :  { %614 = vmatpush.bf16.msrb.mxu2 %v1160_v6  ;;  %v1460_v6 = vor.u32 %v1670_v61, %v1459_v60  ;;  %v1464_v7 = vor.u32 %v1666_v62, %v1461_v0  ;;  %v1616_v60 = vor.u32 %v1701_v52, %v1613_v53  ;;  %v1573_v61 = vld [vmem:[#allocation2 + $0x170] sm:$0xf0]  ;;  %v1579_v62 = vld [vmem:[#allocation2 + $0x158] sm:$0xf]  ;;  %v1693_v0 = vld [vmem:[#allocation2 + $0x15c] sm:$0xf] }
  0x4f   :  { %628 = vmatpush.bf16.msrb.mxu3 %v1164_v9  ;;  %v1427_v9 = vld [vmem:[#allocation2 + $0x40] sm:$0xf]  ;;  %v1581_v2 = vld [vmem:[#allocation2 + $0x178] sm:$0xf0]  ;;  %v1680_v19 = vld [vmem:[#allocation2 + $0xec] sm:$0xf0] }
  0x50   :  { %587 = vmatmul.bf16.vlgmr.msrb.gmra.mxu0 %v1907_v1  ;;  %601 = vmatmul.bf16.vlgmr.msrb.gmra.mxu1 %v1907_v1  ;;  %v1676_v20 = vld [vmem:[#allocation2 + $0xd4] sm:$0xf]  ;;  %v1677_v25 = vld [vmem:[#allocation2 + $0xdc] sm:$0xf] }
  0x51   :  { %961 = vmatpush.bf16.msra.mxu0 %v1620_v10  ;;  %975 = vmatpush.bf16.msra.mxu1 %v1624_v11  ;;  %v1662_v10 = vld [vmem:[#allocation2 + $0x5c] sm:$0xf0]  ;;  %v1658_v11 = vld [vmem:[#allocation2 + $0x44] sm:$0xf] }
  0x52   :  { %989 = vmatpush.bf16.msra.mxu2 %v1628_v12  ;;  %629 = vmatmul.bf16.vlgmr.msrb.gmra.mxu3 %v1907_v1  ;;  %v1472_v12 = vor.u32 %v1667_v4, %v1469_v5  ;;  %v1428_v18 = vor.u32 %v1662_v10, %v1427_v9  ;;  %v1432_v21 = vor.u32 %v1658_v11, %v1429_v13  ;;  %v1541_v10 = vld [vmem:[#allocation2 + $0x130] sm:$0xf0]  ;;  %v1547_v11 = vld [vmem:[#allocation2 + $0x118] sm:$0xf]  ;;  %v1685_v13 = vld [vmem:[#allocation2 + $0x11c] sm:$0xf] }
  0x53   :  { %1003 = vmatpush.bf16.msra.mxu3 %v1632_v16  ;;  %615 = vmatmul.bf16.vlgmr.msrb.gmra.mxu2 %v1907_v1  ;;  %v1532_v1 = vor.u32 %v1687_v43, %v1531_v42  ;;  %v1659_v16 = vld [vmem:[#allocation2 + $0x4c] sm:$0xf]  ;;  %v1636_v42 = vor.u32 %v1712_v31, %v1635_v30  ;;  %v1920_v43 = vld [vmem:[%s1994_s0] sm:$0xff]  ;;  %v1584_v9 = vor.u32 %v1693_v0, %v1581_v2  ;;  %v1475_v30 = vld [vmem:[#allocation2 + $0x90] sm:$0xf] }
  0x54   :  { %v1440_v26 = vor.u32 %v1659_v16, %v1437_v17  ;;  %v1672_v31 = vld [vmem:[#allocation2 + $0xac] sm:$0xf0] }
  0x55   :  { %962 = vmatpush.bf16.msra.mxu0 %v1588_v22  ;;  %976 = vmatpush.bf16.msra.mxu1 %v1592_v23  ;;  %v1436_v22 = vor.u32 %v1663_v15, %v1435_v14  ;;  %v1650_v23 = vld [vmem:[#allocation2 + $0x4] sm:$0xf]  ;;  %v1549_v14 = vld [vmem:[#allocation2 + $0x138] sm:$0xf0] }
  0x56   :  { %990 = vmatpush.bf16.msra.mxu2 %v1596_v24  ;;  %v1397_v24 = vld [vmem:[#allocation2 + $0x20] sm:$0xf0] }
  0x57   :  { %1004 = vmatpush.bf16.msra.mxu3 %v1600_v28  ;;  %v1651_v28 = vld [vmem:[#allocation2 + $0xc] sm:$0xf]  ;;  %v1400_v37 = vor.u32 %v1650_v23, %v1397_v24  ;;  %v1515_v23 = vld [vmem:[#allocation2 + $0xd8] sm:$0xf] }
  0x58   :  { %v1408_v41 = vor.u32 %v1651_v28, %v1405_v29  ;;  %v1681_v24 = vld [vmem:[#allocation2 + $0xf4] sm:$0xf0] }
  0x59   :  { %963 = vmatpush.bf16.msra.mxu0 %v1556_v34  ;;  %977 = vmatpush.bf16.msra.mxu1 %v1560_v35  ;;  %v1637_v34 = vld [vmem:[#allocation2 + $0x1f0] sm:$0xf0]  ;;  %v1643_v35 = vld [vmem:[#allocation2 + $0x1d8] sm:$0xf]  ;;  %v1516_v29 = vor.u32 %v1681_v24, %v1515_v23 }
  0x5a   :  { %991 = vmatpush.bf16.msra.mxu2 %v1564_v36  ;;  %v1713_v36 = vld [vmem:[#allocation2 + $0x1f4] sm:$0xf0]  ;;  %v1640_v44 = vor.u32 %v1708_v32, %v1637_v34  ;;  %v1668_v32 = vld [vmem:[#allocation2 + $0x94] sm:$0xf] }
  0x5b   :  { %1005 = vmatpush.bf16.msra.mxu3 %v1568_v40  ;;  %v1645_v40 = vld [vmem:[#allocation2 + $0x1f8] sm:$0xf0]  ;;  %v1644_v45 = vor.u32 %v1713_v36, %v1643_v35  ;;  %v1477_v34 = vld [vmem:[#allocation2 + $0xb0] sm:$0xf0]  ;;  %v1483_v35 = vld [vmem:[#allocation2 + $0x98] sm:$0xf] }
  0x5c   :  { %v1648_v48 = vor.u32 %v1709_v39, %v1645_v40  ;;  %v1673_v36 = vld [vmem:[#allocation2 + $0xb4] sm:$0xf0]  ;;  %v1476_v39 = vor.u32 %v1672_v31, %v1475_v30  ;;  %v1480_v40 = vor.u32 %v1668_v32, %v1477_v34 }
  0x5d   :  { %964 = vmatpush.bf16.msra.mxu0 %v1524_v46  ;;  %978 = vmatpush.bf16.msra.mxu1 %v1528_v47  ;;  %v1603_v46 = vld [vmem:[#allocation2 + $0x190] sm:$0xf] }
  0x5e   :  { %992 = vmatpush.bf16.msra.mxu2 %v1532_v1  ;;  %v1704_v47 = vld [vmem:[#allocation2 + $0x1ac] sm:$0xf0]  ;;  %v1700_v1 = vld [vmem:[#allocation2 + $0x194] sm:$0xf] }
  0x5f   :  { %1006 = vmatpush.bf16.msra.mxu3 %v1536_v51  ;;  %v1705_v51 = vld [vmem:[#allocation2 + $0x1b4] sm:$0xf0]  ;;  %v1604_v54 = vor.u32 %v1704_v47, %v1603_v46  ;;  %v1608_v55 = vor.u32 %v1700_v1, %v1605_v49  ;;  %v1445_v47 = vld [vmem:[#allocation2 + $0x70] sm:$0xf0]  ;;  %v1661_v49 = vld [vmem:[#allocation2 + $0x5c] sm:$0xf] }
  0x60   :  { %v1612_v56 = vor.u32 %v1705_v51, %v1611_v50  ;;  %v1451_v1 = vld [vmem:[#allocation2 + $0x58] sm:$0xf]  ;;  %v1453_v50 = vld [vmem:[#allocation2 + $0x78] sm:$0xf0] }
  0x61   :  { %965 = vmatpush.bf16.msra.mxu0 %v1492_v57  ;;  %979 = vmatpush.bf16.msra.mxu1 %v1496_v58  ;;  %v1571_v57 = vld [vmem:[#allocation2 + $0x150] sm:$0xf] }
  0x62   :  { %993 = vmatpush.bf16.msra.mxu2 %v1500_v59  ;;  %v1696_v58 = vld [vmem:[#allocation2 + $0x16c] sm:$0xf0]  ;;  %v1692_v59 = vld [vmem:[#allocation2 + $0x154] sm:$0xf] }
  0x63   :  { %1007 = vmatpush.bf16.msra.mxu3 %v1504_v63  ;;  %v1697_v63 = vld [vmem:[#allocation2 + $0x174] sm:$0xf0]  ;;  %v1572_v3 = vor.u32 %v1696_v58, %v1571_v57  ;;  %v1576_v4 = vor.u32 %v1692_v59, %v1573_v61  ;;  %v1456_v57 = vor.u32 %v1661_v49, %v1453_v50  ;;  %v1413_v58 = vld [vmem:[#allocation2 + $0x30] sm:$0xf0]  ;;  %v1653_v61 = vld [vmem:[#allocation2 + $0x1c] sm:$0xf] }
  0x64   :  { %v1580_v5 = vor.u32 %v1697_v63, %v1579_v62  ;;  %v1419_v59 = vld [vmem:[#allocation2 + $0x18] sm:$0xf]  ;;  %v1421_v62 = vld [vmem:[#allocation2 + $0x38] sm:$0xf0] }
  0x65   :  { %966 = vmatpush.bf16.msra.mxu0 %v1460_v6  ;;  %980 = vmatpush.bf16.msra.mxu1 %v1464_v7  ;;  %v1539_v6 = vld [vmem:[#allocation2 + $0x110] sm:$0xf] }
  0x66   :  { %994 = vmatpush.bf16.msra.mxu2 %v1468_v8  ;;  %v1688_v7 = vld [vmem:[#allocation2 + $0x12c] sm:$0xf0]  ;;  %v1684_v8 = vld [vmem:[#allocation2 + $0x114] sm:$0xf] }
  0x67   :  { %1008 = vmatpush.bf16.msra.mxu3 %v1472_v12  ;;  %v1689_v12 = vld [vmem:[#allocation2 + $0x134] sm:$0xf0]  ;;  %v1540_v15 = vor.u32 %v1688_v7, %v1539_v6  ;;  %v1544_v16 = vor.u32 %v1684_v8, %v1541_v10 }
  0x68   :  { %v1548_v17 = vor.u32 %v1689_v12, %v1547_v11 }
  0x69   :  { %967 = vmatpush.bf16.msra.mxu0 %v1428_v18  ;;  %981 = vmatpush.bf16.msra.mxu1 %v1432_v21  ;;  %v1507_v18 = vld [vmem:[#allocation2 + $0xd0] sm:$0xf]  ;;  %v1552_v21 = vor.u32 %v1685_v13, %v1549_v14 }
  0x6a   :  { %995 = vmatpush.bf16.msra.mxu2 %v1436_v22  ;;  %v1509_v22 = vld [vmem:[#allocation2 + $0xf0] sm:$0xf0]  ;;  %v1508_v27 = vor.u32 %v1680_v19, %v1507_v18  ;;  %v1930_v18 = vld [vmem:[#allocation6] sm:$0xff] }
  0x6b   :  { %1009 = vmatpush.bf16.msra.mxu3 %v1440_v26  ;;  %v1517_v26 = vld [vmem:[#allocation2 + $0xf8] sm:$0xf0]  ;;  %v1512_v28 = vor.u32 %v1676_v20, %v1509_v22  ;;  %v1076_v22 = vperm.slane %v1930_v18, 1  ;;  %v1078_v30 = vperm.slane %v1930_v18, 3  ;;  %v1080_v50 = vperm.slane %v1930_v18, 5 }
  0x6d   :  { %968 = vmatpush.bf16.msra.mxu0 %v1396_v33  ;;  %982 = vmatpush.bf16.msra.mxu1 %v1400_v37  ;;  %v1520_v33 = vor.u32 %v1677_v25, %v1517_v26  ;;  %v1669_v37 = vld [vmem:[#allocation2 + $0x9c] sm:$0xf] }
  0x6e   :  { %996 = vmatpush.bf16.msra.mxu2 %v1404_v38  ;;  %v1485_v38 = vld [vmem:[#allocation2 + $0xb8] sm:$0xf0] }
  0x6f   :  { %1010 = vmatpush.bf16.msra.mxu3 %v1408_v41  ;;  %v1484_v41 = vor.u32 %v1673_v36, %v1483_v35  ;;  %v1488_v46 = vor.u32 %v1669_v37, %v1485_v38 }
  0x70   :  { %969 = vmatmul.bf16.vlgmr.msra.gmra.mxu0 %v1920_v43  ;;  %983 = vmatmul.bf16.vlgmr.msra.gmra.mxu1 %v1920_v43 }
  0x71   :  { %1017 = vmatpush.bf16.msrb.mxu0 %v1636_v42  ;;  %1031 = vmatpush.bf16.msrb.mxu1 %v1640_v44  ;;  %v1443_v42 = vld [vmem:[#allocation2 + $0x50] sm:$0xf] }
  0x72   :  { %1045 = vmatpush.bf16.msrb.mxu2 %v1644_v45  ;;  %1011 = vmatmul.bf16.vlgmr.msra.gmra.mxu3 %v1920_v43  ;;  %v1664_v44 = vld [vmem:[#allocation2 + $0x6c] sm:$0xf0]  ;;  %v1660_v45 = vld [vmem:[#allocation2 + $0x54] sm:$0xf] }
  0x73   :  { %1059 = vmatpush.bf16.msrb.mxu3 %v1648_v48  ;;  %997 = vmatmul.bf16.vlgmr.msra.gmra.mxu2 %v1920_v43  ;;  %v1665_v48 = vld [vmem:[#allocation2 + $0x74] sm:$0xf0]  ;;  %v1444_v51 = vor.u32 %v1664_v44, %v1443_v42  ;;  %v1448_v52 = vor.u32 %v1660_v45, %v1445_v47 }
  0x74   :  { %v1452_v53 = vor.u32 %v1665_v48, %v1451_v1  ;;  %v1079_v48 = vperm.slane %v1930_v18, 4 }
  0x75   :  { %1018 = vmatpush.bf16.msrb.mxu0 %v1604_v54  ;;  %1032 = vmatpush.bf16.msrb.mxu1 %v1608_v55  ;;  %v1411_v54 = vld [vmem:[#allocation2 + $0x10] sm:$0xf] }
  0x76   :  { %1046 = vmatpush.bf16.msrb.mxu2 %v1612_v56  ;;  %v1656_v55 = vld [vmem:[#allocation2 + $0x2c] sm:$0xf0]  ;;  %v1652_v56 = vld [vmem:[#allocation2 + $0x14] sm:$0xf] }
  0x77   :  { %1060 = vmatpush.bf16.msrb.mxu3 %v1616_v60  ;;  %v1657_v60 = vld [vmem:[#allocation2 + $0x34] sm:$0xf0]  ;;  %v1412_v63 = vor.u32 %v1656_v55, %v1411_v54  ;;  %v1416_v0 = vor.u32 %v1652_v56, %v1413_v58  ;;  %v1081_v56 = vperm.slane %v1930_v18, 6  ;;  %v1082_v58 = vperm.slane %v1930_v18, 7 }
  0x78   :  { %v1420_v2 = vor.u32 %v1657_v60, %v1419_v59 }
  0x79   :  { %1019 = vmatpush.bf16.msrb.mxu0 %v1572_v3  ;;  %1033 = vmatpush.bf16.msrb.mxu1 %v1576_v4  ;;  %v1424_v3 = vor.u32 %v1653_v61, %v1421_v62 }
  0x7a   :  { %1047 = vmatpush.bf16.msrb.mxu2 %v1580_v5 }
  0x7b   :  { %1061 = vmatpush.bf16.msrb.mxu3 %v1584_v9 }
  0x7d   :  { %1020 = vmatpush.bf16.msrb.mxu0 %v1540_v15  ;;  %1034 = vmatpush.bf16.msrb.mxu1 %v1544_v16 }
  0x7e   :  { %1048 = vmatpush.bf16.msrb.mxu2 %v1548_v17 }
  0x7f   :  { %1062 = vmatpush.bf16.msrb.mxu3 %v1552_v21 }
  0x81   :  { %1021 = vmatpush.bf16.msrb.mxu0 %v1508_v27  ;;  %1035 = vmatpush.bf16.msrb.mxu1 %v1512_v28  ;;  %v1077_v28 = vperm.slane %v1930_v18, 2 }
  0x82   :  { %1049 = vmatpush.bf16.msrb.mxu2 %v1516_v29 }
  0x83   :  { %1063 = vmatpush.bf16.msrb.mxu3 %v1520_v33 }
  0x85   :  { %1022 = vmatpush.bf16.msrb.mxu0 %v1476_v39  ;;  %1036 = vmatpush.bf16.msrb.mxu1 %v1480_v40 }
  0x86   :  { %1050 = vmatpush.bf16.msrb.mxu2 %v1484_v41 }
  0x87   :  { %1064 = vmatpush.bf16.msrb.mxu3 %v1488_v46 }
  0x89   :  { %1023 = vmatpush.bf16.msrb.mxu0 %v1444_v51  ;;  %1037 = vmatpush.bf16.msrb.mxu1 %v1448_v52 }
  0x8a   :  { %1051 = vmatpush.bf16.msrb.mxu2 %v1452_v53 }
  0x8b   :  { %1065 = vmatpush.bf16.msrb.mxu3 %v1456_v57 }
  0x8d   :  { %1024 = vmatpush.bf16.msrb.mxu0 %v1412_v63  ;;  %1038 = vmatpush.bf16.msrb.mxu1 %v1416_v0 }
  0x8e   :  { %1052 = vmatpush.bf16.msrb.mxu2 %v1420_v2 }
  0x8f   :  { %1066 = vmatpush.bf16.msrb.mxu3 %v1424_v3 }
  0x90   :  { %1025 = vmatmul.bf16.vlgmr.msrb.gmra.mxu0 %v1920_v43  ;;  %1039 = vmatmul.bf16.vlgmr.msrb.gmra.mxu1 %v1920_v43 }
  0x91   :  { %1053 = vmatmul.bf16.vlgmr.msrb.gmra.mxu2 %v1920_v43 }
  0x92   :  { %1067 = vmatmul.bf16.vlgmr.msrb.gmra.mxu3 %v1920_v43  ;;  %v1075_v43 = vperm.slane %v1930_v18, 0 }
  0xad   :  { %v532_v4 = vpop.f32.mrf.mxu0  ;;  %v546_v5 = vpop.f32.mrf.mxu1 }
  0xb5   :  { %v574_v7 = vpop.f32.mrf.mxu3  ;;  %v534_v8 = vpop.f32.mrf.mxu0 }
  0xb6   :  { %v560_v6 = vpop.f32.mrf.mxu2  ;;  %v548_v9 = vpop.f32.mrf.mxu1 }
  0xbd   :  { %v576_v11 = vpop.f32.mrf.mxu3 }
  0xbe   :  { %v562_v10 = vpop.f32.mrf.mxu2 }
  0xcd   :  { %v588_v12 = vpop.f32.mrf.mxu0  ;;  %v602_v13 = vpop.f32.mrf.mxu1 }
  0xd5   :  { %v630_v15 = vpop.f32.mrf.mxu3  ;;  %v590_v16 = vpop.f32.mrf.mxu0 }
  0xd6   :  { %v616_v14 = vpop.f32.mrf.mxu2  ;;  %v604_v17 = vpop.f32.mrf.mxu1 }
  0xdd   :  { %v1934_v20 = vpop.f32.mrf.mxu3 }
  0xde   :  { %v1932_v19 = vpop.f32.mrf.mxu2 }
  0xed   :  { %v970_v21 = vpop.f32.mrf.mxu0  ;;  %v984_v24 = vpop.f32.mrf.mxu1 }
  0xee   :  { %v971_v23 = vadd.f32 %v970_v21, %v532_v4  ;;  %v985_v25 = vadd.f32 %v984_v24, %v546_v5 }
  0xf0   :  { %v1091_v26 = vadd.f32 %v1075_v43, %v971_v23  ;;  %v1092_v27 = vadd.f32 %v1076_v22, %v985_v25 }
  0xf2   :  { %1107 = vst [vmem:[%s1999_s5] sm:$0xff] %v1091_v26 }
  0xf3   :  { %1108 = vst [vmem:[%s1999_s5 + $0x8] sm:$0xff] %v1092_v27 }
  0xf5   :  { %v1012_v32 = vpop.f32.mrf.mxu3  ;;  %v972_v33 = vpop.f32.mrf.mxu0 }
  0xf6   :  { %v998_v29 = vpop.f32.mrf.mxu2  ;;  %v1013_v34 = vadd.f32 %v1012_v32, %v574_v7  ;;  %v973_v35 = vadd.f32 %v972_v33, %v534_v8  ;;  %v986_v36 = vpop.f32.mrf.mxu1 }
  0xf7   :  { %v999_v31 = vadd.f32 %v998_v29, %v560_v6  ;;  %v987_v38 = vadd.f32 %v986_v36, %v548_v9 }
  0xf8   :  { %v1094_v39 = vadd.f32 %v1078_v30, %v1013_v34  ;;  %v1099_v40 = vadd.f32 %v1075_v43, %v973_v35 }
  0xf9   :  { %v1093_v37 = vadd.f32 %v1077_v28, %v999_v31  ;;  %v1100_v41 = vadd.f32 %v1076_v22, %v987_v38 }
  0xfa   :  { %1110 = vst [vmem:[%s1999_s5 + $0x18] sm:$0xff] %v1094_v39 }
  0xfb   :  { %1109 = vst [vmem:[%s1999_s5 + $0x10] sm:$0xff] %v1093_v37 }
  0xfc   :  { %1115 = vst [vmem:[%s1999_s5 + $0x40] sm:$0xff] %v1099_v40 }
  0xfd   :  { %1116 = vst [vmem:[%s1999_s5 + $0x48] sm:$0xff] %v1100_v41  ;;  %v1014_v45 = vpop.f32.mrf.mxu3 }
  0xfe   :  { %v1000_v42 = vpop.f32.mrf.mxu2  ;;  %v1015_v46 = vadd.f32 %v1014_v45, %v576_v11 }
  0xff   :  { %v1001_v44 = vadd.f32 %v1000_v42, %v562_v10 }
 0x100   :  { %v1102_v1 = vadd.f32 %v1078_v30, %v1015_v46 }
 0x101   :  { %v1101_v47 = vadd.f32 %v1077_v28, %v1001_v44 }
 0x102   :  { %1118 = vst [vmem:[%s1999_s5 + $0x58] sm:$0xff] %v1102_v1 }
 0x103   :  { %1117 = vst [vmem:[%s1999_s5 + $0x50] sm:$0xff] %v1101_v47 }
 0x10d   :  { %v1026_v49 = vpop.f32.mrf.mxu0  ;;  %v1040_v52 = vpop.f32.mrf.mxu1 }
 0x10e   :  { %v1027_v51 = vadd.f32 %v1026_v49, %v588_v12  ;;  %v1041_v53 = vadd.f32 %v1040_v52, %v602_v13 }
 0x110   :  { %v1095_v54 = vadd.f32 %v1079_v48, %v1027_v51  ;;  %v1096_v55 = vadd.f32 %v1080_v50, %v1041_v53 }
 0x112   :  { %1111 = vst [vmem:[%s1999_s5 + $0x20] sm:$0xff] %v1095_v54 }
 0x113   :  { %1112 = vst [vmem:[%s1999_s5 + $0x28] sm:$0xff] %v1096_v55 }
 0x114   :  { %v1054_v57 = vpop.f32.mrf.mxu2 }
 0x115   :  { %v1055_v59 = vadd.f32 %v1054_v57, %v616_v14  ;;  %v1068_v60 = vpop.f32.mrf.mxu3  ;;  %v1028_v61 = vpop.f32.mrf.mxu0 }
 0x116   :  { %v1069_v62 = vadd.f32 %v1068_v60, %v630_v15  ;;  %v1029_v63 = vadd.f32 %v1028_v61, %v590_v16  ;;  %v1042_v0 = vpop.f32.mrf.mxu1 }
 0x117   :  { %v1097_v2 = vadd.f32 %v1081_v56, %v1055_v59  ;;  %v1043_v3 = vadd.f32 %v1042_v0, %v604_v17 }
 0x118   :  { %v1098_v4 = vadd.f32 %v1082_v58, %v1069_v62  ;;  %v1103_v5 = vadd.f32 %v1079_v48, %v1029_v63 }
 0x119   :  { %1113 = vst [vmem:[%s1999_s5 + $0x30] sm:$0xff] %v1097_v2  ;;  %v1104_v6 = vadd.f32 %v1080_v50, %v1043_v3 }
 0x11a   :  { %1114 = vst [vmem:[%s1999_s5 + $0x38] sm:$0xff] %v1098_v4 }
 0x11b   :  { %1119 = vst [vmem:[%s1999_s5 + $0x60] sm:$0xff] %v1103_v5 }
 0x11c   :  { %1120 = vst [vmem:[%s1999_s5 + $0x68] sm:$0xff] %v1104_v6  ;;  %v1056_v7 = vpop.f32.mrf.mxu2 }
 0x11d   :  { %v1057_v8 = vadd.f32 %v1056_v7, %v1932_v19  ;;  %v1070_v9 = vpop.f32.mrf.mxu3 }
 0x11e   :  { %v1071_v10 = vadd.f32 %v1070_v9, %v1934_v20 }
 0x11f   :  { %v1105_v11 = vadd.f32 %v1081_v56, %v1057_v8 }
 0x120   :  { %v1106_v12 = vadd.f32 %v1082_v58, %v1071_v10 }
 0x121   :  { %1121 = vst [vmem:[%s1999_s5 + $0x70] sm:$0xff] %v1105_v11 }
 0x122   :  { %1122 = vst [vmem:[%s1999_s5 + $0x78] sm:$0xff] %v1106_v12 }
 0x123   :  { %1127 = vsyncpa [#allocation3], 1 }
 0x124   :  { %1128 = vsyncpa [#allocation5], 1 }

// kernel: ema_reconstruction_forward.8
= control target key start
LH: loop header
LB: loop body
LE: loop exit
PB: predicated region body
PF: predicated region fallthrough
CT: control target
= control target key end

     0   :  { %11 = vsyncpa [#allocation9], 0  ;;  %s1465_s29 = smov [#allocation8]   ;;  %s2035_s0 = inlined_call_operand.vmem [shape: f32[8,2,1024], index: 0, kind: input, shape index: {}, may-alias: {0,1}]   ;;  %s2036_s1 = inlined_call_operand.vmem [shape: f32[8,2,1024], index: 1, kind: input, shape index: {}, may-alias: {0,1}]   ;;  %s2037_s2 = inlined_call_operand.hbm [shape: bf16[128,512], index: 2, kind: input, shape index: {}]   ;;  %s2038_s3 = inlined_call_operand.hbm [shape: bf16[128,512], index: 3, kind: input, shape index: {}]   ;;  %s2039_s4 = inlined_call_operand.vmem [shape: bf16[8,2,128], index: 4, kind: output, shape index: {0}]   ;;  %s2040_s5 = inlined_call_operand.vmem [shape: bf16[8,2,128], index: 5, kind: output, shape index: {1}]  }
   0x1   :  { %v57_v0 = vld [vmem:[%s2035_s0] sm:$0xff]  ;;  %v59_v1 = vld [vmem:[%s2035_s0 + $0x10] sm:$0xff]  ;;  %s149_s26 = sshll.u32 %s2037_s2, 4  ;;  %s151_s30 = sshll.u32 %s1465_s29, 4  ;;  %v956_v8 = vld [vmem:[%s2036_s1 + $0x8] sm:$0xff]  ;;  %s150_s26 = int_to_ptr.hbm [resolvable:$true] %s149_s26  ;;  %s152_s30 = int_to_ptr.vmem [resolvable:$true] %s151_s30 }
   0x2   :  { %v61_v2 = vld [vmem:[%s2035_s0 + $0x20] sm:$0xff]  ;;  %58 = vst [vmem:[#allocation6] sm:$0xff] %v57_v0  ;;  %v63_v3 = vld [vmem:[%s2035_s0 + $0x30] sm:$0xff]  ;;  %s162_s11 = sshll.u32 %s2038_s3, 4  ;;  %s163_s11 = int_to_ptr.hbm [resolvable:$true] %s162_s11 }
   0x3   :  { %60 = vst [vmem:[#allocation6 + $0x8] sm:$0xff] %v59_v1  ;;  %v65_v4 = vld [vmem:[%s2035_s0 + $0x40] sm:$0xff]  ;;  %v67_v5 = vld [vmem:[%s2035_s0 + $0x50] sm:$0xff] }
   0x4   :  { %62 = vst [vmem:[#allocation6 + $0x10] sm:$0xff] %v61_v2  ;;  %v69_v6 = vld [vmem:[%s2035_s0 + $0x60] sm:$0xff]  ;;  %v71_v7 = vld [vmem:[%s2035_s0 + $0x70] sm:$0xff] }
   0x5   :  { %64 = vst [vmem:[#allocation6 + $0x18] sm:$0xff] %v63_v3 }
   0x6   :  { %66 = vst [vmem:[#allocation6 + $0x20] sm:$0xff] %v65_v4 }
   0x7   :  { %12 = vsyncpa [#allocation11], 0  ;;  %s1466_s18 = smov [#allocation10]   ;;  %68 = vst [vmem:[#allocation6 + $0x28] sm:$0xff] %v67_v5  ;;  %s1467_s3 = smov 256   ;;  %v957_v9 = vld [vmem:[%s2036_s1 + $0x18] sm:$0xff] }
   0x8   :  { %s164_s19 = sshll.u32 %s1466_s18, 4  ;;  %s1468_s20 = smov 16   ;;  %70 = vst [vmem:[#allocation6 + $0x30] sm:$0xff] %v69_v6  ;;  %v958_v10 = vld [vmem:[%s2036_s1 + $0x28] sm:$0xff]  ;;  %v959_v11 = vld [vmem:[%s2036_s1 + $0x38] sm:$0xff]  ;;  %s165_s19 = int_to_ptr.vmem [resolvable:$true] %s164_s19 }
   0x9   :  { %157 = dma.hbm_to_vmem [thread:$0]  %s150_s26, 4096, %s152_s30, [#allocation9], %s1467_s3, %s1467_s3, %s1468_s20   ;;  %72 = vst [vmem:[#allocation6 + $0x38] sm:$0xff] %v71_v7 }
   0xa   :  { %170 = dma.hbm_to_vmem [thread:$0]  %s163_s11, 4096, %s165_s19, [#allocation11], %s1467_s3, %s1467_s3, %s1468_s20   ;;  %127 = vst [vmem:[#allocation7] sm:$0xff] %v956_v8 }
   0xb   :  { %129 = vst [vmem:[#allocation7 + $0x8] sm:$0xff] %v957_v9  ;;  %v960_v12 = vld [vmem:[%s2036_s1 + $0x48] sm:$0xff]  ;;  %v961_v13 = vld [vmem:[%s2036_s1 + $0x58] sm:$0xff] }
   0xc   :  { %131 = vst [vmem:[#allocation7 + $0x10] sm:$0xff] %v958_v10  ;;  %v962_v14 = vld [vmem:[%s2036_s1 + $0x68] sm:$0xff]  ;;  %v963_v15 = vld [vmem:[%s2036_s1 + $0x78] sm:$0xff] }
   0xd   :  { %133 = vst [vmem:[#allocation7 + $0x18] sm:$0xff] %v959_v11 }
   0xe   :  { %135 = vst [vmem:[#allocation7 + $0x20] sm:$0xff] %v960_v12 }
   0xf   :  { %137 = vst [vmem:[#allocation7 + $0x28] sm:$0xff] %v961_v13 }
  0x10   :  { %139 = vst [vmem:[#allocation7 + $0x30] sm:$0xff] %v962_v14 }
  0x11   :  { %141 = vst [vmem:[#allocation7 + $0x38] sm:$0xff] %v963_v15 }
  0x12   :  { %1441 = dma.done.wait [#allocation9], 4096  }
  0x13   :  { %1442 = vsyncadd [#allocation9], 4294963200 }
  0x14   :  { %1443 = dma.done.wait [#allocation11], 4096  }
  0x15   :  { %1444 = vsyncadd [#allocation11], 4294963200  ;;  %v1554_v16 = vld [vmem:[#allocation8 + $0x4] sm:$0xf]  ;;  %v1556_v17 = vld [vmem:[#allocation8] sm:$0xf] }
  0x16   :  { %2041 = vst [vmem:[#allocation14_spill] sm:$0xff] %v1554_v16  ;;  %v1558_v18 = vld [vmem:[#allocation8 + $0xc] sm:$0xf]  ;;  %v1560_v19 = vld [vmem:[#allocation8 + $0x8] sm:$0xf]  ;;  %s1818_s1 = smov 0  }
  0x17   :  { %2042 = vst [vmem:[#allocation15_spill] sm:$0xff] %v1556_v17  ;;  %v1562_v20 = vld [vmem:[#allocation8 + $0x10] sm:$0xf0]  ;;  %v1564_v21 = vld [vmem:[#allocation8 + $0xc] sm:$0xf0] }
  0x18   :  { %2043 = vst [vmem:[#allocation16_spill] sm:$0xff] %v1558_v18  ;;  %v1566_v22 = vld [vmem:[#allocation8 + $0x18] sm:$0xf0]  ;;  %v1568_v23 = vld [vmem:[#allocation8 + $0x14] sm:$0xf0] }
  0x19   :  { %2044 = vst [vmem:[#allocation17_spill] sm:$0xff] %v1560_v19  ;;  %v1570_v24 = vld [vmem:[#allocation8 + $0x24] sm:$0xf]  ;;  %v1572_v25 = vld [vmem:[#allocation8 + $0x20] sm:$0xf] }
  0x1a   :  { %2045 = vst [vmem:[#allocation18_spill] sm:$0xff] %v1562_v20  ;;  %v1574_v26 = vld [vmem:[#allocation8 + $0x2c] sm:$0xf]  ;;  %v1576_v27 = vld [vmem:[#allocation8 + $0x28] sm:$0xf] }
  0x1b   :  { %2046 = vst [vmem:[#allocation19_spill] sm:$0xff] %v1564_v21  ;;  %v1578_v28 = vld [vmem:[#allocation8 + $0x30] sm:$0xf0]  ;;  %v1580_v29 = vld [vmem:[#allocation8 + $0x2c] sm:$0xf0] }
  0x1c   :  { %2047 = vst [vmem:[#allocation20_spill] sm:$0xff] %v1566_v22  ;;  %v1582_v30 = vld [vmem:[#allocation8 + $0x38] sm:$0xf0]  ;;  %v1584_v31 = vld [vmem:[#allocation8 + $0x34] sm:$0xf0] }
  0x1d   :  { %2048 = vst [vmem:[#allocation21_spill] sm:$0xff] %v1568_v23  ;;  %v1586_v32 = vld [vmem:[#allocation8 + $0x44] sm:$0xf]  ;;  %v1588_v33 = vld [vmem:[#allocation8 + $0x40] sm:$0xf] }
  0x1e   :  { %2049 = vst [vmem:[#allocation22_spill] sm:$0xff] %v1570_v24  ;;  %v1590_v34 = vld [vmem:[#allocation8 + $0x4c] sm:$0xf]  ;;  %v1592_v35 = vld [vmem:[#allocation8 + $0x48] sm:$0xf] }
  0x1f   :  { %2050 = vst [vmem:[#allocation23_spill] sm:$0xff] %v1572_v25  ;;  %v1594_v36 = vld [vmem:[#allocation8 + $0x50] sm:$0xf0]  ;;  %v1596_v37 = vld [vmem:[#allocation8 + $0x4c] sm:$0xf0] }
  0x20   :  { %2051 = vst [vmem:[#allocation24_spill] sm:$0xff] %v1574_v26  ;;  %v1598_v38 = vld [vmem:[#allocation8 + $0x58] sm:$0xf0]  ;;  %v1600_v39 = vld [vmem:[#allocation8 + $0x54] sm:$0xf0] }
  0x21   :  { %2052 = vst [vmem:[#allocation25_spill] sm:$0xff] %v1576_v27  ;;  %v1602_v40 = vld [vmem:[#allocation8 + $0x64] sm:$0xf]  ;;  %v1604_v41 = vld [vmem:[#allocation8 + $0x60] sm:$0xf] }
  0x22   :  { %2053 = vst [vmem:[#allocation26_spill] sm:$0xff] %v1582_v30  ;;  %v1606_v42 = vld [vmem:[#allocation8 + $0x6c] sm:$0xf]  ;;  %v1608_v43 = vld [vmem:[#allocation8 + $0x68] sm:$0xf] }
  0x23   :  { %2054 = vst [vmem:[#allocation27_spill] sm:$0xff] %v1584_v31  ;;  %v1610_v44 = vld [vmem:[#allocation8 + $0x70] sm:$0xf0]  ;;  %v1612_v45 = vld [vmem:[#allocation8 + $0x6c] sm:$0xf0] }
  0x24   :  { %v1614_v46 = vld [vmem:[#allocation8 + $0x78] sm:$0xf0]  ;;  %v1616_v47 = vld [vmem:[#allocation8 + $0x74] sm:$0xf0]  ;;  %v1618_v48 = vld [vmem:[#allocation8 + $0x84] sm:$0xf] }
  0x25   :  { %v1620_v49 = vld [vmem:[#allocation8 + $0x80] sm:$0xf]  ;;  %v1622_v50 = vld [vmem:[#allocation8 + $0x8c] sm:$0xf]  ;;  %v1624_v51 = vld [vmem:[#allocation8 + $0x88] sm:$0xf] }
  0x26   :  { %v1626_v52 = vld [vmem:[#allocation8 + $0x90] sm:$0xf0]  ;;  %v1628_v53 = vld [vmem:[#allocation8 + $0x8c] sm:$0xf0]  ;;  %v1630_v54 = vld [vmem:[#allocation8 + $0x98] sm:$0xf0] }
  0x27   :  { %v1632_v55 = vld [vmem:[#allocation8 + $0x94] sm:$0xf0]  ;;  %v1634_v56 = vld [vmem:[#allocation8 + $0xa4] sm:$0xf]  ;;  %v1636_v57 = vld [vmem:[#allocation8 + $0xa0] sm:$0xf] }
  0x28   :  { %v1638_v58 = vld [vmem:[#allocation8 + $0xac] sm:$0xf]  ;;  %v1640_v59 = vld [vmem:[#allocation8 + $0xa8] sm:$0xf]  ;;  %v1642_v60 = vld [vmem:[#allocation8 + $0xb0] sm:$0xf0] }
  0x29   :  { %v1644_v61 = vld [vmem:[#allocation8 + $0xac] sm:$0xf0]  ;;  %v1646_v62 = vld [vmem:[#allocation8 + $0xb8] sm:$0xf0]  ;;  %v1648_v63 = vld [vmem:[#allocation8 + $0xb4] sm:$0xf0] }
  0x2a   :  { %v1650_v0 = vld [vmem:[#allocation8 + $0xc4] sm:$0xf]  ;;  %v1652_v1 = vld [vmem:[#allocation8 + $0xc0] sm:$0xf]  ;;  %v1654_v2 = vld [vmem:[#allocation8 + $0xcc] sm:$0xf] }
  0x2b   :  { %2055 = vst [vmem:[#allocation28_spill] sm:$0xff] %v1650_v0  ;;  %v1656_v3 = vld [vmem:[#allocation8 + $0xc8] sm:$0xf]  ;;  %v1658_v4 = vld [vmem:[#allocation8 + $0xd0] sm:$0xf0] }
  0x2c   :  { %2056 = vst [vmem:[#allocation29_spill] sm:$0xff] %v1652_v1  ;;  %v1660_v5 = vld [vmem:[#allocation8 + $0xcc] sm:$0xf0]  ;;  %v1662_v6 = vld [vmem:[#allocation8 + $0xd8] sm:$0xf0] }
  0x2d   :  { %2057 = vst [vmem:[#allocation30_spill] sm:$0xff] %v1654_v2  ;;  %v1664_v7 = vld [vmem:[#allocation8 + $0xd4] sm:$0xf0]  ;;  %v1666_v8 = vld [vmem:[#allocation8 + $0xe4] sm:$0xf] }
  0x2e   :  { %2058 = vst [vmem:[#allocation31_spill] sm:$0xff] %v1656_v3  ;;  %v1668_v9 = vld [vmem:[#allocation8 + $0xe0] sm:$0xf]  ;;  %v1670_v10 = vld [vmem:[#allocation8 + $0xec] sm:$0xf] }
  0x2f   :  { %2059 = vst [vmem:[#allocation32_spill] sm:$0xff] %v1658_v4  ;;  %v1672_v11 = vld [vmem:[#allocation8 + $0xe8] sm:$0xf]  ;;  %v1674_v12 = vld [vmem:[#allocation8 + $0xf0] sm:$0xf0] }
  0x30   :  { %2060 = vst [vmem:[#allocation33_spill] sm:$0xff] %v1660_v5  ;;  %v1676_v13 = vld [vmem:[#allocation8 + $0xec] sm:$0xf0]  ;;  %v1678_v14 = vld [vmem:[#allocation8 + $0xf8] sm:$0xf0] }
  0x31   :  { %2061 = vst [vmem:[#allocation34_spill] sm:$0xff] %v1662_v6  ;;  %v1680_v15 = vld [vmem:[#allocation8 + $0xf4] sm:$0xf0]  ;;  %v1682_v18 = vld [vmem:[#allocation10 + $0x4] sm:$0xf] }
  0x32   :  { %2062 = vst [vmem:[#allocation35_spill] sm:$0xff] %v1664_v7  ;;  %v1684_v22 = vld [vmem:[#allocation10] sm:$0xf]  ;;  %v1686_v23 = vld [vmem:[#allocation10 + $0xc] sm:$0xf] }
  0x33   :  { %2063 = vst [vmem:[#allocation36_spill] sm:$0xff] %v1666_v8  ;;  %v1688_v19 = vld [vmem:[#allocation10 + $0x8] sm:$0xf]  ;;  %v1690_v16 = vld [vmem:[#allocation10 + $0x10] sm:$0xf0] }
  0x34   :  { %2064 = vst [vmem:[#allocation37_spill] sm:$0xff] %v1668_v9  ;;  %v1692_v20 = vld [vmem:[#allocation10 + $0xc] sm:$0xf0]  ;;  %v1694_v21 = vld [vmem:[#allocation10 + $0x18] sm:$0xf0] }
  0x35   :  { %2065 = vst [vmem:[#allocation38_spill] sm:$0xff] %v1670_v10  ;;  %v1696_v17 = vld [vmem:[#allocation10 + $0x14] sm:$0xf0]  ;;  %v1698_v26 = vld [vmem:[#allocation10 + $0x24] sm:$0xf] }
  0x36   :  { %2066 = vst [vmem:[#allocation39_spill] sm:$0xff] %v1672_v11  ;;  %v1700_v30 = vld [vmem:[#allocation10 + $0x20] sm:$0xf]  ;;  %v1702_v31 = vld [vmem:[#allocation10 + $0x2c] sm:$0xf] }
  0x37   :  { %2067 = vst [vmem:[#allocation40_spill] sm:$0xff] %v1674_v12 }
  0x38   :  { %2068 = vst [vmem:[#allocation41_spill] sm:$0xff] %v1676_v13 }
  0x39   :  { %2069 = vst [vmem:[#allocation42_spill] sm:$0xff] %v1678_v14 }
  0x3a   :  { %2070 = vst [vmem:[#allocation43_spill] sm:$0xff] %v1680_v15 }
  0x3b   :  { %2071 = vst [vmem:[#allocation44_spill] sm:$0xff] %v1682_v18  ;;  %v1704_v18 = vld [vmem:[#allocation10 + $0x28] sm:$0xf] }
  0x3c   :  { %2072 = vst [vmem:[#allocation45_spill] sm:$0xff] %v1684_v22  ;;  %v1706_v22 = vld [vmem:[#allocation10 + $0x30] sm:$0xf0] }
  0x3d   :  { %2073 = vst [vmem:[#allocation46_spill] sm:$0xff] %v1686_v23  ;;  %v1708_v23 = vld [vmem:[#allocation10 + $0x2c] sm:$0xf0] }
  0x3e   :  { %2074 = vst [vmem:[#allocation47_spill] sm:$0xff] %v1688_v19  ;;  %v1710_v19 = vld [vmem:[#allocation10 + $0x38] sm:$0xf0] }
  0x3f   :  { %2075 = vst [vmem:[#allocation48_spill] sm:$0xff] %v1690_v16  ;;  %v1712_v16 = vld [vmem:[#allocation10 + $0x34] sm:$0xf0] }
  0x40   :  { %2076 = vst [vmem:[#allocation49_spill] sm:$0xff] %v1692_v20  ;;  %v1714_v20 = vld [vmem:[#allocation10 + $0x44] sm:$0xf] }
  0x41   :  { %2077 = vst [vmem:[#allocation50_spill] sm:$0xff] %v1694_v21  ;;  %v1716_v21 = vld [vmem:[#allocation10 + $0x40] sm:$0xf] }
  0x42   :  { %2078 = vst [vmem:[#allocation51_spill] sm:$0xff] %v1696_v17  ;;  %v1718_v17 = vld [vmem:[#allocation10 + $0x4c] sm:$0xf] }
  0x43   :  { %2079 = vst [vmem:[#allocation52_spill] sm:$0xff] %v1698_v26  ;;  %v1720_v26 = vld [vmem:[#allocation10 + $0x48] sm:$0xf] }
  0x44   :  { %2080 = vst [vmem:[#allocation53_spill] sm:$0xff] %v1700_v30  ;;  %v1722_v30 = vld [vmem:[#allocation10 + $0x50] sm:$0xf0] }
  0x45   :  { %2081 = vst [vmem:[#allocation54_spill] sm:$0xff] %v1702_v31  ;;  %v1724_v31 = vld [vmem:[#allocation10 + $0x4c] sm:$0xf0] }
  0x46   :  { %2082 = vst [vmem:[#allocation55_spill] sm:$0xff] %v1704_v18  ;;  %v1726_v18 = vld [vmem:[#allocation10 + $0x58] sm:$0xf0] }
  0x47   :  { %2083 = vst [vmem:[#allocation56_spill] sm:$0xff] %v1706_v22  ;;  %v1728_v22 = vld [vmem:[#allocation10 + $0x54] sm:$0xf0] }
  0x48   :  { %2084 = vst [vmem:[#allocation57_spill] sm:$0xff] %v1708_v23  ;;  %v1730_v23 = vld [vmem:[#allocation10 + $0x64] sm:$0xf] }
  0x49   :  { %2085 = vst [vmem:[#allocation58_spill] sm:$0xff] %v1710_v19  ;;  %v1732_v19 = vld [vmem:[#allocation10 + $0x60] sm:$0xf] }
  0x4a   :  { %2086 = vst [vmem:[#allocation59_spill] sm:$0xff] %v1712_v16  ;;  %v1734_v16 = vld [vmem:[#allocation10 + $0x6c] sm:$0xf] }
  0x4b   :  { %2087 = vst [vmem:[#allocation60_spill] sm:$0xff] %v1714_v20  ;;  %v1736_v20 = vld [vmem:[#allocation10 + $0x68] sm:$0xf] }
  0x4c   :  { %2088 = vst [vmem:[#allocation61_spill] sm:$0xff] %v1716_v21  ;;  %v1738_v21 = vld [vmem:[#allocation10 + $0x70] sm:$0xf0] }
  0x4d   :  { %2089 = vst [vmem:[#allocation62_spill] sm:$0xff] %v1718_v17  ;;  %v1740_v17 = vld [vmem:[#allocation10 + $0x6c] sm:$0xf0] }
  0x4e   :  { %2090 = vst [vmem:[#allocation63_spill] sm:$0xff] %v1720_v26  ;;  %v1742_v26 = vld [vmem:[#allocation10 + $0x78] sm:$0xf0] }
  0x4f   :  { %2091 = vst [vmem:[#allocation64_spill] sm:$0xff] %v1722_v30  ;;  %v1744_v30 = vld [vmem:[#allocation10 + $0x74] sm:$0xf0] }
  0x50   :  { %2092 = vst [vmem:[#allocation65_spill] sm:$0xff] %v1724_v31  ;;  %v1746_v31 = vld [vmem:[#allocation10 + $0x84] sm:$0xf] }
  0x51   :  { %2093 = vst [vmem:[#allocation66_spill] sm:$0xff] %v1726_v18  ;;  %v1748_v18 = vld [vmem:[#allocation10 + $0x80] sm:$0xf] }
  0x52   :  { %2094 = vst [vmem:[#allocation67_spill] sm:$0xff] %v1728_v22  ;;  %v1750_v22 = vld [vmem:[#allocation10 + $0x8c] sm:$0xf] }
  0x53   :  { %2095 = vst [vmem:[#allocation68_spill] sm:$0xff] %v1730_v23  ;;  %v1752_v23 = vld [vmem:[#allocation10 + $0x88] sm:$0xf] }
  0x54   :  { %2096 = vst [vmem:[#allocation69_spill] sm:$0xff] %v1732_v19  ;;  %v1754_v19 = vld [vmem:[#allocation10 + $0x90] sm:$0xf0] }
  0x55   :  { %2097 = vst [vmem:[#allocation70_spill] sm:$0xff] %v1734_v16  ;;  %v1756_v16 = vld [vmem:[#allocation10 + $0x8c] sm:$0xf0] }
  0x56   :  { %2098 = vst [vmem:[#allocation71_spill] sm:$0xff] %v1736_v20  ;;  %v1758_v20 = vld [vmem:[#allocation10 + $0x98] sm:$0xf0] }
  0x57   :  { %2099 = vst [vmem:[#allocation72_spill] sm:$0xff] %v1738_v21  ;;  %v1760_v21 = vld [vmem:[#allocation10 + $0x94] sm:$0xf0] }
  0x58   :  { %2100 = vst [vmem:[#allocation73_spill] sm:$0xff] %v1740_v17  ;;  %v1762_v17 = vld [vmem:[#allocation10 + $0xa4] sm:$0xf] }
  0x59   :  { %2101 = vst [vmem:[#allocation74_spill] sm:$0xff] %v1742_v26  ;;  %v1764_v26 = vld [vmem:[#allocation10 + $0xa0] sm:$0xf] }
  0x5a   :  { %2102 = vst [vmem:[#allocation75_spill] sm:$0xff] %v1744_v30  ;;  %v1766_v30 = vld [vmem:[#allocation10 + $0xac] sm:$0xf] }
  0x5b   :  { %2103 = vst [vmem:[#allocation76_spill] sm:$0xff] %v1746_v31  ;;  %v1768_v31 = vld [vmem:[#allocation10 + $0xa8] sm:$0xf] }
  0x5c   :  { %2104 = vst [vmem:[#allocation77_spill] sm:$0xff] %v1748_v18  ;;  %v1770_v18 = vld [vmem:[#allocation10 + $0xb0] sm:$0xf0] }
  0x5d   :  { %2105 = vst [vmem:[#allocation78_spill] sm:$0xff] %v1750_v22  ;;  %v1772_v22 = vld [vmem:[#allocation10 + $0xac] sm:$0xf0] }
  0x5e   :  { %2106 = vst [vmem:[#allocation79_spill] sm:$0xff] %v1752_v23  ;;  %v1774_v23 = vld [vmem:[#allocation10 + $0xb8] sm:$0xf0] }
  0x5f   :  { %2107 = vst [vmem:[#allocation80_spill] sm:$0xff] %v1754_v19  ;;  %v1776_v19 = vld [vmem:[#allocation10 + $0xb4] sm:$0xf0] }
  0x60   :  { %2108 = vst [vmem:[#allocation81_spill] sm:$0xff] %v1756_v16  ;;  %v1778_v16 = vld [vmem:[#allocation10 + $0xc4] sm:$0xf] }
  0x61   :  { %2109 = vst [vmem:[#allocation82_spill] sm:$0xff] %v1758_v20  ;;  %v1780_v20 = vld [vmem:[#allocation10 + $0xc0] sm:$0xf] }
  0x62   :  { %2110 = vst [vmem:[#allocation83_spill] sm:$0xff] %v1760_v21  ;;  %v1782_v21 = vld [vmem:[#allocation10 + $0xcc] sm:$0xf] }
  0x63   :  { %2111 = vst [vmem:[#allocation84_spill] sm:$0xff] %v1762_v17  ;;  %v1784_v17 = vld [vmem:[#allocation10 + $0xc8] sm:$0xf] }
  0x64   :  { %2112 = vst [vmem:[#allocation85_spill] sm:$0xff] %v1764_v26  ;;  %v1786_v26 = vld [vmem:[#allocation10 + $0xd0] sm:$0xf0] }
  0x65   :  { %2113 = vst [vmem:[#allocation86_spill] sm:$0xff] %v1766_v30  ;;  %v1788_v30 = vld [vmem:[#allocation10 + $0xcc] sm:$0xf0] }
  0x66   :  { %2114 = vst [vmem:[#allocation87_spill] sm:$0xff] %v1768_v31  ;;  %v1790_v31 = vld [vmem:[#allocation10 + $0xd8] sm:$0xf0] }
  0x67   :  { %2115 = vst [vmem:[#allocation88_spill] sm:$0xff] %v1770_v18  ;;  %v1792_v18 = vld [vmem:[#allocation10 + $0xd4] sm:$0xf0] }
  0x68   :  { %2116 = vst [vmem:[#allocation89_spill] sm:$0xff] %v1772_v22  ;;  %v1794_v22 = vld [vmem:[#allocation10 + $0xe4] sm:$0xf] }
  0x69   :  { %2117 = vst [vmem:[#allocation90_spill] sm:$0xff] %v1774_v23  ;;  %v1796_v23 = vld [vmem:[#allocation10 + $0xe0] sm:$0xf] }
  0x6a   :  { %2118 = vst [vmem:[#allocation91_spill] sm:$0xff] %v1776_v19  ;;  %v1798_v19 = vld [vmem:[#allocation10 + $0xec] sm:$0xf] }
  0x6b   :  { %2119 = vst [vmem:[#allocation92_spill] sm:$0xff] %v1778_v16  ;;  %v1800_v16 = vld [vmem:[#allocation10 + $0xe8] sm:$0xf] }
  0x6c   :  { %2120 = vst [vmem:[#allocation93_spill] sm:$0xff] %v1780_v20  ;;  %v1802_v20 = vld [vmem:[#allocation10 + $0xf0] sm:$0xf0] }
  0x6d   :  { %2121 = vst [vmem:[#allocation94_spill] sm:$0xff] %v1782_v21  ;;  %v1804_v21 = vld [vmem:[#allocation10 + $0xec] sm:$0xf0] }
  0x6e   :  { %2122 = vst [vmem:[#allocation95_spill] sm:$0xff] %v1784_v17  ;;  %v1806_v17 = vld [vmem:[#allocation10 + $0xf8] sm:$0xf0] }
  0x6f   :  { %2123 = vst [vmem:[#allocation96_spill] sm:$0xff] %v1786_v26  ;;  %v1808_v26 = vld [vmem:[#allocation10 + $0xf4] sm:$0xf0] }
  0x70   :  { %2124 = vst [vmem:[#allocation97_spill] sm:$0xff] %v1788_v30  ;;  %v1469_v30 = vmov 0.0  }
  0x71   :  { %2125 = vst [vmem:[#allocation98_spill] sm:$0xff] %v1790_v31 }
  0x72   :  { %2126 = vst [vmem:[#allocation99_spill] sm:$0xff] %v1792_v18 }
  0x73   :  { %2127 = vst [vmem:[#allocation100_spill] sm:$0xff] %v1794_v22 }
  0x74   :  { %2128 = vst [vmem:[#allocation101_spill] sm:$0xff] %v1796_v23 }
  0x75   :  { %2129 = vst [vmem:[#allocation102_spill] sm:$0xff] %v1798_v19 }
  0x76   :  { %2130 = vst [vmem:[#allocation103_spill] sm:$0xff] %v1800_v16 }
  0x77   :  { %2131 = vst [vmem:[#allocation104_spill] sm:$0xff] %v1802_v20 }
  0x78   :  { %2132 = vst [vmem:[#allocation105_spill] sm:$0xff] %v1804_v21 }
  0x79   :  { %2133 = vst [vmem:[#allocation106_spill] sm:$0xff] %v1806_v17 }
  0x7a   :  { %2134 = vst [vmem:[#allocation107_spill] sm:$0xff] %v1808_v26 }
  0x7b   :  { %201 = vst [vmem:[#allocation2] sm:$0x3] %v1469_v30 }
  0x7c   :  { %202 = vst [vmem:[#allocation3] sm:$0x3] %v1469_v30 }
  0x7d   :  { %203 = vst [vmem:[#allocation4] sm:$0x3] %v1469_v30 }
  0x7e   :  { %204 = vst [vmem:[#allocation5] sm:$0x3] %v1469_v30 }
  0x82   :  { %v269_v31 = vld [vmem:[#allocation2] sm:$0x3]  }
  0x83   :  { %v270_v18 = vld [vmem:[#allocation3] sm:$0x3]  }
  0x84   :  { %v271_v22 = vld [vmem:[#allocation4] sm:$0x3]  }
  0x85   :  { %v272_v23 = vld [vmem:[#allocation5] sm:$0x3]  }
  0x86 LB: > { %2135 = vst [vmem:[#allocation108_spill] sm:$0xff] %v1447_v23  ;;  %v2139_v9 = vld [vmem:[#allocation37_spill] sm:$0xff]  ;;  %v2141_v12 = vld [vmem:[#allocation40_spill] sm:$0xff]  ;;  %v2143_v11 = vld [vmem:[#allocation39_spill] sm:$0xff]  ;;  %s1294_s9 = sshll.u32 %s1463_s1, 3  ;;  %vm508_vm0 = vcmask 1041408   ;;  %s886_s15 = scalar_lea.vmem %s2039_s4, %s1463_s1  ;;  %s1463_s1 = sphi %s1818_s1, %s278_s1   ;;  %v1459_v31 = vphi %v269_v31, %v2244_v31   ;;  %v1455_v18 = vphi %v270_v18, %v2243_v18   ;;  %v1451_v22 = vphi %v271_v22, %v2242_v22   ;;  %v1447_v23 = vphi %v272_v23, %v2241_v23  }
  0x87   : > { %2136 = vst [vmem:[#allocation109_spill] sm:$0xff] %v1451_v22  ;;  %v2140_v13 = vld [vmem:[#allocation41_spill] sm:$0xff]  ;;  %v2142_v8 = vld [vmem:[#allocation36_spill] sm:$0xff]  ;;  %v2144_v15 = vld [vmem:[#allocation43_spill] sm:$0xff]  ;;  %vm510_vm1 = vcmask 1045508   ;;  %vm512_vm2 = vcmask 1043456  }
  0x88   : > { %2137 = vst [vmem:[#allocation110_spill] sm:$0xff] %v1455_v18  ;;  %v1081_v30 = vor.u32 %v2140_v13, %v2139_v9  ;;  %v1085_v19 = vor.u32 %v2142_v8, %v2141_v12  ;;  %v1089_v23 = vor.u32 %v2144_v15, %v2143_v11  ;;  %v2145_v14 = vld [vmem:[#allocation42_spill] sm:$0xff]  ;;  %v2147_v1 = vld [vmem:[#allocation29_spill] sm:$0xff]  ;;  %v2149_v4 = vld [vmem:[#allocation32_spill] sm:$0xff]  ;;  %s286_s2 = scalar_lea.vmem [#allocation6], %s1294_s9  ;;  %s283_s10 = ssub.s32 7, %s1463_s1 }
  0x89   : > { %2138 = vst [vmem:[#allocation111_spill] sm:$0xff] %v1459_v31  ;;  %v2146_v10 = vld [vmem:[#allocation38_spill] sm:$0xff]  ;;  %v2148_v5 = vld [vmem:[#allocation33_spill] sm:$0xff]  ;;  %v2150_v0 = vld [vmem:[#allocation28_spill] sm:$0xff]  ;;  %s1977_s11 = sshll.u32 %s283_s10, 3  ;;  %s889_s18 = scalar_lea.vmem %s2040_s5, %s283_s10 }
  0x8a   : > { %v1093_v22 = vor.u32 %v2146_v10, %v2145_v14  ;;  %449 = vmatpush.bf16.msra.mxu0 %v1081_v30  ;;  %462 = vmatpush.bf16.msra.mxu1 %v1085_v19  ;;  %v1065_v18 = vor.u32 %v2148_v5, %v2147_v1  ;;  %v1069_v31 = vor.u32 %v2150_v0, %v2149_v4  ;;  %v2151_v3 = vld [vmem:[#allocation31_spill] sm:$0xff]  ;;  %v2153_v6 = vld [vmem:[#allocation34_spill] sm:$0xff]  ;;  %v2157_v27 = vld [vmem:[#allocation25_spill] sm:$0xff]  ;;  %s518_s12 = scalar_lea.vmem [#allocation7], %s1977_s11  ;;  %s278_s1 = sadd.s32 1, %s1463_s1  }
  0x8b   : > { %475 = vmatpush.bf16.msra.mxu2 %v1089_v23  ;;  %v2152_v7 = vld [vmem:[#allocation35_spill] sm:$0xff]  ;;  %v2154_v2 = vld [vmem:[#allocation30_spill] sm:$0xff]  ;;  %v1049_v30 = vor.u32 %v1644_v61, %v1636_v57  ;;  %v1053_v19 = vor.u32 %v1634_v56, %v1642_v60  ;;  %v1057_v23 = vor.u32 %v1648_v63, %v1640_v59  ;;  %v2160_v1 = vld [vmem:[#allocation24_spill] sm:$0xff]  ;;  %p275_p0 = scmp.ge.s32.totalorder %s278_s1, 8  }
  0x8c   : > { %488 = vmatpush.bf16.msra.mxu3 %v1093_v22  ;;  %v1073_v9 = vor.u32 %v2152_v7, %v2151_v3  ;;  %v1077_v8 = vor.u32 %v2154_v2, %v2153_v6  ;;  %v1061_v22 = vor.u32 %v1638_v58, %v1646_v62  ;;  %v2155_v25 = vld [vmem:[#allocation23_spill] sm:$0xff]  ;;  %v2156_v24 = vld [vmem:[#allocation22_spill] sm:$0xff]  ;;  %v2165_v7 = vld [vmem:[#allocation17_spill] sm:$0xff] }
  0x8d   : > { %v2158_v0 = vld [vmem:[#allocation27_spill] sm:$0xff]  ;;  %v2164_v5 = vld [vmem:[#allocation14_spill] sm:$0xff]  ;;  %v2166_v10 = vld [vmem:[#allocation21_spill] sm:$0xff] }
  0x8e   : > { %450 = vmatpush.bf16.msra.mxu0 %v1065_v18  ;;  %463 = vmatpush.bf16.msra.mxu1 %v1069_v31  ;;  %v1033_v18 = vor.u32 %v1628_v53, %v1620_v49  ;;  %v1037_v31 = vor.u32 %v1618_v48, %v1626_v52  ;;  %v2161_v3 = vld [vmem:[#allocation15_spill] sm:$0xff]  ;;  %v2168_v11 = vld [vmem:[#allocation16_spill] sm:$0xff]  ;;  %v2170_v21 = vld [vmem:[#allocation105_spill] sm:$0xff] }
  0x8f   : > { %476 = vmatpush.bf16.msra.mxu2 %v1073_v9  ;;  %v1041_v9 = vor.u32 %v1632_v55, %v1624_v51  ;;  %v2162_v4 = vld [vmem:[#allocation19_spill] sm:$0xff]  ;;  %v2171_v20 = vld [vmem:[#allocation104_spill] sm:$0xff]  ;;  %v2175_v17 = vld [vmem:[#allocation106_spill] sm:$0xff] }
  0x90   : > { %489 = vmatpush.bf16.msra.mxu3 %v1077_v8  ;;  %v1045_v8 = vor.u32 %v1622_v50, %v1630_v54  ;;  %v2173_v16 = vld [vmem:[#allocation103_spill] sm:$0xff] }
  0x91   : > { %v2174_v26 = vld [vmem:[#allocation107_spill] sm:$0xff] }
  0x92   : > { %451 = vmatpush.bf16.msra.mxu0 %v1049_v30  ;;  %464 = vmatpush.bf16.msra.mxu1 %v1053_v19  ;;  %v1017_v30 = vor.u32 %v1612_v45, %v1604_v41  ;;  %v1021_v19 = vor.u32 %v1602_v40, %v1610_v44 }
  0x93   : > { %477 = vmatpush.bf16.msra.mxu2 %v1057_v23  ;;  %v1025_v23 = vor.u32 %v1616_v47, %v1608_v43 }
  0x94   : > { %490 = vmatpush.bf16.msra.mxu3 %v1061_v22  ;;  %v1029_v22 = vor.u32 %v1606_v42, %v1614_v46 }
  0x96   : > { %452 = vmatpush.bf16.msra.mxu0 %v1033_v18  ;;  %465 = vmatpush.bf16.msra.mxu1 %v1037_v31  ;;  %v1001_v18 = vor.u32 %v1596_v37, %v1588_v33  ;;  %v1005_v31 = vor.u32 %v1586_v32, %v1594_v36 }
  0x97   : > { %478 = vmatpush.bf16.msra.mxu2 %v1041_v9  ;;  %v1009_v9 = vor.u32 %v1600_v39, %v1592_v35 }
  0x98   : > { %491 = vmatpush.bf16.msra.mxu3 %v1045_v8  ;;  %v1013_v8 = vor.u32 %v1590_v34, %v1598_v38 }
  0x9a   : > { %453 = vmatpush.bf16.msra.mxu0 %v1017_v30  ;;  %466 = vmatpush.bf16.msra.mxu1 %v1021_v19  ;;  %v985_v30 = vor.u32 %v1580_v29, %v2155_v25  ;;  %v989_v19 = vor.u32 %v2156_v24, %v1578_v28 }
  0x9b   : > { %479 = vmatpush.bf16.msra.mxu2 %v1025_v23  ;;  %v993_v23 = vor.u32 %v2158_v0, %v2157_v27  ;;  %v2169_v0 = vld [vmem:[#allocation101_spill] sm:$0xff] }
  0x9c   : > { %492 = vmatpush.bf16.msra.mxu3 %v1029_v22  ;;  %v2159_v22 = vld [vmem:[#allocation26_spill] sm:$0xff]  ;;  %v1211_v13 = vor.u32 %v2170_v21, %v2169_v0  ;;  %v2183_v0 = vld [vmem:[#allocation99_spill] sm:$0xff]  ;;  %v519_v21 = vld [vmem:[%s518_s12] sm:$0xff] }
  0x9d   : > { %v997_v2 = vor.u32 %v2160_v1, %v2159_v22  ;;  %v2172_v1 = vld [vmem:[#allocation100_spill] sm:$0xff] }
  0x9e   : > { %454 = vmatpush.bf16.msra.mxu0 %v1001_v18  ;;  %467 = vmatpush.bf16.msra.mxu1 %v1005_v31  ;;  %v969_v18 = vor.u32 %v2162_v4, %v2161_v3  ;;  %v2163_v31 = vld [vmem:[#allocation18_spill] sm:$0xff]  ;;  %v1219_v3 = vor.u32 %v2174_v26, %v2173_v16  ;;  %v2181_v22 = vld [vmem:[#allocation92_spill] sm:$0xff] }
  0x9f   : > { %480 = vmatpush.bf16.msra.mxu2 %v1009_v9  ;;  %v973_v6 = vor.u32 %v2164_v5, %v2163_v31  ;;  %v977_v9 = vor.u32 %v2166_v10, %v2165_v7  ;;  %v2176_v4 = vld [vmem:[#allocation102_spill] sm:$0xff]  ;;  %v2178_v10 = vld [vmem:[#allocation93_spill] sm:$0xff] }
  0xa0   : > { %493 = vmatpush.bf16.msra.mxu3 %v1013_v8  ;;  %v2167_v8 = vld [vmem:[#allocation20_spill] sm:$0xff]  ;;  %v1223_v5 = vor.u32 %v2176_v4, %v2175_v17 }
  0xa1   : > { %v981_v12 = vor.u32 %v2168_v11, %v2167_v8  ;;  %v2179_v11 = vld [vmem:[#allocation97_spill] sm:$0xff]  ;;  %v2182_v8 = vld [vmem:[#allocation95_spill] sm:$0xff] }
  0xa2   : > { %455 = vmatpush.bf16.msra.mxu0 %v985_v30  ;;  %468 = vmatpush.bf16.msra.mxu1 %v989_v19  ;;  %v1215_v30 = vor.u32 %v2172_v1, %v2171_v20  ;;  %v1195_v19 = vor.u32 %v2179_v11, %v2178_v10  ;;  %v1203_v1 = vor.u32 %v2183_v0, %v2182_v8  ;;  %v2194_v0 = vld [vmem:[#allocation77_spill] sm:$0xff] }
  0xa3   : > { %481 = vmatpush.bf16.msra.mxu2 %v993_v23  ;;  %v2180_v23 = vld [vmem:[#allocation96_spill] sm:$0xff] }
  0xa4   : > { %494 = vmatpush.bf16.msra.mxu3 %v997_v2  ;;  %v2177_v2 = vld [vmem:[#allocation111_spill] sm:$0xff]  ;;  %v1199_v31 = vor.u32 %v2181_v22, %v2180_v23  ;;  %v2192_v23 = vld [vmem:[#allocation90_spill] sm:$0xff] }
  0xa5   : > { %v288_v7 = vpack.c.bf16 %v2177_v2, %v2177_v2  ;;  %v2189_v2 = vld [vmem:[#allocation84_spill] sm:$0xff]  ;;  %v2193_v22 = vld [vmem:[#allocation86_spill] sm:$0xff] }
  0xa6   : > { %456 = vmatpush.bf16.msra.mxu0 %v969_v18  ;;  %469 = vmatpush.bf16.msra.mxu1 %v973_v6  ;;  %v2184_v18 = vld [vmem:[#allocation98_spill] sm:$0xff]  ;;  %v1191_v8 = vor.u32 %v2193_v22, %v2192_v23  ;;  %v2205_v23 = vld [vmem:[#allocation68_spill] sm:$0xff] }
  0xa7   : > { %482 = vmatpush.bf16.msra.mxu2 %v977_v9  ;;  %v2185_v6 = vld [vmem:[#allocation94_spill] sm:$0xff] }
  0xa8   : > { %495 = vmatpush.bf16.msra.mxu3 %v981_v12  ;;  %v1207_v4 = vor.u32 %v2185_v6, %v2184_v18  ;;  %v2186_v12 = vld [vmem:[#allocation85_spill] sm:$0xff]  ;;  %v2197_v18 = vld [vmem:[#allocation76_spill] sm:$0xff] }
  0xa9   : > { %470 = vmatmul.bf16.vlgmr.msra.gmra.mxu1 %v288_v7  ;;  %457 = vmatmul.bf16.vlgmr.msra.gmra.mxu0 %v288_v7 }
  0xaa   : > { %681 = vmatpush.bf16.msrb.mxu0 %v1211_v13  ;;  %694 = vmatpush.bf16.msrb.mxu1 %v1215_v30  ;;  %v2187_v13 = vld [vmem:[#allocation89_spill] sm:$0xff]  ;;  %v2188_v30 = vld [vmem:[#allocation88_spill] sm:$0xff] }
  0xab   : > { %707 = vmatpush.bf16.msrb.mxu2 %v1219_v3  ;;  %496 = vmatmul.bf16.vlgmr.msra.gmra.mxu3 %v288_v7  ;;  %v1179_v9 = vor.u32 %v2187_v13, %v2186_v12  ;;  %v1183_v10 = vor.u32 %v2189_v2, %v2188_v30  ;;  %v2190_v3 = vld [vmem:[#allocation87_spill] sm:$0xff]  ;;  %v2201_v30 = vld [vmem:[#allocation78_spill] sm:$0xff] }
  0xac   : > { %720 = vmatpush.bf16.msrb.mxu3 %v1223_v5  ;;  %483 = vmatmul.bf16.vlgmr.msra.gmra.mxu2 %v288_v7  ;;  %v2191_v5 = vld [vmem:[#allocation91_spill] sm:$0xff]  ;;  %v2195_v7 = vld [vmem:[#allocation81_spill] sm:$0xff] }
  0xad   : > { %v1187_v11 = vor.u32 %v2191_v5, %v2190_v3  ;;  %v2198_v12 = vld [vmem:[#allocation79_spill] sm:$0xff]  ;;  %v2202_v3 = vld [vmem:[#allocation69_spill] sm:$0xff] }
  0xae   : > { %682 = vmatpush.bf16.msrb.mxu0 %v1195_v19  ;;  %695 = vmatpush.bf16.msrb.mxu1 %v1199_v31  ;;  %v1163_v19 = vor.u32 %v2195_v7, %v2194_v0  ;;  %v2196_v31 = vld [vmem:[#allocation80_spill] sm:$0xff]  ;;  %v2199_v13 = vld [vmem:[#allocation83_spill] sm:$0xff]  ;;  %v2203_v5 = vld [vmem:[#allocation73_spill] sm:$0xff] }
  0xaf   : > { %708 = vmatpush.bf16.msrb.mxu2 %v1203_v1  ;;  %v1167_v6 = vor.u32 %v2197_v18, %v2196_v31  ;;  %v1171_v1 = vor.u32 %v2199_v13, %v2198_v12  ;;  %v2206_v0 = vld [vmem:[#allocation71_spill] sm:$0xff]  ;;  %v2209_v31 = vld [vmem:[#allocation70_spill] sm:$0xff]  ;;  %v2210_v12 = vld [vmem:[#allocation61_spill] sm:$0xff] }
  0xb0   : > { %721 = vmatpush.bf16.msrb.mxu3 %v1207_v4  ;;  %v2200_v4 = vld [vmem:[#allocation82_spill] sm:$0xff]  ;;  %v2207_v7 = vld [vmem:[#allocation75_spill] sm:$0xff]  ;;  %v2211_v13 = vld [vmem:[#allocation65_spill] sm:$0xff] }
  0xb1   : > { %v1175_v2 = vor.u32 %v2201_v30, %v2200_v4  ;;  %v2213_v4 = vld [vmem:[#allocation60_spill] sm:$0xff] }
  0xb2   : > { %683 = vmatpush.bf16.msrb.mxu0 %v1179_v9  ;;  %696 = vmatpush.bf16.msrb.mxu1 %v1183_v10  ;;  %v1147_v9 = vor.u32 %v2203_v5, %v2202_v3  ;;  %v2204_v10 = vld [vmem:[#allocation72_spill] sm:$0xff]  ;;  %v2214_v3 = vld [vmem:[#allocation63_spill] sm:$0xff] }
  0xb3   : > { %709 = vmatpush.bf16.msrb.mxu2 %v1187_v11  ;;  %v1151_v22 = vor.u32 %v2205_v23, %v2204_v10  ;;  %v1155_v11 = vor.u32 %v2207_v7, %v2206_v0  ;;  %v2215_v5 = vld [vmem:[#allocation67_spill] sm:$0xff]  ;;  %v2217_v10 = vld [vmem:[#allocation62_spill] sm:$0xff]  ;;  %v2218_v0 = vld [vmem:[#allocation53_spill] sm:$0xff] }
  0xb4   : > { %722 = vmatpush.bf16.msrb.mxu3 %v1191_v8  ;;  %v2208_v8 = vld [vmem:[#allocation74_spill] sm:$0xff]  ;;  %v2219_v7 = vld [vmem:[#allocation57_spill] sm:$0xff] }
  0xb5   : > { %v1159_v18 = vor.u32 %v2209_v31, %v2208_v8  ;;  %v2221_v8 = vld [vmem:[#allocation52_spill] sm:$0xff] }
  0xb6   : > { %684 = vmatpush.bf16.msrb.mxu0 %v1163_v19  ;;  %697 = vmatpush.bf16.msrb.mxu1 %v1167_v6  ;;  %v1131_v19 = vor.u32 %v2211_v13, %v2210_v12  ;;  %v2212_v6 = vld [vmem:[#allocation64_spill] sm:$0xff]  ;;  %v2222_v12 = vld [vmem:[#allocation55_spill] sm:$0xff] }
  0xb7   : > { %710 = vmatpush.bf16.msrb.mxu2 %v1171_v1  ;;  %v1135_v30 = vor.u32 %v2213_v4, %v2212_v6  ;;  %v1139_v1 = vor.u32 %v2215_v5, %v2214_v3  ;;  %v2223_v13 = vld [vmem:[#allocation59_spill] sm:$0xff]  ;;  %v2225_v6 = vld [vmem:[#allocation54_spill] sm:$0xff]  ;;  %v2226_v3 = vld [vmem:[#allocation45_spill] sm:$0xff] }
  0xb8   : > { %723 = vmatpush.bf16.msrb.mxu3 %v1175_v2  ;;  %v2216_v2 = vld [vmem:[#allocation66_spill] sm:$0xff]  ;;  %v2227_v5 = vld [vmem:[#allocation49_spill] sm:$0xff] }
  0xb9   : > { %v1143_v23 = vor.u32 %v2217_v10, %v2216_v2  ;;  %v2229_v2 = vld [vmem:[#allocation44_spill] sm:$0xff] }
  0xba   : > { %685 = vmatpush.bf16.msrb.mxu0 %v1147_v9  ;;  %698 = vmatpush.bf16.msrb.mxu1 %v1151_v22  ;;  %v1115_v9 = vor.u32 %v2219_v7, %v2218_v0  ;;  %v2220_v22 = vld [vmem:[#allocation56_spill] sm:$0xff]  ;;  %v2230_v0 = vld [vmem:[#allocation47_spill] sm:$0xff]  ;;  %v2232_v7 = vld [vmem:[#allocation50_spill] sm:$0xff] }
  0xbb   : > { %711 = vmatpush.bf16.msrb.mxu2 %v1155_v11  ;;  %v1119_v31 = vor.u32 %v2221_v8, %v2220_v22  ;;  %v1123_v11 = vor.u32 %v2223_v13, %v2222_v12  ;;  %v2233_v22 = vld [vmem:[#allocation46_spill] sm:$0xff] }
  0xbc   : > { %724 = vmatpush.bf16.msrb.mxu3 %v1159_v18  ;;  %v2224_v18 = vld [vmem:[#allocation58_spill] sm:$0xff]  ;;  %v1111_v8 = vor.u32 %v2233_v22, %v2232_v7 }
  0xbd   : > { %v1127_v4 = vor.u32 %v2225_v6, %v2224_v18  ;;  %v2234_v12 = vld [vmem:[#allocation110_spill] sm:$0xff] }
  0xbe   : > { %686 = vmatpush.bf16.msrb.mxu0 %v1131_v19  ;;  %699 = vmatpush.bf16.msrb.mxu1 %v1135_v30  ;;  %v1099_v19 = vor.u32 %v2227_v5, %v2226_v3  ;;  %v2228_v30 = vld [vmem:[#allocation48_spill] sm:$0xff]  ;;  %v520_v13 = vpack.c.bf16 %v2234_v12, %v2234_v12 }
  0xbf   : > { %712 = vmatpush.bf16.msrb.mxu2 %v1139_v1  ;;  %v1103_v10 = vor.u32 %v2229_v2, %v2228_v30  ;;  %v2231_v1 = vld [vmem:[#allocation51_spill] sm:$0xff] }
  0xc0   : > { %725 = vmatpush.bf16.msrb.mxu3 %v1143_v23  ;;  %v1107_v23 = vor.u32 %v2231_v1, %v2230_v0 }
  0xc2   : > { %687 = vmatpush.bf16.msrb.mxu0 %v1115_v9  ;;  %700 = vmatpush.bf16.msrb.mxu1 %v1119_v31 }
  0xc3   : > { %713 = vmatpush.bf16.msrb.mxu2 %v1123_v11 }
  0xc4   : > { %726 = vmatpush.bf16.msrb.mxu3 %v1127_v4 }
  0xc6   : > { %688 = vmatpush.bf16.msrb.mxu0 %v1099_v19  ;;  %701 = vmatpush.bf16.msrb.mxu1 %v1103_v10  ;;  %v287_v19 = vld [vmem:[%s286_s2] sm:$0xff] }
  0xc7   : > { %714 = vmatpush.bf16.msrb.mxu2 %v1107_v23 }
  0xc8   : > { %727 = vmatpush.bf16.msrb.mxu3 %v1111_v8 }
  0xc9   : > { %689 = vmatmul.bf16.vlgmr.msrb.gmra.mxu0 %v520_v13  ;;  %702 = vmatmul.bf16.vlgmr.msrb.gmra.mxu1 %v520_v13 }
  0xca   : > { %715 = vmatmul.bf16.vlgmr.msrb.gmra.mxu2 %v520_v13 }
  0xcb   : > { %728 = vmatmul.bf16.vlgmr.msrb.gmra.mxu3 %v520_v13 }
 0x126   : > { %v471_v9 = vpop.f32.mrf.mxu1  ;;  %v458_v31 = vpop.f32.mrf.mxu0 }
 0x127   : > { %v505_v11 = vrot.slane %v471_v9, 6 }
 0x129   : > { %v509_v5 = vsel %vm508_vm0, %v458_v31, %v505_v11 }
 0x12e   : > { %v497_v6 = vpop.f32.mrf.mxu3  ;;  %v473_v2 = vpop.f32.mrf.mxu1 }
 0x12f   : > { %v484_v18 = vpop.f32.mrf.mxu2  ;;  %v507_v3 = vrot.slane %v497_v6, 2  ;;  %v460_v10 = vpop.f32.mrf.mxu0 }
 0x130   : > { %v506_v4 = vrot.slane %v484_v18, 4 }
 0x132   : > { %v511_v30 = vsel %vm510_vm1, %v506_v4, %v507_v3 }
 0x133   : > { %v513_v0 = vsel %vm512_vm2, %v509_v5, %v511_v30 }
 0x134   : > { %v515_v1 = vadd.f32 %v513_v0, %v287_v19 }
 0x136   : > { %v1224_v23 = vmul.f32 -1.442695, %v515_v1  ;;  %v765_v7 = vrot.slane %v515_v1, 2  ;;  %v789_v22 = vrot.slane %v515_v1, 6  ;;  %v499_v12 = vpop.f32.mrf.mxu3  ;;  %v786_v2 = vrot.slane %v515_v1, 4 }
 0x137   : > { %v486_v8 = vpop.f32.mrf.mxu2 }
 0x138   : > { %1341 = vpow2.f32 %v1224_v23  ;;  %v1225_v13 = vmul.f32 -1.442695, %v765_v7  ;;  %v1226_v9 = vmul.f32 -1.442695, %v789_v22 }
 0x13a   : > { %1343 = vpow2.f32 %v1225_v13 }
 0x13b   : > { %1345 = vpow2.f32 %v1226_v9 }
 0x13e   : > { %v1342_v31 = vpop.eup %1341 }
 0x13f   : > { %v748_v11 = vadd.f32 1.0, %v1342_v31 }
 0x140   : > { %v1344_v18 = vpop.eup %1343 }
 0x141   : > { %v1346_v6 = vpop.eup %1345  ;;  %1347 = vrcp.f32 %v748_v11  ;;  %v770_v4 = vadd.f32 1.0, %v1344_v18  ;;  %v760_v0 = vand.u32 2147483648, %v748_v11  ;;  %vm754_vm3 = vweird.f32 %v748_v11 }
 0x142   : > { %v1971_v3 = vadd.f32 1.0, %v1346_v6  ;;  %v758_v12 = vand.u32 2147483647, %v748_v11 }
 0x143   : > { %1349 = vrcp.f32 %v770_v4  ;;  %v761_v31 = vor.u32 1.1754944e-38, %v760_v0  ;;  %v782_v18 = vand.u32 2147483648, %v770_v4  ;;  %vm776_vm6 = vweird.f32 %v770_v4 }
 0x144   : > { %1351 = vrcp.f32 %v1971_v3  ;;  %vm759_vm8 = vcmp.eq.f32.partialorder %v758_v12, 8.507059e+37  ;;  %vm800_vm11 = vweird.f32 %v1971_v3 }
 0x145   : > { %1353 = vtanh.f32 %v786_v2 }
 0x146   : > { %v690_v5 = vpop.f32.mrf.mxu0  ;;  %v703_v19 = vpop.f32.mrf.mxu1 }
 0x147   : > { %v1348_v30 = vpop.eup %1347  ;;  %v737_v22 = vrot.slane %v703_v19, 6  ;;  %v780_v19 = vand.u32 2147483647, %v770_v4 }
 0x148   : > { %v750_v10 = vmul.f32 %v1348_v30, %v748_v11  ;;  %vm755_vm4 = vweird.f32 %v1348_v30 }
 0x149   : > { %v1350_v23 = vpop.eup %1349  ;;  %vm1983_vm5 = vmor %vm754_vm3, %vm755_vm4  ;;  %v740_v2 = vsel %vm508_vm0, %v690_v5, %v737_v22  ;;  %vm781_vm10 = vcmp.eq.f32.partialorder %v780_v19, 8.507059e+37 }
 0x14a   : > { %v751_v7 = vsub.f32 1.0, %v750_v10  ;;  %v1979_v8 = vpop.eup %1351  ;;  %v772_v13 = vmul.f32 %v1350_v23, %v770_v4  ;;  %vm777_vm7 = vweird.f32 %v1350_v23 }
 0x14b   : > { %v796_v1 = vmul.f32 %v1979_v8, %v1971_v3  ;;  %vm778_vm9 = vmor %vm776_vm6, %vm777_vm7  ;;  %v1354_v26 = vpop.eup %1353  ;;  %vm801_vm12 = vweird.f32 %v1979_v8 }
 0x14c   : > { %v752_v9 = vmul.f32 %v1348_v30, %v751_v7  ;;  %v773_v10 = vsub.f32 1.0, %v772_v13  ;;  %v783_v13 = vor.u32 1.1754944e-38, %v782_v18  ;;  %vm802_vm13 = vmor %vm800_vm11, %vm801_vm12 }
 0x14d   : > { %v716_v14 = vpop.f32.mrf.mxu2  ;;  %v797_v25 = vsub.f32 1.0, %v796_v1 }
 0x14e   : > { %v729_v15 = vpop.f32.mrf.mxu3  ;;  %v753_v11 = vadd.f32 %v1348_v30, %v752_v9  ;;  %v738_v7 = vrot.slane %v716_v14, 4  ;;  %v692_v16 = vpop.f32.mrf.mxu0  ;;  %v774_v20 = vmul.f32 %v1350_v23, %v773_v10  ;;  %v2237_v10 = vld [vmem:[#allocation109_spill] sm:$0xff] }
 0x14f   : > { %v739_v0 = vrot.slane %v729_v15, 2  ;;  %v705_v17 = vpop.f32.mrf.mxu1  ;;  %v798_v12 = vmul.f32 %v1979_v8, %v797_v25 }
 0x150   : > { %v757_v24 = vsel %vm1983_vm5, %v1348_v30, %v753_v11  ;;  %v775_v5 = vadd.f32 %v1350_v23, %v774_v20 }
 0x151   : > { %v741_v9 = vsel %vm510_vm1, %v738_v7, %v739_v0  ;;  %v762_v17 = vsel %vm759_vm8, %v761_v31, %v757_v24  ;;  %v799_v25 = vadd.f32 %v1979_v8, %v798_v12  ;;  %v804_v31 = vand.u32 2147483647, %v1971_v3 }
 0x152   : > { %v742_v16 = vsel %vm512_vm2, %v740_v2, %v741_v9  ;;  %v779_v15 = vsel %vm778_vm9, %v1350_v23, %v775_v5  ;;  %v811_v11 = vmul.f32 %v1354_v26, %v762_v17 }
 0x153   : > { %v744_v14 = vadd.f32 %v742_v16, %v519_v21  ;;  %v784_v22 = vsel %vm781_vm10, %v783_v13, %v779_v15  ;;  %v806_v21 = vand.u32 2147483648, %v1971_v3  ;;  %v803_v19 = vsel %vm802_vm13, %v1979_v8, %v799_v25 }
 0x154   : > { %v810_v4 = vmul.f32 %v2237_v10, %v784_v22  ;;  %vm805_vm14 = vcmp.eq.f32.partialorder %v804_v31, 8.507059e+37 }
 0x155   : > { %v1227_v6 = vmul.f32 -1.442695, %v744_v14  ;;  %v835_v30 = vrot.slane %v744_v14, 2  ;;  %v859_v18 = vrot.slane %v744_v14, 6  ;;  %v718_v1 = vpop.f32.mrf.mxu2  ;;  %v807_v26 = vor.u32 1.1754944e-38, %v806_v21 }
 0x156   : > { %v731_v27 = vpop.f32.mrf.mxu3  ;;  %v2000_v22 = vadd.f32 %v811_v11, %v810_v4  }
 0x157   : > { %1355 = vpow2.f32 %v1227_v6  ;;  %v1228_v20 = vmul.f32 -1.442695, %v835_v30  ;;  %v1229_v23 = vmul.f32 -1.442695, %v859_v18  ;;  %v808_v13 = vsel %vm805_vm14, %v807_v26, %v803_v19 }
 0x158   : > { %v2238_v24 = vmov %v2000_v22  ;;  %v856_v6 = vrot.slane %v744_v14, 4 }
 0x159   : > { %1357 = vpow2.f32 %v1228_v20  ;;  %893 = vst [vmem:[#allocation4] sm:$0x3] (%p275_p0), %v2238_v24 }
 0x15a   : > { %1359 = vtanh.f32 %v2238_v24 }
 0x15b   : > { %1361 = vpow2.f32 %v1229_v23 }
 0x15d   : > { %v1356_v27 = vpop.eup %1355 }
 0x15e   : > { %v818_v2 = vadd.f32 1.0, %v1356_v27 }
 0x15f   : > { %v1358_v7 = vpop.eup %1357 }
 0x160   : > { %v1360_v0 = vpop.eup %1359  ;;  %1363 = vrcp.f32 %v818_v2  ;;  %v840_v3 = vadd.f32 1.0, %v1358_v7  ;;  %v830_v11 = vand.u32 2147483648, %v818_v2  ;;  %v828_v1 = vand.u32 2147483647, %v818_v2 }
 0x161   : > { %v1362_v9 = vpop.eup %1361  ;;  %v2006_v31 = vmul.f32 %v1360_v0, %v808_v13   ;;  %vm824_vm0 = vweird.f32 %v818_v2 }
 0x162   : > { %v864_v16 = vadd.f32 1.0, %v1362_v9  ;;  %1365 = vrcp.f32 %v840_v3  ;;  %v852_v23 = vand.u32 2147483648, %v840_v3  ;;  %v831_v27 = vor.u32 1.1754944e-38, %v830_v11 }
 0x163   : > { %v2239_v5 = vmov %v2006_v31  ;;  %v850_v31 = vand.u32 2147483647, %v840_v3  ;;  %vm829_vm3 = vcmp.eq.f32.partialorder %v828_v1, 8.507059e+37  ;;  %vm846_vm4 = vweird.f32 %v840_v3 }
 0x164   : > { %v885_v17 = vpack.c.bf16 %v2239_v5, %v2239_v5  ;;  %1367 = vrcp.f32 %v864_v16  ;;  %v853_v0 = vor.u32 1.1754944e-38, %v852_v23  ;;  %vm870_vm8 = vweird.f32 %v864_v16  ;;  %891 = vst [vmem:[#allocation2] sm:$0x3] (%p275_p0), %v2239_v5 }
 0x165   : > { %1369 = vtanh.f32 %v856_v6  ;;  %vm851_vm6 = vcmp.eq.f32.partialorder %v850_v31, 8.507059e+37  ;;  %v874_v11 = vand.u32 2147483647, %v864_v16  ;;  %v2244_v31 = vmov %v2239_v5 }
 0x166   : > { %887 = vst [vmem:[%s886_s15] sm:$0x1] %v885_v17  ;;  %v1364_v8 = vpop.eup %1363 }
 0x167   : > { %v820_v15 = vmul.f32 %v1364_v8, %v818_v2  ;;  %vm825_vm15 = vweird.f32 %v1364_v8  ;;  %vm875_vm10 = vcmp.eq.f32.partialorder %v874_v11, 8.507059e+37 }
 0x168   : > { %v1366_v22 = vpop.eup %1365  ;;  %vm826_vm1 = vmor %vm824_vm0, %vm825_vm15 }
 0x169   : > { %v821_v12 = vsub.f32 1.0, %v820_v15  ;;  %v842_v10 = vmul.f32 %v1366_v22, %v840_v3  ;;  %vm847_vm2 = vweird.f32 %v1366_v22  ;;  %v2240_v15 = vld [vmem:[#allocation108_spill] sm:$0xff] }
 0x16a   : > { %v1368_v30 = vpop.eup %1367  ;;  %vm848_vm5 = vmor %vm846_vm4, %vm847_vm2 }
 0x16b   : > { %v822_v4 = vmul.f32 %v1364_v8, %v821_v12  ;;  %v866_v18 = vmul.f32 %v1368_v30, %v864_v16  ;;  %v843_v20 = vsub.f32 1.0, %v842_v10  ;;  %v1370_v9 = vpop.eup %1369  ;;  %vm871_vm7 = vweird.f32 %v1368_v30 }
 0x16c   : > { %vm872_vm9 = vmor %vm870_vm8, %vm871_vm7 }
 0x16d   : > { %v823_v21 = vadd.f32 %v1364_v8, %v822_v4  ;;  %v844_v25 = vmul.f32 %v1366_v22, %v843_v20  ;;  %v867_v19 = vsub.f32 1.0, %v866_v18 }
 0x16f   : > { %v827_v26 = vsel %vm826_vm1, %v1364_v8, %v823_v21  ;;  %v845_v14 = vadd.f32 %v1366_v22, %v844_v25  ;;  %v868_v2 = vmul.f32 %v1368_v30, %v867_v19  ;;  %v876_v8 = vand.u32 2147483648, %v864_v16 }
 0x170   : > { %v832_v7 = vsel %vm829_vm3, %v831_v27, %v827_v26 }
 0x171   : > { %v849_v13 = vsel %vm848_vm5, %v1366_v22, %v845_v14  ;;  %v881_v6 = vmul.f32 %v1370_v9, %v832_v7  ;;  %v869_v4 = vadd.f32 %v1368_v30, %v868_v2  ;;  %v877_v18 = vor.u32 1.1754944e-38, %v876_v8 }
 0x172   : > { %v854_v17 = vsel %vm851_vm6, %v853_v0, %v849_v13 }
 0x173   : > { %v880_v12 = vmul.f32 %v2240_v15, %v854_v17  ;;  %v873_v3 = vsel %vm872_vm9, %v1368_v30, %v869_v4 }
 0x174   : > { %v878_v1 = vsel %vm875_vm10, %v877_v18, %v873_v3 }
 0x175   : > { %v882_v10 = vadd.f32 %v881_v6, %v880_v12  }
 0x177   : > { %1371 = vtanh.f32 %v882_v10  ;;  %v2241_v23 = vmov %v882_v10  ;;  %894 = vst [vmem:[#allocation5] sm:$0x3] (%p275_p0), %v882_v10 }
 0x17d   : > { %v1372_v22 = vpop.eup %1371 }
 0x17e   : > { %v884_v20 = vmul.f32 %v1372_v22, %v878_v1   ;;  %v2242_v22 = vmov %v2238_v24  ;;  %277 = sbr.rel (!%p275_p0) target bundleno = 134 (0x86), region = 156 }
 0x180   : > { %v888_v21 = vpack.c.bf16 %v884_v20, %v884_v20  ;;  %v2243_v18 = vmov %v884_v20  ;;  %892 = vst [vmem:[#allocation3] sm:$0x3] (%p275_p0), %v884_v20 }
 0x182   : > { %890 = vst [vmem:[%s889_s18] sm:$0x1] %v888_v21 }
 0x183   :  { %915 = vsyncpa [#allocation9], 1 }
 0x184   :  { %916 = vsyncpa [#allocation11], 1 }

// kernel: ema_reconstruction_forward.11
= control target key start
LH: loop header
LB: loop body
LE: loop exit
PB: predicated region body
PF: predicated region fallthrough
CT: control target
= control target key end

     0   :  { %10 = vsyncpa [#allocation3], 0  ;;  %s2334_s0 = inlined_call_operand.vmem [shape: bf16[16,128], index: 0, kind: input, shape index: {}]   ;;  %s2335_s1 = inlined_call_operand.vmem [shape: bf16[16,128], index: 1, kind: input, shape index: {}]   ;;  %s2336_s2 = inlined_call_operand.hbm [shape: bf16[128,1024], index: 2, kind: input, shape index: {}]   ;;  %s2337_s3 = inlined_call_operand.vmem [shape: bf16[128,1024], index: 3, kind: input, shape index: {}]   ;;  %s2338_s4 = inlined_call_operand.hbm [shape: f32[1,1024], index: 4, kind: input, shape index: {}]   ;;  %s2339_s5 = inlined_call_operand.vmem [shape: f32[16,1024], index: 5, kind: output, shape index: {}]  }
   0x1   :  { %s20_s20 = sshll.u32 %s2336_s2, 4  ;;  %s21_s20 = int_to_ptr.hbm [resolvable:$true] %s20_s20 }
   0x2   :  { %11 = vsyncpa [#allocation5], 0  ;;  %s1820_s21 = smov [#allocation2]   ;;  %s36_s25 = sshll.u32 %s2338_s4, 4  ;;  %s37_s25 = int_to_ptr.hbm [resolvable:$true] %s36_s25 }
   0x3   :  { %s22_s22 = sshll.u32 %s1820_s21, 4  ;;  %s1821_s26 = smov 512   ;;  %s23_s22 = int_to_ptr.vmem [resolvable:$true] %s22_s22 }
   0x4   :  { %s1822_s27 = smov 32   ;;  %s1823_s28 = smov [#allocation4]  }
   0x5   :  { %28 = dma.hbm_to_vmem [thread:$0]  %s21_s20, 8192, %s23_s22, [#allocation3], %s1821_s26, %s1821_s26, %s1822_s27  }
   0x6   :  { %s38_s29 = sshll.u32 %s1823_s28, 4  ;;  %s39_s29 = int_to_ptr.vmem [resolvable:$true] %s38_s29 }
   0x7   :  { %41 = dma.hbm_to_vmem [thread:$0]  %s37_s25, 128, %s39_s29, [#allocation5]  }
   0x8   :  { %1816 = dma.done.wait [#allocation3], 8192  }
   0x9   :  { %1817 = vsyncadd [#allocation3], 4294959104 }
   0xa   :  { %1818 = dma.done.wait [#allocation5], 128  }
   0xb   :  { %1819 = vsyncadd [#allocation5], 4294967168  ;;  %v1344_v0 = vld [vmem:[%s2337_s3 + $0x1c0] sm:$0xf]  ;;  %v1756_v2 = vld [vmem:[%s2337_s3 + $0x1c4] sm:$0xf] }
   0xc   :  { %v1760_v1 = vld [vmem:[%s2337_s3 + $0x1dc] sm:$0xf0]  ;;  %v1346_v4 = vld [vmem:[%s2337_s3 + $0x1e0] sm:$0xf0]  ;;  %v1352_v5 = vld [vmem:[%s2337_s3 + $0x1c8] sm:$0xf] }
   0xd   :  { %v1345_v3 = vor.u32 %v1760_v1, %v1344_v0  ;;  %v1761_v6 = vld [vmem:[%s2337_s3 + $0x1e4] sm:$0xf0]  ;;  %v1349_v7 = vor.u32 %v1756_v2, %v1346_v4  ;;  %v1757_v9 = vld [vmem:[%s2337_s3 + $0x1cc] sm:$0xf]  ;;  %v1312_v11 = vld [vmem:[%s2337_s3 + $0x180] sm:$0xf] }
   0xe   :  { %v1353_v8 = vor.u32 %v1761_v6, %v1352_v5  ;;  %v1354_v10 = vld [vmem:[%s2337_s3 + $0x1e8] sm:$0xf0]  ;;  %v1752_v13 = vld [vmem:[%s2337_s3 + $0x19c] sm:$0xf0]  ;;  %v1748_v14 = vld [vmem:[%s2337_s3 + $0x184] sm:$0xf] }
   0xf   :  { %508 = vmatpush.bf16.msra.mxu0 %v1345_v3  ;;  %v1357_v12 = vor.u32 %v1757_v9, %v1354_v10  ;;  %v1314_v15 = vld [vmem:[%s2337_s3 + $0x1a0] sm:$0xf0]  ;;  %522 = vmatpush.bf16.msra.mxu1 %v1349_v7  ;;  %v1313_v16 = vor.u32 %v1752_v13, %v1312_v11  ;;  %v1320_v18 = vld [vmem:[%s2337_s3 + $0x188] sm:$0xf]  ;;  %v1749_v20 = vld [vmem:[%s2337_s3 + $0x18c] sm:$0xf] }
  0x10   :  { %536 = vmatpush.bf16.msra.mxu2 %v1353_v8  ;;  %v1317_v17 = vor.u32 %v1748_v14, %v1314_v15  ;;  %v1753_v19 = vld [vmem:[%s2337_s3 + $0x1a4] sm:$0xf0]  ;;  %v1322_v22 = vld [vmem:[%s2337_s3 + $0x1a8] sm:$0xf0]  ;;  %v1280_v23 = vld [vmem:[%s2337_s3 + $0x140] sm:$0xf] }
  0x11   :  { %550 = vmatpush.bf16.msra.mxu3 %v1357_v12  ;;  %v1321_v21 = vor.u32 %v1753_v19, %v1320_v18  ;;  %v1744_v24 = vld [vmem:[%s2337_s3 + $0x15c] sm:$0xf0]  ;;  %v1325_v25 = vor.u32 %v1749_v20, %v1322_v22  ;;  %v1740_v26 = vld [vmem:[%s2337_s3 + $0x144] sm:$0xf]  ;;  %v1288_v28 = vld [vmem:[%s2337_s3 + $0x148] sm:$0xf] }
  0x12   :  { %v1282_v27 = vld [vmem:[%s2337_s3 + $0x160] sm:$0xf0]  ;;  %v1281_v29 = vor.u32 %v1744_v24, %v1280_v23  ;;  %v1745_v30 = vld [vmem:[%s2337_s3 + $0x164] sm:$0xf0]  ;;  %v1741_v31 = vld [vmem:[%s2337_s3 + $0x14c] sm:$0xf] }
  0x13   :  { %509 = vmatpush.bf16.msra.mxu0 %v1313_v16  ;;  %v1290_v32 = vld [vmem:[%s2337_s3 + $0x168] sm:$0xf0]  ;;  %523 = vmatpush.bf16.msra.mxu1 %v1317_v17  ;;  %v1285_v33 = vor.u32 %v1740_v26, %v1282_v27  ;;  %v1289_v34 = vor.u32 %v1745_v30, %v1288_v28  ;;  %v1248_v35 = vld [vmem:[%s2337_s3 + $0x100] sm:$0xf]  ;;  %v1732_v37 = vld [vmem:[%s2337_s3 + $0x104] sm:$0xf] }
  0x14   :  { %537 = vmatpush.bf16.msra.mxu2 %v1321_v21  ;;  %v1736_v36 = vld [vmem:[%s2337_s3 + $0x11c] sm:$0xf0]  ;;  %v1293_v38 = vor.u32 %v1741_v31, %v1290_v32  ;;  %v1250_v39 = vld [vmem:[%s2337_s3 + $0x120] sm:$0xf0]  ;;  %v1256_v40 = vld [vmem:[%s2337_s3 + $0x108] sm:$0xf] }
  0x15   :  { %551 = vmatpush.bf16.msra.mxu3 %v1325_v25  ;;  %v1737_v41 = vld [vmem:[%s2337_s3 + $0x124] sm:$0xf0]  ;;  %v1733_v42 = vld [vmem:[%s2337_s3 + $0x10c] sm:$0xf]  ;;  %v1249_v44 = vor.u32 %v1736_v36, %v1248_v35  ;;  %v1253_v45 = vor.u32 %v1732_v37, %v1250_v39  ;;  %v1216_v47 = vld [vmem:[%s2337_s3 + $0xc0] sm:$0xf] }
  0x16   :  { %v1258_v43 = vld [vmem:[%s2337_s3 + $0x128] sm:$0xf0]  ;;  %v1257_v46 = vor.u32 %v1737_v41, %v1256_v40  ;;  %v1728_v48 = vld [vmem:[%s2337_s3 + $0xdc] sm:$0xf0]  ;;  %v1724_v49 = vld [vmem:[%s2337_s3 + $0xc4] sm:$0xf] }
  0x17   :  { %510 = vmatpush.bf16.msra.mxu0 %v1281_v29  ;;  %524 = vmatpush.bf16.msra.mxu1 %v1285_v33  ;;  %v1261_v50 = vor.u32 %v1733_v42, %v1258_v43  ;;  %v1218_v51 = vld [vmem:[%s2337_s3 + $0xe0] sm:$0xf0]  ;;  %v1224_v52 = vld [vmem:[%s2337_s3 + $0xc8] sm:$0xf]  ;;  %v1725_v54 = vld [vmem:[%s2337_s3 + $0xcc] sm:$0xf]  ;;  %v1217_v56 = vor.u32 %v1728_v48, %v1216_v47 }
  0x18   :  { %538 = vmatpush.bf16.msra.mxu2 %v1289_v34  ;;  %v1729_v53 = vld [vmem:[%s2337_s3 + $0xe4] sm:$0xf0]  ;;  %v1226_v55 = vld [vmem:[%s2337_s3 + $0xe8] sm:$0xf0]  ;;  %v1221_v57 = vor.u32 %v1724_v49, %v1218_v51  ;;  %v1184_v59 = vld [vmem:[%s2337_s3 + $0x80] sm:$0xf] }
  0x19   :  { %552 = vmatpush.bf16.msra.mxu3 %v1293_v38  ;;  %v1225_v58 = vor.u32 %v1729_v53, %v1224_v52  ;;  %v1720_v60 = vld [vmem:[%s2337_s3 + $0x9c] sm:$0xf0]  ;;  %v1716_v61 = vld [vmem:[%s2337_s3 + $0x84] sm:$0xf]  ;;  %v1229_v62 = vor.u32 %v1725_v54, %v1226_v55  ;;  %v1192_v0 = vld [vmem:[%s2337_s3 + $0x88] sm:$0xf] }
  0x1a   :  { %v1186_v63 = vld [vmem:[%s2337_s3 + $0xa0] sm:$0xf0]  ;;  %v1721_v1 = vld [vmem:[%s2337_s3 + $0xa4] sm:$0xf0]  ;;  %v1717_v2 = vld [vmem:[%s2337_s3 + $0x8c] sm:$0xf]  ;;  %v1185_v4 = vor.u32 %v1720_v60, %v1184_v59 }
  0x1b   :  { %511 = vmatpush.bf16.msra.mxu0 %v1249_v44  ;;  %525 = vmatpush.bf16.msra.mxu1 %v1253_v45  ;;  %v1194_v3 = vld [vmem:[%s2337_s3 + $0xa8] sm:$0xf0]  ;;  %v1189_v5 = vor.u32 %v1716_v61, %v1186_v63  ;;  %v1193_v6 = vor.u32 %v1721_v1, %v1192_v0  ;;  %v1152_v7 = vld [vmem:[%s2337_s3 + $0x40] sm:$0xf]  ;;  %v1708_v9 = vld [vmem:[%s2337_s3 + $0x44] sm:$0xf] }
  0x1c   :  { %539 = vmatpush.bf16.msra.mxu2 %v1257_v46  ;;  %v1712_v8 = vld [vmem:[%s2337_s3 + $0x5c] sm:$0xf0]  ;;  %v1197_v10 = vor.u32 %v1717_v2, %v1194_v3  ;;  %v1154_v11 = vld [vmem:[%s2337_s3 + $0x60] sm:$0xf0]  ;;  %v1160_v12 = vld [vmem:[%s2337_s3 + $0x48] sm:$0xf] }
  0x1d   :  { %553 = vmatpush.bf16.msra.mxu3 %v1261_v50  ;;  %v1713_v13 = vld [vmem:[%s2337_s3 + $0x64] sm:$0xf0]  ;;  %v1709_v14 = vld [vmem:[%s2337_s3 + $0x4c] sm:$0xf]  ;;  %v1153_v16 = vor.u32 %v1712_v8, %v1152_v7  ;;  %v1120_v17 = vld [vmem:[%s2337_s3] sm:$0xf]  ;;  %v1157_v19 = vor.u32 %v1708_v9, %v1154_v11 }
  0x1e   :  { %v1162_v15 = vld [vmem:[%s2337_s3 + $0x68] sm:$0xf0]  ;;  %v1704_v18 = vld [vmem:[%s2337_s3 + $0x1c] sm:$0xf0]  ;;  %v1161_v20 = vor.u32 %v1713_v13, %v1160_v12  ;;  %v1700_v21 = vld [vmem:[%s2337_s3 + $0x4] sm:$0xf] }
  0x1f   :  { %512 = vmatpush.bf16.msra.mxu0 %v1217_v56  ;;  %526 = vmatpush.bf16.msra.mxu1 %v1221_v57  ;;  %v1122_v22 = vld [vmem:[%s2337_s3 + $0x20] sm:$0xf0]  ;;  %v1128_v23 = vld [vmem:[%s2337_s3 + $0x8] sm:$0xf]  ;;  %v1165_v24 = vor.u32 %v1709_v14, %v1162_v15  ;;  %v1701_v26 = vld [vmem:[%s2337_s3 + $0xc] sm:$0xf]  ;;  %v1121_v31 = vor.u32 %v1704_v18, %v1120_v17 }
  0x20   :  { %540 = vmatpush.bf16.msra.mxu2 %v1225_v58  ;;  %v1705_v25 = vld [vmem:[%s2337_s3 + $0x24] sm:$0xf0]  ;;  %v1130_v27 = vld [vmem:[%s2337_s3 + $0x28] sm:$0xf0]  ;;  %v1360_v28 = vld [vmem:[%s2337_s3 + $0x1d0] sm:$0xf]  ;;  %v1125_v35 = vor.u32 %v1700_v21, %v1122_v22 }
  0x21   :  { %554 = vmatpush.bf16.msra.mxu3 %v1229_v62  ;;  %v1762_v29 = vld [vmem:[%s2337_s3 + $0x1ec] sm:$0xf0]  ;;  %v1758_v30 = vld [vmem:[%s2337_s3 + $0x1d4] sm:$0xf]  ;;  %v1368_v33 = vld [vmem:[%s2337_s3 + $0x1d8] sm:$0xf]  ;;  %v1129_v36 = vor.u32 %v1705_v25, %v1128_v23  ;;  %v1133_v39 = vor.u32 %v1701_v26, %v1130_v27 }
  0x22   :  { %v1362_v32 = vld [vmem:[%s2337_s3 + $0x1f0] sm:$0xf0]  ;;  %v1763_v34 = vld [vmem:[%s2337_s3 + $0x1f4] sm:$0xf0]  ;;  %v1759_v37 = vld [vmem:[%s2337_s3 + $0x1dc] sm:$0xf]  ;;  %v1361_v40 = vor.u32 %v1762_v29, %v1360_v28 }
  0x23   :  { %513 = vmatpush.bf16.msra.mxu0 %v1185_v4  ;;  %527 = vmatpush.bf16.msra.mxu1 %v1189_v5  ;;  %v1370_v38 = vld [vmem:[%s2337_s3 + $0x1f8] sm:$0xf0]  ;;  %v1365_v41 = vor.u32 %v1758_v30, %v1362_v32  ;;  %v1369_v42 = vor.u32 %v1763_v34, %v1368_v33  ;;  %v1328_v43 = vld [vmem:[%s2337_s3 + $0x190] sm:$0xf]  ;;  %v1750_v45 = vld [vmem:[%s2337_s3 + $0x194] sm:$0xf] }
  0x24   :  { %541 = vmatpush.bf16.msra.mxu2 %v1193_v6  ;;  %v1754_v44 = vld [vmem:[%s2337_s3 + $0x1ac] sm:$0xf0]  ;;  %v1373_v46 = vor.u32 %v1759_v37, %v1370_v38  ;;  %v1330_v47 = vld [vmem:[%s2337_s3 + $0x1b0] sm:$0xf0]  ;;  %v1336_v48 = vld [vmem:[%s2337_s3 + $0x198] sm:$0xf] }
  0x25   :  { %555 = vmatpush.bf16.msra.mxu3 %v1197_v10  ;;  %v1755_v49 = vld [vmem:[%s2337_s3 + $0x1b4] sm:$0xf0]  ;;  %v1751_v50 = vld [vmem:[%s2337_s3 + $0x19c] sm:$0xf]  ;;  %v1329_v52 = vor.u32 %v1754_v44, %v1328_v43  ;;  %v1333_v53 = vor.u32 %v1750_v45, %v1330_v47  ;;  %v1296_v55 = vld [vmem:[%s2337_s3 + $0x150] sm:$0xf] }
  0x26   :  { %v1338_v51 = vld [vmem:[%s2337_s3 + $0x1b8] sm:$0xf0]  ;;  %v1337_v54 = vor.u32 %v1755_v49, %v1336_v48  ;;  %v1746_v56 = vld [vmem:[%s2337_s3 + $0x16c] sm:$0xf0]  ;;  %v1742_v57 = vld [vmem:[%s2337_s3 + $0x154] sm:$0xf] }
  0x27   :  { %514 = vmatpush.bf16.msra.mxu0 %v1153_v16  ;;  %528 = vmatpush.bf16.msra.mxu1 %v1157_v19  ;;  %v1341_v58 = vor.u32 %v1751_v50, %v1338_v51  ;;  %v1298_v59 = vld [vmem:[%s2337_s3 + $0x170] sm:$0xf0]  ;;  %v1304_v60 = vld [vmem:[%s2337_s3 + $0x158] sm:$0xf]  ;;  %v1743_v62 = vld [vmem:[%s2337_s3 + $0x15c] sm:$0xf]  ;;  %v1297_v0 = vor.u32 %v1746_v56, %v1296_v55 }
  0x28   :  { %542 = vmatpush.bf16.msra.mxu2 %v1161_v20  ;;  %v1747_v61 = vld [vmem:[%s2337_s3 + $0x174] sm:$0xf0]  ;;  %v1306_v63 = vld [vmem:[%s2337_s3 + $0x178] sm:$0xf0]  ;;  %v2127_v1 = vld [vmem:[%s2335_s1] sm:$0xff]  ;;  %v1301_v2 = vor.u32 %v1742_v57, %v1298_v59 }
  0x29   :  { %556 = vmatpush.bf16.msra.mxu3 %v1165_v24  ;;  %v1305_v3 = vor.u32 %v1747_v61, %v1304_v60  ;;  %v1264_v4 = vld [vmem:[%s2337_s3 + $0x110] sm:$0xf]  ;;  %v1734_v6 = vld [vmem:[%s2337_s3 + $0x114] sm:$0xf]  ;;  %v1309_v7 = vor.u32 %v1743_v62, %v1306_v63  ;;  %v1272_v9 = vld [vmem:[%s2337_s3 + $0x118] sm:$0xf] }
  0x2a   :  { %v1738_v5 = vld [vmem:[%s2337_s3 + $0x12c] sm:$0xf0]  ;;  %v1266_v8 = vld [vmem:[%s2337_s3 + $0x130] sm:$0xf0]  ;;  %v1739_v10 = vld [vmem:[%s2337_s3 + $0x134] sm:$0xf0] }
  0x2b   :  { %515 = vmatpush.bf16.msra.mxu0 %v1121_v31  ;;  %529 = vmatpush.bf16.msra.mxu1 %v1125_v35  ;;  %v1735_v11 = vld [vmem:[%s2337_s3 + $0x11c] sm:$0xf]  ;;  %v1265_v13 = vor.u32 %v1738_v5, %v1264_v4  ;;  %v1269_v14 = vor.u32 %v1734_v6, %v1266_v8  ;;  %v1273_v15 = vor.u32 %v1739_v10, %v1272_v9  ;;  %v1232_v16 = vld [vmem:[%s2337_s3 + $0xd0] sm:$0xf]  ;;  %v1726_v18 = vld [vmem:[%s2337_s3 + $0xd4] sm:$0xf] }
  0x2c   :  { %543 = vmatpush.bf16.msra.mxu2 %v1129_v36  ;;  %v1274_v12 = vld [vmem:[%s2337_s3 + $0x138] sm:$0xf0]  ;;  %v1730_v17 = vld [vmem:[%s2337_s3 + $0xec] sm:$0xf0]  ;;  %v1234_v20 = vld [vmem:[%s2337_s3 + $0xf0] sm:$0xf0] }
  0x2d   :  { %557 = vmatpush.bf16.msra.mxu3 %v1133_v39  ;;  %v1277_v19 = vor.u32 %v1735_v11, %v1274_v12  ;;  %v1240_v21 = vld [vmem:[%s2337_s3 + $0xd8] sm:$0xf]  ;;  %v1727_v23 = vld [vmem:[%s2337_s3 + $0xdc] sm:$0xf]  ;;  %v1233_v25 = vor.u32 %v1730_v17, %v1232_v16  ;;  %v1237_v26 = vor.u32 %v1726_v18, %v1234_v20  ;;  %v1200_v28 = vld [vmem:[%s2337_s3 + $0x90] sm:$0xf] }
  0x2e   :  { %516 = vmatmul.bf16.vlgmr.msra.gmra.mxu0 %v2127_v1  ;;  %530 = vmatmul.bf16.vlgmr.msra.gmra.mxu1 %v2127_v1  ;;  %v1731_v22 = vld [vmem:[%s2337_s3 + $0xf4] sm:$0xf0]  ;;  %v1242_v24 = vld [vmem:[%s2337_s3 + $0xf8] sm:$0xf0]  ;;  %v1722_v29 = vld [vmem:[%s2337_s3 + $0xac] sm:$0xf0] }
  0x2f   :  { %564 = vmatpush.bf16.msrb.mxu0 %v1361_v40  ;;  %578 = vmatpush.bf16.msrb.mxu1 %v1365_v41  ;;  %v1241_v27 = vor.u32 %v1731_v22, %v1240_v21  ;;  %v1718_v30 = vld [vmem:[%s2337_s3 + $0x94] sm:$0xf]  ;;  %v1245_v31 = vor.u32 %v1727_v23, %v1242_v24  ;;  %v1208_v33 = vld [vmem:[%s2337_s3 + $0x98] sm:$0xf]  ;;  %v1719_v35 = vld [vmem:[%s2337_s3 + $0x9c] sm:$0xf]  ;;  %v1201_v37 = vor.u32 %v1722_v29, %v1200_v28 }
  0x30   :  { %592 = vmatpush.bf16.msrb.mxu2 %v1369_v42  ;;  %558 = vmatmul.bf16.vlgmr.msra.gmra.mxu3 %v2127_v1  ;;  %v1202_v32 = vld [vmem:[%s2337_s3 + $0xb0] sm:$0xf0]  ;;  %v1723_v34 = vld [vmem:[%s2337_s3 + $0xb4] sm:$0xf0]  ;;  %v1210_v36 = vld [vmem:[%s2337_s3 + $0xb8] sm:$0xf0] }
  0x31   :  { %606 = vmatpush.bf16.msrb.mxu3 %v1373_v46  ;;  %544 = vmatmul.bf16.vlgmr.msra.gmra.mxu2 %v2127_v1  ;;  %v1205_v38 = vor.u32 %v1718_v30, %v1202_v32  ;;  %v1209_v39 = vor.u32 %v1723_v34, %v1208_v33  ;;  %v1168_v40 = vld [vmem:[%s2337_s3 + $0x50] sm:$0xf]  ;;  %v1710_v42 = vld [vmem:[%s2337_s3 + $0x54] sm:$0xf]  ;;  %v1213_v43 = vor.u32 %v1719_v35, %v1210_v36  ;;  %v1176_v45 = vld [vmem:[%s2337_s3 + $0x58] sm:$0xf] }
  0x32   :  { %v1714_v41 = vld [vmem:[%s2337_s3 + $0x6c] sm:$0xf0]  ;;  %v1170_v44 = vld [vmem:[%s2337_s3 + $0x70] sm:$0xf0]  ;;  %v1715_v46 = vld [vmem:[%s2337_s3 + $0x74] sm:$0xf0] }
  0x33   :  { %565 = vmatpush.bf16.msrb.mxu0 %v1329_v52  ;;  %579 = vmatpush.bf16.msrb.mxu1 %v1333_v53  ;;  %v1711_v47 = vld [vmem:[%s2337_s3 + $0x5c] sm:$0xf]  ;;  %v1169_v49 = vor.u32 %v1714_v41, %v1168_v40  ;;  %v1136_v50 = vld [vmem:[%s2337_s3 + $0x10] sm:$0xf]  ;;  %v1173_v52 = vor.u32 %v1710_v42, %v1170_v44  ;;  %v1177_v53 = vor.u32 %v1715_v46, %v1176_v45  ;;  %v1138_v55 = vld [vmem:[%s2337_s3 + $0x30] sm:$0xf0] }
  0x34   :  { %593 = vmatpush.bf16.msrb.mxu2 %v1337_v54  ;;  %v1178_v48 = vld [vmem:[%s2337_s3 + $0x78] sm:$0xf0]  ;;  %v1706_v51 = vld [vmem:[%s2337_s3 + $0x2c] sm:$0xf0]  ;;  %v1702_v54 = vld [vmem:[%s2337_s3 + $0x14] sm:$0xf] }
  0x35   :  { %607 = vmatpush.bf16.msrb.mxu3 %v1341_v58  ;;  %v1144_v56 = vld [vmem:[%s2337_s3 + $0x18] sm:$0xf]  ;;  %v1181_v57 = vor.u32 %v1711_v47, %v1178_v48  ;;  %v1703_v59 = vld [vmem:[%s2337_s3 + $0x1c] sm:$0xf]  ;;  %v1604_v61 = vld [vmem:[#allocation2 + $0x1c0] sm:$0xf]  ;;  %v1141_v5 = vor.u32 %v1702_v54, %v1138_v55 }
  0x36   :  { %v1707_v58 = vld [vmem:[%s2337_s3 + $0x34] sm:$0xf0]  ;;  %v1146_v60 = vld [vmem:[%s2337_s3 + $0x38] sm:$0xf0]  ;;  %v1695_v62 = vld [vmem:[#allocation2 + $0x1dc] sm:$0xf0] }
  0x37   :  { %566 = vmatpush.bf16.msrb.mxu0 %v1297_v0  ;;  %580 = vmatpush.bf16.msrb.mxu1 %v1301_v2  ;;  %v1691_v63 = vld [vmem:[#allocation2 + $0x1c4] sm:$0xf]  ;;  %v1137_v0 = vor.u32 %v1706_v51, %v1136_v50  ;;  %v1696_v4 = vld [vmem:[#allocation2 + $0x1e4] sm:$0xf0]  ;;  %v1145_v6 = vor.u32 %v1707_v58, %v1144_v56  ;;  %v1614_v8 = vld [vmem:[#allocation2 + $0x1e8] sm:$0xf0]  ;;  %v1149_v9 = vor.u32 %v1703_v59, %v1146_v60 }
  0x38   :  { %594 = vmatpush.bf16.msrb.mxu2 %v1305_v3  ;;  %v1606_v2 = vld [vmem:[#allocation2 + $0x1e0] sm:$0xf0]  ;;  %v1612_v3 = vld [vmem:[#allocation2 + $0x1c8] sm:$0xf]  ;;  %v1605_v10 = vor.u32 %v1695_v62, %v1604_v61  ;;  %v1684_v20 = vld [vmem:[#allocation2 + $0x18c] sm:$0xf] }
  0x39   :  { %608 = vmatpush.bf16.msrb.mxu3 %v1309_v7  ;;  %v1692_v7 = vld [vmem:[#allocation2 + $0x1cc] sm:$0xf]  ;;  %v1609_v11 = vor.u32 %v1691_v63, %v1606_v2  ;;  %v1613_v12 = vor.u32 %v1696_v4, %v1612_v3  ;;  %v1574_v17 = vld [vmem:[#allocation2 + $0x1a0] sm:$0xf0]  ;;  %v1580_v18 = vld [vmem:[#allocation2 + $0x188] sm:$0xf] }
  0x3a   :  { %v1617_v16 = vor.u32 %v1692_v7, %v1614_v8  ;;  %v1582_v21 = vld [vmem:[#allocation2 + $0x1a8] sm:$0xf0]  ;;  %v1542_v29 = vld [vmem:[#allocation2 + $0x160] sm:$0xf0]  ;;  %v1548_v30 = vld [vmem:[#allocation2 + $0x148] sm:$0xf] }
  0x3b   :  { %567 = vmatpush.bf16.msrb.mxu0 %v1265_v13  ;;  %581 = vmatpush.bf16.msrb.mxu1 %v1269_v14  ;;  %v1572_v13 = vld [vmem:[#allocation2 + $0x180] sm:$0xf]  ;;  %v1585_v28 = vor.u32 %v1684_v20, %v1582_v21  ;;  %v1676_v32 = vld [vmem:[#allocation2 + $0x14c] sm:$0xf]  ;;  %v1510_v41 = vld [vmem:[#allocation2 + $0x120] sm:$0xf0] }
  0x3c   :  { %595 = vmatpush.bf16.msrb.mxu2 %v1273_v15  ;;  %v1687_v14 = vld [vmem:[#allocation2 + $0x19c] sm:$0xf0]  ;;  %v1683_v15 = vld [vmem:[#allocation2 + $0x184] sm:$0xf]  ;;  %v1550_v33 = vld [vmem:[#allocation2 + $0x168] sm:$0xf0] }
  0x3d   :  { %609 = vmatpush.bf16.msrb.mxu3 %v1277_v19  ;;  %v1688_v19 = vld [vmem:[#allocation2 + $0x1a4] sm:$0xf0]  ;;  %v1573_v22 = vor.u32 %v1687_v14, %v1572_v13  ;;  %v1577_v23 = vor.u32 %v1683_v15, %v1574_v17  ;;  %v1553_v40 = vor.u32 %v1676_v32, %v1550_v33  ;;  %v1668_v44 = vld [vmem:[#allocation2 + $0x10c] sm:$0xf]  ;;  %v1476_v48 = vld [vmem:[#allocation2 + $0xc0] sm:$0xf] }
  0x3e   :  { %v1581_v24 = vor.u32 %v1688_v19, %v1580_v18  ;;  %v1516_v42 = vld [vmem:[#allocation2 + $0x108] sm:$0xf]  ;;  %v1518_v45 = vld [vmem:[#allocation2 + $0x128] sm:$0xf0]  ;;  %v1659_v50 = vld [vmem:[#allocation2 + $0xc4] sm:$0xf] }
  0x3f   :  { %568 = vmatpush.bf16.msrb.mxu0 %v1233_v25  ;;  %582 = vmatpush.bf16.msrb.mxu1 %v1237_v26  ;;  %v1540_v25 = vld [vmem:[#allocation2 + $0x140] sm:$0xf]  ;;  %v1521_v51 = vor.u32 %v1668_v44, %v1518_v45  ;;  %v1664_v54 = vld [vmem:[#allocation2 + $0xe4] sm:$0xf0]  ;;  %v1660_v55 = vld [vmem:[#allocation2 + $0xcc] sm:$0xf] }
  0x40   :  { %596 = vmatpush.bf16.msrb.mxu2 %v1241_v27  ;;  %v1679_v26 = vld [vmem:[#allocation2 + $0x15c] sm:$0xf0]  ;;  %v1675_v27 = vld [vmem:[#allocation2 + $0x144] sm:$0xf]  ;;  %v1486_v56 = vld [vmem:[#allocation2 + $0xe8] sm:$0xf0] }
  0x41   :  { %610 = vmatpush.bf16.msrb.mxu3 %v1245_v31  ;;  %v1680_v31 = vld [vmem:[#allocation2 + $0x164] sm:$0xf0]  ;;  %v1541_v34 = vor.u32 %v1679_v26, %v1540_v25  ;;  %v1545_v35 = vor.u32 %v1675_v27, %v1542_v29  ;;  %v1444_v60 = vld [vmem:[#allocation2 + $0x80] sm:$0xf]  ;;  %v1651_v62 = vld [vmem:[#allocation2 + $0x84] sm:$0xf]  ;;  %v1489_v63 = vor.u32 %v1660_v55, %v1486_v56 }
  0x42   :  { %v1549_v36 = vor.u32 %v1680_v31, %v1548_v30  ;;  %v1655_v61 = vld [vmem:[#allocation2 + $0x9c] sm:$0xf0]  ;;  %v1452_v2 = vld [vmem:[#allocation2 + $0x88] sm:$0xf]  ;;  %v1652_v4 = vld [vmem:[#allocation2 + $0x8c] sm:$0xf] }
  0x43   :  { %569 = vmatpush.bf16.msrb.mxu0 %v1201_v37  ;;  %583 = vmatpush.bf16.msrb.mxu1 %v1205_v38  ;;  %v1508_v37 = vld [vmem:[#allocation2 + $0x100] sm:$0xf]  ;;  %v1656_v3 = vld [vmem:[#allocation2 + $0xa4] sm:$0xf0]  ;;  %v1414_v13 = vld [vmem:[#allocation2 + $0x60] sm:$0xf0] }
  0x44   :  { %597 = vmatpush.bf16.msrb.mxu2 %v1209_v39  ;;  %v1671_v38 = vld [vmem:[#allocation2 + $0x11c] sm:$0xf0]  ;;  %v1667_v39 = vld [vmem:[#allocation2 + $0x104] sm:$0xf]  ;;  %v1453_v8 = vor.u32 %v1656_v3, %v1452_v2  ;;  %v1420_v14 = vld [vmem:[#allocation2 + $0x48] sm:$0xf] }
  0x45   :  { %611 = vmatpush.bf16.msrb.mxu3 %v1213_v43  ;;  %v1672_v43 = vld [vmem:[#allocation2 + $0x124] sm:$0xf0]  ;;  %v1509_v46 = vor.u32 %v1671_v38, %v1508_v37  ;;  %v1513_v47 = vor.u32 %v1667_v39, %v1510_v41  ;;  %v1422_v17 = vld [vmem:[#allocation2 + $0x68] sm:$0xf0]  ;;  %v1380_v19 = vld [vmem:[#allocation2] sm:$0xf] }
  0x46   :  { %v1648_v15 = vld [vmem:[#allocation2 + $0x64] sm:$0xf0]  ;;  %v1639_v20 = vld [vmem:[#allocation2 + $0x1c] sm:$0xf0]  ;;  %v1390_v29 = vld [vmem:[#allocation2 + $0x28] sm:$0xf0] }
  0x47   :  { %570 = vmatpush.bf16.msrb.mxu0 %v1169_v49  ;;  %584 = vmatpush.bf16.msrb.mxu1 %v1173_v52  ;;  %v1663_v49 = vld [vmem:[#allocation2 + $0xdc] sm:$0xf0]  ;;  %v1478_v52 = vld [vmem:[#allocation2 + $0xe0] sm:$0xf0]  ;;  %v1388_v25 = vld [vmem:[#allocation2 + $0x8] sm:$0xf]  ;;  %v1381_v33 = vor.u32 %v1639_v20, %v1380_v19 }
  0x48   :  { %598 = vmatpush.bf16.msrb.mxu2 %v1177_v53  ;;  %v1484_v53 = vld [vmem:[#allocation2 + $0xc8] sm:$0xf]  ;;  %v1481_v58 = vor.u32 %v1659_v50, %v1478_v52  ;;  %v1620_v30 = vld [vmem:[#allocation2 + $0x1d0] sm:$0xf]  ;;  %v1693_v32 = vld [vmem:[#allocation2 + $0x1d4] sm:$0xf] }
  0x49   :  { %612 = vmatpush.bf16.msrb.mxu3 %v1181_v57  ;;  %v1477_v57 = vor.u32 %v1663_v49, %v1476_v48  ;;  %v1485_v59 = vor.u32 %v1664_v54, %v1484_v53  ;;  %v1640_v27 = vld [vmem:[#allocation2 + $0x24] sm:$0xf0]  ;;  %v1697_v31 = vld [vmem:[#allocation2 + $0x1ec] sm:$0xf0]  ;;  %v1694_v39 = vld [vmem:[#allocation2 + $0x1dc] sm:$0xf] }
  0x4a   :  { %v1389_v38 = vor.u32 %v1640_v27, %v1388_v25  ;;  %v1590_v49 = vld [vmem:[#allocation2 + $0x1b0] sm:$0xf0]  ;;  %v1596_v50 = vld [vmem:[#allocation2 + $0x198] sm:$0xf]  ;;  %v1686_v52 = vld [vmem:[#allocation2 + $0x19c] sm:$0xf] }
  0x4b   :  { %571 = vmatpush.bf16.msrb.mxu0 %v1137_v0  ;;  %585 = vmatpush.bf16.msrb.mxu1 %v1141_v5  ;;  %v1446_v0 = vld [vmem:[#allocation2 + $0xa0] sm:$0xf0]  ;;  %v1454_v5 = vld [vmem:[#allocation2 + $0xa8] sm:$0xf0]  ;;  %v1598_v53 = vld [vmem:[#allocation2 + $0x1b8] sm:$0xf0] }
  0x4c   :  { %599 = vmatpush.bf16.msrb.mxu2 %v1145_v6  ;;  %v1445_v6 = vor.u32 %v1655_v61, %v1444_v60  ;;  %v1449_v7 = vor.u32 %v1651_v62, %v1446_v0  ;;  %v1601_v60 = vor.u32 %v1686_v52, %v1598_v53  ;;  %v1558_v61 = vld [vmem:[#allocation2 + $0x170] sm:$0xf0]  ;;  %v1564_v62 = vld [vmem:[#allocation2 + $0x158] sm:$0xf]  ;;  %v1678_v0 = vld [vmem:[#allocation2 + $0x15c] sm:$0xf] }
  0x4d   :  { %613 = vmatpush.bf16.msrb.mxu3 %v1149_v9  ;;  %v1412_v9 = vld [vmem:[#allocation2 + $0x40] sm:$0xf]  ;;  %v1566_v2 = vld [vmem:[#allocation2 + $0x178] sm:$0xf0]  ;;  %v1665_v19 = vld [vmem:[#allocation2 + $0xec] sm:$0xf0] }
  0x4e   :  { %572 = vmatmul.bf16.vlgmr.msrb.gmra.mxu0 %v2127_v1  ;;  %586 = vmatmul.bf16.vlgmr.msrb.gmra.mxu1 %v2127_v1  ;;  %v1661_v20 = vld [vmem:[#allocation2 + $0xd4] sm:$0xf]  ;;  %v1662_v25 = vld [vmem:[#allocation2 + $0xdc] sm:$0xf] }
  0x4f   :  { %946 = vmatpush.bf16.msra.mxu0 %v1605_v10  ;;  %960 = vmatpush.bf16.msra.mxu1 %v1609_v11  ;;  %v1647_v10 = vld [vmem:[#allocation2 + $0x5c] sm:$0xf0]  ;;  %v1643_v11 = vld [vmem:[#allocation2 + $0x44] sm:$0xf] }
  0x50   :  { %974 = vmatpush.bf16.msra.mxu2 %v1613_v12  ;;  %614 = vmatmul.bf16.vlgmr.msrb.gmra.mxu3 %v2127_v1  ;;  %v1457_v12 = vor.u32 %v1652_v4, %v1454_v5  ;;  %v1413_v18 = vor.u32 %v1647_v10, %v1412_v9  ;;  %v1417_v21 = vor.u32 %v1643_v11, %v1414_v13  ;;  %v1526_v10 = vld [vmem:[#allocation2 + $0x130] sm:$0xf0]  ;;  %v1532_v11 = vld [vmem:[#allocation2 + $0x118] sm:$0xf]  ;;  %v1670_v13 = vld [vmem:[#allocation2 + $0x11c] sm:$0xf] }
  0x51   :  { %988 = vmatpush.bf16.msra.mxu3 %v1617_v16  ;;  %600 = vmatmul.bf16.vlgmr.msrb.gmra.mxu2 %v2127_v1  ;;  %v1517_v1 = vor.u32 %v1672_v43, %v1516_v42  ;;  %v1644_v16 = vld [vmem:[#allocation2 + $0x4c] sm:$0xf]  ;;  %v1621_v42 = vor.u32 %v1697_v31, %v1620_v30  ;;  %v2260_v43 = vld [vmem:[%s2334_s0] sm:$0xff]  ;;  %v1569_v9 = vor.u32 %v1678_v0, %v1566_v2  ;;  %v1460_v30 = vld [vmem:[#allocation2 + $0x90] sm:$0xf] }
  0x52   :  { %v1425_v26 = vor.u32 %v1644_v16, %v1422_v17  ;;  %v1657_v31 = vld [vmem:[#allocation2 + $0xac] sm:$0xf0] }
  0x53   :  { %947 = vmatpush.bf16.msra.mxu0 %v1573_v22  ;;  %961 = vmatpush.bf16.msra.mxu1 %v1577_v23  ;;  %v1421_v22 = vor.u32 %v1648_v15, %v1420_v14  ;;  %v1635_v23 = vld [vmem:[#allocation2 + $0x4] sm:$0xf]  ;;  %v1534_v14 = vld [vmem:[#allocation2 + $0x138] sm:$0xf0] }
  0x54   :  { %975 = vmatpush.bf16.msra.mxu2 %v1581_v24  ;;  %v1382_v24 = vld [vmem:[#allocation2 + $0x20] sm:$0xf0] }
  0x55   :  { %989 = vmatpush.bf16.msra.mxu3 %v1585_v28  ;;  %v1636_v28 = vld [vmem:[#allocation2 + $0xc] sm:$0xf]  ;;  %v1385_v37 = vor.u32 %v1635_v23, %v1382_v24  ;;  %v1500_v23 = vld [vmem:[#allocation2 + $0xd8] sm:$0xf] }
  0x56   :  { %v1393_v41 = vor.u32 %v1636_v28, %v1390_v29  ;;  %v1666_v24 = vld [vmem:[#allocation2 + $0xf4] sm:$0xf0] }
  0x57   :  { %948 = vmatpush.bf16.msra.mxu0 %v1541_v34  ;;  %962 = vmatpush.bf16.msra.mxu1 %v1545_v35  ;;  %v1622_v34 = vld [vmem:[#allocation2 + $0x1f0] sm:$0xf0]  ;;  %v1628_v35 = vld [vmem:[#allocation2 + $0x1d8] sm:$0xf]  ;;  %v1501_v29 = vor.u32 %v1666_v24, %v1500_v23 }
  0x58   :  { %976 = vmatpush.bf16.msra.mxu2 %v1549_v36  ;;  %v1698_v36 = vld [vmem:[#allocation2 + $0x1f4] sm:$0xf0]  ;;  %v1625_v44 = vor.u32 %v1693_v32, %v1622_v34  ;;  %v1653_v32 = vld [vmem:[#allocation2 + $0x94] sm:$0xf] }
  0x59   :  { %990 = vmatpush.bf16.msra.mxu3 %v1553_v40  ;;  %v1630_v40 = vld [vmem:[#allocation2 + $0x1f8] sm:$0xf0]  ;;  %v1629_v45 = vor.u32 %v1698_v36, %v1628_v35  ;;  %v1462_v34 = vld [vmem:[#allocation2 + $0xb0] sm:$0xf0]  ;;  %v1468_v35 = vld [vmem:[#allocation2 + $0x98] sm:$0xf] }
  0x5a   :  { %v1633_v48 = vor.u32 %v1694_v39, %v1630_v40  ;;  %v1658_v36 = vld [vmem:[#allocation2 + $0xb4] sm:$0xf0]  ;;  %v1461_v39 = vor.u32 %v1657_v31, %v1460_v30  ;;  %v1465_v40 = vor.u32 %v1653_v32, %v1462_v34 }
  0x5b   :  { %949 = vmatpush.bf16.msra.mxu0 %v1509_v46  ;;  %963 = vmatpush.bf16.msra.mxu1 %v1513_v47  ;;  %v1588_v46 = vld [vmem:[#allocation2 + $0x190] sm:$0xf] }
  0x5c   :  { %977 = vmatpush.bf16.msra.mxu2 %v1517_v1  ;;  %v1689_v47 = vld [vmem:[#allocation2 + $0x1ac] sm:$0xf0]  ;;  %v1685_v1 = vld [vmem:[#allocation2 + $0x194] sm:$0xf] }
  0x5d   :  { %991 = vmatpush.bf16.msra.mxu3 %v1521_v51  ;;  %v1690_v51 = vld [vmem:[#allocation2 + $0x1b4] sm:$0xf0]  ;;  %v1589_v54 = vor.u32 %v1689_v47, %v1588_v46  ;;  %v1593_v55 = vor.u32 %v1685_v1, %v1590_v49  ;;  %v1430_v47 = vld [vmem:[#allocation2 + $0x70] sm:$0xf0]  ;;  %v1646_v49 = vld [vmem:[#allocation2 + $0x5c] sm:$0xf] }
  0x5e   :  { %v1597_v56 = vor.u32 %v1690_v51, %v1596_v50  ;;  %v1436_v1 = vld [vmem:[#allocation2 + $0x58] sm:$0xf]  ;;  %v1438_v50 = vld [vmem:[#allocation2 + $0x78] sm:$0xf0] }
  0x5f   :  { %950 = vmatpush.bf16.msra.mxu0 %v1477_v57  ;;  %964 = vmatpush.bf16.msra.mxu1 %v1481_v58  ;;  %v1556_v57 = vld [vmem:[#allocation2 + $0x150] sm:$0xf] }
  0x60   :  { %978 = vmatpush.bf16.msra.mxu2 %v1485_v59  ;;  %v1681_v58 = vld [vmem:[#allocation2 + $0x16c] sm:$0xf0]  ;;  %v1677_v59 = vld [vmem:[#allocation2 + $0x154] sm:$0xf] }
  0x61   :  { %992 = vmatpush.bf16.msra.mxu3 %v1489_v63  ;;  %v1682_v63 = vld [vmem:[#allocation2 + $0x174] sm:$0xf0]  ;;  %v1557_v3 = vor.u32 %v1681_v58, %v1556_v57  ;;  %v1561_v4 = vor.u32 %v1677_v59, %v1558_v61  ;;  %v1441_v57 = vor.u32 %v1646_v49, %v1438_v50  ;;  %v1398_v58 = vld [vmem:[#allocation2 + $0x30] sm:$0xf0]  ;;  %v1638_v61 = vld [vmem:[#allocation2 + $0x1c] sm:$0xf] }
  0x62   :  { %v1565_v5 = vor.u32 %v1682_v63, %v1564_v62  ;;  %v1404_v59 = vld [vmem:[#allocation2 + $0x18] sm:$0xf]  ;;  %v1406_v62 = vld [vmem:[#allocation2 + $0x38] sm:$0xf0] }
  0x63   :  { %951 = vmatpush.bf16.msra.mxu0 %v1445_v6  ;;  %965 = vmatpush.bf16.msra.mxu1 %v1449_v7  ;;  %v1524_v6 = vld [vmem:[#allocation2 + $0x110] sm:$0xf] }
  0x64   :  { %979 = vmatpush.bf16.msra.mxu2 %v1453_v8  ;;  %v1673_v7 = vld [vmem:[#allocation2 + $0x12c] sm:$0xf0]  ;;  %v1669_v8 = vld [vmem:[#allocation2 + $0x114] sm:$0xf] }
  0x65   :  { %993 = vmatpush.bf16.msra.mxu3 %v1457_v12  ;;  %v1674_v12 = vld [vmem:[#allocation2 + $0x134] sm:$0xf0]  ;;  %v1525_v15 = vor.u32 %v1673_v7, %v1524_v6  ;;  %v1529_v16 = vor.u32 %v1669_v8, %v1526_v10 }
  0x66   :  { %v1533_v17 = vor.u32 %v1674_v12, %v1532_v11 }
  0x67   :  { %952 = vmatpush.bf16.msra.mxu0 %v1413_v18  ;;  %966 = vmatpush.bf16.msra.mxu1 %v1417_v21  ;;  %v1492_v18 = vld [vmem:[#allocation2 + $0xd0] sm:$0xf]  ;;  %v1537_v21 = vor.u32 %v1670_v13, %v1534_v14 }
  0x68   :  { %980 = vmatpush.bf16.msra.mxu2 %v1421_v22  ;;  %v1494_v22 = vld [vmem:[#allocation2 + $0xf0] sm:$0xf0]  ;;  %v1493_v27 = vor.u32 %v1665_v19, %v1492_v18  ;;  %v2270_v18 = vld [vmem:[#allocation4] sm:$0xff] }
  0x69   :  { %994 = vmatpush.bf16.msra.mxu3 %v1425_v26  ;;  %v1502_v26 = vld [vmem:[#allocation2 + $0xf8] sm:$0xf0]  ;;  %v1497_v28 = vor.u32 %v1661_v20, %v1494_v22  ;;  %v1061_v22 = vperm.slane %v2270_v18, 1  ;;  %v1063_v30 = vperm.slane %v2270_v18, 3  ;;  %v1065_v50 = vperm.slane %v2270_v18, 5 }
  0x6b   :  { %953 = vmatpush.bf16.msra.mxu0 %v1381_v33  ;;  %967 = vmatpush.bf16.msra.mxu1 %v1385_v37  ;;  %v1505_v33 = vor.u32 %v1662_v25, %v1502_v26  ;;  %v1654_v37 = vld [vmem:[#allocation2 + $0x9c] sm:$0xf] }
  0x6c   :  { %981 = vmatpush.bf16.msra.mxu2 %v1389_v38  ;;  %v1470_v38 = vld [vmem:[#allocation2 + $0xb8] sm:$0xf0] }
  0x6d   :  { %995 = vmatpush.bf16.msra.mxu3 %v1393_v41  ;;  %v1469_v41 = vor.u32 %v1658_v36, %v1468_v35  ;;  %v1473_v46 = vor.u32 %v1654_v37, %v1470_v38 }
  0x6e   :  { %954 = vmatmul.bf16.vlgmr.msra.gmra.mxu0 %v2260_v43  ;;  %968 = vmatmul.bf16.vlgmr.msra.gmra.mxu1 %v2260_v43 }
  0x6f   :  { %1002 = vmatpush.bf16.msrb.mxu0 %v1621_v42  ;;  %1016 = vmatpush.bf16.msrb.mxu1 %v1625_v44  ;;  %v1428_v42 = vld [vmem:[#allocation2 + $0x50] sm:$0xf] }
  0x70   :  { %1030 = vmatpush.bf16.msrb.mxu2 %v1629_v45  ;;  %996 = vmatmul.bf16.vlgmr.msra.gmra.mxu3 %v2260_v43  ;;  %v1649_v44 = vld [vmem:[#allocation2 + $0x6c] sm:$0xf0]  ;;  %v1645_v45 = vld [vmem:[#allocation2 + $0x54] sm:$0xf] }
  0x71   :  { %1044 = vmatpush.bf16.msrb.mxu3 %v1633_v48  ;;  %982 = vmatmul.bf16.vlgmr.msra.gmra.mxu2 %v2260_v43  ;;  %v1650_v48 = vld [vmem:[#allocation2 + $0x74] sm:$0xf0]  ;;  %v1429_v51 = vor.u32 %v1649_v44, %v1428_v42  ;;  %v1433_v52 = vor.u32 %v1645_v45, %v1430_v47 }
  0x72   :  { %v1437_v53 = vor.u32 %v1650_v48, %v1436_v1  ;;  %v1064_v48 = vperm.slane %v2270_v18, 4 }
  0x73   :  { %1003 = vmatpush.bf16.msrb.mxu0 %v1589_v54  ;;  %1017 = vmatpush.bf16.msrb.mxu1 %v1593_v55  ;;  %v1396_v54 = vld [vmem:[#allocation2 + $0x10] sm:$0xf] }
  0x74   :  { %1031 = vmatpush.bf16.msrb.mxu2 %v1597_v56  ;;  %v1641_v55 = vld [vmem:[#allocation2 + $0x2c] sm:$0xf0]  ;;  %v1637_v56 = vld [vmem:[#allocation2 + $0x14] sm:$0xf] }
  0x75   :  { %1045 = vmatpush.bf16.msrb.mxu3 %v1601_v60  ;;  %v1642_v60 = vld [vmem:[#allocation2 + $0x34] sm:$0xf0]  ;;  %v1397_v63 = vor.u32 %v1641_v55, %v1396_v54  ;;  %v1401_v0 = vor.u32 %v1637_v56, %v1398_v58  ;;  %v1066_v56 = vperm.slane %v2270_v18, 6  ;;  %v1067_v58 = vperm.slane %v2270_v18, 7 }
  0x76   :  { %v1405_v2 = vor.u32 %v1642_v60, %v1404_v59 }
  0x77   :  { %1004 = vmatpush.bf16.msrb.mxu0 %v1557_v3  ;;  %1018 = vmatpush.bf16.msrb.mxu1 %v1561_v4  ;;  %v1409_v3 = vor.u32 %v1638_v61, %v1406_v62 }
  0x78   :  { %1032 = vmatpush.bf16.msrb.mxu2 %v1565_v5 }
  0x79   :  { %1046 = vmatpush.bf16.msrb.mxu3 %v1569_v9 }
  0x7b   :  { %1005 = vmatpush.bf16.msrb.mxu0 %v1525_v15  ;;  %1019 = vmatpush.bf16.msrb.mxu1 %v1529_v16 }
  0x7c   :  { %1033 = vmatpush.bf16.msrb.mxu2 %v1533_v17 }
  0x7d   :  { %1047 = vmatpush.bf16.msrb.mxu3 %v1537_v21 }
  0x7f   :  { %1006 = vmatpush.bf16.msrb.mxu0 %v1493_v27  ;;  %1020 = vmatpush.bf16.msrb.mxu1 %v1497_v28  ;;  %v1062_v28 = vperm.slane %v2270_v18, 2 }
  0x80   :  { %1034 = vmatpush.bf16.msrb.mxu2 %v1501_v29 }
  0x81   :  { %1048 = vmatpush.bf16.msrb.mxu3 %v1505_v33 }
  0x83   :  { %1007 = vmatpush.bf16.msrb.mxu0 %v1461_v39  ;;  %1021 = vmatpush.bf16.msrb.mxu1 %v1465_v40 }
  0x84   :  { %1035 = vmatpush.bf16.msrb.mxu2 %v1469_v41 }
  0x85   :  { %1049 = vmatpush.bf16.msrb.mxu3 %v1473_v46 }
  0x87   :  { %1008 = vmatpush.bf16.msrb.mxu0 %v1429_v51  ;;  %1022 = vmatpush.bf16.msrb.mxu1 %v1433_v52 }
  0x88   :  { %1036 = vmatpush.bf16.msrb.mxu2 %v1437_v53 }
  0x89   :  { %1050 = vmatpush.bf16.msrb.mxu3 %v1441_v57 }
  0x8b   :  { %1009 = vmatpush.bf16.msrb.mxu0 %v1397_v63  ;;  %1023 = vmatpush.bf16.msrb.mxu1 %v1401_v0 }
  0x8c   :  { %1037 = vmatpush.bf16.msrb.mxu2 %v1405_v2 }
  0x8d   :  { %1051 = vmatpush.bf16.msrb.mxu3 %v1409_v3 }
  0x8e   :  { %1010 = vmatmul.bf16.vlgmr.msrb.gmra.mxu0 %v2260_v43  ;;  %1024 = vmatmul.bf16.vlgmr.msrb.gmra.mxu1 %v2260_v43 }
  0x8f   :  { %1038 = vmatmul.bf16.vlgmr.msrb.gmra.mxu2 %v2260_v43 }
  0x90   :  { %1052 = vmatmul.bf16.vlgmr.msrb.gmra.mxu3 %v2260_v43  ;;  %v1060_v43 = vperm.slane %v2270_v18, 0 }
  0xab   :  { %v517_v4 = vpop.f32.mrf.mxu0  ;;  %v531_v5 = vpop.f32.mrf.mxu1 }
  0xb3   :  { %v559_v7 = vpop.f32.mrf.mxu3  ;;  %v519_v8 = vpop.f32.mrf.mxu0 }
  0xb4   :  { %v545_v6 = vpop.f32.mrf.mxu2  ;;  %v533_v9 = vpop.f32.mrf.mxu1 }
  0xbb   :  { %v561_v11 = vpop.f32.mrf.mxu3 }
  0xbc   :  { %v547_v10 = vpop.f32.mrf.mxu2 }
  0xcb   :  { %v573_v12 = vpop.f32.mrf.mxu0  ;;  %v587_v13 = vpop.f32.mrf.mxu1 }
  0xd3   :  { %v615_v15 = vpop.f32.mrf.mxu3  ;;  %v575_v16 = vpop.f32.mrf.mxu0 }
  0xd4   :  { %v601_v14 = vpop.f32.mrf.mxu2  ;;  %v589_v17 = vpop.f32.mrf.mxu1 }
  0xdb   :  { %v2274_v20 = vpop.f32.mrf.mxu3 }
  0xdc   :  { %v2272_v19 = vpop.f32.mrf.mxu2 }
  0xeb   :  { %v955_v21 = vpop.f32.mrf.mxu0  ;;  %v969_v24 = vpop.f32.mrf.mxu1 }
  0xec   :  { %v956_v23 = vadd.f32 %v955_v21, %v517_v4  ;;  %v970_v25 = vadd.f32 %v969_v24, %v531_v5 }
  0xee   :  { %v1076_v26 = vadd.f32 %v1060_v43, %v956_v23  ;;  %v1077_v27 = vadd.f32 %v1061_v22, %v970_v25 }
  0xf0   :  { %1092 = vst [vmem:[%s2339_s5] sm:$0xff] %v1076_v26 }
  0xf1   :  { %1093 = vst [vmem:[%s2339_s5 + $0x8] sm:$0xff] %v1077_v27 }
  0xf3   :  { %v997_v32 = vpop.f32.mrf.mxu3  ;;  %v957_v33 = vpop.f32.mrf.mxu0 }
  0xf4   :  { %v983_v29 = vpop.f32.mrf.mxu2  ;;  %v998_v34 = vadd.f32 %v997_v32, %v559_v7  ;;  %v958_v35 = vadd.f32 %v957_v33, %v519_v8  ;;  %v971_v36 = vpop.f32.mrf.mxu1 }
  0xf5   :  { %v984_v31 = vadd.f32 %v983_v29, %v545_v6  ;;  %v972_v38 = vadd.f32 %v971_v36, %v533_v9 }
  0xf6   :  { %v1079_v39 = vadd.f32 %v1063_v30, %v998_v34  ;;  %v1084_v40 = vadd.f32 %v1060_v43, %v958_v35 }
  0xf7   :  { %v1078_v37 = vadd.f32 %v1062_v28, %v984_v31  ;;  %v1085_v41 = vadd.f32 %v1061_v22, %v972_v38 }
  0xf8   :  { %1095 = vst [vmem:[%s2339_s5 + $0x18] sm:$0xff] %v1079_v39 }
  0xf9   :  { %1094 = vst [vmem:[%s2339_s5 + $0x10] sm:$0xff] %v1078_v37 }
  0xfa   :  { %1100 = vst [vmem:[%s2339_s5 + $0x40] sm:$0xff] %v1084_v40 }
  0xfb   :  { %1101 = vst [vmem:[%s2339_s5 + $0x48] sm:$0xff] %v1085_v41  ;;  %v999_v45 = vpop.f32.mrf.mxu3 }
  0xfc   :  { %v985_v42 = vpop.f32.mrf.mxu2  ;;  %v1000_v46 = vadd.f32 %v999_v45, %v561_v11 }
  0xfd   :  { %v986_v44 = vadd.f32 %v985_v42, %v547_v10 }
  0xfe   :  { %v1087_v1 = vadd.f32 %v1063_v30, %v1000_v46 }
  0xff   :  { %v1086_v47 = vadd.f32 %v1062_v28, %v986_v44 }
 0x100   :  { %1103 = vst [vmem:[%s2339_s5 + $0x58] sm:$0xff] %v1087_v1 }
 0x101   :  { %1102 = vst [vmem:[%s2339_s5 + $0x50] sm:$0xff] %v1086_v47 }
 0x10b   :  { %v1011_v49 = vpop.f32.mrf.mxu0  ;;  %v1025_v52 = vpop.f32.mrf.mxu1 }
 0x10c   :  { %v1012_v51 = vadd.f32 %v1011_v49, %v573_v12  ;;  %v1026_v53 = vadd.f32 %v1025_v52, %v587_v13 }
 0x10e   :  { %v1080_v54 = vadd.f32 %v1064_v48, %v1012_v51  ;;  %v1081_v55 = vadd.f32 %v1065_v50, %v1026_v53 }
 0x110   :  { %1096 = vst [vmem:[%s2339_s5 + $0x20] sm:$0xff] %v1080_v54 }
 0x111   :  { %1097 = vst [vmem:[%s2339_s5 + $0x28] sm:$0xff] %v1081_v55 }
 0x112   :  { %v1039_v57 = vpop.f32.mrf.mxu2 }
 0x113   :  { %v1040_v59 = vadd.f32 %v1039_v57, %v601_v14  ;;  %v1053_v60 = vpop.f32.mrf.mxu3  ;;  %v1013_v61 = vpop.f32.mrf.mxu0 }
 0x114   :  { %v1054_v62 = vadd.f32 %v1053_v60, %v615_v15  ;;  %v1014_v63 = vadd.f32 %v1013_v61, %v575_v16  ;;  %v1027_v0 = vpop.f32.mrf.mxu1 }
 0x115   :  { %v1082_v2 = vadd.f32 %v1066_v56, %v1040_v59  ;;  %v1028_v3 = vadd.f32 %v1027_v0, %v589_v17 }
 0x116   :  { %v1083_v4 = vadd.f32 %v1067_v58, %v1054_v62  ;;  %v1088_v5 = vadd.f32 %v1064_v48, %v1014_v63 }
 0x117   :  { %1098 = vst [vmem:[%s2339_s5 + $0x30] sm:$0xff] %v1082_v2  ;;  %v1089_v6 = vadd.f32 %v1065_v50, %v1028_v3 }
 0x118   :  { %1099 = vst [vmem:[%s2339_s5 + $0x38] sm:$0xff] %v1083_v4 }
 0x119   :  { %1104 = vst [vmem:[%s2339_s5 + $0x60] sm:$0xff] %v1088_v5 }
 0x11a   :  { %1105 = vst [vmem:[%s2339_s5 + $0x68] sm:$0xff] %v1089_v6  ;;  %v1041_v7 = vpop.f32.mrf.mxu2 }
 0x11b   :  { %v1042_v8 = vadd.f32 %v1041_v7, %v2272_v19  ;;  %v1055_v9 = vpop.f32.mrf.mxu3 }
 0x11c   :  { %v1056_v10 = vadd.f32 %v1055_v9, %v2274_v20 }
 0x11d   :  { %v1090_v11 = vadd.f32 %v1066_v56, %v1042_v8 }
 0x11e   :  { %v1091_v12 = vadd.f32 %v1067_v58, %v1056_v10 }
 0x11f   :  { %1106 = vst [vmem:[%s2339_s5 + $0x70] sm:$0xff] %v1090_v11 }
 0x120   :  { %1107 = vst [vmem:[%s2339_s5 + $0x78] sm:$0xff] %v1091_v12 }
 0x121   :  { %1112 = vsyncpa [#allocation3], 1 }
 0x122   :  { %1113 = vsyncpa [#allocation5], 1 }

// kernel: ema_reconstruction_forward.12
= control target key start
LH: loop header
LB: loop body
LE: loop exit
PB: predicated region body
PF: predicated region fallthrough
CT: control target
= control target key end

     0   :  { %s1421_s29 = smov [#allocation8]   ;;  %s2179_s0 = inlined_call_operand.vmem [shape: f32[8,2,1024], index: 0, kind: input, shape index: {}, may-alias: {0,1}]   ;;  %s2180_s1 = inlined_call_operand.vmem [shape: f32[8,2,1024], index: 1, kind: input, shape index: {}, may-alias: {0,1}]   ;;  %s2181_s2 = inlined_call_operand.hbm [shape: bf16[128,512], index: 2, kind: input, shape index: {}]   ;;  %s2182_s3 = inlined_call_operand.vmem [shape: bf16[128,512], index: 3, kind: input, shape index: {}]   ;;  %s2183_s4 = inlined_call_operand.vmem [shape: bf16[8,2,128], index: 4, kind: output, shape index: {0}]   ;;  %s2184_s5 = inlined_call_operand.vmem [shape: bf16[8,2,128], index: 5, kind: output, shape index: {1}]  }
   0x1   :  { %v56_v0 = vld [vmem:[%s2179_s0] sm:$0xff]  ;;  %v58_v1 = vld [vmem:[%s2179_s0 + $0x10] sm:$0xff]  ;;  %s148_s26 = sshll.u32 %s2181_s2, 4  ;;  %s150_s30 = sshll.u32 %s1421_s29, 4  ;;  %v939_v8 = vld [vmem:[%s2180_s1 + $0x8] sm:$0xff]  ;;  %s149_s26 = int_to_ptr.hbm [resolvable:$true] %s148_s26  ;;  %s151_s30 = int_to_ptr.vmem [resolvable:$true] %s150_s30 }
   0x2   :  { %v60_v2 = vld [vmem:[%s2179_s0 + $0x20] sm:$0xff]  ;;  %57 = vst [vmem:[#allocation6] sm:$0xff] %v56_v0  ;;  %v62_v3 = vld [vmem:[%s2179_s0 + $0x30] sm:$0xff] }
   0x3   :  { %59 = vst [vmem:[#allocation6 + $0x8] sm:$0xff] %v58_v1  ;;  %v64_v4 = vld [vmem:[%s2179_s0 + $0x40] sm:$0xff]  ;;  %v66_v5 = vld [vmem:[%s2179_s0 + $0x50] sm:$0xff] }
   0x4   :  { %61 = vst [vmem:[#allocation6 + $0x10] sm:$0xff] %v60_v2  ;;  %v68_v6 = vld [vmem:[%s2179_s0 + $0x60] sm:$0xff]  ;;  %v70_v7 = vld [vmem:[%s2179_s0 + $0x70] sm:$0xff] }
   0x5   :  { %63 = vst [vmem:[#allocation6 + $0x18] sm:$0xff] %v62_v3 }
   0x6   :  { %65 = vst [vmem:[#allocation6 + $0x20] sm:$0xff] %v64_v4 }
   0x7   :  { %11 = vsyncpa [#allocation9], 0  ;;  %67 = vst [vmem:[#allocation6 + $0x28] sm:$0xff] %v66_v5  ;;  %s1422_s15 = smov 256   ;;  %s1423_s16 = smov 16   ;;  %v940_v9 = vld [vmem:[%s2180_s1 + $0x18] sm:$0xff] }
   0x8   :  { %156 = dma.hbm_to_vmem [thread:$0]  %s149_s26, 4096, %s151_s30, [#allocation9], %s1422_s15, %s1422_s15, %s1423_s16   ;;  %69 = vst [vmem:[#allocation6 + $0x30] sm:$0xff] %v68_v6 }
   0x9   :  { %71 = vst [vmem:[#allocation6 + $0x38] sm:$0xff] %v70_v7  ;;  %v941_v10 = vld [vmem:[%s2180_s1 + $0x28] sm:$0xff]  ;;  %v942_v11 = vld [vmem:[%s2180_s1 + $0x38] sm:$0xff] }
   0xa   :  { %126 = vst [vmem:[#allocation7] sm:$0xff] %v939_v8  ;;  %v943_v12 = vld [vmem:[%s2180_s1 + $0x48] sm:$0xff]  ;;  %v944_v13 = vld [vmem:[%s2180_s1 + $0x58] sm:$0xff] }
   0xb   :  { %128 = vst [vmem:[#allocation7 + $0x8] sm:$0xff] %v940_v9  ;;  %v945_v14 = vld [vmem:[%s2180_s1 + $0x68] sm:$0xff]  ;;  %v946_v15 = vld [vmem:[%s2180_s1 + $0x78] sm:$0xff] }
   0xc   :  { %130 = vst [vmem:[#allocation7 + $0x10] sm:$0xff] %v941_v10 }
   0xd   :  { %132 = vst [vmem:[#allocation7 + $0x18] sm:$0xff] %v942_v11 }
   0xe   :  { %134 = vst [vmem:[#allocation7 + $0x20] sm:$0xff] %v943_v12 }
   0xf   :  { %136 = vst [vmem:[#allocation7 + $0x28] sm:$0xff] %v944_v13 }
  0x10   :  { %138 = vst [vmem:[#allocation7 + $0x30] sm:$0xff] %v945_v14 }
  0x11   :  { %140 = vst [vmem:[#allocation7 + $0x38] sm:$0xff] %v946_v15 }
  0x12   :  { %1399 = dma.done.wait [#allocation9], 4096  }
  0x13   :  { %1400 = vsyncadd [#allocation9], 4294963200  ;;  %v1506_v16 = vld [vmem:[#allocation8 + $0x4] sm:$0xf]  ;;  %v1508_v17 = vld [vmem:[#allocation8] sm:$0xf] }
  0x14   :  { %2185 = vst [vmem:[#allocation11_spill] sm:$0xff] %v1506_v16  ;;  %v1510_v18 = vld [vmem:[#allocation8 + $0xc] sm:$0xf]  ;;  %v1512_v19 = vld [vmem:[#allocation8 + $0x8] sm:$0xf]  ;;  %s1962_s19 = smov 0  }
  0x15   :  { %2186 = vst [vmem:[#allocation12_spill] sm:$0xff] %v1508_v17  ;;  %v1514_v20 = vld [vmem:[#allocation8 + $0x10] sm:$0xf0]  ;;  %v1516_v21 = vld [vmem:[#allocation8 + $0xc] sm:$0xf0] }
  0x16   :  { %2187 = vst [vmem:[#allocation13_spill] sm:$0xff] %v1510_v18  ;;  %v1518_v22 = vld [vmem:[#allocation8 + $0x18] sm:$0xf0]  ;;  %v1520_v23 = vld [vmem:[#allocation8 + $0x14] sm:$0xf0] }
  0x17   :  { %2188 = vst [vmem:[#allocation14_spill] sm:$0xff] %v1512_v19  ;;  %v1522_v24 = vld [vmem:[#allocation8 + $0x24] sm:$0xf]  ;;  %v1524_v25 = vld [vmem:[#allocation8 + $0x20] sm:$0xf] }
  0x18   :  { %2189 = vst [vmem:[#allocation15_spill] sm:$0xff] %v1514_v20  ;;  %v1526_v26 = vld [vmem:[#allocation8 + $0x2c] sm:$0xf]  ;;  %v1528_v27 = vld [vmem:[#allocation8 + $0x28] sm:$0xf] }
  0x19   :  { %2190 = vst [vmem:[#allocation16_spill] sm:$0xff] %v1516_v21  ;;  %v1530_v28 = vld [vmem:[#allocation8 + $0x30] sm:$0xf0]  ;;  %v1532_v29 = vld [vmem:[#allocation8 + $0x2c] sm:$0xf0] }
  0x1a   :  { %2191 = vst [vmem:[#allocation17_spill] sm:$0xff] %v1518_v22  ;;  %v1534_v30 = vld [vmem:[#allocation8 + $0x38] sm:$0xf0]  ;;  %v1536_v31 = vld [vmem:[#allocation8 + $0x34] sm:$0xf0] }
  0x1b   :  { %2192 = vst [vmem:[#allocation18_spill] sm:$0xff] %v1520_v23  ;;  %v1538_v32 = vld [vmem:[#allocation8 + $0x44] sm:$0xf]  ;;  %v1540_v33 = vld [vmem:[#allocation8 + $0x40] sm:$0xf] }
  0x1c   :  { %2193 = vst [vmem:[#allocation19_spill] sm:$0xff] %v1522_v24  ;;  %v1542_v34 = vld [vmem:[#allocation8 + $0x4c] sm:$0xf]  ;;  %v1544_v35 = vld [vmem:[#allocation8 + $0x48] sm:$0xf] }
  0x1d   :  { %2194 = vst [vmem:[#allocation20_spill] sm:$0xff] %v1524_v25  ;;  %v1546_v36 = vld [vmem:[#allocation8 + $0x50] sm:$0xf0]  ;;  %v1548_v37 = vld [vmem:[#allocation8 + $0x4c] sm:$0xf0] }
  0x1e   :  { %2195 = vst [vmem:[#allocation21_spill] sm:$0xff] %v1526_v26  ;;  %v1550_v38 = vld [vmem:[#allocation8 + $0x58] sm:$0xf0]  ;;  %v1552_v39 = vld [vmem:[#allocation8 + $0x54] sm:$0xf0] }
  0x1f   :  { %2196 = vst [vmem:[#allocation22_spill] sm:$0xff] %v1528_v27  ;;  %v1554_v40 = vld [vmem:[#allocation8 + $0x64] sm:$0xf]  ;;  %v1556_v41 = vld [vmem:[#allocation8 + $0x60] sm:$0xf] }
  0x20   :  { %2197 = vst [vmem:[#allocation23_spill] sm:$0xff] %v1530_v28  ;;  %v1558_v42 = vld [vmem:[#allocation8 + $0x6c] sm:$0xf]  ;;  %v1560_v43 = vld [vmem:[#allocation8 + $0x68] sm:$0xf] }
  0x21   :  { %2198 = vst [vmem:[#allocation24_spill] sm:$0xff] %v1532_v29  ;;  %v1562_v44 = vld [vmem:[#allocation8 + $0x70] sm:$0xf0]  ;;  %v1564_v45 = vld [vmem:[#allocation8 + $0x6c] sm:$0xf0] }
  0x22   :  { %v1566_v46 = vld [vmem:[#allocation8 + $0x78] sm:$0xf0]  ;;  %v1568_v47 = vld [vmem:[#allocation8 + $0x74] sm:$0xf0]  ;;  %v1570_v48 = vld [vmem:[#allocation8 + $0x84] sm:$0xf] }
  0x23   :  { %v1572_v49 = vld [vmem:[#allocation8 + $0x80] sm:$0xf]  ;;  %v1574_v50 = vld [vmem:[#allocation8 + $0x8c] sm:$0xf]  ;;  %v1576_v51 = vld [vmem:[#allocation8 + $0x88] sm:$0xf] }
  0x24   :  { %v1578_v52 = vld [vmem:[#allocation8 + $0x90] sm:$0xf0]  ;;  %v1580_v53 = vld [vmem:[#allocation8 + $0x8c] sm:$0xf0]  ;;  %v1582_v54 = vld [vmem:[#allocation8 + $0x98] sm:$0xf0] }
  0x25   :  { %v1584_v55 = vld [vmem:[#allocation8 + $0x94] sm:$0xf0]  ;;  %v1586_v56 = vld [vmem:[#allocation8 + $0xa4] sm:$0xf]  ;;  %v1588_v57 = vld [vmem:[#allocation8 + $0xa0] sm:$0xf] }
  0x26   :  { %v1590_v58 = vld [vmem:[#allocation8 + $0xac] sm:$0xf]  ;;  %v1592_v59 = vld [vmem:[#allocation8 + $0xa8] sm:$0xf]  ;;  %v1594_v60 = vld [vmem:[#allocation8 + $0xb0] sm:$0xf0] }
  0x27   :  { %v1596_v61 = vld [vmem:[#allocation8 + $0xac] sm:$0xf0]  ;;  %v1598_v62 = vld [vmem:[#allocation8 + $0xb8] sm:$0xf0]  ;;  %v1600_v63 = vld [vmem:[#allocation8 + $0xb4] sm:$0xf0] }
  0x28   :  { %v1602_v0 = vld [vmem:[#allocation8 + $0xc4] sm:$0xf]  ;;  %v1604_v1 = vld [vmem:[#allocation8 + $0xc0] sm:$0xf]  ;;  %v1606_v2 = vld [vmem:[#allocation8 + $0xcc] sm:$0xf] }
  0x29   :  { %2199 = vst [vmem:[#allocation25_spill] sm:$0xff] %v1602_v0  ;;  %v1608_v3 = vld [vmem:[#allocation8 + $0xc8] sm:$0xf]  ;;  %v1610_v4 = vld [vmem:[#allocation8 + $0xd0] sm:$0xf0] }
  0x2a   :  { %2200 = vst [vmem:[#allocation26_spill] sm:$0xff] %v1604_v1  ;;  %v1612_v5 = vld [vmem:[#allocation8 + $0xcc] sm:$0xf0]  ;;  %v1614_v6 = vld [vmem:[#allocation8 + $0xd8] sm:$0xf0] }
  0x2b   :  { %2201 = vst [vmem:[#allocation27_spill] sm:$0xff] %v1606_v2  ;;  %v1616_v7 = vld [vmem:[#allocation8 + $0xd4] sm:$0xf0]  ;;  %v1618_v8 = vld [vmem:[#allocation8 + $0xe4] sm:$0xf] }
  0x2c   :  { %2202 = vst [vmem:[#allocation28_spill] sm:$0xff] %v1608_v3  ;;  %v1620_v9 = vld [vmem:[#allocation8 + $0xe0] sm:$0xf]  ;;  %v1622_v10 = vld [vmem:[#allocation8 + $0xec] sm:$0xf] }
  0x2d   :  { %2203 = vst [vmem:[#allocation29_spill] sm:$0xff] %v1610_v4  ;;  %v1624_v11 = vld [vmem:[#allocation8 + $0xe8] sm:$0xf]  ;;  %v1626_v12 = vld [vmem:[#allocation8 + $0xf0] sm:$0xf0] }
  0x2e   :  { %2204 = vst [vmem:[#allocation30_spill] sm:$0xff] %v1612_v5  ;;  %v1628_v13 = vld [vmem:[#allocation8 + $0xec] sm:$0xf0]  ;;  %v1630_v14 = vld [vmem:[#allocation8 + $0xf8] sm:$0xf0] }
  0x2f   :  { %2205 = vst [vmem:[#allocation31_spill] sm:$0xff] %v1614_v6  ;;  %v1632_v15 = vld [vmem:[#allocation8 + $0xf4] sm:$0xf0]  ;;  %v1637_v18 = vld [vmem:[%s2182_s3 + $0x4] sm:$0xf] }
  0x30   :  { %2206 = vst [vmem:[#allocation32_spill] sm:$0xff] %v1616_v7  ;;  %v1642_v22 = vld [vmem:[%s2182_s3] sm:$0xf]  ;;  %v1647_v23 = vld [vmem:[%s2182_s3 + $0xc] sm:$0xf] }
  0x31   :  { %2207 = vst [vmem:[#allocation33_spill] sm:$0xff] %v1618_v8  ;;  %v1652_v19 = vld [vmem:[%s2182_s3 + $0x8] sm:$0xf]  ;;  %v1657_v16 = vld [vmem:[%s2182_s3 + $0x10] sm:$0xf0] }
  0x32   :  { %2208 = vst [vmem:[#allocation34_spill] sm:$0xff] %v1620_v9 }
  0x33   :  { %2209 = vst [vmem:[#allocation35_spill] sm:$0xff] %v1622_v10 }
  0x34   :  { %2210 = vst [vmem:[#allocation36_spill] sm:$0xff] %v1624_v11 }
  0x35   :  { %2211 = vst [vmem:[#allocation37_spill] sm:$0xff] %v1626_v12 }
  0x36   :  { %2212 = vst [vmem:[#allocation38_spill] sm:$0xff] %v1628_v13 }
  0x37   :  { %2213 = vst [vmem:[#allocation39_spill] sm:$0xff] %v1630_v14 }
  0x38   :  { %2214 = vst [vmem:[#allocation40_spill] sm:$0xff] %v1632_v15 }
  0x39   :  { %2215 = vst [vmem:[#allocation41_spill] sm:$0xff] %v1637_v18  ;;  %v1662_v18 = vld [vmem:[%s2182_s3 + $0xc] sm:$0xf0] }
  0x3a   :  { %2216 = vst [vmem:[#allocation42_spill] sm:$0xff] %v1642_v22  ;;  %v1667_v22 = vld [vmem:[%s2182_s3 + $0x18] sm:$0xf0] }
  0x3b   :  { %2217 = vst [vmem:[#allocation43_spill] sm:$0xff] %v1647_v23  ;;  %v1672_v23 = vld [vmem:[%s2182_s3 + $0x14] sm:$0xf0] }
  0x3c   :  { %2218 = vst [vmem:[#allocation44_spill] sm:$0xff] %v1652_v19  ;;  %v1677_v19 = vld [vmem:[%s2182_s3 + $0x24] sm:$0xf] }
  0x3d   :  { %2219 = vst [vmem:[#allocation45_spill] sm:$0xff] %v1657_v16  ;;  %v1682_v16 = vld [vmem:[%s2182_s3 + $0x20] sm:$0xf] }
  0x3e   :  { %2220 = vst [vmem:[#allocation46_spill] sm:$0xff] %v1662_v18  ;;  %v1687_v18 = vld [vmem:[%s2182_s3 + $0x2c] sm:$0xf] }
  0x3f   :  { %2221 = vst [vmem:[#allocation47_spill] sm:$0xff] %v1667_v22  ;;  %v1692_v22 = vld [vmem:[%s2182_s3 + $0x28] sm:$0xf] }
  0x40   :  { %2222 = vst [vmem:[#allocation48_spill] sm:$0xff] %v1672_v23  ;;  %v1697_v23 = vld [vmem:[%s2182_s3 + $0x30] sm:$0xf0] }
  0x41   :  { %2223 = vst [vmem:[#allocation49_spill] sm:$0xff] %v1677_v19  ;;  %v1702_v19 = vld [vmem:[%s2182_s3 + $0x2c] sm:$0xf0] }
  0x42   :  { %2224 = vst [vmem:[#allocation50_spill] sm:$0xff] %v1682_v16  ;;  %v1707_v16 = vld [vmem:[%s2182_s3 + $0x38] sm:$0xf0] }
  0x43   :  { %2225 = vst [vmem:[#allocation51_spill] sm:$0xff] %v1687_v18  ;;  %v1712_v18 = vld [vmem:[%s2182_s3 + $0x34] sm:$0xf0] }
  0x44   :  { %2226 = vst [vmem:[#allocation52_spill] sm:$0xff] %v1692_v22  ;;  %v1717_v22 = vld [vmem:[%s2182_s3 + $0x44] sm:$0xf] }
  0x45   :  { %2227 = vst [vmem:[#allocation53_spill] sm:$0xff] %v1697_v23  ;;  %v1722_v23 = vld [vmem:[%s2182_s3 + $0x40] sm:$0xf] }
  0x46   :  { %2228 = vst [vmem:[#allocation54_spill] sm:$0xff] %v1702_v19  ;;  %v1727_v19 = vld [vmem:[%s2182_s3 + $0x4c] sm:$0xf] }
  0x47   :  { %2229 = vst [vmem:[#allocation55_spill] sm:$0xff] %v1707_v16  ;;  %v1732_v16 = vld [vmem:[%s2182_s3 + $0x48] sm:$0xf] }
  0x48   :  { %2230 = vst [vmem:[#allocation56_spill] sm:$0xff] %v1712_v18  ;;  %v1737_v18 = vld [vmem:[%s2182_s3 + $0x50] sm:$0xf0] }
  0x49   :  { %2231 = vst [vmem:[#allocation57_spill] sm:$0xff] %v1717_v22  ;;  %v1742_v22 = vld [vmem:[%s2182_s3 + $0x4c] sm:$0xf0] }
  0x4a   :  { %2232 = vst [vmem:[#allocation58_spill] sm:$0xff] %v1722_v23  ;;  %v1747_v23 = vld [vmem:[%s2182_s3 + $0x58] sm:$0xf0] }
  0x4b   :  { %2233 = vst [vmem:[#allocation59_spill] sm:$0xff] %v1727_v19  ;;  %v1752_v19 = vld [vmem:[%s2182_s3 + $0x54] sm:$0xf0] }
  0x4c   :  { %2234 = vst [vmem:[#allocation60_spill] sm:$0xff] %v1732_v16  ;;  %v1757_v16 = vld [vmem:[%s2182_s3 + $0x64] sm:$0xf] }
  0x4d   :  { %2235 = vst [vmem:[#allocation61_spill] sm:$0xff] %v1737_v18  ;;  %v1762_v18 = vld [vmem:[%s2182_s3 + $0x60] sm:$0xf] }
  0x4e   :  { %2236 = vst [vmem:[#allocation62_spill] sm:$0xff] %v1742_v22  ;;  %v1767_v22 = vld [vmem:[%s2182_s3 + $0x6c] sm:$0xf] }
  0x4f   :  { %2237 = vst [vmem:[#allocation63_spill] sm:$0xff] %v1747_v23  ;;  %v1772_v23 = vld [vmem:[%s2182_s3 + $0x68] sm:$0xf] }
  0x50   :  { %2238 = vst [vmem:[#allocation64_spill] sm:$0xff] %v1752_v19  ;;  %v1777_v19 = vld [vmem:[%s2182_s3 + $0x70] sm:$0xf0] }
  0x51   :  { %2239 = vst [vmem:[#allocation65_spill] sm:$0xff] %v1757_v16  ;;  %v1782_v16 = vld [vmem:[%s2182_s3 + $0x6c] sm:$0xf0] }
  0x52   :  { %2240 = vst [vmem:[#allocation66_spill] sm:$0xff] %v1762_v18  ;;  %v1787_v18 = vld [vmem:[%s2182_s3 + $0x78] sm:$0xf0] }
  0x53   :  { %2241 = vst [vmem:[#allocation67_spill] sm:$0xff] %v1767_v22  ;;  %v1792_v22 = vld [vmem:[%s2182_s3 + $0x74] sm:$0xf0] }
  0x54   :  { %2242 = vst [vmem:[#allocation68_spill] sm:$0xff] %v1772_v23  ;;  %v1797_v23 = vld [vmem:[%s2182_s3 + $0x84] sm:$0xf] }
  0x55   :  { %2243 = vst [vmem:[#allocation69_spill] sm:$0xff] %v1777_v19  ;;  %v1802_v19 = vld [vmem:[%s2182_s3 + $0x80] sm:$0xf] }
  0x56   :  { %2244 = vst [vmem:[#allocation70_spill] sm:$0xff] %v1782_v16  ;;  %v1807_v16 = vld [vmem:[%s2182_s3 + $0x8c] sm:$0xf] }
  0x57   :  { %2245 = vst [vmem:[#allocation71_spill] sm:$0xff] %v1787_v18  ;;  %v1812_v18 = vld [vmem:[%s2182_s3 + $0x88] sm:$0xf] }
  0x58   :  { %2246 = vst [vmem:[#allocation72_spill] sm:$0xff] %v1792_v22  ;;  %v1817_v22 = vld [vmem:[%s2182_s3 + $0x90] sm:$0xf0] }
  0x59   :  { %2247 = vst [vmem:[#allocation73_spill] sm:$0xff] %v1797_v23  ;;  %v1822_v23 = vld [vmem:[%s2182_s3 + $0x8c] sm:$0xf0] }
  0x5a   :  { %2248 = vst [vmem:[#allocation74_spill] sm:$0xff] %v1802_v19  ;;  %v1827_v19 = vld [vmem:[%s2182_s3 + $0x98] sm:$0xf0] }
  0x5b   :  { %2249 = vst [vmem:[#allocation75_spill] sm:$0xff] %v1807_v16  ;;  %v1832_v16 = vld [vmem:[%s2182_s3 + $0x94] sm:$0xf0] }
  0x5c   :  { %2250 = vst [vmem:[#allocation76_spill] sm:$0xff] %v1812_v18  ;;  %v1837_v18 = vld [vmem:[%s2182_s3 + $0xa4] sm:$0xf] }
  0x5d   :  { %2251 = vst [vmem:[#allocation77_spill] sm:$0xff] %v1817_v22  ;;  %v1842_v22 = vld [vmem:[%s2182_s3 + $0xa0] sm:$0xf] }
  0x5e   :  { %2252 = vst [vmem:[#allocation78_spill] sm:$0xff] %v1822_v23  ;;  %v1847_v23 = vld [vmem:[%s2182_s3 + $0xac] sm:$0xf] }
  0x5f   :  { %2253 = vst [vmem:[#allocation79_spill] sm:$0xff] %v1827_v19  ;;  %v1852_v19 = vld [vmem:[%s2182_s3 + $0xa8] sm:$0xf] }
  0x60   :  { %2254 = vst [vmem:[#allocation80_spill] sm:$0xff] %v1832_v16  ;;  %v1857_v16 = vld [vmem:[%s2182_s3 + $0xb0] sm:$0xf0] }
  0x61   :  { %2255 = vst [vmem:[#allocation81_spill] sm:$0xff] %v1837_v18  ;;  %v1862_v18 = vld [vmem:[%s2182_s3 + $0xac] sm:$0xf0] }
  0x62   :  { %2256 = vst [vmem:[#allocation82_spill] sm:$0xff] %v1842_v22  ;;  %v1867_v22 = vld [vmem:[%s2182_s3 + $0xb8] sm:$0xf0] }
  0x63   :  { %2257 = vst [vmem:[#allocation83_spill] sm:$0xff] %v1847_v23  ;;  %v1872_v23 = vld [vmem:[%s2182_s3 + $0xb4] sm:$0xf0] }
  0x64   :  { %2258 = vst [vmem:[#allocation84_spill] sm:$0xff] %v1852_v19  ;;  %v1877_v19 = vld [vmem:[%s2182_s3 + $0xc4] sm:$0xf] }
  0x65   :  { %2259 = vst [vmem:[#allocation85_spill] sm:$0xff] %v1857_v16  ;;  %v1882_v16 = vld [vmem:[%s2182_s3 + $0xc0] sm:$0xf] }
  0x66   :  { %2260 = vst [vmem:[#allocation86_spill] sm:$0xff] %v1862_v18  ;;  %v1887_v18 = vld [vmem:[%s2182_s3 + $0xcc] sm:$0xf] }
  0x67   :  { %2261 = vst [vmem:[#allocation87_spill] sm:$0xff] %v1867_v22  ;;  %v1892_v22 = vld [vmem:[%s2182_s3 + $0xc8] sm:$0xf] }
  0x68   :  { %2262 = vst [vmem:[#allocation88_spill] sm:$0xff] %v1872_v23  ;;  %v1897_v23 = vld [vmem:[%s2182_s3 + $0xd0] sm:$0xf0] }
  0x69   :  { %2263 = vst [vmem:[#allocation89_spill] sm:$0xff] %v1877_v19  ;;  %v1902_v19 = vld [vmem:[%s2182_s3 + $0xcc] sm:$0xf0] }
  0x6a   :  { %2264 = vst [vmem:[#allocation90_spill] sm:$0xff] %v1882_v16  ;;  %v1907_v16 = vld [vmem:[%s2182_s3 + $0xd8] sm:$0xf0] }
  0x6b   :  { %2265 = vst [vmem:[#allocation91_spill] sm:$0xff] %v1887_v18  ;;  %v1912_v18 = vld [vmem:[%s2182_s3 + $0xd4] sm:$0xf0] }
  0x6c   :  { %2266 = vst [vmem:[#allocation92_spill] sm:$0xff] %v1892_v22  ;;  %v1917_v22 = vld [vmem:[%s2182_s3 + $0xe4] sm:$0xf] }
  0x6d   :  { %2267 = vst [vmem:[#allocation93_spill] sm:$0xff] %v1897_v23  ;;  %v1922_v23 = vld [vmem:[%s2182_s3 + $0xe0] sm:$0xf] }
  0x6e   :  { %2268 = vst [vmem:[#allocation94_spill] sm:$0xff] %v1902_v19  ;;  %v1927_v19 = vld [vmem:[%s2182_s3 + $0xec] sm:$0xf] }
  0x6f   :  { %2269 = vst [vmem:[#allocation95_spill] sm:$0xff] %v1907_v16  ;;  %v1932_v16 = vld [vmem:[%s2182_s3 + $0xe8] sm:$0xf] }
  0x70   :  { %2270 = vst [vmem:[#allocation96_spill] sm:$0xff] %v1912_v18  ;;  %v1937_v18 = vld [vmem:[%s2182_s3 + $0xf0] sm:$0xf0] }
  0x71   :  { %2271 = vst [vmem:[#allocation97_spill] sm:$0xff] %v1917_v22  ;;  %v1942_v22 = vld [vmem:[%s2182_s3 + $0xec] sm:$0xf0] }
  0x72   :  { %2272 = vst [vmem:[#allocation98_spill] sm:$0xff] %v1922_v23  ;;  %v1947_v23 = vld [vmem:[%s2182_s3 + $0xf8] sm:$0xf0] }
  0x73   :  { %2273 = vst [vmem:[#allocation99_spill] sm:$0xff] %v1927_v19  ;;  %v1952_v19 = vld [vmem:[%s2182_s3 + $0xf4] sm:$0xf0] }
  0x74   :  { %2274 = vst [vmem:[#allocation100_spill] sm:$0xff] %v1932_v16  ;;  %v1424_v16 = vmov 0.0  }
  0x75   :  { %2275 = vst [vmem:[#allocation101_spill] sm:$0xff] %v1937_v18 }
  0x76   :  { %2276 = vst [vmem:[#allocation102_spill] sm:$0xff] %v1942_v22 }
  0x77   :  { %2277 = vst [vmem:[#allocation103_spill] sm:$0xff] %v1947_v23 }
  0x78   :  { %2278 = vst [vmem:[#allocation104_spill] sm:$0xff] %v1952_v19 }
  0x79   :  { %185 = vst [vmem:[#allocation2] sm:$0x3] %v1424_v16 }
  0x7a   :  { %186 = vst [vmem:[#allocation3] sm:$0x3] %v1424_v16 }
  0x7b   :  { %187 = vst [vmem:[#allocation4] sm:$0x3] %v1424_v16 }
  0x7c   :  { %188 = vst [vmem:[#allocation5] sm:$0x3] %v1424_v16 }
  0x80   :  { %v253_v18 = vld [vmem:[#allocation2] sm:$0x3]  }
  0x81   :  { %v254_v20 = vld [vmem:[#allocation3] sm:$0x3]  }
  0x82   :  { %v255_v21 = vld [vmem:[#allocation4] sm:$0x3]  }
  0x83   :  { %v256_v17 = vld [vmem:[#allocation5] sm:$0x3]  }
  0x84 LB: > { %2279 = vst [vmem:[#allocation105_spill] sm:$0xff] %v1403_v17  ;;  %v2283_v9 = vld [vmem:[#allocation34_spill] sm:$0xff]  ;;  %v2285_v12 = vld [vmem:[#allocation37_spill] sm:$0xff]  ;;  %v2287_v11 = vld [vmem:[#allocation36_spill] sm:$0xff]  ;;  %s1277_s3 = sshll.u32 %s1419_s19, 3  ;;  %vm492_vm0 = vcmask 1041408   ;;  %s870_s25 = scalar_lea.vmem %s2183_s4, %s1419_s19  ;;  %s1419_s19 = sphi %s1962_s19, %s262_s19   ;;  %v1415_v18 = vphi %v253_v18, %v2388_v18   ;;  %v1411_v20 = vphi %v254_v20, %v2387_v20   ;;  %v1407_v21 = vphi %v255_v21, %v2386_v21   ;;  %v1403_v17 = vphi %v256_v17, %v2385_v17  }
  0x85   : > { %2280 = vst [vmem:[#allocation106_spill] sm:$0xff] %v1407_v21  ;;  %v2284_v13 = vld [vmem:[#allocation38_spill] sm:$0xff]  ;;  %v2286_v8 = vld [vmem:[#allocation33_spill] sm:$0xff]  ;;  %v2288_v15 = vld [vmem:[#allocation40_spill] sm:$0xff]  ;;  %vm494_vm1 = vcmask 1045508   ;;  %vm496_vm2 = vcmask 1043456  }
  0x86   : > { %2281 = vst [vmem:[#allocation107_spill] sm:$0xff] %v1411_v20  ;;  %v1064_v16 = vor.u32 %v2284_v13, %v2283_v9  ;;  %v1068_v23 = vor.u32 %v2286_v8, %v2285_v12  ;;  %v1072_v17 = vor.u32 %v2288_v15, %v2287_v11  ;;  %v2289_v14 = vld [vmem:[#allocation39_spill] sm:$0xff]  ;;  %v2291_v1 = vld [vmem:[#allocation26_spill] sm:$0xff]  ;;  %v2293_v4 = vld [vmem:[#allocation29_spill] sm:$0xff]  ;;  %s270_s20 = scalar_lea.vmem [#allocation6], %s1277_s3  ;;  %s267_s0 = ssub.s32 7, %s1419_s19 }
  0x87   : > { %2282 = vst [vmem:[#allocation108_spill] sm:$0xff] %v1415_v18  ;;  %v2290_v10 = vld [vmem:[#allocation35_spill] sm:$0xff]  ;;  %v2292_v5 = vld [vmem:[#allocation30_spill] sm:$0xff]  ;;  %v2294_v0 = vld [vmem:[#allocation25_spill] sm:$0xff]  ;;  %s2121_s21 = sshll.u32 %s267_s0, 3  ;;  %s873_s28 = scalar_lea.vmem %s2184_s5, %s267_s0 }
  0x88   : > { %v1076_v21 = vor.u32 %v2290_v10, %v2289_v14  ;;  %433 = vmatpush.bf16.msra.mxu0 %v1064_v16  ;;  %446 = vmatpush.bf16.msra.mxu1 %v1068_v23  ;;  %v1048_v20 = vor.u32 %v2292_v5, %v2291_v1  ;;  %v1052_v18 = vor.u32 %v2294_v0, %v2293_v4  ;;  %v2295_v3 = vld [vmem:[#allocation28_spill] sm:$0xff]  ;;  %v2297_v6 = vld [vmem:[#allocation31_spill] sm:$0xff]  ;;  %v2303_v27 = vld [vmem:[#allocation22_spill] sm:$0xff]  ;;  %s502_s22 = scalar_lea.vmem [#allocation7], %s2121_s21  ;;  %s262_s19 = sadd.s32 1, %s1419_s19  }
  0x89   : > { %459 = vmatpush.bf16.msra.mxu2 %v1072_v17  ;;  %v2296_v7 = vld [vmem:[#allocation32_spill] sm:$0xff]  ;;  %v2298_v2 = vld [vmem:[#allocation27_spill] sm:$0xff]  ;;  %v1032_v16 = vor.u32 %v1596_v61, %v1588_v57  ;;  %v1036_v23 = vor.u32 %v1586_v56, %v1594_v60  ;;  %v1040_v17 = vor.u32 %v1600_v63, %v1592_v59  ;;  %v2304_v26 = vld [vmem:[#allocation21_spill] sm:$0xff]  ;;  %p259_p0 = scmp.ge.s32.totalorder %s262_s19, 8  }
  0x8a   : > { %472 = vmatpush.bf16.msra.mxu3 %v1076_v21  ;;  %v1056_v9 = vor.u32 %v2296_v7, %v2295_v3  ;;  %v1060_v8 = vor.u32 %v2298_v2, %v2297_v6  ;;  %v1044_v21 = vor.u32 %v1590_v58, %v1598_v62  ;;  %v2299_v25 = vld [vmem:[#allocation20_spill] sm:$0xff]  ;;  %v2301_v28 = vld [vmem:[#allocation23_spill] sm:$0xff]  ;;  %v2309_v4 = vld [vmem:[#allocation14_spill] sm:$0xff] }
  0x8b   : > { %v2300_v29 = vld [vmem:[#allocation24_spill] sm:$0xff]  ;;  %v2302_v24 = vld [vmem:[#allocation19_spill] sm:$0xff]  ;;  %v2310_v5 = vld [vmem:[#allocation18_spill] sm:$0xff] }
  0x8c   : > { %434 = vmatpush.bf16.msra.mxu0 %v1048_v20  ;;  %447 = vmatpush.bf16.msra.mxu1 %v1052_v18  ;;  %v1016_v20 = vor.u32 %v1580_v53, %v1572_v49  ;;  %v1020_v18 = vor.u32 %v1570_v48, %v1578_v52  ;;  %v2305_v0 = vld [vmem:[#allocation12_spill] sm:$0xff]  ;;  %v2308_v2 = vld [vmem:[#allocation11_spill] sm:$0xff]  ;;  %v2312_v6 = vld [vmem:[#allocation13_spill] sm:$0xff] }
  0x8d   : > { %460 = vmatpush.bf16.msra.mxu2 %v1056_v9  ;;  %v1024_v9 = vor.u32 %v1584_v55, %v1576_v51  ;;  %v2306_v1 = vld [vmem:[#allocation16_spill] sm:$0xff]  ;;  %v2313_v10 = vld [vmem:[#allocation98_spill] sm:$0xff]  ;;  %v2315_v12 = vld [vmem:[#allocation101_spill] sm:$0xff] }
  0x8e   : > { %473 = vmatpush.bf16.msra.mxu3 %v1060_v8  ;;  %v1028_v8 = vor.u32 %v1574_v50, %v1582_v54  ;;  %v2314_v22 = vld [vmem:[#allocation102_spill] sm:$0xff]  ;;  %v2317_v13 = vld [vmem:[#allocation100_spill] sm:$0xff]  ;;  %v2320_v14 = vld [vmem:[#allocation99_spill] sm:$0xff] }
  0x8f   : > { %v1194_v11 = vor.u32 %v2314_v22, %v2313_v10  ;;  %v2318_v19 = vld [vmem:[#allocation104_spill] sm:$0xff] }
  0x90   : > { %435 = vmatpush.bf16.msra.mxu0 %v1032_v16  ;;  %448 = vmatpush.bf16.msra.mxu1 %v1036_v23  ;;  %v1000_v16 = vor.u32 %v1564_v45, %v1556_v41  ;;  %v1004_v23 = vor.u32 %v1554_v40, %v1562_v44 }
  0x91   : > { %461 = vmatpush.bf16.msra.mxu2 %v1040_v17  ;;  %v1008_v17 = vor.u32 %v1568_v47, %v1560_v43 }
  0x92   : > { %474 = vmatpush.bf16.msra.mxu3 %v1044_v21  ;;  %v1012_v21 = vor.u32 %v1558_v42, %v1566_v46 }
  0x94   : > { %436 = vmatpush.bf16.msra.mxu0 %v1016_v20  ;;  %449 = vmatpush.bf16.msra.mxu1 %v1020_v18  ;;  %v984_v20 = vor.u32 %v1548_v37, %v1540_v33  ;;  %v988_v18 = vor.u32 %v1538_v32, %v1546_v36 }
  0x95   : > { %462 = vmatpush.bf16.msra.mxu2 %v1024_v9  ;;  %v992_v9 = vor.u32 %v1552_v39, %v1544_v35 }
  0x96   : > { %475 = vmatpush.bf16.msra.mxu3 %v1028_v8  ;;  %v996_v8 = vor.u32 %v1542_v34, %v1550_v38 }
  0x98   : > { %437 = vmatpush.bf16.msra.mxu0 %v1000_v16  ;;  %450 = vmatpush.bf16.msra.mxu1 %v1004_v23  ;;  %v968_v16 = vor.u32 %v2300_v29, %v2299_v25  ;;  %v972_v23 = vor.u32 %v2302_v24, %v2301_v28  ;;  %v503_v25 = vld [vmem:[%s502_s22] sm:$0xff] }
  0x99   : > { %463 = vmatpush.bf16.msra.mxu2 %v1008_v17  ;;  %v976_v17 = vor.u32 %v1536_v31, %v2303_v27 }
  0x9a   : > { %476 = vmatpush.bf16.msra.mxu3 %v1012_v21  ;;  %v980_v21 = vor.u32 %v2304_v26, %v1534_v30 }
  0x9c   : > { %438 = vmatpush.bf16.msra.mxu0 %v984_v20  ;;  %451 = vmatpush.bf16.msra.mxu1 %v988_v18  ;;  %v952_v20 = vor.u32 %v2306_v1, %v2305_v0  ;;  %v2307_v18 = vld [vmem:[#allocation15_spill] sm:$0xff]  ;;  %v1202_v0 = vor.u32 %v2318_v19, %v2317_v13  ;;  %v2326_v13 = vld [vmem:[#allocation92_spill] sm:$0xff] }
  0x9d   : > { %464 = vmatpush.bf16.msra.mxu2 %v992_v9  ;;  %v956_v3 = vor.u32 %v2308_v2, %v2307_v18  ;;  %v960_v9 = vor.u32 %v2310_v5, %v2309_v4  ;;  %v2319_v1 = vld [vmem:[#allocation103_spill] sm:$0xff]  ;;  %v2322_v5 = vld [vmem:[#allocation90_spill] sm:$0xff] }
  0x9e   : > { %477 = vmatpush.bf16.msra.mxu3 %v996_v8  ;;  %v2311_v8 = vld [vmem:[#allocation17_spill] sm:$0xff]  ;;  %v1206_v2 = vor.u32 %v2320_v14, %v2319_v1 }
  0x9f   : > { %v964_v7 = vor.u32 %v2312_v6, %v2311_v8  ;;  %v2323_v6 = vld [vmem:[#allocation94_spill] sm:$0xff]  ;;  %v2327_v8 = vld [vmem:[#allocation96_spill] sm:$0xff]  ;;  %v2333_v1 = vld [vmem:[#allocation81_spill] sm:$0xff] }
  0xa0   : > { %439 = vmatpush.bf16.msra.mxu0 %v968_v16  ;;  %452 = vmatpush.bf16.msra.mxu1 %v972_v23  ;;  %v2316_v16 = vld [vmem:[#allocation97_spill] sm:$0xff]  ;;  %v1178_v10 = vor.u32 %v2323_v6, %v2322_v5  ;;  %v1186_v14 = vor.u32 %v2327_v8, %v2326_v13  ;;  %v2336_v6 = vld [vmem:[#allocation87_spill] sm:$0xff]  ;;  %v2338_v13 = vld [vmem:[#allocation74_spill] sm:$0xff] }
  0xa1   : > { %465 = vmatpush.bf16.msra.mxu2 %v976_v17  ;;  %v1198_v23 = vor.u32 %v2316_v16, %v2315_v12  ;;  %v2321_v17 = vld [vmem:[#allocation108_spill] sm:$0xff]  ;;  %v2325_v12 = vld [vmem:[#allocation89_spill] sm:$0xff] }
  0xa2   : > { %478 = vmatpush.bf16.msra.mxu3 %v980_v21  ;;  %v272_v4 = vpack.c.bf16 %v2321_v17, %v2321_v17  ;;  %v2324_v21 = vld [vmem:[#allocation93_spill] sm:$0xff] }
  0xa3   : > { %v1182_v18 = vor.u32 %v2325_v12, %v2324_v21  ;;  %v2337_v21 = vld [vmem:[#allocation83_spill] sm:$0xff]  ;;  %v2341_v8 = vld [vmem:[#allocation73_spill] sm:$0xff] }
  0xa4   : > { %440 = vmatpush.bf16.msra.mxu0 %v952_v20  ;;  %453 = vmatpush.bf16.msra.mxu1 %v956_v3  ;;  %v2328_v20 = vld [vmem:[#allocation95_spill] sm:$0xff]  ;;  %v1174_v12 = vor.u32 %v2337_v21, %v2336_v6  ;;  %v2350_v21 = vld [vmem:[#allocation68_spill] sm:$0xff] }
  0xa5   : > { %466 = vmatpush.bf16.msra.mxu2 %v960_v9  ;;  %v2329_v3 = vld [vmem:[#allocation91_spill] sm:$0xff] }
  0xa6   : > { %479 = vmatpush.bf16.msra.mxu3 %v964_v7  ;;  %v1190_v16 = vor.u32 %v2329_v3, %v2328_v20  ;;  %v2330_v7 = vld [vmem:[#allocation82_spill] sm:$0xff]  ;;  %v2342_v3 = vld [vmem:[#allocation76_spill] sm:$0xff] }
  0xa7   : > { %454 = vmatmul.bf16.vlgmr.msra.gmra.mxu1 %v272_v4  ;;  %441 = vmatmul.bf16.vlgmr.msra.gmra.mxu0 %v272_v4 }
  0xa8   : > { %665 = vmatpush.bf16.msrb.mxu0 %v1194_v11  ;;  %678 = vmatpush.bf16.msrb.mxu1 %v1198_v23  ;;  %v2331_v11 = vld [vmem:[#allocation86_spill] sm:$0xff]  ;;  %v2332_v23 = vld [vmem:[#allocation85_spill] sm:$0xff] }
  0xa9   : > { %691 = vmatpush.bf16.msrb.mxu2 %v1202_v0  ;;  %480 = vmatmul.bf16.vlgmr.msra.gmra.mxu3 %v272_v4  ;;  %v1162_v9 = vor.u32 %v2331_v11, %v2330_v7  ;;  %v1166_v17 = vor.u32 %v2333_v1, %v2332_v23  ;;  %v2334_v0 = vld [vmem:[#allocation84_spill] sm:$0xff]  ;;  %v2345_v11 = vld [vmem:[#allocation75_spill] sm:$0xff]  ;;  %v2346_v1 = vld [vmem:[#allocation66_spill] sm:$0xff] }
  0xaa   : > { %704 = vmatpush.bf16.msrb.mxu3 %v1206_v2  ;;  %467 = vmatmul.bf16.vlgmr.msra.gmra.mxu2 %v272_v4  ;;  %v2335_v2 = vld [vmem:[#allocation88_spill] sm:$0xff]  ;;  %v2339_v4 = vld [vmem:[#allocation78_spill] sm:$0xff] }
  0xab   : > { %v1170_v5 = vor.u32 %v2335_v2, %v2334_v0  ;;  %v2343_v7 = vld [vmem:[#allocation80_spill] sm:$0xff]  ;;  %v2347_v0 = vld [vmem:[#allocation70_spill] sm:$0xff]  ;;  %v2349_v2 = vld [vmem:[#allocation65_spill] sm:$0xff] }
  0xac   : > { %666 = vmatpush.bf16.msrb.mxu0 %v1178_v10  ;;  %679 = vmatpush.bf16.msrb.mxu1 %v1182_v18  ;;  %v1146_v10 = vor.u32 %v2339_v4, %v2338_v13  ;;  %v2340_v18 = vld [vmem:[#allocation77_spill] sm:$0xff]  ;;  %v2351_v13 = vld [vmem:[#allocation72_spill] sm:$0xff]  ;;  %v2353_v4 = vld [vmem:[#allocation67_spill] sm:$0xff] }
  0xad   : > { %692 = vmatpush.bf16.msrb.mxu2 %v1186_v14  ;;  %v1150_v20 = vor.u32 %v2341_v8, %v2340_v18  ;;  %v1154_v14 = vor.u32 %v2343_v7, %v2342_v3  ;;  %v2354_v8 = vld [vmem:[#allocation58_spill] sm:$0xff]  ;;  %v2357_v7 = vld [vmem:[#allocation57_spill] sm:$0xff] }
  0xae   : > { %705 = vmatpush.bf16.msrb.mxu3 %v1190_v16  ;;  %v2344_v16 = vld [vmem:[#allocation79_spill] sm:$0xff]  ;;  %v2355_v3 = vld [vmem:[#allocation62_spill] sm:$0xff] }
  0xaf   : > { %v1158_v23 = vor.u32 %v2345_v11, %v2344_v16  ;;  %v2358_v11 = vld [vmem:[#allocation60_spill] sm:$0xff] }
  0xb0   : > { %667 = vmatpush.bf16.msrb.mxu0 %v1162_v9  ;;  %680 = vmatpush.bf16.msrb.mxu1 %v1166_v17  ;;  %v1130_v9 = vor.u32 %v2347_v0, %v2346_v1  ;;  %v2348_v17 = vld [vmem:[#allocation69_spill] sm:$0xff]  ;;  %v2359_v1 = vld [vmem:[#allocation64_spill] sm:$0xff]  ;;  %v2361_v0 = vld [vmem:[#allocation59_spill] sm:$0xff] }
  0xb1   : > { %693 = vmatpush.bf16.msrb.mxu2 %v1170_v5  ;;  %v1134_v6 = vor.u32 %v2349_v2, %v2348_v17  ;;  %v1138_v5 = vor.u32 %v2351_v13, %v2350_v21  ;;  %v2362_v2 = vld [vmem:[#allocation50_spill] sm:$0xff]  ;;  %v2365_v13 = vld [vmem:[#allocation49_spill] sm:$0xff] }
  0xb2   : > { %706 = vmatpush.bf16.msrb.mxu3 %v1174_v12  ;;  %v2352_v12 = vld [vmem:[#allocation71_spill] sm:$0xff]  ;;  %v2363_v21 = vld [vmem:[#allocation54_spill] sm:$0xff] }
  0xb3   : > { %v1142_v18 = vor.u32 %v2353_v4, %v2352_v12  ;;  %v2366_v4 = vld [vmem:[#allocation52_spill] sm:$0xff] }
  0xb4   : > { %668 = vmatpush.bf16.msrb.mxu0 %v1146_v10  ;;  %681 = vmatpush.bf16.msrb.mxu1 %v1150_v20  ;;  %v1114_v10 = vor.u32 %v2355_v3, %v2354_v8  ;;  %v2356_v20 = vld [vmem:[#allocation61_spill] sm:$0xff]  ;;  %v2367_v8 = vld [vmem:[#allocation56_spill] sm:$0xff]  ;;  %v2369_v3 = vld [vmem:[#allocation51_spill] sm:$0xff] }
  0xb5   : > { %694 = vmatpush.bf16.msrb.mxu2 %v1154_v14  ;;  %v1118_v16 = vor.u32 %v2357_v7, %v2356_v20  ;;  %v1122_v14 = vor.u32 %v2359_v1, %v2358_v11  ;;  %v2370_v7 = vld [vmem:[#allocation42_spill] sm:$0xff]  ;;  %v2373_v1 = vld [vmem:[#allocation41_spill] sm:$0xff] }
  0xb6   : > { %707 = vmatpush.bf16.msrb.mxu3 %v1158_v23  ;;  %v2360_v23 = vld [vmem:[#allocation63_spill] sm:$0xff]  ;;  %v2371_v11 = vld [vmem:[#allocation46_spill] sm:$0xff] }
  0xb7   : > { %v1126_v17 = vor.u32 %v2361_v0, %v2360_v23  ;;  %v2374_v0 = vld [vmem:[#allocation44_spill] sm:$0xff] }
  0xb8   : > { %669 = vmatpush.bf16.msrb.mxu0 %v1130_v9  ;;  %682 = vmatpush.bf16.msrb.mxu1 %v1134_v6  ;;  %v1098_v9 = vor.u32 %v2363_v21, %v2362_v2  ;;  %v2364_v6 = vld [vmem:[#allocation53_spill] sm:$0xff]  ;;  %v2376_v2 = vld [vmem:[#allocation47_spill] sm:$0xff] }
  0xb9   : > { %695 = vmatpush.bf16.msrb.mxu2 %v1138_v5  ;;  %v1102_v12 = vor.u32 %v2365_v13, %v2364_v6  ;;  %v1106_v5 = vor.u32 %v2367_v8, %v2366_v4  ;;  %v2377_v21 = vld [vmem:[#allocation43_spill] sm:$0xff] }
  0xba   : > { %708 = vmatpush.bf16.msrb.mxu3 %v1142_v18  ;;  %v2368_v18 = vld [vmem:[#allocation55_spill] sm:$0xff]  ;;  %v1094_v6 = vor.u32 %v2377_v21, %v2376_v2 }
  0xbb   : > { %v1110_v20 = vor.u32 %v2369_v3, %v2368_v18  ;;  %v2378_v13 = vld [vmem:[#allocation107_spill] sm:$0xff] }
  0xbc   : > { %670 = vmatpush.bf16.msrb.mxu0 %v1114_v10  ;;  %683 = vmatpush.bf16.msrb.mxu1 %v1118_v16  ;;  %v1082_v10 = vor.u32 %v2371_v11, %v2370_v7  ;;  %v2372_v16 = vld [vmem:[#allocation45_spill] sm:$0xff]  ;;  %v504_v4 = vpack.c.bf16 %v2378_v13, %v2378_v13  ;;  %v271_v11 = vld [vmem:[%s270_s20] sm:$0xff] }
  0xbd   : > { %696 = vmatpush.bf16.msrb.mxu2 %v1122_v14  ;;  %v1086_v23 = vor.u32 %v2373_v1, %v2372_v16  ;;  %v2375_v14 = vld [vmem:[#allocation48_spill] sm:$0xff] }
  0xbe   : > { %709 = vmatpush.bf16.msrb.mxu3 %v1126_v17  ;;  %v1090_v17 = vor.u32 %v2375_v14, %v2374_v0 }
  0xc0   : > { %671 = vmatpush.bf16.msrb.mxu0 %v1098_v9  ;;  %684 = vmatpush.bf16.msrb.mxu1 %v1102_v12 }
  0xc1   : > { %697 = vmatpush.bf16.msrb.mxu2 %v1106_v5 }
  0xc2   : > { %710 = vmatpush.bf16.msrb.mxu3 %v1110_v20 }
  0xc4   : > { %672 = vmatpush.bf16.msrb.mxu0 %v1082_v10  ;;  %685 = vmatpush.bf16.msrb.mxu1 %v1086_v23 }
  0xc5   : > { %698 = vmatpush.bf16.msrb.mxu2 %v1090_v17 }
  0xc6   : > { %711 = vmatpush.bf16.msrb.mxu3 %v1094_v6 }
  0xc7   : > { %673 = vmatmul.bf16.vlgmr.msrb.gmra.mxu0 %v504_v4  ;;  %686 = vmatmul.bf16.vlgmr.msrb.gmra.mxu1 %v504_v4 }
  0xc8   : > { %699 = vmatmul.bf16.vlgmr.msrb.gmra.mxu2 %v504_v4 }
  0xc9   : > { %712 = vmatmul.bf16.vlgmr.msrb.gmra.mxu3 %v504_v4 }
 0x124   : > { %v455_v9 = vpop.f32.mrf.mxu1  ;;  %v442_v12 = vpop.f32.mrf.mxu0 }
 0x125   : > { %v489_v8 = vrot.slane %v455_v9, 6 }
 0x127   : > { %v493_v7 = vsel %vm492_vm0, %v442_v12, %v489_v8 }
 0x12c   : > { %v481_v18 = vpop.f32.mrf.mxu3  ;;  %v457_v16 = vpop.f32.mrf.mxu1 }
 0x12d   : > { %v468_v5 = vpop.f32.mrf.mxu2  ;;  %v491_v20 = vrot.slane %v481_v18, 2  ;;  %v444_v1 = vpop.f32.mrf.mxu0 }
 0x12e   : > { %v490_v3 = vrot.slane %v468_v5, 4 }
 0x130   : > { %v495_v10 = vsel %vm494_vm1, %v490_v3, %v491_v20 }
 0x131   : > { %v497_v23 = vsel %vm496_vm2, %v493_v7, %v495_v10 }
 0x132   : > { %v499_v0 = vadd.f32 %v497_v23, %v271_v11 }
 0x134   : > { %v1207_v14 = vmul.f32 -1.442695, %v499_v0  ;;  %v749_v17 = vrot.slane %v499_v0, 2  ;;  %v773_v2 = vrot.slane %v499_v0, 6  ;;  %v483_v6 = vpop.f32.mrf.mxu3  ;;  %v770_v10 = vrot.slane %v499_v0, 4 }
 0x135   : > { %v470_v21 = vpop.f32.mrf.mxu2 }
 0x136   : > { %1323 = vpow2.f32 %v1207_v14  ;;  %v1208_v13 = vmul.f32 -1.442695, %v749_v17  ;;  %v1209_v4 = vmul.f32 -1.442695, %v773_v2 }
 0x138   : > { %1325 = vpow2.f32 %v1208_v13 }
 0x139   : > { %1327 = vpow2.f32 %v1209_v4 }
 0x13c   : > { %v1324_v9 = vpop.eup %1323 }
 0x13d   : > { %v732_v12 = vadd.f32 1.0, %v1324_v9 }
 0x13e   : > { %v1326_v8 = vpop.eup %1325 }
 0x13f   : > { %v1328_v5 = vpop.eup %1327  ;;  %1329 = vrcp.f32 %v732_v12  ;;  %v754_v18 = vadd.f32 1.0, %v1326_v8  ;;  %v744_v1 = vand.u32 2147483648, %v732_v12  ;;  %vm738_vm3 = vweird.f32 %v732_v12 }
 0x140   : > { %v2115_v3 = vadd.f32 1.0, %v1328_v5  ;;  %v742_v21 = vand.u32 2147483647, %v732_v12 }
 0x141   : > { %1331 = vrcp.f32 %v754_v18  ;;  %v745_v4 = vor.u32 1.1754944e-38, %v744_v1  ;;  %v766_v9 = vand.u32 2147483648, %v754_v18  ;;  %vm760_vm6 = vweird.f32 %v754_v18 }
 0x142   : > { %1333 = vrcp.f32 %v2115_v3  ;;  %vm743_vm8 = vcmp.eq.f32.partialorder %v742_v21, 8.507059e+37  ;;  %vm784_vm11 = vweird.f32 %v2115_v3 }
 0x143   : > { %1335 = vtanh.f32 %v770_v10 }
 0x144   : > { %v674_v20 = vpop.f32.mrf.mxu0  ;;  %v687_v7 = vpop.f32.mrf.mxu1 }
 0x145   : > { %v1330_v11 = vpop.eup %1329  ;;  %v721_v17 = vrot.slane %v687_v7, 6  ;;  %v764_v7 = vand.u32 2147483647, %v754_v18 }
 0x146   : > { %v734_v16 = vmul.f32 %v1330_v11, %v732_v12  ;;  %vm739_vm4 = vweird.f32 %v1330_v11 }
 0x147   : > { %v1332_v23 = vpop.eup %1331  ;;  %vm2127_vm5 = vmor %vm738_vm3, %vm739_vm4  ;;  %v724_v10 = vsel %vm492_vm0, %v674_v20, %v721_v17  ;;  %vm765_vm10 = vcmp.eq.f32.partialorder %v764_v7, 8.507059e+37 }
 0x148   : > { %v735_v14 = vsub.f32 1.0, %v734_v16  ;;  %v2123_v2 = vpop.eup %1333  ;;  %v756_v6 = vmul.f32 %v1332_v23, %v754_v18  ;;  %vm761_vm7 = vweird.f32 %v1332_v23 }
 0x149   : > { %v780_v0 = vmul.f32 %v2123_v2, %v2115_v3  ;;  %vm762_vm9 = vmor %vm760_vm6, %vm761_vm7  ;;  %v1336_v28 = vpop.eup %1335  ;;  %vm785_vm12 = vweird.f32 %v2123_v2 }
 0x14a   : > { %v736_v13 = vmul.f32 %v1330_v11, %v735_v14  ;;  %v757_v5 = vsub.f32 1.0, %v756_v6  ;;  %v767_v6 = vor.u32 1.1754944e-38, %v766_v9  ;;  %vm786_vm13 = vmor %vm784_vm11, %vm785_vm12 }
 0x14b   : > { %v700_v16 = vpop.f32.mrf.mxu2  ;;  %v781_v27 = vsub.f32 1.0, %v780_v0 }
 0x14c   : > { %v713_v15 = vpop.f32.mrf.mxu3  ;;  %v737_v12 = vadd.f32 %v1330_v11, %v736_v13  ;;  %v722_v14 = vrot.slane %v700_v16, 4  ;;  %v676_v19 = vpop.f32.mrf.mxu0  ;;  %v758_v24 = vmul.f32 %v1332_v23, %v757_v5  ;;  %v2381_v16 = vld [vmem:[#allocation106_spill] sm:$0xff] }
 0x14d   : > { %v723_v1 = vrot.slane %v713_v15, 2  ;;  %v689_v22 = vpop.f32.mrf.mxu1  ;;  %v782_v5 = vmul.f32 %v2123_v2, %v781_v27 }
 0x14e   : > { %v741_v26 = vsel %vm2127_vm5, %v1330_v11, %v737_v12  ;;  %v759_v20 = vadd.f32 %v1332_v23, %v758_v24 }
 0x14f   : > { %v725_v13 = vsel %vm494_vm1, %v722_v14, %v723_v1  ;;  %v746_v22 = vsel %vm743_vm8, %v745_v4, %v741_v26  ;;  %v783_v27 = vadd.f32 %v2123_v2, %v782_v5  ;;  %v788_v4 = vand.u32 2147483647, %v2115_v3 }
 0x150   : > { %v726_v19 = vsel %vm496_vm2, %v724_v10, %v725_v13  ;;  %v763_v17 = vsel %vm762_vm9, %v1332_v23, %v759_v20  ;;  %v795_v12 = vmul.f32 %v1336_v28, %v746_v22 }
 0x151   : > { %v728_v15 = vadd.f32 %v726_v19, %v503_v25  ;;  %v768_v21 = vsel %vm765_vm10, %v767_v6, %v763_v17  ;;  %v790_v25 = vand.u32 2147483648, %v2115_v3  ;;  %v787_v7 = vsel %vm786_vm13, %v2123_v2, %v783_v27 }
 0x152   : > { %v794_v18 = vmul.f32 %v2381_v16, %v768_v21  ;;  %vm789_vm14 = vcmp.eq.f32.partialorder %v788_v4, 8.507059e+37 }
 0x153   : > { %v1210_v8 = vmul.f32 -1.442695, %v728_v15  ;;  %v819_v11 = vrot.slane %v728_v15, 2  ;;  %v843_v9 = vrot.slane %v728_v15, 6  ;;  %v702_v0 = vpop.f32.mrf.mxu2  ;;  %v791_v28 = vor.u32 1.1754944e-38, %v790_v25 }
 0x154   : > { %v715_v29 = vpop.f32.mrf.mxu3  ;;  %v2144_v21 = vadd.f32 %v795_v12, %v794_v18  }
 0x155   : > { %1337 = vpow2.f32 %v1210_v8  ;;  %v1211_v24 = vmul.f32 -1.442695, %v819_v11  ;;  %v1212_v23 = vmul.f32 -1.442695, %v843_v9  ;;  %v792_v6 = vsel %vm789_vm14, %v791_v28, %v787_v7 }
 0x156   : > { %v2382_v26 = vmov %v2144_v21  ;;  %v840_v8 = vrot.slane %v728_v15, 4 }
 0x157   : > { %1339 = vpow2.f32 %v1211_v24  ;;  %877 = vst [vmem:[#allocation4] sm:$0x3] (%p259_p0), %v2382_v26 }
 0x158   : > { %1341 = vtanh.f32 %v2382_v26 }
 0x159   : > { %1343 = vpow2.f32 %v1212_v23 }
 0x15b   : > { %v1338_v29 = vpop.eup %1337 }
 0x15c   : > { %v802_v10 = vadd.f32 1.0, %v1338_v29 }
 0x15d   : > { %v1340_v14 = vpop.eup %1339 }
 0x15e   : > { %v1342_v1 = vpop.eup %1341  ;;  %1345 = vrcp.f32 %v802_v10  ;;  %v824_v3 = vadd.f32 1.0, %v1340_v14  ;;  %v814_v12 = vand.u32 2147483648, %v802_v10  ;;  %v812_v0 = vand.u32 2147483647, %v802_v10 }
 0x15f   : > { %v1344_v13 = vpop.eup %1343  ;;  %v2150_v18 = vmul.f32 %v1342_v1, %v792_v6   ;;  %vm808_vm0 = vweird.f32 %v802_v10 }
 0x160   : > { %v848_v20 = vadd.f32 1.0, %v1344_v13  ;;  %1347 = vrcp.f32 %v824_v3  ;;  %v836_v23 = vand.u32 2147483648, %v824_v3  ;;  %v834_v4 = vand.u32 2147483647, %v824_v3 }
 0x161   : > { %v2383_v19 = vmov %v2150_v18  ;;  %v815_v29 = vor.u32 1.1754944e-38, %v814_v12  ;;  %vm813_vm3 = vcmp.eq.f32.partialorder %v812_v0, 8.507059e+37  ;;  %vm830_vm4 = vweird.f32 %v824_v3 }
 0x162   : > { %v869_v22 = vpack.c.bf16 %v2383_v19, %v2383_v19  ;;  %1349 = vrcp.f32 %v848_v20  ;;  %v837_v1 = vor.u32 1.1754944e-38, %v836_v23  ;;  %vm835_vm6 = vcmp.eq.f32.partialorder %v834_v4, 8.507059e+37  ;;  %875 = vst [vmem:[#allocation2] sm:$0x3] (%p259_p0), %v2383_v19 }
 0x163   : > { %1351 = vtanh.f32 %v840_v8  ;;  %vm854_vm8 = vweird.f32 %v848_v20  ;;  %v858_v12 = vand.u32 2147483647, %v848_v20 }
 0x164   : > { %871 = vst [vmem:[%s870_s25] sm:$0x1] %v869_v22  ;;  %v1346_v2 = vpop.eup %1345 }
 0x165   : > { %v804_v17 = vmul.f32 %v1346_v2, %v802_v10  ;;  %vm809_vm15 = vweird.f32 %v1346_v2  ;;  %vm859_vm10 = vcmp.eq.f32.partialorder %v858_v12, 8.507059e+37 }
 0x166   : > { %v1348_v21 = vpop.eup %1347  ;;  %vm810_vm1 = vmor %vm808_vm0, %vm809_vm15 }
 0x167   : > { %v805_v5 = vsub.f32 1.0, %v804_v17  ;;  %v826_v16 = vmul.f32 %v1348_v21, %v824_v3  ;;  %vm831_vm2 = vweird.f32 %v1348_v21  ;;  %v2384_v17 = vld [vmem:[#allocation105_spill] sm:$0xff] }
 0x168   : > { %v1350_v11 = vpop.eup %1349  ;;  %vm832_vm5 = vmor %vm830_vm4, %vm831_vm2 }
 0x169   : > { %v806_v18 = vmul.f32 %v1346_v2, %v805_v5  ;;  %v850_v9 = vmul.f32 %v1350_v11, %v848_v20  ;;  %v827_v24 = vsub.f32 1.0, %v826_v16  ;;  %v1352_v13 = vpop.eup %1351  ;;  %vm855_vm7 = vweird.f32 %v1350_v11 }
 0x16a   : > { %vm856_vm9 = vmor %vm854_vm8, %vm855_vm7 }
 0x16b   : > { %v807_v25 = vadd.f32 %v1346_v2, %v806_v18  ;;  %v828_v27 = vmul.f32 %v1348_v21, %v827_v24  ;;  %v851_v7 = vsub.f32 1.0, %v850_v9 }
 0x16d   : > { %v811_v28 = vsel %vm810_vm1, %v1346_v2, %v807_v25  ;;  %v829_v15 = vadd.f32 %v1348_v21, %v828_v27  ;;  %v852_v10 = vmul.f32 %v1350_v11, %v851_v7  ;;  %v860_v2 = vand.u32 2147483648, %v848_v20 }
 0x16e   : > { %v816_v14 = vsel %vm813_vm3, %v815_v29, %v811_v28 }
 0x16f   : > { %v833_v6 = vsel %vm832_vm5, %v1348_v21, %v829_v15  ;;  %v865_v8 = vmul.f32 %v1352_v13, %v816_v14  ;;  %v853_v18 = vadd.f32 %v1350_v11, %v852_v10  ;;  %v861_v9 = vor.u32 1.1754944e-38, %v860_v2 }
 0x170   : > { %v838_v22 = vsel %vm835_vm6, %v837_v1, %v833_v6 }
 0x171   : > { %v864_v5 = vmul.f32 %v2384_v17, %v838_v22  ;;  %v857_v3 = vsel %vm856_vm9, %v1350_v11, %v853_v18  ;;  %v2388_v18 = vmov %v2383_v19 }
 0x172   : > { %v862_v0 = vsel %vm859_vm10, %v861_v9, %v857_v3 }
 0x173   : > { %v866_v16 = vadd.f32 %v865_v8, %v864_v5  }
 0x175   : > { %1353 = vtanh.f32 %v866_v16  ;;  %v2385_v17 = vmov %v866_v16  ;;  %878 = vst [vmem:[#allocation5] sm:$0x3] (%p259_p0), %v866_v16 }
 0x17b   : > { %v1354_v21 = vpop.eup %1353 }
 0x17c   : > { %v868_v24 = vmul.f32 %v1354_v21, %v862_v0   ;;  %v2386_v21 = vmov %v2382_v26  ;;  %261 = sbr.rel (!%p259_p0) target bundleno = 132 (0x84), region = 152 }
 0x17e   : > { %v872_v25 = vpack.c.bf16 %v868_v24, %v868_v24  ;;  %v2387_v20 = vmov %v868_v24  ;;  %876 = vst [vmem:[#allocation3] sm:$0x3] (%p259_p0), %v868_v24 }
 0x180   : > { %874 = vst [vmem:[%s873_s28] sm:$0x1] %v872_v25 }
 0x181   :  { %899 = vsyncpa [#allocation9], 1 }

// kernel: ema_reconstruction_forward.13
= control target key start
LH: loop header
LB: loop body
LE: loop exit
PB: predicated region body
PF: predicated region fallthrough
CT: control target
= control target key end

     0   :  { %16 = vsyncpa [#allocation3], 0  ;;  %s1111_s0 = inlined_call_operand.vmem [shape: bf16[16,128], index: 0, kind: input, shape index: {}]   ;;  %s1112_s1 = inlined_call_operand.vmem [shape: bf16[16,128], index: 1, kind: input, shape index: {}]   ;;  %s1113_s2 = inlined_call_operand.vmem [shape: bf16[16,128], index: 2, kind: input, shape index: {}]   ;;  %s1114_s3 = inlined_call_operand.hbm [shape: bf16[128,128], index: 3, kind: input, shape index: {}]   ;;  %s1115_s4 = inlined_call_operand.hbm [shape: bf16[128,128], index: 4, kind: input, shape index: {}]   ;;  %s1116_s5 = inlined_call_operand.vmem [shape: bf16[128,128], index: 5, kind: input, shape index: {}]   ;;  %s1117_s6 = inlined_call_operand.hbm [shape: f32[1,128], index: 6, kind: input, shape index: {}]   ;;  %s1118_s7 = inlined_call_operand.hbm [shape: bf16[64,32], index: 7, kind: input, shape index: {}]   ;;  %s1119_s8 = inlined_call_operand.hbm [shape: f32[1,32], index: 8, kind: input, shape index: {}]   ;;  %s1120_s9 = inlined_call_operand.hbm [shape: bf16[16,128], index: 9, kind: input, shape index: {}]   ;;  %s1121_s10 = inlined_call_operand.hbm [shape: f32[1,128], index: 10, kind: input, shape index: {}]   ;;  %s1122_s11 = inlined_call_operand.vmem [shape: f32[16,128], index: 11, kind: output, shape index: {}]  }
   0x1   :  { %17 = vsyncpa [#allocation5], 0 }
   0x2   :  { %18 = vsyncpa [#allocation8], 0 }
   0x3   :  { %19 = vsyncpa [#allocation11], 0  ;;  %s43_s19 = sshll.u32 %s1115_s4, 4  ;;  %s971_s20 = smov [#allocation4]   ;;  %s44_s19 = int_to_ptr.hbm [resolvable:$true] %s43_s19 }
   0x4   :  { %s45_s21 = sshll.u32 %s971_s20, 4  ;;  %s69_s24 = sshll.u32 %s1118_s7, 4  ;;  %s46_s21 = int_to_ptr.vmem [resolvable:$true] %s45_s21  ;;  %s70_s24 = int_to_ptr.hbm [resolvable:$true] %s69_s24 }
   0x5   :  { %s972_s25 = smov 64   ;;  %s973_s26 = smov 4  }
   0x6   :  { %51 = dma.hbm_to_vmem [thread:$0]  %s44_s19, 1024, %s46_s21, [#allocation5], %s972_s25, %s972_s25, %s973_s26  }
   0x7   :  { %s974_s27 = smov [#allocation7]   ;;  %s93_s4 = sshll.u32 %s1120_s9, 4  ;;  %s94_s4 = int_to_ptr.hbm [resolvable:$true] %s93_s4 }
   0x8   :  { %s71_s28 = sshll.u32 %s974_s27, 4  ;;  %s30_s7 = sshll.u32 %s1114_s3, 4  ;;  %s72_s28 = int_to_ptr.vmem [resolvable:$true] %s71_s28  ;;  %s31_s7 = int_to_ptr.hbm [resolvable:$true] %s30_s7 }
   0x9   :  { %77 = dma.hbm_to_vmem [thread:$0]  %s70_s24, 512, %s72_s28, [#allocation8], %s972_s25, %s972_s25, %s973_s26  }
   0xa   :  { %s975_s14 = smov [#allocation10]   ;;  %s976_s16 = smov [#allocation2]  }
   0xb   :  { %s95_s15 = sshll.u32 %s975_s14, 4  ;;  %s32_s17 = sshll.u32 %s976_s16, 4  ;;  %s96_s15 = int_to_ptr.vmem [resolvable:$true] %s95_s15  ;;  %s33_s17 = int_to_ptr.vmem [resolvable:$true] %s32_s17 }
   0xc   :  { %101 = dma.hbm_to_vmem [thread:$0]  %s94_s4, 128, %s96_s15, [#allocation11], %s972_s25, %s972_s25, %s973_s26  }
   0xd   :  { %s59_s19 = sshll.u32 %s1117_s6, 4  ;;  %s83_s21 = sshll.u32 %s1119_s8, 4  ;;  %s60_s19 = int_to_ptr.hbm [resolvable:$true] %s59_s19  ;;  %s84_s21 = int_to_ptr.hbm [resolvable:$true] %s83_s21 }
   0xe   :  { %38 = dma.hbm_to_vmem [thread:$0]  %s31_s7, 1024, %s33_s17, [#allocation3], %s972_s25, %s972_s25, %s973_s26  }
   0xf   :  { %s977_s22 = smov [#allocation6]   ;;  %s978_s24 = smov [#allocation9]  }
  0x10   :  { %s61_s23 = sshll.u32 %s977_s22, 4  ;;  %s85_s27 = sshll.u32 %s978_s24, 4  ;;  %s62_s23 = int_to_ptr.vmem [resolvable:$true] %s61_s23  ;;  %s86_s27 = int_to_ptr.vmem [resolvable:$true] %s85_s27 }
  0x11   :  { %64 = dma.hbm_to_vmem [thread:$0]  %s60_s19, 16, %s62_s23, [#allocation5]  }
  0x12   :  { %s107_s6 = sshll.u32 %s1121_s10, 4  ;;  %s979_s30 = smov [#allocation12]   ;;  %s108_s6 = int_to_ptr.hbm [resolvable:$true] %s107_s6 }
  0x13   :  { %88 = dma.hbm_to_vmem [thread:$0]  %s84_s21, 16, %s86_s27, [#allocation8]  }
  0x14   :  { %s109_s26 = sshll.u32 %s979_s30, 4  ;;  %s110_s26 = int_to_ptr.vmem [resolvable:$true] %s109_s26 }
  0x15   :  { %112 = dma.hbm_to_vmem [thread:$0]  %s108_s6, 16, %s110_s26, [#allocation11]  }
  0x16   :  { %963 = dma.done.wait [#allocation3], 1024  }
  0x17   :  { %964 = vsyncadd [#allocation3], 4294966272 }
  0x18   :  { %965 = dma.done.wait [#allocation5], 1040  }
  0x19   :  { %966 = vsyncadd [#allocation5], 4294966256 }
  0x1a   :  { %967 = dma.done.wait [#allocation8], 528  }
  0x1b   :  { %968 = vsyncadd [#allocation8], 4294966768 }
  0x1c   :  { %969 = dma.done.wait [#allocation11], 144  }
  0x1d   :  { %970 = vsyncadd [#allocation11], 4294967152  ;;  %v751_v0 = vld [vmem:[#allocation4 + $0x38] sm:$0xff]  ;;  %v750_v3 = vld [vmem:[#allocation4 + $0x30] sm:$0xff]  ;;  %vm493_vm8 = vcmask 523264  }
  0x1e   :  { %v742_v1 = vld [vmem:[#allocation2 + $0x38] sm:$0xff]  ;;  %232 = vmatpush.bf16.msra.mxu0 %v751_v0  ;;  %v741_v4 = vld [vmem:[#allocation2 + $0x30] sm:$0xff]  ;;  %v749_v6 = vld [vmem:[#allocation4 + $0x28] sm:$0xff] }
  0x1f   :  { %v760_v2 = vld [vmem:[%s1116_s5 + $0x38] sm:$0xff]  ;;  %300 = vmatpush.bf16.msra.mxu1 %v742_v1  ;;  %v759_v5 = vld [vmem:[%s1116_s5 + $0x30] sm:$0xff]  ;;  %v740_v7 = vld [vmem:[#allocation2 + $0x28] sm:$0xff] }
  0x20   :  { %386 = vmatpush.bf16.msra.mxu2 %v760_v2  ;;  %v758_v8 = vld [vmem:[%s1116_s5 + $0x28] sm:$0xff]  ;;  %v748_v9 = vld [vmem:[#allocation4 + $0x20] sm:$0xff]  ;;  %v747_v12 = vld [vmem:[#allocation4 + $0x18] sm:$0xff] }
  0x21   :  { %v739_v10 = vld [vmem:[#allocation2 + $0x20] sm:$0xff]  ;;  %v738_v13 = vld [vmem:[#allocation2 + $0x18] sm:$0xff]  ;;  %v746_v15 = vld [vmem:[#allocation4 + $0x10] sm:$0xff] }
  0x22   :  { %233 = vmatpush.bf16.msra.mxu0 %v750_v3  ;;  %v757_v11 = vld [vmem:[%s1116_s5 + $0x20] sm:$0xff]  ;;  %v756_v14 = vld [vmem:[%s1116_s5 + $0x18] sm:$0xff]  ;;  %v737_v16 = vld [vmem:[#allocation2 + $0x10] sm:$0xff] }
  0x23   :  { %301 = vmatpush.bf16.msra.mxu1 %v741_v4  ;;  %v755_v17 = vld [vmem:[%s1116_s5 + $0x10] sm:$0xff]  ;;  %v745_v18 = vld [vmem:[#allocation4 + $0x8] sm:$0xff]  ;;  %v744_v21 = vld [vmem:[#allocation4] sm:$0xff] }
  0x24   :  { %387 = vmatpush.bf16.msra.mxu2 %v759_v5  ;;  %v736_v19 = vld [vmem:[#allocation2 + $0x8] sm:$0xff]  ;;  %v735_v22 = vld [vmem:[#allocation2] sm:$0xff]  ;;  %v763_v3 = vld [vmem:[#allocation7 + $0x10] sm:$0xff] }
  0x25   :  { %v754_v20 = vld [vmem:[%s1116_s5 + $0x8] sm:$0xff]  ;;  %v753_v23 = vld [vmem:[%s1116_s5] sm:$0xff] }
  0x26   :  { %234 = vmatpush.bf16.msra.mxu0 %v749_v6  ;;  %v743_v24 = vld [vmem:[%s1112_s1] sm:$0xff]  ;;  %v762_v4 = vld [vmem:[#allocation7 + $0x8] sm:$0xff] }
  0x27   :  { %302 = vmatpush.bf16.msra.mxu1 %v740_v7  ;;  %v734_v25 = vld [vmem:[%s1111_s0] sm:$0xff]  ;;  %s980_s0 = smov 112  }
  0x28   :  { %388 = vmatpush.bf16.msra.mxu2 %v758_v8  ;;  %v752_v26 = vld [vmem:[%s1113_s2] sm:$0xff] }
  0x29   :  { %v776_v30 = vld [vmem:[#allocation6] ss:$0 sm:$0xff]  ;;  %v761_v5 = vld [vmem:[#allocation7] sm:$0xff] }
  0x2a   :  { %235 = vmatpush.bf16.msra.mxu0 %v748_v9  ;;  %v764_v40 = vld [vmem:[#allocation7 + $0x18] sm:$0xff] }
  0x2b   :  { %303 = vmatpush.bf16.msra.mxu1 %v739_v10  ;;  %501 = vmatpush.bf16.msra.mxu3 %v764_v40 }
  0x2c   :  { %389 = vmatpush.bf16.msra.mxu2 %v757_v11  ;;  %v777_v11 = vld [vmem:[#allocation9] ss:$0 sm:$0xff] }
  0x2e   :  { %236 = vmatpush.bf16.msra.mxu0 %v747_v12 }
  0x2f   :  { %304 = vmatpush.bf16.msra.mxu1 %v738_v13  ;;  %502 = vmatpush.bf16.msra.mxu3 %v763_v3 }
  0x30   :  { %390 = vmatpush.bf16.msra.mxu2 %v756_v14 }
  0x32   :  { %237 = vmatpush.bf16.msra.mxu0 %v746_v15  ;;  %v765_v15 = vld [vmem:[#allocation10] sm:$0xff] }
  0x33   :  { %305 = vmatpush.bf16.msra.mxu1 %v737_v16  ;;  %503 = vmatpush.bf16.msra.mxu3 %v762_v4 }
  0x34   :  { %391 = vmatpush.bf16.msra.mxu2 %v755_v17 }
  0x36   :  { %238 = vmatpush.bf16.msra.mxu0 %v745_v18 }
  0x37   :  { %306 = vmatpush.bf16.msra.mxu1 %v736_v19  ;;  %504 = vmatpush.bf16.msra.mxu3 %v761_v5 }
  0x38   :  { %392 = vmatpush.bf16.msra.mxu2 %v754_v20 }
  0x3a   :  { %239 = vmatpush.bf16.msra.mxu0 %v744_v21 }
  0x3b   :  { %307 = vmatpush.bf16.msra.mxu1 %v735_v22  ;;  %583 = vmatpush.bf16.msrb.mxu3 %v765_v15 }
  0x3c   :  { %393 = vmatpush.bf16.msra.mxu2 %v753_v23 }
  0x3d   :  { %240 = vmatmul.bf16.vlgmr.msra.gmra.mxu0 %v743_v24 }
  0x3e   :  { %308 = vmatmul.bf16.vlgmr.msra.gmra.mxu1 %v734_v25 }
  0x3f   :  { %394 = vmatmul.bf16.vlgmr.msra.gmra.mxu2 %v752_v26 }
  0xba   :  { %v241_v27 = vpop.f32.mrf.mxu0 }
  0xbb   :  { %v309_v28 = vpop.f32.mrf.mxu1 }
  0xbc   :  { %v310_v29 = vadd.f32 %v309_v28, %v241_v27 }
  0xc2   :  { %v395_v31 = vpop.f32.mrf.mxu2  ;;  %v243_v34 = vpop.f32.mrf.mxu0 }
  0xc3   :  { %v400_v32 = vadd.f32 %v395_v31, %v310_v29  ;;  %v311_v35 = vpop.f32.mrf.mxu1 }
  0xc4   :  { %v312_v37 = vadd.f32 %v311_v35, %v243_v34 }
  0xc5   :  { %v406_v33 = vadd.f32 %v776_v30, %v400_v32 }
  0xc7   :  { %v708_v36 = vmul.f32 -1.442695, %v406_v33 }
  0xc9   :  { %779 = vpow2.f32 %v708_v36 }
  0xca   :  { %v397_v38 = vpop.f32.mrf.mxu2 }
  0xcb   :  { %v401_v39 = vadd.f32 %v397_v38, %v312_v37 }
  0xcd   :  { %v407_v41 = vadd.f32 %v776_v30, %v401_v39 }
  0xcf   :  { %v780_v42 = vpop.eup %779  ;;  %v709_v43 = vmul.f32 -1.442695, %v407_v41 }
  0xd0   :  { %v414_v44 = vadd.f32 1.0, %v780_v42 }
  0xd1   :  { %781 = vpow2.f32 %v709_v43 }
  0xd2   :  { %783 = vrcp.f32 %v414_v44  ;;  %v427_v50 = vand.u32 2147483648, %v414_v44  ;;  %v425_v52 = vand.u32 2147483647, %v414_v44  ;;  %vm421_vm1 = vweird.f32 %v414_v44 }
  0xd4   :  { %v428_v55 = vor.u32 1.1754944e-38, %v427_v50  ;;  %vm426_vm3 = vcmp.eq.f32.partialorder %v425_v52, 8.507059e+37 }
  0xd7   :  { %v782_v45 = vpop.eup %781 }
  0xd8   :  { %v784_v46 = vpop.eup %783  ;;  %v415_v47 = vadd.f32 1.0, %v782_v45 }
  0xd9   :  { %v417_v48 = vmul.f32 %v784_v46, %v414_v44  ;;  %vm422_vm0 = vweird.f32 %v784_v46 }
  0xda   :  { %785 = vrcp.f32 %v415_v47  ;;  %vm423_vm2 = vmor %vm421_vm1, %vm422_vm0  ;;  %v442_v60 = vand.u32 2147483648, %v415_v47  ;;  %v440_v62 = vand.u32 2147483647, %v415_v47  ;;  %vm436_vm5 = vweird.f32 %v415_v47 }
  0xdb   :  { %v418_v49 = vsub.f32 1.0, %v417_v48  ;;  %vm572_vm1 = vcmask 130048   ;;  %v778_v48 = vld [vmem:[#allocation12] ss:$0 sm:$0xff] }
  0xdc   :  { %v443_v0 = vor.u32 1.1754944e-38, %v442_v60  ;;  %vm441_vm7 = vcmp.eq.f32.partialorder %v440_v62, 8.507059e+37 }
  0xdd   :  { %v419_v51 = vmul.f32 %v784_v46, %v418_v49 }
  0xdf   :  { %v420_v53 = vadd.f32 %v784_v46, %v419_v51 }
  0xe0   :  { %v786_v54 = vpop.eup %785 }
  0xe1   :  { %v424_v56 = vsel %vm423_vm2, %v784_v46, %v420_v53  ;;  %v432_v57 = vmul.f32 %v786_v54, %v415_v47  ;;  %vm437_vm4 = vweird.f32 %v786_v54 }
  0xe2   :  { %v429_v58 = vsel %vm426_vm3, %v428_v55, %v424_v56  ;;  %vm438_vm6 = vmor %vm436_vm5, %vm437_vm4 }
  0xe3   :  { %448 = vrot.lane.b32.xlu0 %v429_v58, %s972_s25  ;;  %v433_v59 = vsub.f32 1.0, %v432_v57 }
  0xe5   :  { %v434_v61 = vmul.f32 %v786_v54, %v433_v59 }
  0xe7   :  { %v435_v63 = vadd.f32 %v786_v54, %v434_v61 }
  0xe9   :  { %v439_v1 = vsel %vm438_vm6, %v786_v54, %v435_v63 }
  0xea   :  { %v444_v2 = vsel %vm441_vm7, %v443_v0, %v439_v1 }
  0xeb   :  { %450 = vrot.lane.b32.xlu0 %v444_v2, %s972_s25 }
 0x155   :  { %v449_v6 = vpop.permute.xlu0 %448 }
 0x156   :  { %v454_v8 = vmul.f32 %v449_v6, %v406_v33 }
 0x15d   :  { %v451_v7 = vpop.permute.xlu0 %450 }
 0x15e   :  { %v455_v9 = vmul.f32 %v451_v7, %v407_v41 }
 0x160   :  { %v456_v10 = vpack.c.bf16 %v455_v9, %v454_v8 }
 0x162   :  { %726 = vmatmul.msk.bf16.vlgmr.msra.gmra.mxu3 %vm493_vm8, %v456_v10 }
 0x1e5   :  { %v506_v12 = vpop.f32.mrf.mxu3 }
 0x1e6   :  { %v507_v13 = vadd.f32 %v777_v11, %v506_v12 }
 0x1e8   :  { %v727_v14 = vmul.f32 -1.442695, %v507_v13 }
 0x1ea   :  { %787 = vpow2.f32 %v727_v14 }
 0x1ed   :  { %v508_v16 = vpop.f32.mrf.mxu3 }
 0x1ee   :  { %v509_v17 = vadd.f32 %v777_v11, %v508_v16 }
 0x1f0   :  { %v788_v18 = vpop.eup %787  ;;  %v728_v19 = vmul.f32 -1.442695, %v509_v17 }
 0x1f1   :  { %v517_v20 = vadd.f32 1.0, %v788_v18 }
 0x1f2   :  { %789 = vpow2.f32 %v728_v19 }
 0x1f3   :  { %791 = vrcp.f32 %v517_v20  ;;  %v530_v26 = vand.u32 2147483648, %v517_v20  ;;  %v528_v28 = vand.u32 2147483647, %v517_v20  ;;  %vm524_vm10 = vweird.f32 %v517_v20 }
 0x1f5   :  { %v531_v31 = vor.u32 1.1754944e-38, %v530_v26  ;;  %vm529_vm12 = vcmp.eq.f32.partialorder %v528_v28, 8.507059e+37 }
 0x1f8   :  { %v790_v21 = vpop.eup %789 }
 0x1f9   :  { %v792_v22 = vpop.eup %791  ;;  %v518_v23 = vadd.f32 1.0, %v790_v21 }
 0x1fa   :  { %v520_v24 = vmul.f32 %v792_v22, %v517_v20  ;;  %vm525_vm9 = vweird.f32 %v792_v22 }
 0x1fb   :  { %793 = vrcp.f32 %v518_v23  ;;  %vm526_vm11 = vmor %vm524_vm10, %vm525_vm9  ;;  %v545_v36 = vand.u32 2147483648, %v518_v23  ;;  %v543_v38 = vand.u32 2147483647, %v518_v23  ;;  %vm539_vm14 = vweird.f32 %v518_v23 }
 0x1fc   :  { %v521_v25 = vsub.f32 1.0, %v520_v24 }
 0x1fd   :  { %v546_v40 = vor.u32 1.1754944e-38, %v545_v36  ;;  %vm544_vm0 = vcmp.eq.f32.partialorder %v543_v38, 8.507059e+37 }
 0x1fe   :  { %v522_v27 = vmul.f32 %v792_v22, %v521_v25 }
 0x200   :  { %v523_v29 = vadd.f32 %v792_v22, %v522_v27 }
 0x201   :  { %v794_v30 = vpop.eup %793 }
 0x202   :  { %v527_v32 = vsel %vm526_vm11, %v792_v22, %v523_v29  ;;  %v535_v33 = vmul.f32 %v794_v30, %v518_v23  ;;  %vm540_vm13 = vweird.f32 %v794_v30 }
 0x203   :  { %v532_v34 = vsel %vm529_vm12, %v531_v31, %v527_v32  ;;  %vm541_vm15 = vmor %vm539_vm14, %vm540_vm13 }
 0x204   :  { %551 = vrot.lane.b32.xlu1 %v532_v34, %s980_s0  ;;  %v536_v35 = vsub.f32 1.0, %v535_v33 }
 0x206   :  { %v537_v37 = vmul.f32 %v794_v30, %v536_v35 }
 0x208   :  { %v538_v39 = vadd.f32 %v794_v30, %v537_v37 }
 0x20a   :  { %v542_v41 = vsel %vm541_vm15, %v794_v30, %v538_v39 }
 0x20b   :  { %v547_v42 = vsel %vm544_vm0, %v546_v40, %v542_v41 }
 0x20c   :  { %553 = vrot.lane.b32.xlu1 %v547_v42, %s980_s0 }
 0x276   :  { %v552_v43 = vpop.permute.xlu1 %551 }
 0x277   :  { %v557_v45 = vmul.f32 %v552_v43, %v507_v13 }
 0x27e   :  { %v554_v44 = vpop.permute.xlu1 %553 }
 0x27f   :  { %v558_v46 = vmul.f32 %v554_v44, %v509_v17 }
 0x281   :  { %v559_v47 = vpack.c.bf16 %v558_v46, %v557_v45 }
 0x283   :  { %733 = vmatmul.msk.bf16.vlgmr.msrb.gmra.mxu3 %vm572_vm1, %v559_v47 }
 0x306   :  { %v585_v49 = vpop.f32.mrf.mxu3 }
 0x307   :  { %v586_v50 = vadd.f32 %v778_v48, %v585_v49 }
 0x309   :  { %590 = vst [vmem:[%s1122_s11] sm:$0xff] %v586_v50 }
 0x30e   :  { %v587_v51 = vpop.f32.mrf.mxu3 }
 0x30f   :  { %v588_v52 = vadd.f32 %v778_v48, %v587_v51 }
 0x311   :  { %591 = vst [vmem:[%s1122_s11 + $0x8] sm:$0xff] %v588_v52 }
 0x312   :  { %596 = vsyncpa [#allocation3], 1 }
 0x313   :  { %597 = vsyncpa [#allocation5], 1 }
 0x314   :  { %598 = vsyncpa [#allocation8], 1 }
 0x315   :  { %599 = vsyncpa [#allocation11], 1 }

</bundles_post_ra>
